<compile_context>
chip_gen: v5e
topology: v5e:2x2
jax: 0.10.0
libtpu: 0.0.40
codegen_flags: <defaults>
</compile_context>

<pallas_src>
import functools

import jax
import jax.numpy as jnp
from jax.experimental import pallas as pl
from jax.experimental.pallas import tpu as pltpu


# ---------------------------------------------------------------------------
# Pallas kernel: conv1 -> relu -> conv2 -> relu -> conv3 -> residual add.
# Operates on one (batch, output-row strip) tile in NHWC; stores a lane-dense
# flat-NCHW (Cout, th_out*Wo) block.
# ---------------------------------------------------------------------------
def _pnn_kernel(x_ref, w1_ref, b1_ref, w2_ref, b2_ref, w3_ref, b3_ref, o_ref,
                *, kernels, scope):
    x = x_ref[0, 0]                                   # (th_in, W, Cin) f32
    # Cast once to bf16 *before* im2col: the tap concat / patch matrices are
    # half the bytes. The f32 strip is kept only for the residual add.
    xb = x.astype(jnp.bfloat16)

    def conv_valid(inp, k, w_ref, b_ref, relu, out_dtype):
        # inp: (h, w, ci) bf16 ; w_ref: (k*k*ci, co) bf16 ; b_ref: (1, co) f32
        h, w, ci = inp.shape
        ho, wo = h - k + 1, w - k + 1
        # im2col: one concatenated (already-bf16) patch matrix -> ONE MXU
        # matmul per layer with f32 accumulation.
        taps = [inp[dh:dh + ho, dw:dw + wo, :]
                for dh in range(k) for dw in range(k)]
        patches = jnp.concatenate(taps, axis=-1)      # (ho, wo, k*k*ci) bf16
        patches = patches.reshape(ho * wo, k * k * ci)
        acc = jnp.dot(patches, w_ref[...],
                      preferred_element_type=jnp.float32)
        acc = acc + b_ref[...]                        # (1, co) broadcasts
        if relu:
            acc = jnp.maximum(acc, 0.0)
        return acc.astype(out_dtype).reshape(ho, wo, w_ref.shape[-1])

    k1, k2, k3 = kernels
    h1 = conv_valid(xb, k1, w1_ref, b1_ref, relu=True, out_dtype=jnp.bfloat16)
    h2 = conv_valid(h1, k2, w2_ref, b2_ref, relu=True, out_dtype=jnp.bfloat16)
    h3 = conv_valid(h2, k3, w3_ref, b3_ref, relu=False, out_dtype=jnp.float32)

    tho, wo, co = h3.shape
    residual = x[scope:scope + tho, scope:scope + wo, :co]     # f32, exact
    out2d = (h3 + residual).reshape(tho * wo, co)
    # Transpose in-kernel so the store is lane-dense flat NCHW: (Cout, M).
    o_ref[0] = jnp.transpose(out2d).astype(o_ref.dtype)


# ---------------------------------------------------------------------------
# VMEM-aware row-strip sizing
# ---------------------------------------------------------------------------
def _strip_vmem_bytes(th_out, W, Cin, kernels, chans):
    """Conservative (summed) VMEM footprint of one row-strip's live buffers."""
    k1, k2, k3 = kernels
    c1, c2, c3 = chans
    halo = (k1 - 1) + (k2 - 1) + (k3 - 1)
    th_in = th_out + halo
    h1, w1 = th_out + (k2 - 1) + (k3 - 1), W - (k1 - 1)
    h2, w2 = th_out + (k3 - 1), w1 - (k2 - 1)
    h3, w3 = th_out, w2 - (k3 - 1)
    b = 0
    b += 2 * th_in * W * Cin * 4          # f32 input block, double-buffered
    b += th_in * W * Cin * 2              # bf16 copy of the strip
    b += h1 * w1 * (k1 * k1 * Cin) * 2    # layer-1 patch matrix (bf16)
    b += h1 * w1 * c1 * (4 + 2)           # h1: f32 matmul result + bf16 cast
    b += h2 * w2 * (k2 * k2 * c1) * 2     # layer-2 patch matrix (dominant)
    b += h2 * w2 * c2 * (4 + 2)           # h2
    b += h3 * w3 * (k3 * k3 * c2) * 2     # layer-3 patch matrix
    b += h3 * w3 * c3 * 4 * 2             # h3 + residual sum
    b += 2 * h3 * w3 * c3 * 4             # output block, double-buffered
    return b


def _pick_row_tile(Ho, W, Cin, kernels, chans, budget_bytes, max_rows):
    """Largest output-row strip that fits the VMEM budget (never the whole
    image as a fallback). Prefers a divisor of Ho; otherwise pads the bottom
    rows (returned as pad_rows, sliced off by the wrapper)."""
    cap = max(1, min(Ho, max_rows))
    th = 1
    for t in range(cap, 0, -1):
        if _strip_vmem_bytes(t, W, Cin, kernels, chans) <= budget_bytes:
            th = t
            break
    for d in range(th, 0, -1):            # largest divisor of Ho <= th
        if Ho % d == 0:
            if 2 * d >= th:               # close enough -> no ragged padding
                return d, 0
            break
    n_strips = -(-Ho // th)
    return th, n_strips * th - Ho


def _default_vmem_limit_bytes():
    # ~78% of physical VMEM: ~100 MiB on 128-MiB parts (v5e/v6e), ~50 MiB on
    # 64-MiB parts (v7x) — well above the 16/32 MiB scoped defaults.
    phys = 64 * 1024 * 1024
    try:
        phys = int(getattr(pltpu.get_tpu_info(), "vmem_capacity_bytes", phys))
    except Exception:
        pass
    return max(32 * 1024 * 1024, int(phys * 0.78))


# ---------------------------------------------------------------------------
# Wrapper (NCHW in / NCHW out, like the PyTorch module)
# ---------------------------------------------------------------------------
@functools.partial(jax.jit,
                   static_argnames=("scope", "th_out", "pad_rows",
                                    "vmem_limit_bytes"))
def _pnn_forward_impl(x_nchw, params, *, scope, th_out, pad_rows,
                      vmem_limit_bytes):
    (w1, b1), (w2, b2), (w3, b3) = params             # OIHW weights, (C,) bias
    N, Cin, H, W = x_nchw.shape
    k1, k2, k3 = w1.shape[-1], w2.shape[-1], w3.shape[-1]
    halo = (k1 - 1) + (k2 - 1) + (k3 - 1)
    Ho, Wo = H - halo, W - halo
    Cout = w3.shape[0]

    # NHWC activations for the kernel.
    x = jnp.transpose(x_nchw, (0, 2, 3, 1)).astype(jnp.float32)   # (N,H,W,Cin)
    if pad_rows:
        x = jnp.pad(x, ((0, 0), (0, pad_rows), (0, 0), (0, 0)))

    # Pack weights once: OIHW -> (KH*KW*Ci, Co), matching the im2col
    # (tap-major, channel-minor) concat order. bf16 for the MXU.
    def pack_w(w):
        co, ci, kh, kw = w.shape
        return jnp.transpose(w, (2, 3, 1, 0)).reshape(kh * kw * ci, co)

    w1p = pack_w(w1).astype(jnp.bfloat16)
    w2p = pack_w(w2).astype(jnp.bfloat16)
    w3p = pack_w(w3).astype(jnp.bfloat16)
    b1r = b1.reshape(1, -1).astype(jnp.float32)
    b2r = b2.reshape(1, -1).astype(jnp.float32)
    b3r = b3.reshape(1, -1).astype(jnp.float32)

    n_strips = (Ho + pad_rows) // th_out
    th_in = th_out + halo
    # TODO(synk): read overlapping halo strips straight from HBM (pl.Element /
    # manual DMA) instead of materialising this halo-duplicated copy.
    x_strips = jnp.stack(
        [x[:, s * th_out:s * th_out + th_in] for s in range(n_strips)],
        axis=1)                                       # (N, S, th_in, W, Cin)

    out_flat = pl.pallas_call(
        functools.partial(_pnn_kernel, kernels=(k1, k2, k3), scope=scope),
        grid=(N, n_strips),
        in_specs=[
            pl.BlockSpec((1, 1, th_in, W, Cin), lambda b, s: (b, s, 0, 0, 0)),
            pl.BlockSpec(w1p.shape, lambda b, s: (0, 0)),
            pl.BlockSpec(b1r.shape, lambda b, s: (0, 0)),
            pl.BlockSpec(w2p.shape, lambda b, s: (0, 0)),
            pl.BlockSpec(b2r.shape, lambda b, s: (0, 0)),
            pl.BlockSpec(w3p.shape, lambda b, s: (0, 0)),
            pl.BlockSpec(b3r.shape, lambda b, s: (0, 0)),
        ],
        # Flat-NCHW output: strip s owns a contiguous lane-dense
        # (Cout, th_out*Wo) block of (N, Cout, (Ho+pad)*Wo).
        out_specs=pl.BlockSpec((1, Cout, th_out * Wo), lambda b, s: (b, 0, s)),
        out_shape=jax.ShapeDtypeStruct((N, Cout, n_strips * th_out * Wo),
                                       jnp.float32),
        compiler_params=pltpu.CompilerParams(
            dimension_semantics=("parallel", "parallel"),
            vmem_limit_bytes=vmem_limit_bytes),
    )(x_strips, w1p, b1r, w2p, b2r, w3p, b3r)

    # Free reshape; slicing drops the padded rows (no-op when pad_rows == 0).
    out = out_flat.reshape(N, Cout, n_strips * th_out, Wo)
    return out[:, :, :Ho]


def pnn_forward(x_nchw, params, *, scope, row_tile=None, vmem_limit_bytes=None):
    """NCHW -> NCHW forward matching the PyTorch PNN module."""
    (w1, _), (w2, _), (w3, _) = params
    N, Cin, H, W = x_nchw.shape
    k1, k2, k3 = w1.shape[-1], w2.shape[-1], w3.shape[-1]
    halo = (k1 - 1) + (k2 - 1) + (k3 - 1)
    assert halo == 2 * scope, "scope must be half the total receptive-field loss"
    Ho = H - halo

    if vmem_limit_bytes is None:
        vmem_limit_bytes = _default_vmem_limit_bytes()
    chans = (w1.shape[0], w2.shape[0], w3.shape[0])
    # Leave headroom for weights / compiler-internal scratch below the limit.
    budget = max(int(vmem_limit_bytes * 0.85) - (4 << 20), 1 << 20)
    max_rows = row_tile if row_tile is not None else 256
    th_out, pad_rows = _pick_row_tile(Ho, W, Cin, (k1, k2, k3), chans,
                                      budget, max_rows)
    return _pnn_forward_impl(x_nchw, params, scope=scope, th_out=th_out,
                             pad_rows=pad_rows,
                             vmem_limit_bytes=int(vmem_limit_bytes))


# ---------------------------------------------------------------------------
# Pure-JAX reference (NCHW, like torch) for verification
# ---------------------------------------------------------------------------
def pnn_reference(x, params, scope):
    (w1, b1), (w2, b2), (w3, b3) = params

    def conv(a, w, b):
        y = jax.lax.conv_general_dilated(
            a, w, window_strides=(1, 1), padding="VALID",
            dimension_numbers=("NCHW", "OIHW", "NCHW"))
        return y + b[None, :, None, None]

    h = jnp.maximum(conv(x, w1, b1), 0.0)
    h = jnp.maximum(conv(h, w2, b2), 0.0)
    h = conv(h, w3, b3)
    return h + x[:, :-1, scope:-scope, scope:-scope]


# ---------------------------------------------------------------------------
def make_params(key, in_channels, kernels):
    """Deterministic synthetic conv params (OIHW weights, 1-D biases)."""
    sizes = [(48, in_channels, kernels[0]),
             (32, 48, kernels[1]),
             (in_channels - 1, 32, kernels[2])]
    params = []
    for (co, ci, k) in sizes:
        key, kw_, kb_ = jax.random.split(key, 3)
        fan_in = ci * k * k
        w = jax.random.normal(kw_, (co, ci, k, k), jnp.float32) / jnp.sqrt(fan_in)
        b = jax.random.normal(kb_, (co,), jnp.float32) * 0.01
        params.append((w, b))
    return params


if __name__ == "__main__":
    in_channels = 4
    kernels = [3, 3, 3]
    scope = sum(k - 1 for k in kernels) // 2   # = 3

    key = jax.random.PRNGKey(0)
    key, kx = jax.random.split(key)
    x = jax.random.normal(kx, (2, in_channels, 16, 16), jnp.float32)  # NCHW

    params = make_params(key, in_channels, kernels)

    out = jax.block_until_ready(pnn_forward(x, params, scope=scope))
    ref = jax.block_until_ready(pnn_reference(x, params, scope))

    assert out.shape == ref.shape == (2, in_channels - 1, 10, 10), out.shape
    # bf16 MXU operands with f32 accumulation -> ~1e-2 worst-case deviation.
    err = float(jnp.max(jnp.abs(out - ref)))
    assert err < 3e-2, err

    print("KERNEL_OK")
</pallas_src>

<mosaic_0001>
module attributes {stable_mosaic.version = 11 : i64} {
  func.func @_pnn_kernel(%arg0: i32, %arg1: i32, %arg2: memref<1x1x16x16x4xf32, #tpu.memory_space<vmem>>, %arg3: memref<36x48xbf16, #tpu.memory_space<vmem>>, %arg4: memref<1x48xf32, #tpu.memory_space<vmem>>, %arg5: memref<432x32xbf16, #tpu.memory_space<vmem>>, %arg6: memref<1x32xf32, #tpu.memory_space<vmem>>, %arg7: memref<288x3xbf16, #tpu.memory_space<vmem>>, %arg8: memref<1x3xf32, #tpu.memory_space<vmem>>, %arg9: memref<1x3x100xf32, #tpu.memory_space<vmem>>) attributes {dimension_semantics = [#tpu.dimension_semantics<parallel>, #tpu.dimension_semantics<parallel>], iteration_bounds = array<i64: 2, 1>, scalar_prefetch = 0 : i64, scratch_operands = 0 : i64, tpu.core_type = #tpu.core_type<tc>, window_params = [{transform_indices = @transform_0, window_bounds = array<i64: 1, 1, 16, 16, 4>}, {pipeline_mode = #tpu.pipeline_mode<synchronous>, transform_indices = @transform_1, window_bounds = array<i64: 36, 48>}, {pipeline_mode = #tpu.pipeline_mode<synchronous>, transform_indices = @transform_2, window_bounds = array<i64: 1, 48>}, {pipeline_mode = #tpu.pipeline_mode<synchronous>, transform_indices = @transform_3, window_bounds = array<i64: 432, 32>}, {pipeline_mode = #tpu.pipeline_mode<synchronous>, transform_indices = @transform_4, window_bounds = array<i64: 1, 32>}, {pipeline_mode = #tpu.pipeline_mode<synchronous>, transform_indices = @transform_5, window_bounds = array<i64: 288, 3>}, {pipeline_mode = #tpu.pipeline_mode<synchronous>, transform_indices = @transform_6, window_bounds = array<i64: 1, 3>}, {transform_indices = @transform_7, window_bounds = array<i64: 1, 3, 100>}]} {
    %c0 = arith.constant 0 : index
    %c0_0 = arith.constant 0 : index
    %c0_1 = arith.constant 0 : index
    %c0_2 = arith.constant 0 : index
    %c0_3 = arith.constant 0 : index
    %0 = vector.load %arg2[%c0, %c0_0, %c0_1, %c0_2, %c0_3] : memref<1x1x16x16x4xf32, #tpu.memory_space<vmem>>, vector<1x1x16x16x4xf32>
    %1 = vector.shape_cast %0 : vector<1x1x16x16x4xf32> to vector<16x16x4xf32>
    %2 = arith.truncf %1 : vector<16x16x4xf32> to vector<16x16x4xbf16>
    %3 = vector.extract_strided_slice %2 {offsets = [0, 0, 0], sizes = [14, 14, 4], strides = [1, 1, 1]} : vector<16x16x4xbf16> to vector<14x14x4xbf16>
    %4 = vector.extract_strided_slice %2 {offsets = [0, 1, 0], sizes = [14, 14, 4], strides = [1, 1, 1]} : vector<16x16x4xbf16> to vector<14x14x4xbf16>
    %5 = vector.extract_strided_slice %2 {offsets = [0, 2, 0], sizes = [14, 14, 4], strides = [1, 1, 1]} : vector<16x16x4xbf16> to vector<14x14x4xbf16>
    %6 = vector.extract_strided_slice %2 {offsets = [1, 0, 0], sizes = [14, 14, 4], strides = [1, 1, 1]} : vector<16x16x4xbf16> to vector<14x14x4xbf16>
    %7 = vector.extract_strided_slice %2 {offsets = [1, 1, 0], sizes = [14, 14, 4], strides = [1, 1, 1]} : vector<16x16x4xbf16> to vector<14x14x4xbf16>
    %8 = vector.extract_strided_slice %2 {offsets = [1, 2, 0], sizes = [14, 14, 4], strides = [1, 1, 1]} : vector<16x16x4xbf16> to vector<14x14x4xbf16>
    %9 = vector.extract_strided_slice %2 {offsets = [2, 0, 0], sizes = [14, 14, 4], strides = [1, 1, 1]} : vector<16x16x4xbf16> to vector<14x14x4xbf16>
    %10 = vector.extract_strided_slice %2 {offsets = [2, 1, 0], sizes = [14, 14, 4], strides = [1, 1, 1]} : vector<16x16x4xbf16> to vector<14x14x4xbf16>
    %11 = vector.extract_strided_slice %2 {offsets = [2, 2, 0], sizes = [14, 14, 4], strides = [1, 1, 1]} : vector<16x16x4xbf16> to vector<14x14x4xbf16>
    %12 = tpu.concatenate %3, %4, %5, %6, %7, %8, %9, %10, %11 in 2 : vector<14x14x4xbf16>, vector<14x14x4xbf16>, vector<14x14x4xbf16>, vector<14x14x4xbf16>, vector<14x14x4xbf16>, vector<14x14x4xbf16>, vector<14x14x4xbf16>, vector<14x14x4xbf16>, vector<14x14x4xbf16> -> vector<14x14x36xbf16>
    %13 = vector.shape_cast %12 : vector<14x14x36xbf16> to vector<196x36xbf16>
    %c0_4 = arith.constant 0 : index
    %c0_5 = arith.constant 0 : index
    %14 = vector.load %arg3[%c0_4, %c0_5] : memref<36x48xbf16, #tpu.memory_space<vmem>>, vector<36x48xbf16>
    %cst = arith.constant dense<0.000000e+00> : vector<196x48xf32>
    %15 = tpu.matmul %13, %14, %cst {dimension_numbers = #tpu.dot_dimension_numbers<[1], [0], [0], [1], [0, 0, 1, 1], [], []>} : vector<196x36xbf16>, vector<36x48xbf16>, vector<196x48xf32> -> vector<196x48xf32>
    %c0_6 = arith.constant 0 : index
    %c0_7 = arith.constant 0 : index
    %16 = vector.load %arg4[%c0_6, %c0_7] : memref<1x48xf32, #tpu.memory_space<vmem>>, vector<1x48xf32>
    %17 = vector.broadcast %16 : vector<1x48xf32> to vector<196x48xf32>
    %18 = arith.addf %15, %17 : vector<196x48xf32>
    %cst_8 = arith.constant 0.000000e+00 : f32
    %19 = vector.broadcast %cst_8 : f32 to vector<196x48xf32>
    %20 = arith.maximumf %18, %19 : vector<196x48xf32>
    %21 = arith.truncf %20 : vector<196x48xf32> to vector<196x48xbf16>
    %22 = vector.shape_cast %21 : vector<196x48xbf16> to vector<14x14x48xbf16>
    %23 = vector.extract_strided_slice %22 {offsets = [0, 0, 0], sizes = [12, 12, 48], strides = [1, 1, 1]} : vector<14x14x48xbf16> to vector<12x12x48xbf16>
    %24 = vector.extract_strided_slice %22 {offsets = [0, 1, 0], sizes = [12, 12, 48], strides = [1, 1, 1]} : vector<14x14x48xbf16> to vector<12x12x48xbf16>
    %25 = vector.extract_strided_slice %22 {offsets = [0, 2, 0], sizes = [12, 12, 48], strides = [1, 1, 1]} : vector<14x14x48xbf16> to vector<12x12x48xbf16>
    %26 = vector.extract_strided_slice %22 {offsets = [1, 0, 0], sizes = [12, 12, 48], strides = [1, 1, 1]} : vector<14x14x48xbf16> to vector<12x12x48xbf16>
    %27 = vector.extract_strided_slice %22 {offsets = [1, 1, 0], sizes = [12, 12, 48], strides = [1, 1, 1]} : vector<14x14x48xbf16> to vector<12x12x48xbf16>
    %28 = vector.extract_strided_slice %22 {offsets = [1, 2, 0], sizes = [12, 12, 48], strides = [1, 1, 1]} : vector<14x14x48xbf16> to vector<12x12x48xbf16>
    %29 = vector.extract_strided_slice %22 {offsets = [2, 0, 0], sizes = [12, 12, 48], strides = [1, 1, 1]} : vector<14x14x48xbf16> to vector<12x12x48xbf16>
    %30 = vector.extract_strided_slice %22 {offsets = [2, 1, 0], sizes = [12, 12, 48], strides = [1, 1, 1]} : vector<14x14x48xbf16> to vector<12x12x48xbf16>
    %31 = vector.extract_strided_slice %22 {offsets = [2, 2, 0], sizes = [12, 12, 48], strides = [1, 1, 1]} : vector<14x14x48xbf16> to vector<12x12x48xbf16>
    %32 = tpu.concatenate %23, %24, %25, %26, %27, %28, %29, %30, %31 in 2 : vector<12x12x48xbf16>, vector<12x12x48xbf16>, vector<12x12x48xbf16>, vector<12x12x48xbf16>, vector<12x12x48xbf16>, vector<12x12x48xbf16>, vector<12x12x48xbf16>, vector<12x12x48xbf16>, vector<12x12x48xbf16> -> vector<12x12x432xbf16>
    %33 = vector.shape_cast %32 : vector<12x12x432xbf16> to vector<144x432xbf16>
    %c0_9 = arith.constant 0 : index
    %c0_10 = arith.constant 0 : index
    %34 = vector.load %arg5[%c0_9, %c0_10] : memref<432x32xbf16, #tpu.memory_space<vmem>>, vector<432x32xbf16>
    %cst_11 = arith.constant dense<0.000000e+00> : vector<144x32xf32>
    %35 = tpu.matmul %33, %34, %cst_11 {dimension_numbers = #tpu.dot_dimension_numbers<[1], [0], [0], [1], [0, 0, 1, 1], [], []>} : vector<144x432xbf16>, vector<432x32xbf16>, vector<144x32xf32> -> vector<144x32xf32>
    %c0_12 = arith.constant 0 : index
    %c0_13 = arith.constant 0 : index
    %36 = vector.load %arg6[%c0_12, %c0_13] : memref<1x32xf32, #tpu.memory_space<vmem>>, vector<1x32xf32>
    %37 = vector.broadcast %36 : vector<1x32xf32> to vector<144x32xf32>
    %38 = arith.addf %35, %37 : vector<144x32xf32>
    %cst_14 = arith.constant 0.000000e+00 : f32
    %39 = vector.broadcast %cst_14 : f32 to vector<144x32xf32>
    %40 = arith.maximumf %38, %39 : vector<144x32xf32>
    %41 = arith.truncf %40 : vector<144x32xf32> to vector<144x32xbf16>
    %42 = vector.shape_cast %41 : vector<144x32xbf16> to vector<12x12x32xbf16>
    %43 = vector.extract_strided_slice %42 {offsets = [0, 0, 0], sizes = [10, 10, 32], strides = [1, 1, 1]} : vector<12x12x32xbf16> to vector<10x10x32xbf16>
    %44 = vector.extract_strided_slice %42 {offsets = [0, 1, 0], sizes = [10, 10, 32], strides = [1, 1, 1]} : vector<12x12x32xbf16> to vector<10x10x32xbf16>
    %45 = vector.extract_strided_slice %42 {offsets = [0, 2, 0], sizes = [10, 10, 32], strides = [1, 1, 1]} : vector<12x12x32xbf16> to vector<10x10x32xbf16>
    %46 = vector.extract_strided_slice %42 {offsets = [1, 0, 0], sizes = [10, 10, 32], strides = [1, 1, 1]} : vector<12x12x32xbf16> to vector<10x10x32xbf16>
    %47 = vector.extract_strided_slice %42 {offsets = [1, 1, 0], sizes = [10, 10, 32], strides = [1, 1, 1]} : vector<12x12x32xbf16> to vector<10x10x32xbf16>
    %48 = vector.extract_strided_slice %42 {offsets = [1, 2, 0], sizes = [10, 10, 32], strides = [1, 1, 1]} : vector<12x12x32xbf16> to vector<10x10x32xbf16>
    %49 = vector.extract_strided_slice %42 {offsets = [2, 0, 0], sizes = [10, 10, 32], strides = [1, 1, 1]} : vector<12x12x32xbf16> to vector<10x10x32xbf16>
    %50 = vector.extract_strided_slice %42 {offsets = [2, 1, 0], sizes = [10, 10, 32], strides = [1, 1, 1]} : vector<12x12x32xbf16> to vector<10x10x32xbf16>
    %51 = vector.extract_strided_slice %42 {offsets = [2, 2, 0], sizes = [10, 10, 32], strides = [1, 1, 1]} : vector<12x12x32xbf16> to vector<10x10x32xbf16>
    %52 = tpu.concatenate %43, %44, %45, %46, %47, %48, %49, %50, %51 in 2 : vector<10x10x32xbf16>, vector<10x10x32xbf16>, vector<10x10x32xbf16>, vector<10x10x32xbf16>, vector<10x10x32xbf16>, vector<10x10x32xbf16>, vector<10x10x32xbf16>, vector<10x10x32xbf16>, vector<10x10x32xbf16> -> vector<10x10x288xbf16>
    %53 = vector.shape_cast %52 : vector<10x10x288xbf16> to vector<100x288xbf16>
    %c0_15 = arith.constant 0 : index
    %c0_16 = arith.constant 0 : index
    %54 = vector.load %arg7[%c0_15, %c0_16] : memref<288x3xbf16, #tpu.memory_space<vmem>>, vector<288x3xbf16>
    %cst_17 = arith.constant dense<0.000000e+00> : vector<100x3xf32>
    %55 = tpu.matmul %53, %54, %cst_17 {dimension_numbers = #tpu.dot_dimension_numbers<[1], [0], [0], [1], [0, 0, 1, 1], [], []>} : vector<100x288xbf16>, vector<288x3xbf16>, vector<100x3xf32> -> vector<100x3xf32>
    %c0_18 = arith.constant 0 : index
    %c0_19 = arith.constant 0 : index
    %56 = vector.load %arg8[%c0_18, %c0_19] : memref<1x3xf32, #tpu.memory_space<vmem>>, vector<1x3xf32>
    %57 = vector.broadcast %56 : vector<1x3xf32> to vector<100x3xf32>
    %58 = arith.addf %55, %57 : vector<100x3xf32>
    %59 = vector.shape_cast %58 : vector<100x3xf32> to vector<10x10x3xf32>
    %60 = vector.extract_strided_slice %1 {offsets = [3, 3, 0], sizes = [10, 10, 3], strides = [1, 1, 1]} : vector<16x16x4xf32> to vector<10x10x3xf32>
    %61 = arith.addf %59, %60 : vector<10x10x3xf32>
    %62 = vector.shape_cast %61 : vector<10x10x3xf32> to vector<100x3xf32>
    %63 = tpu.transpose %62, [1, 0] : vector<100x3xf32> -> vector<3x100xf32>
    %c0_20 = arith.constant 0 : index
    %c0_21 = arith.constant 0 : index
    %c0_22 = arith.constant 0 : index
    %64 = vector.load %arg9[%c0_20, %c0_21, %c0_22] : memref<1x3x100xf32, #tpu.memory_space<vmem>>, vector<1x3x100xf32>
    %65 = vector.shape_cast %64 : vector<1x3x100xf32> to vector<3x100xf32>
    %66 = vector.shape_cast %63 : vector<3x100xf32> to vector<1x3x100xf32>
    tpu.vector_store %arg9[%c0_20, %c0_21, %c0_22], %66 {strides = array<i32>} : memref<1x3x100xf32, #tpu.memory_space<vmem>>, vector<1x3x100xf32>,
    return
  }
  func.func @transform_0(%arg0: i32, %arg1: i32) -> (i32, i32, i32, i32, i32) {
    %c0_i32 = arith.constant 0 : i32
    %c0_i32_0 = arith.constant 0 : i32
    %c0_i32_1 = arith.constant 0 : i32
    %c0_i32_2 = arith.constant 0 : i32
    return %arg0, %arg1, %c0_i32, %c0_i32_0, %c0_i32_1 : i32, i32, i32, i32, i32
  }
  func.func @transform_1(%arg0: i32, %arg1: i32) -> (i32, i32) {
    %c0_i32 = arith.constant 0 : i32
    %c0_i32_0 = arith.constant 0 : i32
    %c0_i32_1 = arith.constant 0 : i32
    return %c0_i32, %c0_i32_0 : i32, i32
  }
  func.func @transform_2(%arg0: i32, %arg1: i32) -> (i32, i32) {
    %c0_i32 = arith.constant 0 : i32
    %c0_i32_0 = arith.constant 0 : i32
    %c0_i32_1 = arith.constant 0 : i32
    return %c0_i32, %c0_i32_0 : i32, i32
  }
  func.func @transform_3(%arg0: i32, %arg1: i32) -> (i32, i32) {
    %c0_i32 = arith.constant 0 : i32
    %c0_i32_0 = arith.constant 0 : i32
    %c0_i32_1 = arith.constant 0 : i32
    return %c0_i32, %c0_i32_0 : i32, i32
  }
  func.func @transform_4(%arg0: i32, %arg1: i32) -> (i32, i32) {
    %c0_i32 = arith.constant 0 : i32
    %c0_i32_0 = arith.constant 0 : i32
    %c0_i32_1 = arith.constant 0 : i32
    return %c0_i32, %c0_i32_0 : i32, i32
  }
  func.func @transform_5(%arg0: i32, %arg1: i32) -> (i32, i32) {
    %c0_i32 = arith.constant 0 : i32
    %c0_i32_0 = arith.constant 0 : i32
    %c0_i32_1 = arith.constant 0 : i32
    return %c0_i32, %c0_i32_0 : i32, i32
  }
  func.func @transform_6(%arg0: i32, %arg1: i32) -> (i32, i32) {
    %c0_i32 = arith.constant 0 : i32
    %c0_i32_0 = arith.constant 0 : i32
    %c0_i32_1 = arith.constant 0 : i32
    return %c0_i32, %c0_i32_0 : i32, i32
  }
  func.func @transform_7(%arg0: i32, %arg1: i32) -> (i32, i32, i32) {
    %c0_i32 = arith.constant 0 : i32
    %c0_i32_0 = arith.constant 0 : i32
    return %arg0, %c0_i32, %arg1 : i32, i32, i32
  }
}

</mosaic_0001>

<bundles_post_ra>
// kernel: _pnn_forward_impl.1
= control target key start
LH: loop header
LB: loop body
LE: loop exit
PB: predicated region body
PF: predicated region fallthrough
CT: control target
= control target key end

     0   :  { %s7117_s24 = smov 0   ;;  %s7119_s25 = smov 0   ;;  %s11528_s0 = inlined_call_operand.vmem [shape: f32[2,1,16,16,4], index: 0, kind: input, shape index: {}]   ;;  %s11529_s1 = inlined_call_operand.vmem [shape: bf16[36,48], index: 1, kind: input, shape index: {}]   ;;  %s11530_s2 = inlined_call_operand.vmem [shape: f32[1,48], index: 2, kind: input, shape index: {}]   ;;  %s11531_s3 = inlined_call_operand.vmem [shape: bf16[432,32], index: 3, kind: input, shape index: {}]   ;;  %s11532_s4 = inlined_call_operand.vmem [shape: f32[1,32], index: 4, kind: input, shape index: {}]   ;;  %s11533_s5 = inlined_call_operand.vmem [shape: bf16[288,3], index: 5, kind: input, shape index: {}]   ;;  %s11534_s6 = inlined_call_operand.vmem [shape: f32[1,3], index: 6, kind: input, shape index: {}]   ;;  %s11535_s7 = inlined_call_operand.vmem [shape: f32[2,3,100], index: 7, kind: output, shape index: {}]  }
   0x1   :  { %s7121_s26 = smov 0  }
   0x2 LB: > { %s29_s27 = sadd.s32 1, %s7058_s25  ;;  %p6714_p0 = scmp.ge.s32.totalorder %s7062_s26, 1  ;;  %s7062_s26 = sphi %s7121_s26, %s17_s26   ;;  %s7058_s25 = sphi %s7119_s25, %s12386_s25   ;;  %s7054_s24 = sphi %s7117_s24, %s12385_s24  }
   0x3   : > { %p31_p1 = scmp.ge.s32.totalorder %s29_s27, 2  ;;  %p257_p2 = scmp.lt.s32.totalorder %s7062_s26, 3 }
   0x5   : > { %s12388_s27 = smov (%p31_p1, %s29_s27), 0  ;;  %p258_p3 = pnand %p6714_p0, %p257_p2 }
   0x7   : > { %261 = sbr.rel (%p258_p3) target bundleno = 3228 (0xc9c), region = 48 }
   0xc   : > { %p295_p4 = scmp.lt.s32.totalorder %s7054_s24, 1  ;;  %s7064_s9 = smov 12   ;;  %vm1391_vm0 = vcmask 1041408   ;;  %vm808_vm1 = vcmask 31744   ;;  %vm837_vm2 = vcmask 64512   ;;  %vm866_vm3 = vcmask 97280  }
   0xd   : > { %s7065_s10 = smov 8   ;;  %s7066_s11 = smov 20   ;;  %vm895_vm4 = vcmask 130048   ;;  %vm924_vm5 = vcmask 162816   ;;  %vm953_vm6 = vcmask 195584   ;;  %vm982_vm7 = vcmask 228352  }
   0xe   : > { %s12390_s24 = smov (!%p295_p4, %s7054_s24), 1  ;;  %s7067_s12 = smov 16   ;;  %vm1011_vm8 = vcmask 261120   ;;  %vm1364_vm9 = vcmask 293888   ;;  %vm1576_vm10 = vcmask 1042434   ;;  %vm1572_vm11 = vcmask 1041409  }
   0xf   : > { %s6947_s28 = sshll.u32 %s12390_s24, 8  ;;  %s7068_s13 = smov 4   ;;  %vm1568_vm12 = vcmask 1040384   ;;  %vm11788_vm13 = vcmask 1043459   ;;  %vm3297_vm14 = vcmask 523264   ;;  %vm3248_vm15 = vcmask 785408  }
  0x10   : > { %s7141_s8 = scalar_lea.vmem %s11528_s0, %s6947_s28  ;;  %s7069_s14 = smov 28  }
  0x11   : > { %v314_v0 = vld [vmem:[%s7141_s8 + $0x10] sm:$0xff]  ;;  %v315_v1 = vld [vmem:[%s7141_s8 + $0x18] sm:$0xff]  ;;  %v312_v2 = vld [vmem:[%s7141_s8] sm:$0xff]  ;;  %s7070_s15 = smov 24   ;;  %s7071_s16 = smov 32  }
  0x12   : > { %v346_v3 = vpack.c.bf16 %v314_v0, %v314_v0  ;;  %v347_v4 = vpack.c.bf16 %v315_v1, %v315_v1  ;;  %v313_v5 = vld [vmem:[%s7141_s8 + $0x8] sm:$0xff]  ;;  %v344_v6 = vpack.c.bf16 %v312_v2, %v312_v2  ;;  %v316_v8 = vld [vmem:[%s7141_s8 + $0x20] sm:$0xff]  ;;  %v7171_v31 = vld [vmem:[%s7141_s8 + $0x30] sm:$0xff] }
  0x13   : > { %v345_v7 = vpack.c.bf16 %v313_v5, %v313_v5  ;;  %v317_v9 = vld [vmem:[%s7141_s8 + $0x28] sm:$0xff]  ;;  %v348_v15 = vpack.c.bf16 %v316_v8, %v316_v8  ;;  %11801 = vst [vmem:[#allocation2_spill] sm:$0xff] %v7171_v31  ;;  %v7174_v32 = vld [vmem:[%s7141_s8 + $0x38] sm:$0xff]  ;;  %v350_v35 = vpack.c.bf16 %v7171_v31, %v7171_v31  ;;  %v7194_v46 = vld [vmem:[%s7141_s8 + $0x40] sm:$0xff] }
  0x14   : > { %v406_v10 = vunpack.c.l.b16 %v346_v3  ;;  %v407_v11 = vunpack.c.l.b16 %v347_v4  ;;  %v404_v12 = vunpack.c.l.b16 %v344_v6  ;;  %v349_v16 = vpack.c.bf16 %v317_v9, %v317_v9  ;;  %11802 = vst [vmem:[#allocation3_spill] sm:$0xff] %v7174_v32  ;;  %v7197_v47 = vld [vmem:[%s7141_s8 + $0x48] sm:$0xff]  ;;  %v7222_v60 = vld [vmem:[%s7141_s8 + $0x50] sm:$0xff]  ;;  %v7225_v61 = vld [vmem:[%s7141_s8 + $0x58] sm:$0xff] }
  0x15   : > { %v405_v13 = vunpack.c.l.b16 %v345_v7  ;;  %v408_v21 = vunpack.c.l.b16 %v348_v15  ;;  %v351_v36 = vpack.c.bf16 %v7174_v32, %v7174_v32  ;;  %v410_v39 = vunpack.c.l.b16 %v350_v35  ;;  %11803 = vst [vmem:[#allocation4_spill] sm:$0xff] %v7194_v46  ;;  %v7247_v6 = vld [vmem:[%s7141_s8 + $0x60] sm:$0xff]  ;;  %v7250_v7 = vld [vmem:[%s7141_s8 + $0x68] sm:$0xff] }
  0x16   : > { %v7149_v14 = vpack.c.b16 %v407_v11, %v406_v10  ;;  %v409_v22 = vunpack.c.l.b16 %v349_v16  ;;  %11804 = vst [vmem:[#allocation5_spill] sm:$0xff] %v7197_v47  ;;  %v352_v49 = vpack.c.bf16 %v7194_v46, %v7194_v46  ;;  %v353_v50 = vpack.c.bf16 %v7197_v47, %v7197_v47 }
  0x17   : > { %v7151_v17 = vpack.c.b16 %v405_v13, %v404_v12  ;;  %v411_v40 = vunpack.c.l.b16 %v351_v36  ;;  %11805 = vst [vmem:[#allocation6_spill] sm:$0xff] %v7222_v60  ;;  %v354_v62 = vpack.c.bf16 %v7222_v60, %v7222_v60  ;;  %v355_v63 = vpack.c.bf16 %v7225_v61, %v7225_v61 }
  0x18   : > { %619 = vrot.lane.b32.xlu1 %v7149_v14, %s7064_s9  ;;  %v573_v18 = vrot.slane %v7149_v14, 1  ;;  %v456_v19 = vshll.u32 %v7149_v14, 16  ;;  %v454_v23 = vshrl.u32 %v7149_v14, 16  ;;  %v7161_v25 = vpack.c.b16 %v409_v22, %v408_v21  ;;  %11806 = vst [vmem:[#allocation7_spill] sm:$0xff] %v7225_v61  ;;  %v7271_v21 = vld [vmem:[%s7141_s8 + $0x70] sm:$0xff]  ;;  %v7274_v22 = vld [vmem:[%s7141_s8 + $0x78] sm:$0xff] }
  0x19   : > { %v572_v20 = vrot.slane %v7151_v17, 1  ;;  %v449_v26 = vshll.u32 %v7151_v17, 16  ;;  %v447_v29 = vshrl.u32 %v7151_v17, 16  ;;  %v7185_v42 = vpack.c.b16 %v411_v40, %v410_v39  ;;  %11807 = vst [vmem:[#allocation8_spill] sm:$0xff] %v7247_v6 }
  0x1a   : > { %588 = vrot.lane.b32.xlu2 %v573_v18, %s7065_s10  ;;  %v458_v24 = vrot.slane %v456_v19, 1  ;;  %v463_v28 = vshll.u32 %v7161_v25, 16  ;;  %v461_v33 = vshrl.u32 %v7161_v25, 16  ;;  %v574_v41 = vrot.slane %v7161_v25, 1  ;;  %11808 = vst [vmem:[#allocation9_spill] sm:$0xff] %v7250_v7 }
  0x1b   : > { %586 = vrot.lane.b32.xlu0 %v572_v20, %s7065_s10  ;;  %v451_v30 = vrot.slane %v449_v26, 1  ;;  %v470_v43 = vshll.u32 %v7185_v42, 16  ;;  %v468_v44 = vshrl.u32 %v7185_v42, 16  ;;  %v412_v51 = vunpack.c.l.b16 %v352_v49  ;;  %11809 = vst [vmem:[#allocation10_spill] sm:$0xff] %v7271_v21  ;;  %v1142_v49 = vld [vmem:[%s11529_s1 + $0x10] sm:$0x3] }
  0x1c   : > { %v459_v27 = vor.u32 %v458_v24, %v454_v23  ;;  %v465_v34 = vrot.slane %v463_v28, 1  ;;  %v413_v52 = vunpack.c.l.b16 %v353_v50  ;;  %v575_v53 = vrot.slane %v7185_v42, 1  ;;  %11810 = vst [vmem:[#allocation11_spill] sm:$0xff] %v7274_v22 }
  0x1d   : > { %v452_v37 = vor.u32 %v451_v30, %v447_v29  ;;  %v472_v45 = vrot.slane %v470_v43, 1  ;;  %v414_v0 = vunpack.c.l.b16 %v354_v62  ;;  %v415_v1 = vunpack.c.l.b16 %v355_v63 }
  0x1e   : > { %v466_v38 = vor.u32 %v465_v34, %v461_v33  ;;  %v7209_v54 = vpack.c.b16 %v413_v52, %v412_v51  ;;  %v356_v9 = vpack.c.bf16 %v7247_v6, %v7247_v6  ;;  %v357_v10 = vpack.c.bf16 %v7250_v7, %v7250_v7 }
  0x1f   : > { %v473_v48 = vor.u32 %v472_v45, %v468_v44  ;;  %v7238_v2 = vpack.c.b16 %v415_v1, %v414_v0  ;;  %v358_v24 = vpack.c.bf16 %v7271_v21, %v7271_v21  ;;  %v359_v26 = vpack.c.bf16 %v7274_v22, %v7274_v22  ;;  %v7308_v44 = vld [vmem:[%s7141_s8 + $0x80] sm:$0xff]  ;;  %v7311_v45 = vld [vmem:[%s7141_s8 + $0x88] sm:$0xff] }
  0x20   : > { %683 = vrot.lane.b32.xlu1 %v573_v18, %s7066_s11  ;;  %v477_v55 = vshll.u32 %v7209_v54, 16  ;;  %v475_v56 = vshrl.u32 %v7209_v54, 16  ;;  %v576_v59 = vrot.slane %v7209_v54, 1  ;;  %v416_v12 = vunpack.c.l.b16 %v356_v9  ;;  %11811 = vst [vmem:[#allocation12_spill] sm:$0xff] %v7308_v44  ;;  %v6949_v0 = vld [vmem:[%s11529_s1 + $0x8] sm:$0xff]  ;;  %v6948_v9 = vld [vmem:[%s11529_s1] sm:$0xff] }
  0x21   : > { %v484_v3 = vshll.u32 %v7238_v2, 16  ;;  %v482_v4 = vshrl.u32 %v7238_v2, 16  ;;  %v577_v8 = vrot.slane %v7238_v2, 1  ;;  %v417_v13 = vunpack.c.l.b16 %v357_v10  ;;  %11812 = vst [vmem:[#allocation13_spill] sm:$0xff] %v7311_v45 }
  0x22   : > { %654 = vrot.lane.b32.xlu2 %v459_v27, %s7067_s12  ;;  %v479_v57 = vrot.slane %v477_v55, 1  ;;  %v419_v28 = vunpack.c.l.b16 %v359_v26  ;;  %v360_v50 = vpack.c.bf16 %v7308_v44, %v7308_v44  ;;  %v361_v51 = vpack.c.bf16 %v7311_v45, %v7311_v45 }
  0x23   : > { %621 = vrot.lane.b32.xlu0 %v7161_v25, %s7064_s9  ;;  %v486_v5 = vrot.slane %v484_v3, 1  ;;  %v7260_v15 = vpack.c.b16 %v417_v13, %v416_v12  ;;  %v1358_v52 = vunpack.c.l.b16 %v1142_v49 }
  0x24   : > { %v480_v58 = vor.u32 %v479_v57, %v475_v56  ;;  %v420_v57 = vunpack.c.l.b16 %v360_v50 }
  0x25   : > { %v487_v11 = vor.u32 %v486_v5, %v482_v4  ;;  %v491_v16 = vshll.u32 %v7260_v15, 16  ;;  %v489_v18 = vshrl.u32 %v7260_v15, 16  ;;  %v578_v30 = vrot.slane %v7260_v15, 1 }
  0x26   : > { %v1361_v56 = vpack.c.b16 %v1358_v52, %v1358_v52 }
  0x27   : > { %v493_v19 = vrot.slane %v491_v16, 1  ;;  %v7355_v16 = vld [vmem:[%s7141_s8 + $0x90] sm:$0xff] }
  0x28   : > { %546 = vrot.lane.b32.xlu1 %v459_v27, %s7068_s13  ;;  %v418_v27 = vunpack.c.l.b16 %v358_v24  ;;  %11813 = vst [vmem:[#allocation14_spill] sm:$0xff] %v7355_v16 }
  0x29   : > { %v494_v23 = vor.u32 %v493_v19, %v489_v18  ;;  %v7358_v18 = vld [vmem:[%s7141_s8 + $0x98] sm:$0xff] }
  0x2a   : > { %656 = vrot.lane.b32.xlu2 %v466_v38, %s7067_s12  ;;  %v7286_v33 = vpack.c.b16 %v419_v28, %v418_v27  ;;  %11814 = vst [vmem:[#allocation15_spill] sm:$0xff] %v7358_v18  ;;  %v362_v27 = vpack.c.bf16 %v7355_v16, %v7355_v16  ;;  %v363_v28 = vpack.c.bf16 %v7358_v18, %v7358_v18 }
  0x2b   : > { %544 = vrot.lane.b32.xlu0 %v452_v37, %s7068_s13 }
  0x2c   : > { %v498_v34 = vshll.u32 %v7286_v33, 16  ;;  %v496_v36 = vshrl.u32 %v7286_v33, 16  ;;  %v7305_v43 = vrot.slane %v7286_v33, 1 }
  0x2e   : > { %v500_v37 = vrot.slane %v498_v34, 1 }
  0x30   : > { %685 = vrot.lane.b32.xlu1 %v574_v41, %s7066_s11  ;;  %v7298_v39 = vor.u32 %v500_v37, %v496_v36 }
  0x32   : > { %751 = vrot.lane.b32.xlu2 %v466_v38, %s7069_s14 }
  0x33   : > { %716 = vrot.lane.b32.xlu0 %v7161_v25, %s7070_s15 }
  0x38   : > { %780 = vrot.lane.b32.xlu1 %v574_v41, %s7071_s16 }
  0x3a   : > { %753 = vrot.lane.b32.xlu2 %v473_v48, %s7069_s14 }
  0x3b   : > { %718 = vrot.lane.b32.xlu0 %v7185_v42, %s7070_s15 }
  0x40   : > { %548 = vrot.lane.b32.xlu1 %v466_v38, %s7068_s13 }
  0x42   : > { %590 = vrot.lane.b32.xlu2 %v574_v41, %s7065_s10 }
  0x43   : > { %782 = vrot.lane.b32.xlu0 %v575_v53, %s7071_s16 }
  0x48   : > { %658 = vrot.lane.b32.xlu1 %v473_v48, %s7067_s12 }
  0x4a   : > { %687 = vrot.lane.b32.xlu2 %v575_v53, %s7066_s11 }
  0x4b   : > { %623 = vrot.lane.b32.xlu0 %v7185_v42, %s7064_s9 }
  0x50   : > { %755 = vrot.lane.b32.xlu1 %v480_v58, %s7069_s14 }
  0x52   : > { %784 = vrot.lane.b32.xlu2 %v576_v59, %s7071_s16 }
  0x53   : > { %720 = vrot.lane.b32.xlu0 %v7209_v54, %s7070_s15 }
  0x58   : > { %592 = vrot.lane.b32.xlu1 %v575_v53, %s7065_s10 }
  0x5a   : > { %625 = vrot.lane.b32.xlu2 %v7209_v54, %s7064_s9 }
  0x5b   : > { %550 = vrot.lane.b32.xlu0 %v473_v48, %s7068_s13 }
  0x60   : > { %689 = vrot.lane.b32.xlu1 %v576_v59, %s7066_s11 }
  0x62   : > { %722 = vrot.lane.b32.xlu2 %v7238_v2, %s7070_s15 }
  0x63   : > { %660 = vrot.lane.b32.xlu0 %v480_v58, %s7067_s12 }
  0x68   : > { %786 = vrot.lane.b32.xlu1 %v577_v8, %s7071_s16 }
  0x6a   : > { %552 = vrot.lane.b32.xlu2 %v480_v58, %s7068_s13  ;;  %v421_v58 = vunpack.c.l.b16 %v361_v51 }
  0x6b   : > { %757 = vrot.lane.b32.xlu0 %v487_v11, %s7069_s14 }
  0x6c   : > { %v7331_v63 = vpack.c.b16 %v421_v58, %v420_v57 }
  0x6e   : > { %v503_v12 = vshrl.u32 %v7331_v63, 16  ;;  %v7361_v19 = vrot.slane %v7331_v63, 1 }
  0x70   : > { %627 = vrot.lane.b32.xlu1 %v7238_v2, %s7064_s9 }
  0x72   : > { %662 = vrot.lane.b32.xlu2 %v487_v11, %s7067_s12 }
  0x73   : > { %594 = vrot.lane.b32.xlu0 %v576_v59, %s7065_s10  ;;  %v1393_v59 = vsel %vm1391_vm0, %v1361_v56, 0 }
  0x74   : > { %v7268_v20 = vpop.permute.xlu2 %588  ;;  %1400 = vmatpush.bf16.msra.mxu0 %v1393_v59 }
  0x78   : > { %724 = vrot.lane.b32.xlu1 %v7260_v15, %s7070_s15  ;;  %1401 = vmatpush.bf16.msra.mxu0 %v6949_v0 }
  0x7a   : > { %759 = vrot.lane.b32.xlu2 %v494_v23, %s7069_s14 }
  0x7b   : > { %691 = vrot.lane.b32.xlu0 %v577_v8, %s7066_s11 }
  0x7c   : > { %v655_v29 = vpop.permute.xlu2 %654  ;;  %1402 = vmatpush.bf16.msra.mxu0 %v6948_v9 }
  0x80   : > { %554 = vrot.lane.b32.xlu1 %v487_v11, %s7068_s13 }
  0x82   : > { %596 = vrot.lane.b32.xlu2 %v577_v8, %s7065_s10  ;;  %v505_v8 = vshll.u32 %v7331_v63, 16 }
  0x83   : > { %788 = vrot.lane.b32.xlu0 %v578_v30, %s7071_s16 }
  0x84   : > { %v7291_v35 = vpop.permute.xlu2 %656  ;;  %v507_v13 = vrot.slane %v505_v8, 1 }
  0x86   : > { %v508_v34 = vor.u32 %v507_v13, %v503_v12 }
  0x88   : > { %664 = vrot.lane.b32.xlu1 %v494_v23, %s7067_s12 }
  0x8a   : > { %v620_v38 = vpop.permute.xlu1 %619  ;;  %693 = vrot.lane.b32.xlu2 %v578_v30, %s7066_s11 }
  0x8b   : > { %629 = vrot.lane.b32.xlu0 %v7260_v15, %s7064_s9 }
  0x8c   : > { %v7300_v40 = vpop.permute.xlu2 %751 }
  0x8d   : > { %v587_v41 = vpop.permute.xlu0 %586 }
  0x90   : > { %761 = vrot.lane.b32.xlu1 %v7298_v39, %s7069_s14 }
  0x92   : > { %v684_v48 = vpop.permute.xlu1 %683  ;;  %790 = vrot.lane.b32.xlu2 %v7305_v43, %s7071_s16 }
  0x93   : > { %726 = vrot.lane.b32.xlu0 %v7286_v33, %s7070_s15 }
  0x94   : > { %v7324_v53 = vpop.permute.xlu2 %753 }
  0x95   : > { %v622_v55 = vpop.permute.xlu0 %621 }
  0x98   : > { %598 = vrot.lane.b32.xlu1 %v578_v30, %s7065_s10 }
  0x9a   : > { %v547_v62 = vpop.permute.xlu1 %546  ;;  %631 = vrot.lane.b32.xlu2 %v7286_v33, %s7064_s9 }
  0x9b   : > { %556 = vrot.lane.b32.xlu0 %v494_v23, %s7068_s13 }
  0x9c   : > { %v7336_v1 = vpop.permute.xlu2 %590 }
  0x9d   : > { %v545_v3 = vpop.permute.xlu0 %544 }
  0x9e   : > { %v810_v4 = vsel %vm808_vm1, %v7151_v17, %v545_v3 }
  0x9f   : > { %v839_v5 = vsel %vm837_vm2, %v810_v4, %v587_v41  ;;  %v422_v41 = vunpack.c.l.b16 %v362_v27 }
  0xa0   : > { %v868_v10 = vsel %vm866_vm3, %v839_v5, %v620_v38  ;;  %695 = vrot.lane.b32.xlu1 %v7305_v43, %s7066_s11 }
  0xa1   : > { %v897_v17 = vsel %vm895_vm4, %v868_v10, %v655_v29  ;;  %v812_v29 = vsel %vm808_vm1, %v7149_v14, %v547_v62 }
  0xa2   : > { %v686_v11 = vpop.permute.xlu1 %685  ;;  %728 = vrot.lane.b32.xlu2 %v7331_v63, %s7070_s15  ;;  %v926_v26 = vsel %vm924_vm5, %v897_v17, %v684_v48  ;;  %v841_v36 = vsel %vm837_vm2, %v812_v29, %v7268_v20  ;;  %v423_v48 = vunpack.c.l.b16 %v363_v28 }
  0xa3   : > { %666 = vrot.lane.b32.xlu0 %v7298_v39, %s7067_s12  ;;  %v870_v20 = vsel %vm866_vm3, %v841_v36, %v622_v55 }
  0xa4   : > { %v7363_v23 = vpop.permute.xlu2 %687  ;;  %v7386_v58 = vpack.c.b16 %v423_v48, %v422_v41 }
  0xa5   : > { %v717_v24 = vpop.permute.xlu0 %716 }
  0xa6   : > { %v955_v30 = vsel %vm953_vm6, %v926_v26, %v717_v24  ;;  %v512_v62 = vshll.u32 %v7386_v58, 16 }
  0xa7   : > { %v984_v37 = vsel %vm982_vm7, %v955_v30, %v7300_v40 }
  0xa8   : > { %792 = vrot.lane.b32.xlu1 %v7361_v19, %s7071_s16  ;;  %v514_v4 = vrot.slane %v512_v62, 1 }
  0xaa   : > { %v781_v38 = vpop.permute.xlu1 %780  ;;  %558 = vrot.lane.b32.xlu2 %v7298_v39, %s7068_s13  ;;  %v899_v39 = vsel %vm895_vm4, %v870_v20, %v7291_v35  ;;  %v510_v35 = vshrl.u32 %v7386_v58, 16 }
  0xab   : > { %v1013_v14 = vsel %vm1011_vm8, %v984_v37, %v781_v38  ;;  %763 = vrot.lane.b32.xlu0 %v508_v34, %s7069_s14  ;;  %v928_v0 = vsel %vm924_vm5, %v899_v39, %v686_v11  ;;  %v7423_v37 = vld [vmem:[%s7141_s8 + $0xa0] sm:$0xff]  ;;  %v7426_v38 = vld [vmem:[%s7141_s8 + $0xa8] sm:$0xff] }
  0xac   : > { %v1054_v49 = vrot.slane %v1013_v14, 1  ;;  %v1055_v50 = vrot.slane %v1013_v14, 2  ;;  %v1056_v51 = vrot.slane %v1013_v14, 3  ;;  %1147 = vst [vmem:[#allocation1] ss:$9 sm:$0xff] %v1013_v14  ;;  %v7383_v52 = vpop.permute.xlu2 %784  ;;  %v1057_v56 = vrot.slane %v1013_v14, 4 }
  0xad   : > { %v719_v40 = vpop.permute.xlu0 %718  ;;  %v1058_v57 = vrot.slane %v1013_v14, 5  ;;  %v1059_v59 = vrot.slane %v1013_v14, 6  ;;  %v7406_v11 = vor.u32 %v514_v4, %v510_v35  ;;  %11815 = vst [vmem:[#allocation16_spill] sm:$0xff] %v7423_v37  ;;  %v365_v14 = vpack.c.bf16 %v7426_v38, %v7426_v38  ;;  %v7459_v35 = vld [vmem:[%s7141_s8 + $0xb0] sm:$0xff]  ;;  %v7462_v4 = vld [vmem:[%s7141_s8 + $0xb8] sm:$0xff] }
  0xae   : > { %1150 = vst [vmem:[#allocation1 + $0x1] ss:$9 sm:$0xff] %v1054_v49  ;;  %v957_v55 = vsel %vm953_vm6, %v928_v0, %v719_v40 }
  0xaf   : > { %1153 = vst [vmem:[#allocation1 + $0x2] ss:$9 sm:$0xff] %v1055_v50  ;;  %v986_v8 = vsel %vm982_vm7, %v957_v55, %v7324_v53 }
  0xb0   : > { %1156 = vst [vmem:[#allocation1 + $0x3] ss:$9 sm:$0xff] %v1056_v51  ;;  %633 = vrot.lane.b32.xlu1 %v7331_v63, %s7064_s9 }
  0xb1   : > { %1159 = vst [vmem:[#allocation1 + $0x4] ss:$9 sm:$0xff] %v1057_v56 }
  0xb2   : > { %1162 = vst [vmem:[#allocation1 + $0x5] ss:$9 sm:$0xff] %v1058_v57  ;;  %v549_v3 = vpop.permute.xlu1 %548  ;;  %668 = vrot.lane.b32.xlu2 %v508_v34, %s7067_s12  ;;  %v425_v57 = vunpack.c.l.b16 %v365_v14 }
  0xb3   : > { %1165 = vst [vmem:[#allocation1 + $0x6] ss:$9 sm:$0xff] %v1059_v59  ;;  %600 = vrot.lane.b32.xlu0 %v7305_v43, %s7065_s10  ;;  %v814_v43 = vsel %vm808_vm1, %v7161_v25, %v549_v3  ;;  %v581_v25 = vrot.slane %v7386_v58, 1 }
  0xb4   : > { %v7399_v5 = vpop.permute.xlu2 %625  ;;  %v843_v27 = vsel %vm837_vm2, %v814_v43, %v7336_v1  ;;  %11816 = vst [vmem:[#allocation17_spill] sm:$0xff] %v7426_v38 }
  0xb5   : > { %v783_v9 = vpop.permute.xlu0 %782  ;;  %11817 = vst [vmem:[#allocation18_spill] sm:$0xff] %v7459_v35 }
  0xb6   : > { %v1015_v10 = vsel %vm1011_vm8, %v986_v8, %v783_v9  ;;  %11818 = vst [vmem:[#allocation19_spill] sm:$0xff] %v7462_v4 }
  0xb7   : > { %1167 = vst [vmem:[#allocation1 + $0x7] ss:$9 sm:$0xff] %v1015_v10  ;;  %v1060_v12 = vrot.slane %v1015_v10, 1  ;;  %v1061_v24 = vrot.slane %v1015_v10, 2  ;;  %v1062_v28 = vrot.slane %v1015_v10, 3  ;;  %v1063_v30 = vrot.slane %v1015_v10, 4 }
  0xb8   : > { %730 = vrot.lane.b32.xlu1 %v7386_v58, %s7070_s15  ;;  %v1064_v36 = vrot.slane %v1015_v10, 5  ;;  %v1065_v41 = vrot.slane %v1015_v10, 6 }
  0xba   : > { %v659_v17 = vpop.permute.xlu1 %658  ;;  %765 = vrot.lane.b32.xlu2 %v7406_v11, %s7069_s14 }
  0xbb   : > { %697 = vrot.lane.b32.xlu0 %v7361_v19, %s7066_s11 }
  0xbc   : > { %v7414_v53 = vpop.permute.xlu2 %722 }
  0xbd   : > { %v624_v13 = vpop.permute.xlu0 %623 }
  0xbe   : > { %v1168_v26 = vld [vmem:[#allocation1] sm:$0xff]  ;;  %v872_v29 = vsel %vm866_vm3, %v843_v27, %v624_v13 }
  0xbf   : > { %1170 = vst [vmem:[#allocation1] ss:$9 sm:$0xff] %v1060_v12  ;;  %6726 = vmatmul.msk.bf16.vlgmr.msra.gmra.mxu0 %vm1364_vm9, %v1168_v26  ;;  %v901_v1 = vsel %vm895_vm4, %v872_v29, %v659_v17  ;;  %v367_v26 = vpack.c.bf16 %v7462_v4, %v7462_v4 }
  0xc0   : > { %1172 = vst [vmem:[#allocation1 + $0x1] ss:$9 sm:$0xff] %v1061_v24  ;;  %560 = vrot.lane.b32.xlu1 %v508_v34, %s7068_s13  ;;  %v364_v34 = vpack.c.bf16 %v7423_v37, %v7423_v37  ;;  %v930_v50 = vsel %vm924_vm5, %v901_v1, %v7363_v23  ;;  %v366_v24 = vpack.c.bf16 %v7459_v35, %v7459_v35 }
  0xc1   : > { %1174 = vst [vmem:[#allocation1 + $0x2] ss:$9 sm:$0xff] %v1062_v28  ;;  %v427_v1 = vunpack.c.l.b16 %v367_v26 }
  0xc2   : > { %1176 = vst [vmem:[#allocation1 + $0x3] ss:$9 sm:$0xff] %v1063_v30  ;;  %v756_v48 = vpop.permute.xlu1 %755  ;;  %602 = vrot.lane.b32.xlu2 %v7361_v19, %s7065_s10  ;;  %v424_v40 = vunpack.c.l.b16 %v364_v34 }
  0xc3   : > { %1178 = vst [vmem:[#allocation1 + $0x4] ss:$9 sm:$0xff] %v1064_v36  ;;  %794 = vrot.lane.b32.xlu0 %v581_v25, %s7071_s16 }
  0xc4   : > { %1180 = vst [vmem:[#allocation1 + $0x5] ss:$9 sm:$0xff] %v1065_v41  ;;  %v7436_v49 = vpop.permute.xlu2 %552  ;;  %v7449_v23 = vpack.c.b16 %v425_v57, %v424_v40  ;;  %v426_v41 = vunpack.c.l.b16 %v366_v24 }
  0xc5   : > { %v721_v51 = vpop.permute.xlu0 %720 }
  0xc6   : > { %v959_v20 = vsel %vm953_vm6, %v930_v50, %v721_v51  ;;  %v519_v0 = vshll.u32 %v7449_v23, 16 }
  0xc7   : > { %v988_v19 = vsel %vm982_vm7, %v959_v20, %v756_v48 }
  0xc8   : > { %v1017_v56 = vsel %vm1011_vm8, %v988_v19, %v7383_v52  ;;  %635 = vrot.lane.b32.xlu1 %v7386_v58, %s7064_s9  ;;  %v521_v12 = vrot.slane %v519_v0, 1  ;;  %v7507_v0 = vld [vmem:[%s7141_s8 + $0xc8] sm:$0xff] }
  0xc9   : > { %v1066_v59 = vrot.slane %v1017_v56, 1  ;;  %1181 = vst [vmem:[#allocation1 + $0x6] ss:$9 sm:$0xff] %v1017_v56  ;;  %v1067_v3 = vrot.slane %v1017_v56, 2  ;;  %v1068_v8 = vrot.slane %v1017_v56, 3  ;;  %v1069_v17 = vrot.slane %v1017_v56, 4 }
  0xca   : > { %v593_v39 = vpop.permute.xlu1 %592  ;;  %604 = vrot.lane.b32.xlu2 %v581_v25, %s7065_s10  ;;  %v1070_v13 = vrot.slane %v1017_v56, 5  ;;  %v1071_v28 = vrot.slane %v1017_v56, 6  ;;  %11820 = vst [vmem:[#allocation21_spill] sm:$0xff] %v7507_v0 }
  0xcb   : > { %1183 = vst [vmem:[#allocation1 + $0x7] ss:$9 sm:$0xff] %v1066_v59  ;;  %562 = vrot.lane.b32.xlu0 %v7406_v11, %s7068_s13 }
  0xcc   : > { %v7451_v62 = vpop.permute.xlu2 %662 }
  0xcd   : > { %v551_v52 = vpop.permute.xlu0 %550 }
  0xce   : > { %v816_v55 = vsel %vm808_vm1, %v7185_v42, %v551_v52  ;;  %v517_v42 = vshrl.u32 %v7449_v23, 16  ;;  %v7504_v52 = vld [vmem:[%s7141_s8 + $0xc0] sm:$0xff] }
  0xcf   : > { %v845_v43 = vsel %vm837_vm2, %v816_v55, %v593_v39  ;;  %11819 = vst [vmem:[#allocation20_spill] sm:$0xff] %v7504_v52 }
  0xd0   : > { %637 = vrot.lane.b32.xlu1 %v7449_v23, %s7064_s9  ;;  %v522_v36 = vor.u32 %v521_v12, %v517_v42 }
  0xd2   : > { %v1184_v9 = vld [vmem:[#allocation1] sm:$0xff]  ;;  %v690_v10 = vpop.permute.xlu1 %689  ;;  %699 = vrot.lane.b32.xlu2 %v581_v25, %s7066_s11  ;;  %v7479_v25 = vrot.slane %v7449_v23, 1 }
  0xd3   : > { %1186 = vst [vmem:[#allocation1] ss:$9 sm:$0xff] %v1067_v3  ;;  %670 = vrot.lane.b32.xlu0 %v7406_v11, %s7067_s12  ;;  %6727 = vmatmul.msk.bf16.gmra.mxu0 %vm1364_vm9, %v1184_v9  ;;  %v874_v11 = vsel %vm866_vm3, %v845_v43, %v7399_v5  ;;  %v7488_v5 = vpack.c.b16 %v427_v1, %v426_v41 }
  0xd4   : > { %1188 = vst [vmem:[#allocation1 + $0x1] ss:$9 sm:$0xff] %v1068_v8  ;;  %v7474_v27 = vpop.permute.xlu2 %759  ;;  %v818_v8 = vsel %vm808_vm1, %v7209_v54, %v7436_v49 }
  0xd5   : > { %1190 = vst [vmem:[#allocation1 + $0x2] ss:$9 sm:$0xff] %v1069_v17  ;;  %v661_v29 = vpop.permute.xlu0 %660  ;;  %v526_v56 = vshll.u32 %v7488_v5, 16  ;;  %v7510_v55 = vrot.slane %v7488_v5, 1  ;;  %v369_v17 = vpack.c.bf16 %v7507_v0, %v7507_v0 }
  0xd6   : > { %1192 = vst [vmem:[#allocation1 + $0x3] ss:$9 sm:$0xff] %v1070_v13  ;;  %v903_v30 = vsel %vm895_vm4, %v874_v11, %v661_v29 }
  0xd7   : > { %1194 = vst [vmem:[#allocation1 + $0x4] ss:$9 sm:$0xff] %v1071_v28  ;;  %v932_v48 = vsel %vm924_vm5, %v903_v30, %v690_v10  ;;  %v528_v39 = vrot.slane %v526_v56, 1  ;;  %v368_v10 = vpack.c.bf16 %v7504_v52, %v7504_v52  ;;  %v429_v29 = vunpack.c.l.b16 %v369_v17 }
  0xd8   : > { %732 = vrot.lane.b32.xlu1 %v7449_v23, %s7070_s15  ;;  %v961_v50 = vsel %vm953_vm6, %v932_v48, %v7414_v53  ;;  %v524_v53 = vshrl.u32 %v7488_v5, 16 }
  0xd9   : > { %v428_v28 = vunpack.c.l.b16 %v368_v10 }
  0xda   : > { %v787_v34 = vpop.permute.xlu1 %786  ;;  %701 = vrot.lane.b32.xlu2 %v7479_v25, %s7066_s11  ;;  %v529_v43 = vor.u32 %v528_v39, %v524_v53 }
  0xdb   : > { %672 = vrot.lane.b32.xlu0 %v522_v36, %s7067_s12  ;;  %v7532_v1 = vpack.c.b16 %v429_v29, %v428_v28 }
  0xdc   : > { %v7490_v14 = vpop.permute.xlu2 %596 }
  0xdd   : > { %v758_v51 = vpop.permute.xlu0 %757 }
  0xde   : > { %v990_v20 = vsel %vm982_vm7, %v961_v50, %v758_v51 }
  0xdf   : > { %v1019_v19 = vsel %vm1011_vm8, %v990_v20, %v787_v34  ;;  %v533_v34 = vshll.u32 %v7532_v1, 16  ;;  %v531_v20 = vshrl.u32 %v7532_v1, 16 }
  0xe0   : > { %v1072_v40 = vrot.slane %v1019_v19, 1  ;;  %v1073_v57 = vrot.slane %v1019_v19, 2  ;;  %1195 = vst [vmem:[#allocation1 + $0x5] ss:$9 sm:$0xff] %v1019_v19  ;;  %734 = vrot.lane.b32.xlu1 %v7488_v5, %s7070_s15  ;;  %v1074_v12 = vrot.slane %v1019_v19, 3  ;;  %v1075_v13 = vrot.slane %v1019_v19, 4 }
  0xe1   : > { %v1076_v54 = vrot.slane %v1019_v19, 5  ;;  %v1077_v11 = vrot.slane %v1019_v19, 6 }
  0xe2   : > { %1197 = vst [vmem:[#allocation1 + $0x6] ss:$9 sm:$0xff] %v1072_v40  ;;  %v628_v59 = vpop.permute.xlu1 %627  ;;  %796 = vrot.lane.b32.xlu2 %v7479_v25, %s7071_s16 }
  0xe3   : > { %1199 = vst [vmem:[#allocation1 + $0x7] ss:$9 sm:$0xff] %v1073_v57  ;;  %767 = vrot.lane.b32.xlu0 %v522_v36, %s7069_s14  ;;  %v338_v57 = vld [vmem:[%s7141_s8 + $0xd0] sm:$0xff] }
  0xe4   : > { %v7512_v3 = vpop.permute.xlu2 %693  ;;  %v370_v10 = vpack.c.bf16 %v338_v57, %v338_v57 }
  0xe5   : > { %v595_v9 = vpop.permute.xlu0 %594 }
  0xe6   : > { %v847_v42 = vsel %vm837_vm2, %v818_v8, %v595_v9 }
  0xe7   : > { %v876_v49 = vsel %vm866_vm3, %v847_v42, %v628_v59  ;;  %v339_v59 = vld [vmem:[%s7141_s8 + $0xd8] sm:$0xff] }
  0xe8   : > { %798 = vrot.lane.b32.xlu1 %v7510_v55, %s7071_s16  ;;  %v371_v17 = vpack.c.bf16 %v339_v59, %v339_v59 }
  0xea   : > { %v1200_v24 = vld [vmem:[#allocation1] sm:$0xff]  ;;  %v725_v26 = vpop.permute.xlu1 %724  ;;  %564 = vrot.lane.b32.xlu2 %v522_v36, %s7068_s13  ;;  %v905_v36 = vsel %vm895_vm4, %v876_v49, %v7451_v62  ;;  %v535_v62 = vrot.slane %v533_v34, 1 }
  0xeb   : > { %1202 = vst [vmem:[#allocation1] ss:$9 sm:$0xff] %v1074_v12  ;;  %6728 = vmatmul.msk.bf16.gmra.mxu0 %vm1364_vm9, %v1200_v24  ;;  %769 = vrot.lane.b32.xlu0 %v529_v43, %s7069_s14  ;;  %v430_v12 = vunpack.c.l.b16 %v370_v10 }
  0xec   : > { %1204 = vst [vmem:[#allocation1 + $0x1] ss:$9 sm:$0xff] %v1075_v13  ;;  %v7528_v30 = vpop.permute.xlu2 %790  ;;  %v431_v13 = vunpack.c.l.b16 %v371_v17 }
  0xed   : > { %1206 = vst [vmem:[#allocation1 + $0x2] ss:$9 sm:$0xff] %v1076_v54  ;;  %v692_v41 = vpop.permute.xlu0 %691  ;;  %v584_v54 = vrot.slane %v7532_v1, 1 }
  0xee   : > { %1208 = vst [vmem:[#allocation1 + $0x3] ss:$9 sm:$0xff] %v1077_v11  ;;  %v934_v48 = vsel %vm924_vm5, %v905_v36, %v692_v41  ;;  %v7567_v49 = vpack.c.b16 %v431_v13, %v430_v12 }
  0xef   : > { %v963_v50 = vsel %vm953_vm6, %v934_v48, %v725_v26 }
  0xf0   : > { %639 = vrot.lane.b32.xlu1 %v7488_v5, %s7064_s9  ;;  %v992_v56 = vsel %vm982_vm7, %v963_v50, %v7474_v27  ;;  %v7598_v17 = vrot.slane %v7567_v49, 1 }
  0xf2   : > { %v555_v51 = vpop.permute.xlu1 %554  ;;  %674 = vrot.lane.b32.xlu2 %v529_v43, %s7067_s12 }
  0xf3   : > { %606 = vrot.lane.b32.xlu0 %v7479_v25, %s7065_s10  ;;  %v7552_v25 = vor.u32 %v535_v62, %v531_v20  ;;  %v820_v27 = vsel %vm808_vm1, %v7238_v2, %v555_v51 }
  0xf4   : > { %v7543_v19 = vpop.permute.xlu2 %631  ;;  %v849_v28 = vsel %vm837_vm2, %v820_v27, %v7490_v14  ;;  %v540_v14 = vshll.u32 %v7567_v49, 16  ;;  %v341_v27 = vld [vmem:[%s7141_s8 + $0xe8] sm:$0xff] }
  0xf5   : > { %v789_v40 = vpop.permute.xlu0 %788 }
  0xf6   : > { %v1021_v53 = vsel %vm1011_vm8, %v992_v56, %v789_v40  ;;  %v538_v56 = vshrl.u32 %v7567_v49, 16  ;;  %v542_v40 = vrot.slane %v540_v14, 1 }
  0xf7   : > { %v1078_v39 = vrot.slane %v1021_v53, 1  ;;  %v1079_v8 = vrot.slane %v1021_v53, 2  ;;  %v1080_v9 = vrot.slane %v1021_v53, 3  ;;  %1209 = vst [vmem:[#allocation1 + $0x4] ss:$9 sm:$0xff] %v1021_v53  ;;  %v1081_v2 = vrot.slane %v1021_v53, 4 }
  0xf8   : > { %736 = vrot.lane.b32.xlu1 %v7532_v1, %s7070_s15  ;;  %v1082_v11 = vrot.slane %v1021_v53, 5  ;;  %v1083_v34 = vrot.slane %v1021_v53, 6 }
  0xf9   : > { %1211 = vst [vmem:[#allocation1 + $0x5] ss:$9 sm:$0xff] %v1078_v39 }
  0xfa   : > { %1213 = vst [vmem:[#allocation1 + $0x6] ss:$9 sm:$0xff] %v1079_v8  ;;  %v665_v42 = vpop.permute.xlu1 %664  ;;  %771 = vrot.lane.b32.xlu2 %v7552_v25, %s7069_s14 }
  0xfb   : > { %1215 = vst [vmem:[#allocation1 + $0x7] ss:$9 sm:$0xff] %v1080_v9  ;;  %703 = vrot.lane.b32.xlu0 %v7510_v55, %s7066_s11 }
  0xfc   : > { %v7560_v24 = vpop.permute.xlu2 %728 }
  0xfd   : > { %v630_v26 = vpop.permute.xlu0 %629 }
  0xfe   : > { %v878_v29 = vsel %vm866_vm3, %v849_v28, %v630_v26  ;;  %v373_v28 = vpack.c.bf16 %v341_v27, %v341_v27 }
  0xff   : > { %v907_v36 = vsel %vm895_vm4, %v878_v29, %v665_v42  ;;  %v340_v42 = vld [vmem:[%s7141_s8 + $0xe0] sm:$0xff] }
 0x100   : > { %566 = vrot.lane.b32.xlu1 %v529_v43, %s7068_s13  ;;  %v936_v50 = vsel %vm924_vm5, %v907_v36, %v7512_v3  ;;  %v372_v26 = vpack.c.bf16 %v340_v42, %v340_v42  ;;  %v617_v14 = vunpack.c.l.b16 %v373_v28  ;;  %v342_v28 = vld [vmem:[%s7141_s8 + $0xf0] sm:$0xff] }
 0x102   : > { %v1216_v41 = vld [vmem:[#allocation1] sm:$0xff]  ;;  %v762_v48 = vpop.permute.xlu1 %761  ;;  %608 = vrot.lane.b32.xlu2 %v7510_v55, %s7065_s10 }
 0x103   : > { %1218 = vst [vmem:[#allocation1] ss:$9 sm:$0xff] %v1081_v2  ;;  %6729 = vmatmul.msk.bf16.gmra.mxu0 %vm1364_vm9, %v1216_v41  ;;  %800 = vrot.lane.b32.xlu0 %v584_v54, %s7071_s16 }
 0x104   : > { %1220 = vst [vmem:[#allocation1 + $0x1] ss:$9 sm:$0xff] %v1082_v11  ;;  %v7575_v43 = vpop.permute.xlu2 %558 }
 0x105   : > { %1222 = vst [vmem:[#allocation1 + $0x2] ss:$9 sm:$0xff] %v1083_v34  ;;  %v727_v51 = vpop.permute.xlu0 %726  ;;  %v616_v34 = vunpack.c.l.b16 %v372_v26  ;;  %v824_v42 = vsel %vm808_vm1, %v7286_v33, %v7575_v43  ;;  %v374_v43 = vpack.c.bf16 %v342_v28, %v342_v28 }
 0x106   : > { %v965_v20 = vsel %vm953_vm6, %v936_v50, %v727_v51 }
 0x107   : > { %v994_v55 = vsel %vm982_vm7, %v965_v20, %v762_v48  ;;  %v7619_v20 = vpack.c.b16 %v617_v14, %v616_v34 }
 0x108   : > { %v1023_v62 = vsel %vm1011_vm8, %v994_v55, %v7528_v30  ;;  %676 = vrot.lane.b32.xlu1 %v7552_v25, %s7067_s12  ;;  %v7589_v30 = vor.u32 %v542_v40, %v538_v56 }
 0x109   : > { %v1084_v57 = vrot.slane %v1023_v62, 1  ;;  %v1085_v59 = vrot.slane %v1023_v62, 2  ;;  %v1086_v53 = vrot.slane %v1023_v62, 3  ;;  %1223 = vst [vmem:[#allocation1 + $0x3] ss:$9 sm:$0xff] %v1023_v62  ;;  %v1087_v3 = vrot.slane %v1023_v62, 4 }
 0x10a   : > { %v599_v39 = vpop.permute.xlu1 %598  ;;  %705 = vrot.lane.b32.xlu2 %v584_v54, %s7066_s11  ;;  %v1089_v2 = vrot.slane %v1023_v62, 6  ;;  %v650_v40 = vshll.u32 %v7619_v20, 16 }
 0x10b   : > { %1225 = vst [vmem:[#allocation1 + $0x4] ss:$9 sm:$0xff] %v1084_v57  ;;  %641 = vrot.lane.b32.xlu0 %v7532_v1, %s7064_s9 }
 0x10c   : > { %1227 = vst [vmem:[#allocation1 + $0x5] ss:$9 sm:$0xff] %v1085_v59  ;;  %v7591_v8 = vpop.permute.xlu2 %668 }
 0x10d   : > { %1229 = vst [vmem:[#allocation1 + $0x6] ss:$9 sm:$0xff] %v1086_v53  ;;  %v557_v9 = vpop.permute.xlu0 %556 }
 0x10e   : > { %1231 = vst [vmem:[#allocation1 + $0x7] ss:$9 sm:$0xff] %v1087_v3  ;;  %v822_v10 = vsel %vm808_vm1, %v7260_v15, %v557_v9  ;;  %v1088_v15 = vrot.slane %v1023_v62, 5  ;;  %v652_v9 = vrot.slane %v650_v40, 1 }
 0x10f   : > { %v851_v13 = vsel %vm837_vm2, %v822_v10, %v599_v39  ;;  %v682_v10 = vrot.slane %v7619_v20, 1 }
 0x110   : > { %773 = vrot.lane.b32.xlu1 %v7589_v30, %s7069_s14  ;;  %v880_v36 = vsel %vm866_vm3, %v851_v13, %v7543_v19 }
 0x112   : > { %v696_v12 = vpop.permute.xlu1 %695  ;;  %802 = vrot.lane.b32.xlu2 %v7598_v17, %s7071_s16 }
 0x113   : > { %738 = vrot.lane.b32.xlu0 %v7567_v49, %s7070_s15 }
 0x114   : > { %v7607_v29 = vpop.permute.xlu2 %765 }
 0x115   : > { %v1232_v11 = vld [vmem:[#allocation1] sm:$0xff]  ;;  %v667_v41 = vpop.permute.xlu0 %666 }
 0x116   : > { %1234 = vst [vmem:[#allocation1] ss:$9 sm:$0xff] %v1088_v15  ;;  %6730 = vmatmul.msk.bf16.gmra.mxu0 %vm1364_vm9, %v1232_v11  ;;  %v909_v48 = vsel %vm895_vm4, %v880_v36, %v667_v41  ;;  %v343_v15 = vld [vmem:[%s7141_s8 + $0xf8] sm:$0xff]  ;;  %s7072_s8 = smov 48  }
 0x117   : > { %1236 = vst [vmem:[#allocation1 + $0x1] ss:$9 sm:$0xff] %v1089_v2  ;;  %v938_v50 = vsel %vm924_vm5, %v909_v48, %v696_v12  ;;  %v375_v41 = vpack.c.bf16 %v343_v15, %v343_v15  ;;  %v7671_v15 = vld [vmem:[%s11530_s2] ss:$0 sm:$0xff] }
 0x118   : > { %610 = vrot.lane.b32.xlu1 %v584_v54, %s7065_s10  ;;  %v967_v55 = vsel %vm953_vm6, %v938_v50, %v7560_v24  ;;  %v648_v24 = vshrl.u32 %v7619_v20, 16 }
 0x119   : > { %v714_v50 = vunpack.c.l.b16 %v375_v41 }
 0x11a   : > { %v793_v51 = vpop.permute.xlu1 %792  ;;  %643 = vrot.lane.b32.xlu2 %v7567_v49, %s7064_s9  ;;  %v653_v13 = vor.u32 %v652_v9, %v648_v24 }
 0x11b   : > { %568 = vrot.lane.b32.xlu0 %v7552_v25, %s7068_s13 }
 0x11c   : > { %v7621_v19 = vpop.permute.xlu2 %602 }
 0x11d   : > { %v764_v62 = vpop.permute.xlu0 %763 }
 0x11e   : > { %v996_v56 = vsel %vm982_vm7, %v967_v55, %v764_v62 }
 0x11f   : > { %v1025_v54 = vsel %vm1011_vm8, %v996_v56, %v793_v51 }
 0x120   : > { %v1090_v57 = vrot.slane %v1025_v54, 1  ;;  %v1091_v59 = vrot.slane %v1025_v54, 2  ;;  %v1092_v53 = vrot.slane %v1025_v54, 3  ;;  %1237 = vst [vmem:[#allocation1 + $0x2] ss:$9 sm:$0xff] %v1025_v54  ;;  %707 = vrot.lane.b32.xlu1 %v7598_v17, %s7066_s11  ;;  %v1093_v25 = vrot.slane %v1025_v54, 4 }
 0x121   : > { %v1094_v3 = vrot.slane %v1025_v54, 5  ;;  %v1095_v33 = vrot.slane %v1025_v54, 6 }
 0x122   : > { %1239 = vst [vmem:[#allocation1 + $0x3] ss:$9 sm:$0xff] %v1090_v57  ;;  %v634_v39 = vpop.permute.xlu1 %633  ;;  %740 = vrot.lane.b32.xlu2 %v7619_v20, %s7070_s15 }
 0x123   : > { %1241 = vst [vmem:[#allocation1 + $0x4] ss:$9 sm:$0xff] %v1091_v59  ;;  %678 = vrot.lane.b32.xlu0 %v7589_v30, %s7067_s12 }
 0x124   : > { %1243 = vst [vmem:[#allocation1 + $0x5] ss:$9 sm:$0xff] %v1092_v53  ;;  %v7639_v12 = vpop.permute.xlu2 %604 }
 0x125   : > { %1245 = vst [vmem:[#allocation1 + $0x6] ss:$9 sm:$0xff] %v1093_v25  ;;  %v601_v27 = vpop.permute.xlu0 %600 }
 0x126   : > { %1247 = vst [vmem:[#allocation1 + $0x7] ss:$9 sm:$0xff] %v1094_v3  ;;  %v853_v26 = vsel %vm837_vm2, %v824_v42, %v601_v27 }
 0x127   : > { %v882_v11 = vsel %vm866_vm3, %v853_v26, %v634_v39 }
 0x128   : > { %804 = vrot.lane.b32.xlu1 %v682_v10, %s7071_s16  ;;  %v911_v34 = vsel %vm895_vm4, %v882_v11, %v7591_v8 }
 0x12a   : > { %v731_v2 = vpop.permute.xlu1 %730  ;;  %570 = vrot.lane.b32.xlu2 %v7589_v30, %s7068_s13  ;;  %v713_v30 = vunpack.c.l.b16 %v374_v43 }
 0x12b   : > { %775 = vrot.lane.b32.xlu0 %v653_v13, %s7069_s14 }
 0x12c   : > { %v700_v51 = vpop.permute.xlu2 %699  ;;  %v715_v56 = vpack.c.b16 %v714_v50, %v713_v30 }
 0x12d   : > { %v1248_v36 = vld [vmem:[#allocation1] sm:$0xff]  ;;  %v698_v48 = vpop.permute.xlu0 %697 }
 0x12e   : > { %1250 = vst [vmem:[#allocation1] ss:$9 sm:$0xff] %v1095_v33  ;;  %6731 = vmatmul.msk.bf16.gmra.mxu0 %vm1364_vm9, %v1248_v36  ;;  %v940_v14 = vsel %vm924_vm5, %v911_v34, %v698_v48  ;;  %v747_v3 = vshll.u32 %v715_v56, 16  ;;  %v779_v26 = vrot.slane %v715_v56, 1 }
 0x12f   : > { %v969_v55 = vsel %vm953_vm6, %v940_v14, %v731_v2 }
 0x130   : > { %645 = vrot.lane.b32.xlu1 %v7619_v20, %s7064_s9  ;;  %v998_v8 = vsel %vm982_vm7, %v969_v55, %v7607_v29  ;;  %v745_v29 = vshrl.u32 %v715_v56, 16  ;;  %v749_v9 = vrot.slane %v747_v3, 1  ;;  %s7073_s9 = smov 96  }
 0x132   : > { %v561_v62 = vpop.permute.xlu1 %560  ;;  %680 = vrot.lane.b32.xlu2 %v653_v13, %s7067_s12  ;;  %v750_v13 = vor.u32 %v749_v9, %v745_v29 }
 0x133   : > { %612 = vrot.lane.b32.xlu0 %v7598_v17, %s7065_s10  ;;  %v826_v34 = vsel %vm808_vm1, %v7331_v63, %v561_v62  ;;  %s7074_s10 = smov 64  }
 0x134   : > { %v702_v24 = vpop.permute.xlu2 %701 }
 0x135   : > { %v795_v54 = vpop.permute.xlu0 %794 }
 0x136   : > { %v1027_v40 = vsel %vm1011_vm8, %v998_v8, %v795_v54 }
 0x137   : > { %v1096_v57 = vrot.slane %v1027_v40, 1  ;;  %v1097_v20 = vrot.slane %v1027_v40, 2  ;;  %v1098_v59 = vrot.slane %v1027_v40, 3  ;;  %1251 = vst [vmem:[#allocation1 + $0x1] ss:$9 sm:$0xff] %v1027_v40  ;;  %v1099_v53 = vrot.slane %v1027_v40, 4 }
 0x138   : > { %742 = vrot.lane.b32.xlu1 %v715_v56, %s7070_s15  ;;  %v1100_v25 = vrot.slane %v1027_v40, 5  ;;  %v1101_v39 = vrot.slane %v1027_v40, 6  ;;  %v855_v56 = vsel %vm837_vm2, %v826_v34, %v7621_v19  ;;  %s7076_s15 = smov 80  }
 0x139   : > { %1253 = vst [vmem:[#allocation1 + $0x2] ss:$9 sm:$0xff] %v1096_v57 }
 0x13a   : > { %1255 = vst [vmem:[#allocation1 + $0x3] ss:$9 sm:$0xff] %v1097_v20  ;;  %v636_v17 = vpop.permute.xlu1 %635  ;;  %777 = vrot.lane.b32.xlu2 %v750_v13, %s7069_s14 }
 0x13b   : > { %1257 = vst [vmem:[#allocation1 + $0x4] ss:$9 sm:$0xff] %v1098_v59  ;;  %709 = vrot.lane.b32.xlu0 %v682_v10, %s7066_s11  ;;  %v884_v8 = vsel %vm866_vm3, %v855_v56, %v636_v17  ;;  %s7075_s11 = smov 112  }
 0x13c   : > { %1259 = vst [vmem:[#allocation1 + $0x5] ss:$9 sm:$0xff] %v1099_v53  ;;  %v7664_v42 = vpop.f32.mrf.mxu0  ;;  %v797_v2 = vpop.permute.xlu2 %796 }
 0x13d   : > { %1261 = vst [vmem:[#allocation1 + $0x6] ss:$9 sm:$0xff] %v1100_v25  ;;  %v563_v27 = vpop.permute.xlu0 %562 }
 0x13e   : > { %1263 = vst [vmem:[#allocation1 + $0x7] ss:$9 sm:$0xff] %v1101_v39  ;;  %v828_v40 = vsel %vm808_vm1, %v7386_v58, %v563_v27 }
 0x13f   : > { %v857_v19 = vsel %vm837_vm2, %v828_v40, %v7639_v12 }
 0x142   : > { %v638_v28 = vpop.permute.xlu1 %637 }
 0x143   : > { %806 = vrot.lane.b32.xlu0 %v779_v26, %s7071_s16  ;;  %v886_v3 = vsel %vm866_vm3, %v857_v19, %v638_v28 }
 0x144   : > { %v1406_v10 = vpop.f32.mrf.mxu0  ;;  %v565_v55 = vpop.permute.xlu2 %564 }
 0x145   : > { %v1264_v11 = vld [vmem:[#allocation1] sm:$0xff]  ;;  %v671_v33 = vpop.permute.xlu0 %670  ;;  %v1407_v43 = vadd.f32 %v7671_v15, %v1406_v10 }
 0x146   : > { %6732 = vmatmul.msk.bf16.gmra.mxu0 %vm1364_vm9, %v1264_v11  ;;  %v913_v63 = vsel %vm895_vm4, %v884_v8, %v671_v33  ;;  %v830_v8 = vsel %vm808_vm1, %v7449_v23, %v565_v55 }
 0x147   : > { %v1469_v41 = vmax.f32 %v1407_v43, 0.0  ;;  %v942_v57 = vsel %vm924_vm5, %v913_v63, %v700_v51 }
 0x149   : > { %v7675_v36 = vpack.c.bf16 %v1469_v41, %v1469_v41 }
 0x14a   : > { %v733_v48 = vpop.permute.xlu1 %732 }
 0x14b   : > { %v7680_v14 = vrot.slane %v7675_v36, 3  ;;  %v971_v20 = vsel %vm953_vm6, %v942_v57, %v733_v48 }
 0x14c   : > { %v675_v58 = vpop.permute.xlu2 %674 }
 0x14d   : > { %v673_v30 = vpop.permute.xlu0 %672  ;;  %v7685_v50 = vsel %vm1576_vm10, %v7675_v36, %v7680_v14 }
 0x14e   : > { %v915_v51 = vsel %vm895_vm4, %v886_v3, %v673_v30 }
 0x150   : > { %v7690_v54 = vpop.f32.mrf.mxu0 }
 0x152   : > { %v735_v62 = vpop.permute.xlu1 %734 }
 0x154   : > { %v772_v30 = vpop.permute.xlu2 %771 }
 0x155   : > { %v768_v59 = vpop.permute.xlu0 %767 }
 0x156   : > { %v1000_v53 = vsel %vm982_vm7, %v971_v20, %v768_v59 }
 0x157   : > { %v1029_v25 = vsel %vm1011_vm8, %v1000_v53, %v797_v2  ;;  %v944_v2 = vsel %vm924_vm5, %v915_v51, %v702_v24 }
 0x158   : > { %v1102_v39 = vrot.slane %v1029_v25, 1  ;;  %v1103_v17 = vrot.slane %v1029_v25, 2  ;;  %v1104_v29 = vrot.slane %v1029_v25, 3  ;;  %1265 = vst [vmem:[#allocation1] ss:$9 sm:$0xff] %v1029_v25  ;;  %v1411_v9 = vpop.f32.mrf.mxu0  ;;  %v1105_v27 = vrot.slane %v1029_v25, 4 }
 0x159   : > { %v1106_v13 = vrot.slane %v1029_v25, 5  ;;  %v1107_v10 = vrot.slane %v1029_v25, 6  ;;  %v1412_v12 = vadd.f32 %v7671_v15, %v1411_v9  ;;  %v973_v28 = vsel %vm953_vm6, %v944_v2, %v735_v62 }
 0x15a   : > { %1267 = vst [vmem:[#allocation1 + $0x1] ss:$9 sm:$0xff] %v1102_v39  ;;  %v799_v26 = vpop.permute.xlu1 %798 }
 0x15b   : > { %1269 = vst [vmem:[#allocation1 + $0x2] ss:$9 sm:$0xff] %v1103_v17  ;;  %v1471_v11 = vmax.f32 %v1412_v12, 0.0 }
 0x15c   : > { %1271 = vst [vmem:[#allocation1 + $0x3] ss:$9 sm:$0xff] %v1104_v29  ;;  %v609_v55 = vpop.permute.xlu2 %608 }
 0x15d   : > { %1273 = vst [vmem:[#allocation1 + $0x4] ss:$9 sm:$0xff] %v1105_v27  ;;  %v770_v33 = vpop.permute.xlu0 %769  ;;  %v7707_v41 = vpack.c.bf16 %v1471_v11, %v1471_v11 }
 0x15e   : > { %1275 = vst [vmem:[#allocation1 + $0x5] ss:$9 sm:$0xff] %v1106_v13  ;;  %v1002_v43 = vsel %vm982_vm7, %v973_v28, %v770_v33 }
 0x15f   : > { %1277 = vst [vmem:[#allocation1 + $0x6] ss:$9 sm:$0xff] %v1107_v10  ;;  %v1031_v48 = vsel %vm1011_vm8, %v1002_v43, %v799_v26  ;;  %v7711_v34 = vrot.slane %v7707_v41, 3 }
 0x160   : > { %1278 = vst [vmem:[#allocation1 + $0x7] ss:$9 sm:$0xff] %v1031_v48  ;;  %v1108_v62 = vrot.slane %v1031_v48, 1  ;;  %v1109_v40 = vrot.slane %v1031_v48, 2  ;;  %v1110_v20 = vrot.slane %v1031_v48, 3  ;;  %v1111_v19 = vrot.slane %v1031_v48, 4 }
 0x161   : > { %v7716_v56 = vsel %vm1572_vm11, %v7707_v41, %v7711_v34  ;;  %v1112_v25 = vrot.slane %v1031_v48, 5  ;;  %v1113_v39 = vrot.slane %v1031_v48, 6 }
 0x162   : > { %v640_v24 = vpop.permute.xlu1 %639 }
 0x164   : > { %v706_v33 = vpop.permute.xlu2 %705 }
 0x165   : > { %v607_v63 = vpop.permute.xlu0 %606 }
 0x166   : > { %v859_v59 = vsel %vm837_vm2, %v830_v8, %v607_v63 }
 0x167   : > { %v1279_v57 = vld [vmem:[#allocation1] sm:$0xff]  ;;  %v888_v23 = vsel %vm866_vm3, %v859_v59, %v640_v24 }
 0x168   : > { %1281 = vst [vmem:[#allocation1] ss:$9 sm:$0xff] %v1108_v62  ;;  %v7721_v53 = vpop.f32.mrf.mxu0  ;;  %6733 = vmatmul.msk.bf16.gmra.mxu0 %vm1364_vm9, %v1279_v57  ;;  %v917_v29 = vsel %vm895_vm4, %v888_v23, %v675_v58 }
 0x169   : > { %1283 = vst [vmem:[#allocation1 + $0x1] ss:$9 sm:$0xff] %v1109_v40 }
 0x16a   : > { %1285 = vst [vmem:[#allocation1 + $0x2] ss:$9 sm:$0xff] %v1110_v20  ;;  %v737_v3 = vpop.permute.xlu1 %736 }
 0x16b   : > { %1287 = vst [vmem:[#allocation1 + $0x3] ss:$9 sm:$0xff] %v1111_v19 }
 0x16c   : > { %1289 = vst [vmem:[#allocation1 + $0x4] ss:$9 sm:$0xff] %v1112_v25  ;;  %v803_v19 = vpop.permute.xlu2 %802 }
 0x16d   : > { %1291 = vst [vmem:[#allocation1 + $0x5] ss:$9 sm:$0xff] %v1113_v39  ;;  %v704_v17 = vpop.permute.xlu0 %703 }
 0x16e   : > { %v946_v9 = vsel %vm924_vm5, %v917_v29, %v704_v17 }
 0x16f   : > { %v975_v27 = vsel %vm953_vm6, %v946_v9, %v737_v3 }
 0x170   : > { %v1416_v51 = vpop.f32.mrf.mxu0  ;;  %v1004_v12 = vsel %vm982_vm7, %v975_v27, %v772_v30 }
 0x171   : > { %v1417_v13 = vadd.f32 %v7671_v15, %v1416_v51 }
 0x172   : > { %v567_v26 = vpop.permute.xlu1 %566 }
 0x173   : > { %v1473_v10 = vmax.f32 %v1417_v13, 0.0  ;;  %v832_v30 = vsel %vm808_vm1, %v7488_v5, %v567_v26 }
 0x174   : > { %v861_v63 = vsel %vm837_vm2, %v832_v30, %v609_v55 }
 0x175   : > { %v801_v2 = vpop.permute.xlu0 %800  ;;  %v7730_v28 = vpack.c.bf16 %v1473_v10, %v1473_v10 }
 0x176   : > { %v1033_v11 = vsel %vm1011_vm8, %v1004_v12, %v801_v2 }
 0x177   : > { %v1114_v43 = vrot.slane %v1033_v11, 1  ;;  %1292 = vst [vmem:[#allocation1 + $0x6] ss:$9 sm:$0xff] %v1033_v11  ;;  %v7734_v58 = vrot.slane %v7730_v28, 3  ;;  %v1115_v62 = vrot.slane %v1033_v11, 2  ;;  %v1116_v57 = vrot.slane %v1033_v11, 3 }
 0x178   : > { %v1117_v25 = vrot.slane %v1033_v11, 4  ;;  %v1118_v39 = vrot.slane %v1033_v11, 5  ;;  %v1119_v17 = vrot.slane %v1033_v11, 6  ;;  %v644_v11 = vpop.permute.xlu2 %643 }
 0x179   : > { %1294 = vst [vmem:[#allocation1 + $0x7] ss:$9 sm:$0xff] %v1114_v43  ;;  %v7739_v48 = vsel %vm1568_vm12, %v7730_v28, %v7734_v58 }
 0x17a   : > { %11821 = vst [vmem:[#allocation22_spill] sm:$0xff] %v7739_v48  ;;  %v677_v24 = vpop.permute.xlu1 %676 }
 0x17d   : > { %v642_v8 = vpop.permute.xlu0 %641 }
 0x17e   : > { %v890_v40 = vsel %vm866_vm3, %v861_v63, %v642_v8 }
 0x17f   : > { %v919_v5 = vsel %vm895_vm4, %v890_v40, %v677_v24 }
 0x180   : > { %v1295_v20 = vld [vmem:[#allocation1] sm:$0xff]  ;;  %v1419_v59 = vpop.f32.mrf.mxu0  ;;  %v948_v9 = vsel %vm924_vm5, %v919_v5, %v706_v33 }
 0x181   : > { %1297 = vst [vmem:[#allocation1] ss:$9 sm:$0xff] %v1115_v62  ;;  %v1420_v3 = vadd.f32 %v7671_v15, %v1419_v59  ;;  %6734 = vmatmul.msk.bf16.gmra.mxu0 %vm1364_vm9, %v1295_v20  ;;  %v741_v59 = vpop.permute.xlu2 %740 }
 0x182   : > { %1299 = vst [vmem:[#allocation1 + $0x1] ss:$9 sm:$0xff] %v1116_v57  ;;  %v774_v23 = vpop.permute.xlu1 %773 }
 0x183   : > { %1301 = vst [vmem:[#allocation1 + $0x2] ss:$9 sm:$0xff] %v1117_v25  ;;  %v1474_v55 = vmax.f32 %v1420_v3, 0.0 }
 0x184   : > { %1303 = vst [vmem:[#allocation1 + $0x3] ss:$9 sm:$0xff] %v1118_v39 }
 0x185   : > { %1305 = vst [vmem:[#allocation1 + $0x4] ss:$9 sm:$0xff] %v1119_v17  ;;  %v7748_v29 = vpack.c.bf16 %v1474_v55, %v1474_v55  ;;  %v739_v51 = vpop.permute.xlu0 %738 }
 0x186   : > { %v977_v27 = vsel %vm953_vm6, %v948_v9, %v739_v51 }
 0x187   : > { %v7753_v13 = vrot.slane %v7748_v29, 3  ;;  %v1006_v26 = vsel %vm982_vm7, %v977_v27, %v774_v23 }
 0x188   : > { %v1035_v10 = vsel %vm1011_vm8, %v1006_v26, %v803_v19  ;;  %v7762_v33 = vpop.f32.mrf.mxu0 }
 0x189   : > { %v7760_v12 = vsel %vm11788_vm13, %v7748_v29, %v7753_v13  ;;  %1306 = vst [vmem:[#allocation1 + $0x5] ss:$9 sm:$0xff] %v1035_v10  ;;  %v1120_v43 = vrot.slane %v1035_v10, 1  ;;  %v1121_v24 = vrot.slane %v1035_v10, 2  ;;  %v1122_v57 = vrot.slane %v1035_v10, 3 }
 0x18a   : > { %v611_v2 = vpop.permute.xlu1 %610  ;;  %v1123_v19 = vrot.slane %v1035_v10, 4  ;;  %v1124_v39 = vrot.slane %v1035_v10, 5  ;;  %v1125_v17 = vrot.slane %v1035_v10, 6  ;;  %v1650_v21 = vsel %vm1576_vm10, %v7748_v29, %v7753_v13 }
 0x18b   : > { %1308 = vst [vmem:[#allocation1 + $0x6] ss:$9 sm:$0xff] %v1120_v43 }
 0x18c   : > { %1310 = vst [vmem:[#allocation1 + $0x7] ss:$9 sm:$0xff] %v1121_v24 }
 0x18d   : > { %v569_v30 = vpop.permute.xlu0 %568 }
 0x18e   : > { %v834_v8 = vsel %vm808_vm1, %v7532_v1, %v569_v30 }
 0x18f   : > { %v863_v62 = vsel %vm837_vm2, %v834_v8, %v611_v2  ;;  %v571_v2 = vpop.permute.xlu2 %570 }
 0x190   : > { %v892_v5 = vsel %vm866_vm3, %v863_v62, %v644_v11 }
 0x192   : > { %v708_v63 = vpop.permute.xlu1 %707 }
 0x193   : > { %v1424_v40 = vpop.f32.mrf.mxu0  ;;  %v1311_v25 = vld [vmem:[#allocation1] sm:$0xff] }
 0x194   : > { %v1425_v20 = vadd.f32 %v7671_v15, %v1424_v40  ;;  %1313 = vst [vmem:[#allocation1] ss:$9 sm:$0xff] %v1122_v57  ;;  %6735 = vmatmul.msk.bf16.gmra.mxu0 %vm1364_vm9, %v1311_v25  ;;  %v836_v40 = vsel %vm808_vm1, %v7567_v49, %v571_v2  ;;  %vm3322_vm1 = vcmask 916480  }
 0x195   : > { %v679_v3 = vpop.permute.xlu0 %678  ;;  %1315 = vst [vmem:[#allocation1 + $0x1] ss:$9 sm:$0xff] %v1123_v19 }
 0x196   : > { %v1476_v23 = vmax.f32 %v1425_v20, 0.0  ;;  %v921_v1 = vsel %vm895_vm4, %v892_v5, %v679_v3  ;;  %1317 = vst [vmem:[#allocation1 + $0x2] ss:$9 sm:$0xff] %v1124_v39 }
 0x197   : > { %1319 = vst [vmem:[#allocation1 + $0x3] ss:$9 sm:$0xff] %v1125_v17  ;;  %v950_v51 = vsel %vm924_vm5, %v921_v1, %v708_v63  ;;  %v681_v19 = vpop.permute.xlu2 %680 }
 0x198   : > { %v7771_v55 = vpack.c.bf16 %v1476_v23, %v1476_v23  ;;  %v979_v10 = vsel %vm953_vm6, %v950_v51, %v741_v59 }
 0x19a   : > { %v7774_v9 = vrot.slane %v7771_v55, 3  ;;  %v805_v27 = vpop.permute.xlu1 %804 }
 0x19b   : > { %v7785_v63 = vpop.f32.mrf.mxu0 }
 0x19c   : > { %v7780_v26 = vsel %vm1576_vm10, %v7771_v55, %v7774_v9 }
 0x19d   : > { %v776_v11 = vpop.permute.xlu0 %775 }
 0x19e   : > { %v1008_v43 = vsel %vm982_vm7, %v979_v10, %v776_v11 }
 0x19f   : > { %v1037_v24 = vsel %vm1011_vm8, %v1008_v43, %v805_v27 }
 0x1a0   : > { %v1126_v30 = vrot.slane %v1037_v24, 1  ;;  %v1127_v8 = vrot.slane %v1037_v24, 2  ;;  %v1128_v62 = vrot.slane %v1037_v24, 3  ;;  %1320 = vst [vmem:[#allocation1 + $0x4] ss:$9 sm:$0xff] %v1037_v24  ;;  %v1129_v3 = vrot.slane %v1037_v24, 4 }
 0x1a1   : > { %v1130_v39 = vrot.slane %v1037_v24, 5  ;;  %v1131_v1 = vrot.slane %v1037_v24, 6 }
 0x1a2   : > { %1322 = vst [vmem:[#allocation1 + $0x5] ss:$9 sm:$0xff] %v1126_v30  ;;  %v646_v57 = vpop.permute.xlu1 %645  ;;  %v778_v30 = vpop.permute.xlu2 %777 }
 0x1a3   : > { %1324 = vst [vmem:[#allocation1 + $0x6] ss:$9 sm:$0xff] %v1127_v8 }
 0x1a4   : > { %1326 = vst [vmem:[#allocation1 + $0x7] ss:$9 sm:$0xff] %v1128_v62 }
 0x1a5   : > { %v613_v20 = vpop.permute.xlu0 %612 }
 0x1a6   : > { %v865_v59 = vsel %vm837_vm2, %v836_v40, %v613_v20  ;;  %vm3223_vm2 = vcmask 392192  }
 0x1a7   : > { %v894_v25 = vsel %vm866_vm3, %v865_v59, %v646_v57  ;;  %vm3458_vm3 = vcmask 1045508  }
 0x1a8   : > { %v923_v17 = vsel %vm895_vm4, %v894_v25, %v681_v19 }
 0x1aa   : > { %v743_v27 = vpop.permute.xlu1 %742 }
 0x1ab   : > { %v1327_v5 = vld [vmem:[#allocation1] sm:$0xff]  ;;  %v1429_v23 = vpop.f32.mrf.mxu0 }
 0x1ac   : > { %1329 = vst [vmem:[#allocation1] ss:$9 sm:$0xff] %v1129_v3  ;;  %v1430_v51 = vadd.f32 %v7671_v15, %v1429_v23  ;;  %6736 = vmatmul.msk.bf16.gmra.mxu0 %vm1364_vm9, %v1327_v5  ;;  %v1405_v3 = vadd.f32 %v7671_v15, %v7664_v42  ;;  %v1410_v42 = vadd.f32 %v7671_v15, %v7690_v54 }
 0x1ad   : > { %1331 = vst [vmem:[#allocation1 + $0x1] ss:$9 sm:$0xff] %v1130_v39  ;;  %v710_v49 = vpop.permute.xlu0 %709 }
 0x1ae   : > { %1333 = vst [vmem:[#allocation1 + $0x2] ss:$9 sm:$0xff] %v1131_v1  ;;  %v1478_v2 = vmax.f32 %v1430_v51, 0.0  ;;  %v952_v10 = vsel %vm924_vm5, %v923_v17, %v710_v49  ;;  %v1468_v39 = vmax.f32 %v1405_v3, 0.0  ;;  %v1587_v3 = vsel %vm1572_vm11, %v7675_v36, %v7680_v14 }
 0x1af   : > { %v981_v43 = vsel %vm953_vm6, %v952_v10, %v743_v27  ;;  %vm3464_vm5 = vcmask 1043458   ;;  %vm3371_vm6 = vcmask 654336  }
 0x1b0   : > { %v7795_v11 = vpack.c.bf16 %v1478_v2, %v1478_v2  ;;  %v1010_v24 = vsel %vm982_vm7, %v981_v43, %v778_v30  ;;  %v1493_v17 = vpack.c.bf16 %v1468_v39, %v1468_v39  ;;  %vm3466_vm7 = vcmask 1045504  }
 0x1b2   : > { %v7799_v8 = vrot.slane %v7795_v11, 3  ;;  %v1543_v49 = vrot.slane %v1493_v17, 3 }
 0x1b3   : > { %v7810_v5 = vpop.f32.mrf.mxu0 }
 0x1b4   : > { %v7805_v62 = vsel %vm1572_vm11, %v7795_v11, %v7799_v8  ;;  %v1573_v43 = vsel %vm1572_vm11, %v1493_v17, %v1543_v49  ;;  %v1577_v30 = vsel %vm1576_vm10, %v1493_v17, %v1543_v49 }
 0x1b5   : > { %v807_v40 = vpop.permute.xlu0 %806  ;;  %v7829_v54 = vrot.slane %v1577_v30, 2  ;;  %v1415_v30 = vadd.f32 %v7671_v15, %v7721_v53 }
 0x1b6   : > { %v1039_v57 = vsel %vm1011_vm8, %v1010_v24, %v807_v40  ;;  %v1581_v40 = vsel %vm11788_vm13, %v1493_v17, %v1543_v49 }
 0x1b7   : > { %v1132_v20 = vrot.slane %v1039_v57, 1  ;;  %v1133_v59 = vrot.slane %v1039_v57, 2  ;;  %v1134_v19 = vrot.slane %v1039_v57, 3  ;;  %1334 = vst [vmem:[#allocation1 + $0x3] ss:$9 sm:$0xff] %v1039_v57  ;;  %v1135_v25 = vrot.slane %v1039_v57, 4 }
 0x1b8   : > { %v1136_v23 = vrot.slane %v1039_v57, 5  ;;  %v1137_v1 = vrot.slane %v1039_v57, 6  ;;  %v1470_v57 = vmax.f32 %v1410_v42, 0.0  ;;  %v7835_v39 = vrot.slane %v1581_v40, 3 }
 0x1b9   : > { %1336 = vst [vmem:[#allocation1 + $0x4] ss:$9 sm:$0xff] %v1132_v20  ;;  %v7822_v20 = vsel %vm1568_vm12, %v1493_v17, %v1543_v49  ;;  %v7849_v49 = vrot.slane %v1587_v3, 1 }
 0x1ba   : > { %1338 = vst [vmem:[#allocation1 + $0x5] ss:$9 sm:$0xff] %v1133_v59  ;;  %v7824_v59 = vrot.slane %v1573_v43, 1  ;;  %v1495_v17 = vpack.c.bf16 %v1470_v57, %v1470_v57  ;;  %v1593_v43 = vsel %vm11788_vm13, %v7675_v36, %v7680_v14 }
 0x1bb   : > { %1340 = vst [vmem:[#allocation1 + $0x6] ss:$9 sm:$0xff] %v1134_v19  ;;  %v7867_v3 = vrot.slane %v1593_v43, 3 }
 0x1bc   : > { %1342 = vst [vmem:[#allocation1 + $0x7] ss:$9 sm:$0xff] %v1135_v25  ;;  %v1545_v42 = vrot.slane %v1495_v17, 3 }
 0x1bd   : > { %11823 = vst [vmem:[#allocation24_spill] sm:$0xff] %v7867_v3 }
 0x1be   : > { %v1599_v57 = vsel %vm1572_vm11, %v1495_v17, %v1545_v42  ;;  %v7879_v53 = vsel %vm1568_vm12, %v1495_v17, %v1545_v42 }
 0x1c3   : > { %v1343_v51 = vld [vmem:[#allocation1] sm:$0xff]  ;;  %v1434_v27 = vpop.f32.mrf.mxu0 }
 0x1c4   : > { %1345 = vst [vmem:[#allocation1] ss:$9 sm:$0xff] %v1136_v23  ;;  %6737 = vmatmul.msk.bf16.gmra.mxu0 %vm1364_vm9, %v1343_v51  ;;  %v1435_v2 = vadd.f32 %v7671_v15, %v1434_v27  ;;  %v7847_v51 = vsel %vm1568_vm12, %v7675_v36, %v7680_v14  ;;  %v1472_v36 = vmax.f32 %v1415_v30, 0.0  ;;  %v1614_v30 = vsel %vm1576_vm10, %v7707_v41, %v7711_v34 }
 0x1c5   : > { %1347 = vst [vmem:[#allocation1 + $0x1] ss:$9 sm:$0xff] %v1137_v1 }
 0x1c6   : > { %v1480_v10 = vmax.f32 %v1435_v2, 0.0  ;;  %v1497_v0 = vpack.c.bf16 %v1472_v36, %v1472_v36 }
 0x1c8   : > { %v7818_v24 = vpack.c.bf16 %v1480_v10, %v1480_v10 }
 0x1ca   : > { %v7827_v25 = vrot.slane %v7818_v24, 3 }
 0x1cb   : > { %v1436_v1 = vpop.f32.mrf.mxu0 }
 0x1cc   : > { %v1348_v19 = vld [vmem:[#allocation1] sm:$0xff]  ;;  %v7841_v23 = vsel %vm1568_vm12, %v7818_v24, %v7827_v25  ;;  %v1437_v27 = vadd.f32 %v7671_v15, %v1436_v1  ;;  %v1602_v1 = vsel %vm1576_vm10, %v1495_v17, %v1545_v42 }
 0x1cd   : > { %1866 = vst [vmem:[#allocation1] ss:$9 sm:$0xff] %v7822_v20  ;;  %v7884_v43 = vrot.slane %v1602_v1, 2  ;;  %v7904_v1 = vrot.slane %v1614_v30, 2 }
 0x1ce   : > { %1869 = vst [vmem:[#allocation1 + $0x1] ss:$9 sm:$0xff] %v7824_v59  ;;  %v1481_v2 = vmax.f32 %v1437_v27, 0.0  ;;  %v1605_v27 = vsel %vm11788_vm13, %v1495_v17, %v1545_v42  ;;  %v7894_v17 = vsel %vm1568_vm12, %v7707_v41, %v7711_v34  ;;  %v1547_v42 = vrot.slane %v1497_v0, 3 }
 0x1cf   : > { %11822 = vst [vmem:[#allocation23_spill] sm:$0xff] %v7841_v23  ;;  %v7887_v52 = vrot.slane %v1605_v27, 3 }
 0x1d0   : > { %1872 = vst [vmem:[#allocation1 + $0x2] ss:$9 sm:$0xff] %v7829_v54  ;;  %v7855_v10 = vpack.c.bf16 %v1481_v2, %v1481_v2  ;;  %v7881_v2 = vrot.slane %v1599_v57, 1  ;;  %v1617_v57 = vsel %vm11788_vm13, %v7707_v41, %v7711_v34  ;;  %v1623_v27 = vsel %vm1572_vm11, %v1497_v0, %v1547_v42 }
 0x1d1   : > { %1875 = vst [vmem:[#allocation1 + $0x3] ss:$9 sm:$0xff] %v7835_v39  ;;  %v7907_v36 = vrot.slane %v1617_v57, 3  ;;  %v1626_v35 = vsel %vm1576_vm10, %v1497_v0, %v1547_v42  ;;  %v1629_v37 = vsel %vm11788_vm13, %v1497_v0, %v1547_v42  ;;  %v7915_v38 = vsel %vm1568_vm12, %v1497_v0, %v1547_v42 }
 0x1d2   : > { %1877 = vst [vmem:[#allocation1 + $0x4] ss:$9 sm:$0xff] %v7847_v51  ;;  %v7864_v40 = vrot.slane %v7855_v10, 3  ;;  %v7917_v16 = vrot.slane %v1623_v27, 1  ;;  %v7920_v41 = vrot.slane %v1626_v35, 2  ;;  %v7923_v34 = vrot.slane %v1629_v37, 3 }
 0x1d3   : > { %1880 = vst [vmem:[#allocation1 + $0x5] ss:$9 sm:$0xff] %v7849_v49  ;;  %v1422_v0 = vadd.f32 %v7671_v15, %v7762_v33  ;;  %v1635_v42 = vsel %vm1572_vm11, %v7730_v28, %v7734_v58  ;;  %v1638_v35 = vsel %vm1576_vm10, %v7730_v28, %v7734_v58  ;;  %v1641_v37 = vsel %vm11788_vm13, %v7730_v28, %v7734_v58 }
 0x1d4   : > { %6738 = vmatmul.msk.bf16.gmra.mxu0 %vm1364_vm9, %v1348_v19  ;;  %v7873_v19 = vsel %vm11788_vm13, %v7855_v10, %v7864_v40  ;;  %11826 = vst [vmem:[#allocation27_spill] sm:$0xff] %v7904_v1  ;;  %v7939_v57 = vrot.slane %v1635_v42, 1  ;;  %v7943_v18 = vrot.slane %v1638_v35, 2  ;;  %v1647_v33 = vsel %vm1572_vm11, %v7748_v29, %v7753_v13 }
 0x1d5   : > { %11824 = vst [vmem:[#allocation25_spill] sm:$0xff] %v7873_v19  ;;  %v1475_v30 = vmax.f32 %v1422_v0, 0.0  ;;  %v7950_v45 = vrot.slane %v1641_v37, 3  ;;  %v7960_v58 = vsel %vm1568_vm12, %v7748_v29, %v7753_v13  ;;  %v7962_v0 = vrot.slane %v1647_v33, 1 }
 0x1d6   : > { %11827 = vst [vmem:[#allocation28_spill] sm:$0xff] %v7907_v36  ;;  %v7965_v42 = vrot.slane %v1650_v21, 2  ;;  %v1427_v37 = vadd.f32 %v7671_v15, %v7785_v63  ;;  %v1671_v63 = vsel %vm1572_vm11, %v7771_v55, %v7774_v9  ;;  %vm3462_vm9 = vcmask 1043456  }
 0x1d7   : > { %11829 = vst [vmem:[#allocation30_spill] sm:$0xff] %v7915_v38  ;;  %v1500_v28 = vpack.c.bf16 %v1475_v30, %v1475_v30 }
 0x1d8   : > { %11830 = vst [vmem:[#allocation31_spill] sm:$0xff] %v7917_v16  ;;  %v1477_v22 = vmax.f32 %v1427_v37, 0.0  ;;  %v8001_v37 = vsel %vm1568_vm12, %v7771_v55, %v7774_v9 }
 0x1d9   : > { %11831 = vst [vmem:[#allocation32_spill] sm:$0xff] %v7920_v41  ;;  %v1550_v35 = vrot.slane %v1500_v28, 3 }
 0x1da   : > { %v7876_v14 = vld [vmem:[#allocation1] sm:$0xff]  ;;  %11832 = vst [vmem:[#allocation33_spill] sm:$0xff] %v7923_v34 }
 0x1db   : > { %11825 = vst [vmem:[#allocation26_spill] sm:$0xff] %v7876_v14  ;;  %v1659_v29 = vsel %vm1572_vm11, %v1500_v28, %v1550_v35  ;;  %v1662_v33 = vsel %vm1576_vm10, %v1500_v28, %v1550_v35  ;;  %v1665_v21 = vsel %vm11788_vm13, %v1500_v28, %v1550_v35  ;;  %v7977_v7 = vsel %vm1568_vm12, %v1500_v28, %v1550_v35 }
 0x1dc   : > { %1883 = vst [vmem:[#allocation1] ss:$9 sm:$0xff] %v7867_v3  ;;  %v7979_v60 = vrot.slane %v1659_v29, 1  ;;  %v7983_v46 = vrot.slane %v1662_v33, 2  ;;  %v7991_v47 = vrot.slane %v1665_v21, 3  ;;  %v1502_v28 = vpack.c.bf16 %v1477_v22, %v1477_v22 }
 0x1dd   : > { %1884 = vst [vmem:[#allocation1 + $0x1] ss:$9 sm:$0xff] %v7879_v53  ;;  %v8003_v29 = vrot.slane %v1671_v63, 1  ;;  %v1432_v33 = vadd.f32 %v7671_v15, %v7810_v5 }
 0x1de   : > { %1886 = vst [vmem:[#allocation1 + $0x2] ss:$9 sm:$0xff] %v7881_v2  ;;  %v1552_v22 = vrot.slane %v1502_v28, 3 }
 0x1df   : > { %1888 = vst [vmem:[#allocation1 + $0x3] ss:$9 sm:$0xff] %v7884_v43 }
 0x1e0   : > { %1890 = vst [vmem:[#allocation1 + $0x4] ss:$9 sm:$0xff] %v7887_v52  ;;  %v1683_v21 = vsel %vm1572_vm11, %v1502_v28, %v1552_v22  ;;  %v1686_v31 = vsel %vm1576_vm10, %v1502_v28, %v1552_v22  ;;  %v1689_v32 = vsel %vm11788_vm13, %v1502_v28, %v1552_v22 }
 0x1e1   : > { %1891 = vst [vmem:[#allocation1 + $0x5] ss:$9 sm:$0xff] %v7894_v17  ;;  %v8028_v14 = vrot.slane %v1683_v21, 1 }
 0x1e2   : > { %11833 = vst [vmem:[#allocation34_spill] sm:$0xff] %v7939_v57 }
 0x1e3   : > { %11834 = vst [vmem:[#allocation35_spill] sm:$0xff] %v7943_v18 }
 0x1e4   : > { %11836 = vst [vmem:[#allocation37_spill] sm:$0xff] %v7977_v7 }
 0x1e5   : > { %v7941_v27 = vpop.f32.mrf.mxu0  ;;  %11838 = vst [vmem:[#allocation39_spill] sm:$0xff] %v7991_v47 }
 0x1e6   : > { %11842 = vst [vmem:[#allocation43_spill] sm:$0xff] %v8028_v14 }
 0x1e8   : > { %v7910_v4 = vld [vmem:[#allocation1] sm:$0xff] }
 0x1e9   : > { %11828 = vst [vmem:[#allocation29_spill] sm:$0xff] %v7910_v4  ;;  %v8026_v4 = vsel %vm1568_vm12, %v1502_v28, %v1552_v22  ;;  %v8041_v28 = vsel %vm1568_vm12, %v7795_v11, %v7799_v8 }
 0x1ea   : > { %1894 = vst [vmem:[#allocation1] ss:$9 sm:$0xff] %v7904_v1 }
 0x1eb   : > { %1896 = vst [vmem:[#allocation1 + $0x1] ss:$9 sm:$0xff] %v7907_v36 }
 0x1ec   : > { %1897 = vst [vmem:[#allocation1 + $0x2] ss:$9 sm:$0xff] %v7915_v38 }
 0x1ed   : > { %1899 = vst [vmem:[#allocation1 + $0x3] ss:$9 sm:$0xff] %v7917_v16  ;;  %v1441_v30 = vpop.f32.mrf.mxu0 }
 0x1ee   : > { %1901 = vst [vmem:[#allocation1 + $0x4] ss:$9 sm:$0xff] %v7920_v41  ;;  %v1442_v13 = vadd.f32 %v7671_v15, %v1441_v30 }
 0x1ef   : > { %1903 = vst [vmem:[#allocation1 + $0x5] ss:$9 sm:$0xff] %v7923_v34 }
 0x1f0   : > { %v1483_v6 = vmax.f32 %v1442_v13, 0.0  ;;  %v1677_v13 = vsel %vm11788_vm13, %v7771_v55, %v7774_v9  ;;  %v8031_v55 = vrot.slane %v1686_v31, 2  ;;  %v8034_v9 = vrot.slane %v1689_v32, 3  ;;  %11845 = vst [vmem:[#allocation46_spill] sm:$0xff] %v8041_v28 }
 0x1f1   : > { %v8019_v63 = vrot.slane %v1677_v13, 3  ;;  %v1698_v32 = vsel %vm1576_vm10, %v7795_v11, %v7799_v8 }
 0x1f2   : > { %v7989_v30 = vpack.c.bf16 %v1483_v6, %v1483_v6  ;;  %11843 = vst [vmem:[#allocation44_spill] sm:$0xff] %v8031_v55  ;;  %v8051_v22 = vrot.slane %v1698_v32, 2 }
 0x1f3   : > { %11840 = vst [vmem:[#allocation41_spill] sm:$0xff] %v8019_v63 }
 0x1f4   : > { %v7996_v35 = vrot.slane %v7989_v30, 3  ;;  %11844 = vst [vmem:[#allocation45_spill] sm:$0xff] %v8034_v9 }
 0x1f5   : > { %11846 = vst [vmem:[#allocation47_spill] sm:$0xff] %v8051_v22 }
 0x1f6   : > { %v7948_v44 = vld [vmem:[#allocation1] sm:$0xff]  ;;  %v8010_v6 = vsel %vm1576_vm10, %v7989_v30, %v7996_v35 }
 0x1f7   : > { %11835 = vst [vmem:[#allocation36_spill] sm:$0xff] %v7948_v44 }
 0x1f8   : > { %1906 = vst [vmem:[#allocation1] ss:$9 sm:$0xff] %v7939_v57 }
 0x1f9   : > { %1908 = vst [vmem:[#allocation1 + $0x1] ss:$9 sm:$0xff] %v7943_v18 }
 0x1fa   : > { %1910 = vst [vmem:[#allocation1 + $0x2] ss:$9 sm:$0xff] %v7950_v45 }
 0x1fb   : > { %1911 = vst [vmem:[#allocation1 + $0x3] ss:$9 sm:$0xff] %v7960_v58 }
 0x1fc   : > { %1913 = vst [vmem:[#allocation1 + $0x4] ss:$9 sm:$0xff] %v7962_v0 }
 0x1fd   : > { %1915 = vst [vmem:[#allocation1 + $0x5] ss:$9 sm:$0xff] %v7965_v42 }
 0x1fe   : > { %11839 = vst [vmem:[#allocation40_spill] sm:$0xff] %v8010_v6  ;;  %v1444_v13 = vpop.f32.mrf.mxu0 }
 0x204   : > { %v7981_v61 = vld [vmem:[#allocation1] sm:$0xff] }
 0x205   : > { %11837 = vst [vmem:[#allocation38_spill] sm:$0xff] %v7981_v61  ;;  %v1479_v61 = vmax.f32 %v1432_v33, 0.0 }
 0x206   : > { %1917 = vst [vmem:[#allocation1] ss:$9 sm:$0xff] %v7977_v7  ;;  %v1446_v23 = vpop.f32.mrf.mxu0 }
 0x207   : > { %1919 = vst [vmem:[#allocation1 + $0x1] ss:$9 sm:$0xff] %v7979_v60  ;;  %v1504_v5 = vpack.c.bf16 %v1479_v61, %v1479_v61  ;;  %v1701_v61 = vsel %vm11788_vm13, %v7795_v11, %v7799_v8  ;;  %v1447_v11 = vadd.f32 %v7671_v15, %v1446_v23 }
 0x208   : > { %1921 = vst [vmem:[#allocation1 + $0x2] ss:$9 sm:$0xff] %v7983_v46  ;;  %v8054_v21 = vrot.slane %v1701_v61, 3 }
 0x209   : > { %1923 = vst [vmem:[#allocation1 + $0x3] ss:$9 sm:$0xff] %v7991_v47  ;;  %v1554_v31 = vrot.slane %v1504_v5, 3  ;;  %v1485_v61 = vmax.f32 %v1447_v11, 0.0 }
 0x20a   : > { %1924 = vst [vmem:[#allocation1 + $0x4] ss:$9 sm:$0xff] %v8001_v37 }
 0x20b   : > { %1926 = vst [vmem:[#allocation1 + $0x5] ss:$9 sm:$0xff] %v8003_v29  ;;  %v1707_v33 = vsel %vm1572_vm11, %v1504_v5, %v1554_v31  ;;  %v1713_v19 = vsel %vm11788_vm13, %v1504_v5, %v1554_v31 }
 0x20c   : > { %11847 = vst [vmem:[#allocation48_spill] sm:$0xff] %v8054_v21  ;;  %v8071_v32 = vrot.slane %v1713_v19, 3  ;;  %v1722_v19 = vsel %vm1576_vm10, %v7818_v24, %v7827_v25 }
 0x20e   : > { %11852 = vst [vmem:[#allocation53_spill] sm:$0xff] %v8071_v32 }
 0x212   : > { %v8023_v44 = vld [vmem:[#allocation1] sm:$0xff] }
 0x213   : > { %11841 = vst [vmem:[#allocation42_spill] sm:$0xff] %v8023_v44  ;;  %v1710_v44 = vsel %vm1576_vm10, %v1504_v5, %v1554_v31 }
 0x214   : > { %1929 = vst [vmem:[#allocation1] ss:$9 sm:$0xff] %v8019_v63  ;;  %v8068_v8 = vrot.slane %v1710_v44, 2  ;;  %v1719_v44 = vsel %vm1572_vm11, %v7818_v24, %v7827_v25 }
 0x215   : > { %1930 = vst [vmem:[#allocation1 + $0x1] ss:$9 sm:$0xff] %v8026_v4 }
 0x216   : > { %1932 = vst [vmem:[#allocation1 + $0x2] ss:$9 sm:$0xff] %v8028_v14 }
 0x217   : > { %1934 = vst [vmem:[#allocation1 + $0x3] ss:$9 sm:$0xff] %v8031_v55 }
 0x218   : > { %1936 = vst [vmem:[#allocation1 + $0x4] ss:$9 sm:$0xff] %v8034_v9  ;;  %v8064_v9 = vrot.slane %v1707_v33, 1 }
 0x219   : > { %1937 = vst [vmem:[#allocation1 + $0x5] ss:$9 sm:$0xff] %v8041_v28  ;;  %v8062_v28 = vsel %vm1568_vm12, %v1504_v5, %v1554_v31  ;;  %v8076_v5 = vpack.c.bf16 %v1485_v61, %v1485_v61  ;;  %v1440_v31 = vadd.f32 %v7671_v15, %v7941_v27  ;;  %v1725_v27 = vsel %vm11788_vm13, %v7818_v24, %v7827_v25 }
 0x21a   : > { %11849 = vst [vmem:[#allocation50_spill] sm:$0xff] %v8062_v28  ;;  %v8097_v61 = vrot.slane %v1719_v44, 1  ;;  %v1734_v24 = vsel %vm1576_vm10, %v7855_v10, %v7864_v40 }
 0x21b   : > { %11850 = vst [vmem:[#allocation51_spill] sm:$0xff] %v8064_v9  ;;  %v8081_v23 = vrot.slane %v8076_v5, 3  ;;  %v1482_v11 = vmax.f32 %v1440_v31, 0.0  ;;  %v8117_v31 = vsel %vm1568_vm12, %v7855_v10, %v7864_v40 }
 0x21c   : > { %11851 = vst [vmem:[#allocation52_spill] sm:$0xff] %v8068_v8 }
 0x21d   : > { %v8092_v33 = vsel %vm1572_vm11, %v8076_v5, %v8081_v23  ;;  %11854 = vst [vmem:[#allocation55_spill] sm:$0xff] %v8097_v61  ;;  %v1507_v25 = vpack.c.bf16 %v1482_v11, %v1482_v11  ;;  %v1445_v11 = vadd.f32 %v7671_v15, %v1444_v13 }
 0x21e   : > { %11853 = vst [vmem:[#allocation54_spill] sm:$0xff] %v8092_v33 }
 0x21f   : > { %11858 = vst [vmem:[#allocation59_spill] sm:$0xff] %v8117_v31 }
 0x220   : > { %v8057_v6 = vld [vmem:[#allocation1] sm:$0xff] }
 0x221   : > { %11848 = vst [vmem:[#allocation49_spill] sm:$0xff] %v8057_v6 }
 0x222   : > { %1940 = vst [vmem:[#allocation1] ss:$9 sm:$0xff] %v8051_v22 }
 0x223   : > { %1942 = vst [vmem:[#allocation1 + $0x1] ss:$9 sm:$0xff] %v8054_v21 }
 0x224   : > { %1943 = vst [vmem:[#allocation1 + $0x2] ss:$9 sm:$0xff] %v8062_v28  ;;  %v8106_v28 = vrot.slane %v1725_v27, 3  ;;  %v1557_v27 = vrot.slane %v1507_v25, 3 }
 0x225   : > { %1945 = vst [vmem:[#allocation1 + $0x3] ss:$9 sm:$0xff] %v8064_v9  ;;  %v1449_v9 = vpop.f32.mrf.mxu0 }
 0x226   : > { %1947 = vst [vmem:[#allocation1 + $0x4] ss:$9 sm:$0xff] %v8068_v8  ;;  %v1731_v8 = vsel %vm1572_vm11, %v7855_v10, %v7864_v40  ;;  %v1743_v33 = vsel %vm1572_vm11, %v1507_v25, %v1557_v27  ;;  %v1746_v10 = vsel %vm1576_vm10, %v1507_v25, %v1557_v27  ;;  %v1749_v40 = vsel %vm11788_vm13, %v1507_v25, %v1557_v27 }
 0x227   : > { %1949 = vst [vmem:[#allocation1 + $0x5] ss:$9 sm:$0xff] %v8071_v32  ;;  %v8101_v32 = vrot.slane %v1722_v19, 2  ;;  %v8119_v44 = vrot.slane %v1731_v8, 1  ;;  %v8121_v19 = vrot.slane %v1734_v24, 2  ;;  %v1484_v8 = vmax.f32 %v1445_v11, 0.0 }
 0x228   : > { %11857 = vst [vmem:[#allocation58_spill] sm:$0xff] %v8106_v28 }
 0x229   : > { %11856 = vst [vmem:[#allocation57_spill] sm:$0xff] %v8101_v32 }
 0x22a   : > { %11859 = vst [vmem:[#allocation60_spill] sm:$0xff] %v8119_v44 }
 0x22b   : > { %11860 = vst [vmem:[#allocation61_spill] sm:$0xff] %v8121_v19 }
 0x22e   : > { %v8099_v6 = vld [vmem:[#allocation1] sm:$0xff] }
 0x22f   : > { %11855 = vst [vmem:[#allocation56_spill] sm:$0xff] %v8099_v6  ;;  %v1451_v6 = vpop.f32.mrf.mxu0 }
 0x230   : > { %1952 = vst [vmem:[#allocation1] ss:$9 sm:$0xff] %v8097_v61  ;;  %v8144_v61 = vrot.slane %v1749_v40, 3  ;;  %v1450_v40 = vadd.f32 %v7671_v15, %v1449_v9 }
 0x231   : > { %1954 = vst [vmem:[#allocation1 + $0x1] ss:$9 sm:$0xff] %v8101_v32 }
 0x232   : > { %1956 = vst [vmem:[#allocation1 + $0x2] ss:$9 sm:$0xff] %v8106_v28  ;;  %v1452_v28 = vadd.f32 %v7671_v15, %v1451_v6  ;;  %v1755_v6 = vsel %vm1572_vm11, %v7989_v30, %v7996_v35 }
 0x233   : > { %1957 = vst [vmem:[#allocation1 + $0x3] ss:$9 sm:$0xff] %v8117_v31  ;;  %v8138_v31 = vrot.slane %v1746_v10, 2 }
 0x234   : > { %1959 = vst [vmem:[#allocation1 + $0x4] ss:$9 sm:$0xff] %v8119_v44  ;;  %v1487_v24 = vmax.f32 %v1452_v28, 0.0  ;;  %v8134_v44 = vsel %vm1568_vm12, %v1507_v25, %v1557_v27  ;;  %v1509_v28 = vpack.c.bf16 %v1484_v8, %v1484_v8  ;;  %v8154_v27 = vrot.slane %v1755_v6, 1 }
 0x235   : > { %1961 = vst [vmem:[#allocation1 + $0x5] ss:$9 sm:$0xff] %v8121_v19  ;;  %v8136_v19 = vrot.slane %v1743_v33, 1  ;;  %v8152_v33 = vsel %vm1568_vm12, %v7989_v30, %v7996_v35  ;;  %v1761_v8 = vsel %vm11788_vm13, %v7989_v30, %v7996_v35 }
 0x236   : > { %11862 = vst [vmem:[#allocation63_spill] sm:$0xff] %v8134_v44  ;;  %v1512_v13 = vpack.c.bf16 %v1487_v24, %v1487_v24  ;;  %v1559_v10 = vrot.slane %v1509_v28, 3 }
 0x237   : > { %11863 = vst [vmem:[#allocation64_spill] sm:$0xff] %v8136_v19  ;;  %v1454_v24 = vpop.f32.mrf.mxu0 }
 0x238   : > { %11864 = vst [vmem:[#allocation65_spill] sm:$0xff] %v8138_v31  ;;  %v1562_v25 = vrot.slane %v1512_v13, 3  ;;  %v1455_v6 = vadd.f32 %v7671_v15, %v1454_v24  ;;  %v8175_v9 = vsel %vm1568_vm12, %v1509_v28, %v1559_v10  ;;  %v8188_v24 = vsel %vm1568_vm12, %v8076_v5, %v8081_v23 }
 0x239   : > { %11865 = vst [vmem:[#allocation66_spill] sm:$0xff] %v8144_v61 }
 0x23a   : > { %11866 = vst [vmem:[#allocation67_spill] sm:$0xff] %v8152_v33  ;;  %v8158_v11 = vsel %vm1568_vm12, %v1512_v13, %v1562_v25 }
 0x23b   : > { %11867 = vst [vmem:[#allocation68_spill] sm:$0xff] %v8154_v27 }
 0x23c   : > { %v8131_v32 = vld [vmem:[#allocation1] sm:$0xff]  ;;  %11868 = vst [vmem:[#allocation69_spill] sm:$0xff] %v8158_v11 }
 0x23d   : > { %11861 = vst [vmem:[#allocation62_spill] sm:$0xff] %v8131_v32  ;;  %v1767_v32 = vsel %vm1572_vm11, %v1509_v28, %v1559_v10 }
 0x23e   : > { %1963 = vst [vmem:[#allocation1] ss:$9 sm:$0xff] %v8134_v44  ;;  %v8177_v30 = vrot.slane %v1767_v32, 1 }
 0x23f   : > { %1965 = vst [vmem:[#allocation1 + $0x1] ss:$9 sm:$0xff] %v8136_v19  ;;  %v1488_v19 = vmax.f32 %v1455_v6, 0.0 }
 0x240   : > { %1967 = vst [vmem:[#allocation1 + $0x2] ss:$9 sm:$0xff] %v8138_v31  ;;  %v8167_v31 = vrot.slane %v1761_v8, 3 }
 0x241   : > { %1969 = vst [vmem:[#allocation1 + $0x3] ss:$9 sm:$0xff] %v8144_v61  ;;  %v1486_v61 = vmax.f32 %v1450_v40, 0.0  ;;  %v1513_v40 = vpack.c.bf16 %v1488_v19, %v1488_v19  ;;  %v1782_v19 = vsel %vm1576_vm10, %v8076_v5, %v8081_v23 }
 0x242   : > { %1970 = vst [vmem:[#allocation1 + $0x4] ss:$9 sm:$0xff] %v8152_v33  ;;  %v1770_v33 = vsel %vm1576_vm10, %v1509_v28, %v1559_v10  ;;  %v8204_v6 = vrot.slane %v1782_v19, 2  ;;  %v1809_v19 = vsel %vm11788_vm13, %v1512_v13, %v1562_v25 }
 0x243   : > { %1972 = vst [vmem:[#allocation1 + $0x5] ss:$9 sm:$0xff] %v8154_v27  ;;  %v1773_v27 = vsel %vm11788_vm13, %v1509_v28, %v1559_v10  ;;  %v8179_v35 = vrot.slane %v1770_v33, 2  ;;  %v1511_v15 = vpack.c.bf16 %v1486_v61, %v1486_v61  ;;  %v1563_v28 = vrot.slane %v1513_v40, 3 }
 0x244   : > { %11869 = vst [vmem:[#allocation70_spill] sm:$0xff] %v8167_v31  ;;  %v8182_v8 = vrot.slane %v1773_v27, 3  ;;  %v1785_v33 = vsel %vm11788_vm13, %v8076_v5, %v8081_v23 }
 0x245   : > { %11871 = vst [vmem:[#allocation72_spill] sm:$0xff] %v8175_v9  ;;  %v1561_v32 = vrot.slane %v1511_v15, 3  ;;  %v8194_v61 = vsel %vm11788_vm13, %v1513_v40, %v1563_v28 }
 0x246   : > { %11872 = vst [vmem:[#allocation73_spill] sm:$0xff] %v8177_v30 }
 0x247   : > { %11873 = vst [vmem:[#allocation74_spill] sm:$0xff] %v8179_v35  ;;  %v1791_v27 = vsel %vm1572_vm11, %v1511_v15, %v1561_v32  ;;  %v1794_v10 = vsel %vm1576_vm10, %v1511_v15, %v1561_v32 }
 0x248   : > { %11874 = vst [vmem:[#allocation75_spill] sm:$0xff] %v8182_v8  ;;  %v8217_v5 = vrot.slane %v1794_v10, 2  ;;  %v8234_v10 = vrot.slane %v1809_v19, 3  ;;  %v8303_v19 = vrot.slane %v7780_v26, 2  ;;  %v11901_v26 = vld [vmem:[#allocation45_spill] sm:$0xff] }
 0x249   : > { %11875 = vst [vmem:[#allocation76_spill] sm:$0xff] %v8188_v24 }
 0x24a   : > { %v8170_v11 = vld [vmem:[#allocation1] sm:$0xff]  ;;  %11876 = vst [vmem:[#allocation77_spill] sm:$0xff] %v8194_v61  ;;  %v8212_v61 = vsel %vm1568_vm12, %v1511_v15, %v1561_v32 }
 0x24b   : > { %11870 = vst [vmem:[#allocation71_spill] sm:$0xff] %v8170_v11  ;;  %v1797_v11 = vsel %vm11788_vm13, %v1511_v15, %v1561_v32  ;;  %v1803_v15 = vsel %vm1572_vm11, %v1512_v13, %v1562_v25  ;;  %v1806_v32 = vsel %vm1576_vm10, %v1512_v13, %v1562_v25 }
 0x24c   : > { %1975 = vst [vmem:[#allocation1] ss:$9 sm:$0xff] %v8167_v31  ;;  %v8220_v23 = vrot.slane %v1797_v11, 3  ;;  %v1815_v11 = vsel %vm1572_vm11, %v1513_v40, %v1563_v28 }
 0x24d   : > { %1976 = vst [vmem:[#allocation1 + $0x1] ss:$9 sm:$0xff] %v8175_v9 }
 0x24e   : > { %1978 = vst [vmem:[#allocation1 + $0x2] ss:$9 sm:$0xff] %v8177_v30 }
 0x24f   : > { %1980 = vst [vmem:[#allocation1 + $0x3] ss:$9 sm:$0xff] %v8179_v35  ;;  %v8214_v35 = vrot.slane %v1791_v27, 1  ;;  %v8231_v27 = vrot.slane %v1806_v32, 2 }
 0x250   : > { %1982 = vst [vmem:[#allocation1 + $0x4] ss:$9 sm:$0xff] %v8182_v8 }
 0x251   : > { %1983 = vst [vmem:[#allocation1 + $0x5] ss:$9 sm:$0xff] %v8188_v24  ;;  %v8207_v24 = vrot.slane %v1785_v33, 3  ;;  %v8229_v33 = vrot.slane %v1803_v15, 1  ;;  %v8291_v15 = vrot.slane %v7760_v12, 3 }
 0x252   : > { %11877 = vst [vmem:[#allocation78_spill] sm:$0xff] %v8204_v6 }
 0x253   : > { %11878 = vst [vmem:[#allocation79_spill] sm:$0xff] %v8207_v24 }
 0x254   : > { %11880 = vst [vmem:[#allocation81_spill] sm:$0xff] %v8212_v61 }
 0x255   : > { %11881 = vst [vmem:[#allocation82_spill] sm:$0xff] %v8214_v35 }
 0x256   : > { %11882 = vst [vmem:[#allocation83_spill] sm:$0xff] %v8217_v5 }
 0x257   : > { %11883 = vst [vmem:[#allocation84_spill] sm:$0xff] %v8220_v23 }
 0x258   : > { %v8209_v8 = vld [vmem:[#allocation1] sm:$0xff]  ;;  %11884 = vst [vmem:[#allocation85_spill] sm:$0xff] %v8229_v33 }
 0x259   : > { %11879 = vst [vmem:[#allocation80_spill] sm:$0xff] %v8209_v8  ;;  %v1818_v8 = vsel %vm1576_vm10, %v1513_v40, %v1563_v28 }
 0x25a   : > { %1986 = vst [vmem:[#allocation1] ss:$9 sm:$0xff] %v8204_v6  ;;  %v8246_v13 = vrot.slane %v1818_v8, 2 }
 0x25b   : > { %1988 = vst [vmem:[#allocation1 + $0x1] ss:$9 sm:$0xff] %v8207_v24 }
 0x25c   : > { %1989 = vst [vmem:[#allocation1 + $0x2] ss:$9 sm:$0xff] %v8212_v61 }
 0x25d   : > { %1991 = vst [vmem:[#allocation1 + $0x3] ss:$9 sm:$0xff] %v8214_v35 }
 0x25e   : > { %1993 = vst [vmem:[#allocation1 + $0x4] ss:$9 sm:$0xff] %v8217_v5  ;;  %v8243_v5 = vrot.slane %v1815_v11, 1  ;;  %v8315_v11 = vrot.slane %v7805_v62, 1  ;;  %v11907_v62 = vld [vmem:[#allocation53_spill] sm:$0xff] }
 0x25f   : > { %1995 = vst [vmem:[#allocation1 + $0x5] ss:$9 sm:$0xff] %v8220_v23  ;;  %v8241_v23 = vsel %vm1568_vm12, %v1513_v40, %v1563_v28  ;;  %v11604_v40 = vrot.slane %v7685_v50, 2 }
 0x260   : > { %11885 = vst [vmem:[#allocation86_spill] sm:$0xff] %v8231_v27 }
 0x261   : > { %11886 = vst [vmem:[#allocation87_spill] sm:$0xff] %v8234_v10 }
 0x262   : > { %11888 = vst [vmem:[#allocation89_spill] sm:$0xff] %v8241_v23 }
 0x263   : > { %11889 = vst [vmem:[#allocation90_spill] sm:$0xff] %v8243_v5 }
 0x264   : > { %11890 = vst [vmem:[#allocation91_spill] sm:$0xff] %v8246_v13 }
 0x265   : > { %11896 = vst [vmem:[#allocation97_spill] sm:$0xff] %v8291_v15 }
 0x266   : > { %v8237_v35 = vld [vmem:[#allocation1] sm:$0xff]  ;;  %11898 = vst [vmem:[#allocation99_spill] sm:$0xff] %v8303_v19 }
 0x267   : > { %11887 = vst [vmem:[#allocation88_spill] sm:$0xff] %v8237_v35  ;;  %v11904_v35 = vld [vmem:[#allocation50_spill] sm:$0xff] }
 0x268   : > { %1998 = vst [vmem:[#allocation1] ss:$9 sm:$0xff] %v8229_v33 }
 0x269   : > { %2000 = vst [vmem:[#allocation1 + $0x1] ss:$9 sm:$0xff] %v8231_v27 }
 0x26a   : > { %2002 = vst [vmem:[#allocation1 + $0x2] ss:$9 sm:$0xff] %v8234_v10 }
 0x26b   : > { %2003 = vst [vmem:[#allocation1 + $0x3] ss:$9 sm:$0xff] %v8241_v23 }
 0x26c   : > { %2005 = vst [vmem:[#allocation1 + $0x4] ss:$9 sm:$0xff] %v8243_v5 }
 0x26d   : > { %2007 = vst [vmem:[#allocation1 + $0x5] ss:$9 sm:$0xff] %v8246_v13 }
 0x26e   : > { %11900 = vst [vmem:[#allocation101_spill] sm:$0xff] %v8315_v11 }
 0x274   : > { %v8252_v25 = vld [vmem:[#allocation1] sm:$0xff] }
 0x275   : > { %11891 = vst [vmem:[#allocation92_spill] sm:$0xff] %v8252_v25 }
 0x276   : > { %2009 = vst [vmem:[#allocation1] ss:$9 sm:$0xff] %v7822_v20  ;;  %v8270_v20 = vrot.slane %v7716_v56, 1 }
 0x277   : > { %2011 = vst [vmem:[#allocation1 + $0x1] ss:$9 sm:$0xff] %v7824_v59 }
 0x278   : > { %2013 = vst [vmem:[#allocation1 + $0x2] ss:$9 sm:$0xff] %v7829_v54 }
 0x279   : > { %2015 = vst [vmem:[#allocation1 + $0x3] ss:$9 sm:$0xff] %v7835_v39 }
 0x27a   : > { %2017 = vst [vmem:[#allocation1 + $0x4] ss:$9 sm:$0xff] %v7847_v51 }
 0x27b   : > { %2019 = vst [vmem:[#allocation1 + $0x5] ss:$9 sm:$0xff] %v7849_v49 }
 0x27c   : > { %2022 = vst [vmem:[#allocation1 + $0x6] ss:$9 sm:$0xff] %v11604_v40  ;;  %v11902_v40 = vld [vmem:[#allocation46_spill] sm:$0xff] }
 0x27d   : > { %11893 = vst [vmem:[#allocation94_spill] sm:$0xff] %v8270_v20 }
 0x283   : > { %v8263_v8 = vld [vmem:[#allocation1] sm:$0xff] }
 0x284   : > { %11892 = vst [vmem:[#allocation93_spill] sm:$0xff] %v8263_v8  ;;  %v11914_v8 = vld [vmem:[#allocation25_spill] sm:$0xff] }
 0x285   : > { %2024 = vst [vmem:[#allocation1] ss:$9 sm:$0xff] %v7867_v3  ;;  %v11917_v3 = vld [vmem:[#allocation61_spill] sm:$0xff] }
 0x286   : > { %2025 = vst [vmem:[#allocation1 + $0x1] ss:$9 sm:$0xff] %v7879_v53 }
 0x287   : > { %2026 = vst [vmem:[#allocation1 + $0x2] ss:$9 sm:$0xff] %v7881_v2 }
 0x288   : > { %2027 = vst [vmem:[#allocation1 + $0x3] ss:$9 sm:$0xff] %v7884_v43 }
 0x289   : > { %2028 = vst [vmem:[#allocation1 + $0x4] ss:$9 sm:$0xff] %v7887_v52 }
 0x28a   : > { %2029 = vst [vmem:[#allocation1 + $0x5] ss:$9 sm:$0xff] %v7894_v17 }
 0x28b   : > { %2031 = vst [vmem:[#allocation1 + $0x6] ss:$9 sm:$0xff] %v8270_v20 }
 0x292   : > { %v8275_v28 = vld [vmem:[#allocation1] sm:$0xff] }
 0x293   : > { %11894 = vst [vmem:[#allocation95_spill] sm:$0xff] %v8275_v28 }
 0x294   : > { %2033 = vst [vmem:[#allocation1] ss:$9 sm:$0xff] %v7904_v1  ;;  %v11916_v1 = vld [vmem:[#allocation60_spill] sm:$0xff] }
 0x295   : > { %2034 = vst [vmem:[#allocation1 + $0x1] ss:$9 sm:$0xff] %v7907_v36 }
 0x296   : > { %2035 = vst [vmem:[#allocation1 + $0x2] ss:$9 sm:$0xff] %v7915_v38 }
 0x297   : > { %2036 = vst [vmem:[#allocation1 + $0x3] ss:$9 sm:$0xff] %v7917_v16 }
 0x298   : > { %2037 = vst [vmem:[#allocation1 + $0x4] ss:$9 sm:$0xff] %v7920_v41 }
 0x299   : > { %2038 = vst [vmem:[#allocation1 + $0x5] ss:$9 sm:$0xff] %v7923_v34 }
 0x29a   : > { %2039 = vst [vmem:[#allocation1 + $0x6] ss:$9 sm:$0xff] %v7739_v48 }
 0x2a1   : > { %v8284_v56 = vld [vmem:[#allocation1] sm:$0xff] }
 0x2a2   : > { %11895 = vst [vmem:[#allocation96_spill] sm:$0xff] %v8284_v56  ;;  %v11908_v56 = vld [vmem:[#allocation23_spill] sm:$0xff] }
 0x2a3   : > { %2041 = vst [vmem:[#allocation1] ss:$9 sm:$0xff] %v7939_v57  ;;  %v8336_v57 = vrot.slane %v11914_v8, 3  ;;  %v11924_v8 = vld [vmem:[#allocation67_spill] sm:$0xff] }
 0x2a4   : > { %2042 = vst [vmem:[#allocation1 + $0x1] ss:$9 sm:$0xff] %v7943_v18 }
 0x2a5   : > { %2043 = vst [vmem:[#allocation1 + $0x2] ss:$9 sm:$0xff] %v7950_v45 }
 0x2a6   : > { %2044 = vst [vmem:[#allocation1 + $0x3] ss:$9 sm:$0xff] %v7960_v58 }
 0x2a7   : > { %2045 = vst [vmem:[#allocation1 + $0x4] ss:$9 sm:$0xff] %v7962_v0 }
 0x2a8   : > { %2046 = vst [vmem:[#allocation1 + $0x5] ss:$9 sm:$0xff] %v7965_v42 }
 0x2a9   : > { %2048 = vst [vmem:[#allocation1 + $0x6] ss:$9 sm:$0xff] %v8291_v15 }
 0x2aa   : > { %11915 = vst [vmem:[#allocation25_spill] sm:$0xff] %v8336_v57 }
 0x2b0   : > { %v8296_v32 = vld [vmem:[#allocation1] sm:$0xff] }
 0x2b1   : > { %11897 = vst [vmem:[#allocation98_spill] sm:$0xff] %v8296_v32  ;;  %v11906_v32 = vld [vmem:[#allocation52_spill] sm:$0xff] }
 0x2b2   : > { %2050 = vst [vmem:[#allocation1] ss:$9 sm:$0xff] %v7977_v7  ;;  %v11911_v7 = vld [vmem:[#allocation57_spill] sm:$0xff] }
 0x2b3   : > { %2051 = vst [vmem:[#allocation1 + $0x1] ss:$9 sm:$0xff] %v7979_v60 }
 0x2b4   : > { %2052 = vst [vmem:[#allocation1 + $0x2] ss:$9 sm:$0xff] %v7983_v46 }
 0x2b5   : > { %2053 = vst [vmem:[#allocation1 + $0x3] ss:$9 sm:$0xff] %v7991_v47 }
 0x2b6   : > { %2054 = vst [vmem:[#allocation1 + $0x4] ss:$9 sm:$0xff] %v8001_v37 }
 0x2b7   : > { %2055 = vst [vmem:[#allocation1 + $0x5] ss:$9 sm:$0xff] %v8003_v29 }
 0x2b8   : > { %2057 = vst [vmem:[#allocation1 + $0x6] ss:$9 sm:$0xff] %v8303_v19 }
 0x2bf   : > { %v8308_v12 = vld [vmem:[#allocation1] sm:$0xff] }
 0x2c0   : > { %11899 = vst [vmem:[#allocation100_spill] sm:$0xff] %v8308_v12  ;;  %v11905_v12 = vld [vmem:[#allocation51_spill] sm:$0xff] }
 0x2c1   : > { %2059 = vst [vmem:[#allocation1] ss:$9 sm:$0xff] %v8019_v63  ;;  %v11910_v63 = vld [vmem:[#allocation55_spill] sm:$0xff] }
 0x2c2   : > { %2060 = vst [vmem:[#allocation1 + $0x1] ss:$9 sm:$0xff] %v8026_v4 }
 0x2c3   : > { %2061 = vst [vmem:[#allocation1 + $0x2] ss:$9 sm:$0xff] %v8028_v14 }
 0x2c4   : > { %2062 = vst [vmem:[#allocation1 + $0x3] ss:$9 sm:$0xff] %v8031_v55 }
 0x2c5   : > { %2063 = vst [vmem:[#allocation1 + $0x4] ss:$9 sm:$0xff] %v11901_v26 }
 0x2c6   : > { %2064 = vst [vmem:[#allocation1 + $0x5] ss:$9 sm:$0xff] %v11902_v40 }
 0x2c7   : > { %2066 = vst [vmem:[#allocation1 + $0x6] ss:$9 sm:$0xff] %v8315_v11 }
 0x2ce   : > { %v8320_v25 = vld [vmem:[#allocation1] sm:$0xff] }
 0x2cf   : > { %11903 = vst [vmem:[#allocation102_spill] sm:$0xff] %v8320_v25  ;;  %v11912_v25 = vld [vmem:[#allocation58_spill] sm:$0xff] }
 0x2d0   : > { %2068 = vst [vmem:[#allocation1] ss:$9 sm:$0xff] %v8051_v22  ;;  %v11913_v22 = vld [vmem:[#allocation59_spill] sm:$0xff] }
 0x2d1   : > { %2069 = vst [vmem:[#allocation1 + $0x1] ss:$9 sm:$0xff] %v8054_v21 }
 0x2d2   : > { %2070 = vst [vmem:[#allocation1 + $0x2] ss:$9 sm:$0xff] %v11904_v35 }
 0x2d3   : > { %2071 = vst [vmem:[#allocation1 + $0x3] ss:$9 sm:$0xff] %v11905_v12 }
 0x2d4   : > { %2072 = vst [vmem:[#allocation1 + $0x4] ss:$9 sm:$0xff] %v11906_v32 }
 0x2d5   : > { %2073 = vst [vmem:[#allocation1 + $0x5] ss:$9 sm:$0xff] %v11907_v62 }
 0x2d6   : > { %2074 = vst [vmem:[#allocation1 + $0x6] ss:$9 sm:$0xff] %v11908_v56 }
 0x2dd   : > { %v8329_v28 = vld [vmem:[#allocation1] sm:$0xff] }
 0x2de   : > { %11909 = vst [vmem:[#allocation103_spill] sm:$0xff] %v8329_v28  ;;  %v11919_v28 = vld [vmem:[#allocation64_spill] sm:$0xff] }
 0x2df   : > { %2076 = vst [vmem:[#allocation1] ss:$9 sm:$0xff] %v11910_v63  ;;  %v11920_v63 = vld [vmem:[#allocation65_spill] sm:$0xff] }
 0x2e0   : > { %2077 = vst [vmem:[#allocation1 + $0x1] ss:$9 sm:$0xff] %v11911_v7 }
 0x2e1   : > { %2078 = vst [vmem:[#allocation1 + $0x2] ss:$9 sm:$0xff] %v11912_v25  ;;  %v11921_v25 = vld [vmem:[#allocation66_spill] sm:$0xff] }
 0x2e2   : > { %2079 = vst [vmem:[#allocation1 + $0x3] ss:$9 sm:$0xff] %v11913_v22  ;;  %v11922_v22 = vld [vmem:[#allocation40_spill] sm:$0xff] }
 0x2e3   : > { %2080 = vst [vmem:[#allocation1 + $0x4] ss:$9 sm:$0xff] %v11916_v1  ;;  %v8348_v7 = vrot.slane %v11922_v22, 2  ;;  %v11925_v1 = vld [vmem:[#allocation68_spill] sm:$0xff]  ;;  %v11930_v22 = vld [vmem:[#allocation75_spill] sm:$0xff] }
 0x2e4   : > { %2081 = vst [vmem:[#allocation1 + $0x5] ss:$9 sm:$0xff] %v11917_v3 }
 0x2e5   : > { %2083 = vst [vmem:[#allocation1 + $0x6] ss:$9 sm:$0xff] %v8336_v57 }
 0x2e6   : > { %11923 = vst [vmem:[#allocation40_spill] sm:$0xff] %v8348_v7 }
 0x2ec   : > { %v8341_v56 = vld [vmem:[#allocation1] sm:$0xff] }
 0x2ed   : > { %11918 = vst [vmem:[#allocation104_spill] sm:$0xff] %v8341_v56  ;;  %v11927_v56 = vld [vmem:[#allocation74_spill] sm:$0xff] }
 0x2ee   : > { %2085 = vst [vmem:[#allocation1] ss:$9 sm:$0xff] %v8134_v44  ;;  %v11928_v44 = vld [vmem:[#allocation54_spill] sm:$0xff] }
 0x2ef   : > { %2086 = vst [vmem:[#allocation1 + $0x1] ss:$9 sm:$0xff] %v11919_v28 }
 0x2f0   : > { %2087 = vst [vmem:[#allocation1 + $0x2] ss:$9 sm:$0xff] %v11920_v63 }
 0x2f1   : > { %2088 = vst [vmem:[#allocation1 + $0x3] ss:$9 sm:$0xff] %v11921_v25  ;;  %v8360_v25 = vrot.slane %v11928_v44, 1  ;;  %v11935_v44 = vld [vmem:[#allocation84_spill] sm:$0xff] }
 0x2f2   : > { %2089 = vst [vmem:[#allocation1 + $0x4] ss:$9 sm:$0xff] %v11924_v8  ;;  %v11931_v8 = vld [vmem:[#allocation76_spill] sm:$0xff] }
 0x2f3   : > { %2090 = vst [vmem:[#allocation1 + $0x5] ss:$9 sm:$0xff] %v11925_v1 }
 0x2f4   : > { %2092 = vst [vmem:[#allocation1 + $0x6] ss:$9 sm:$0xff] %v8348_v7 }
 0x2f5   : > { %11929 = vst [vmem:[#allocation54_spill] sm:$0xff] %v8360_v25 }
 0x2fb   : > { %v8353_v57 = vld [vmem:[#allocation1] sm:$0xff] }
 0x2fc   : > { %11926 = vst [vmem:[#allocation105_spill] sm:$0xff] %v8353_v57  ;;  %v11933_v57 = vld [vmem:[#allocation82_spill] sm:$0xff] }
 0x2fd   : > { %2094 = vst [vmem:[#allocation1] ss:$9 sm:$0xff] %v8167_v31  ;;  %v11934_v31 = vld [vmem:[#allocation83_spill] sm:$0xff] }
 0x2fe   : > { %2095 = vst [vmem:[#allocation1 + $0x1] ss:$9 sm:$0xff] %v8175_v9 }
 0x2ff   : > { %2096 = vst [vmem:[#allocation1 + $0x2] ss:$9 sm:$0xff] %v8177_v30 }
 0x300   : > { %2097 = vst [vmem:[#allocation1 + $0x3] ss:$9 sm:$0xff] %v11927_v56  ;;  %v11936_v56 = vld [vmem:[#allocation69_spill] sm:$0xff] }
 0x301   : > { %2098 = vst [vmem:[#allocation1 + $0x4] ss:$9 sm:$0xff] %v11930_v22 }
 0x302   : > { %2099 = vst [vmem:[#allocation1 + $0x5] ss:$9 sm:$0xff] %v11931_v8  ;;  %v8376_v8 = vpop.f32.mrf.mxu0 }
 0x303   : > { %2101 = vst [vmem:[#allocation1 + $0x6] ss:$9 sm:$0xff] %v8360_v25 }
 0x304   : > { %11938 = vst [vmem:[#allocation108_spill] sm:$0xff] %v8376_v8 }
 0x30a   : > { %v8365_v7 = vld [vmem:[#allocation1] sm:$0xff] }
 0x30b   : > { %11932 = vst [vmem:[#allocation106_spill] sm:$0xff] %v8365_v7  ;;  %v11939_v7 = vld [vmem:[#allocation77_spill] sm:$0xff] }
 0x30c   : > { %2103 = vst [vmem:[#allocation1] ss:$9 sm:$0xff] %v8204_v6  ;;  %v8383_v6 = vrot.slane %v11939_v7, 3 }
 0x30d   : > { %2104 = vst [vmem:[#allocation1 + $0x1] ss:$9 sm:$0xff] %v8207_v24 }
 0x30e   : > { %2105 = vst [vmem:[#allocation1 + $0x2] ss:$9 sm:$0xff] %v8212_v61 }
 0x30f   : > { %2106 = vst [vmem:[#allocation1 + $0x3] ss:$9 sm:$0xff] %v11933_v57 }
 0x310   : > { %2107 = vst [vmem:[#allocation1 + $0x4] ss:$9 sm:$0xff] %v11934_v31 }
 0x311   : > { %2108 = vst [vmem:[#allocation1 + $0x5] ss:$9 sm:$0xff] %v11935_v44 }
 0x312   : > { %2109 = vst [vmem:[#allocation1 + $0x6] ss:$9 sm:$0xff] %v11936_v56 }
 0x313   : > { %11940 = vst [vmem:[#allocation77_spill] sm:$0xff] %v8383_v6 }
 0x319   : > { %v8374_v22 = vld [vmem:[#allocation1] sm:$0xff] }
 0x31a   : > { %11937 = vst [vmem:[#allocation107_spill] sm:$0xff] %v8374_v22  ;;  %v1459_v22 = vpop.f32.mrf.mxu0 }
 0x31b   : > { %2111 = vst [vmem:[#allocation1] ss:$9 sm:$0xff] %v8229_v33  ;;  %v8391_v33 = vld [vmem:[%s11530_s2] ss:$0 sm:$0xff] }
 0x31c   : > { %2112 = vst [vmem:[#allocation1 + $0x1] ss:$9 sm:$0xff] %v8231_v27  ;;  %v1460_v8 = vadd.f32 %v8391_v33, %v1459_v22  ;;  %v11950_v22 = vld [vmem:[#allocation23_spill] sm:$0xff] }
 0x31d   : > { %2113 = vst [vmem:[#allocation1 + $0x2] ss:$9 sm:$0xff] %v8234_v10 }
 0x31e   : > { %2114 = vst [vmem:[#allocation1 + $0x3] ss:$9 sm:$0xff] %v8241_v23  ;;  %v1490_v10 = vmax.f32 %v1460_v8, 0.0 }
 0x31f   : > { %2115 = vst [vmem:[#allocation1 + $0x4] ss:$9 sm:$0xff] %v8243_v5 }
 0x320   : > { %2116 = vst [vmem:[#allocation1 + $0x5] ss:$9 sm:$0xff] %v8246_v13  ;;  %v8394_v27 = vpack.c.bf16 %v1490_v10, %v1490_v10 }
 0x321   : > { %2118 = vst [vmem:[#allocation1 + $0x6] ss:$9 sm:$0xff] %v8383_v6 }
 0x322   : > { %v8400_v7 = vrot.slane %v8394_v27, 3 }
 0x324   : > { %v8407_v6 = vsel %vm1576_vm10, %v8394_v27, %v8400_v7  ;;  %v8412_v10 = vsel %vm11788_vm13, %v8394_v27, %v8400_v7 }
 0x325   : > { %11942 = vst [vmem:[#allocation110_spill] sm:$0xff] %v8407_v6  ;;  %v11954_v6 = vld [vmem:[#allocation59_spill] sm:$0xff] }
 0x326   : > { %11943 = vst [vmem:[#allocation111_spill] sm:$0xff] %v8412_v10  ;;  %v11953_v10 = vld [vmem:[#allocation58_spill] sm:$0xff] }
 0x328   : > { %v8396_v23 = vld [vmem:[#allocation1] sm:$0xff] }
 0x329   : > { %11941 = vst [vmem:[#allocation109_spill] sm:$0xff] %v8396_v23  ;;  %v11952_v23 = vld [vmem:[#allocation57_spill] sm:$0xff] }
 0x32a   : > { %2216 = vst [vmem:[#allocation1] ss:$9 sm:$0xff] %v7824_v59  ;;  %v11944_v59 = vrot.slane %v7685_v50, 2 }
 0x32b   : > { %2218 = vst [vmem:[#allocation1 + $0x1] ss:$9 sm:$0xff] %v7829_v54 }
 0x32c   : > { %2220 = vst [vmem:[#allocation1 + $0x2] ss:$9 sm:$0xff] %v7835_v39 }
 0x32d   : > { %2222 = vst [vmem:[#allocation1 + $0x3] ss:$9 sm:$0xff] %v7847_v51 }
 0x32e   : > { %2224 = vst [vmem:[#allocation1 + $0x4] ss:$9 sm:$0xff] %v7849_v49 }
 0x32f   : > { %2226 = vst [vmem:[#allocation1 + $0x5] ss:$9 sm:$0xff] %v11944_v59 }
 0x336   : > { %v8418_v54 = vld [vmem:[#allocation1] sm:$0xff] }
 0x337   : > { %11945 = vst [vmem:[#allocation112_spill] sm:$0xff] %v8418_v54  ;;  %v11968_v54 = vld [vmem:[#allocation87_spill] sm:$0xff] }
 0x338   : > { %2229 = vst [vmem:[#allocation1] ss:$9 sm:$0xff] %v7879_v53 }
 0x339   : > { %2230 = vst [vmem:[#allocation1 + $0x1] ss:$9 sm:$0xff] %v7881_v2 }
 0x33a   : > { %2231 = vst [vmem:[#allocation1 + $0x2] ss:$9 sm:$0xff] %v7884_v43 }
 0x33b   : > { %2232 = vst [vmem:[#allocation1 + $0x3] ss:$9 sm:$0xff] %v7887_v52 }
 0x33c   : > { %2233 = vst [vmem:[#allocation1 + $0x4] ss:$9 sm:$0xff] %v7894_v17 }
 0x33d   : > { %2234 = vst [vmem:[#allocation1 + $0x5] ss:$9 sm:$0xff] %v8270_v20  ;;  %v11972_v20 = vld [vmem:[#allocation24_spill] sm:$0xff] }
 0x344   : > { %v8426_v39 = vld [vmem:[#allocation1] sm:$0xff] }
 0x345   : > { %11946 = vst [vmem:[#allocation113_spill] sm:$0xff] %v8426_v39 }
 0x346   : > { %2237 = vst [vmem:[#allocation1] ss:$9 sm:$0xff] %v7907_v36 }
 0x347   : > { %2238 = vst [vmem:[#allocation1 + $0x1] ss:$9 sm:$0xff] %v7915_v38 }
 0x348   : > { %2239 = vst [vmem:[#allocation1 + $0x2] ss:$9 sm:$0xff] %v7917_v16 }
 0x349   : > { %2240 = vst [vmem:[#allocation1 + $0x3] ss:$9 sm:$0xff] %v7920_v41 }
 0x34a   : > { %2241 = vst [vmem:[#allocation1 + $0x4] ss:$9 sm:$0xff] %v7923_v34 }
 0x34b   : > { %2242 = vst [vmem:[#allocation1 + $0x5] ss:$9 sm:$0xff] %v7739_v48  ;;  %v11964_v48 = vld [vmem:[#allocation76_spill] sm:$0xff] }
 0x352   : > { %v8434_v50 = vld [vmem:[#allocation1] sm:$0xff] }
 0x353   : > { %11947 = vst [vmem:[#allocation114_spill] sm:$0xff] %v8434_v50 }
 0x354   : > { %2245 = vst [vmem:[#allocation1] ss:$9 sm:$0xff] %v7943_v18 }
 0x355   : > { %2246 = vst [vmem:[#allocation1 + $0x1] ss:$9 sm:$0xff] %v7950_v45 }
 0x356   : > { %2247 = vst [vmem:[#allocation1 + $0x2] ss:$9 sm:$0xff] %v7960_v58 }
 0x357   : > { %2248 = vst [vmem:[#allocation1 + $0x3] ss:$9 sm:$0xff] %v7962_v0 }
 0x358   : > { %2249 = vst [vmem:[#allocation1 + $0x4] ss:$9 sm:$0xff] %v7965_v42 }
 0x359   : > { %2250 = vst [vmem:[#allocation1 + $0x5] ss:$9 sm:$0xff] %v8291_v15 }
 0x360   : > { %v8442_v51 = vld [vmem:[#allocation1] sm:$0xff] }
 0x361   : > { %11948 = vst [vmem:[#allocation115_spill] sm:$0xff] %v8442_v51 }
 0x362   : > { %2253 = vst [vmem:[#allocation1] ss:$9 sm:$0xff] %v7979_v60 }
 0x363   : > { %2254 = vst [vmem:[#allocation1 + $0x1] ss:$9 sm:$0xff] %v7983_v46 }
 0x364   : > { %2255 = vst [vmem:[#allocation1 + $0x2] ss:$9 sm:$0xff] %v7991_v47 }
 0x365   : > { %2256 = vst [vmem:[#allocation1 + $0x3] ss:$9 sm:$0xff] %v8001_v37 }
 0x366   : > { %2257 = vst [vmem:[#allocation1 + $0x4] ss:$9 sm:$0xff] %v8003_v29 }
 0x367   : > { %2258 = vst [vmem:[#allocation1 + $0x5] ss:$9 sm:$0xff] %v8303_v19  ;;  %v11956_v19 = vld [vmem:[#allocation25_spill] sm:$0xff] }
 0x36e   : > { %v8450_v49 = vld [vmem:[#allocation1] sm:$0xff] }
 0x36f   : > { %2261 = vst [vmem:[#allocation1] ss:$9 sm:$0xff] %v8026_v4 }
 0x370   : > { %2262 = vst [vmem:[#allocation1 + $0x1] ss:$9 sm:$0xff] %v8028_v14 }
 0x371   : > { %2263 = vst [vmem:[#allocation1 + $0x2] ss:$9 sm:$0xff] %v8031_v55 }
 0x372   : > { %2264 = vst [vmem:[#allocation1 + $0x3] ss:$9 sm:$0xff] %v11901_v26 }
 0x373   : > { %2265 = vst [vmem:[#allocation1 + $0x4] ss:$9 sm:$0xff] %v11902_v40 }
 0x374   : > { %2266 = vst [vmem:[#allocation1 + $0x5] ss:$9 sm:$0xff] %v8315_v11  ;;  %v11955_v11 = vld [vmem:[#allocation60_spill] sm:$0xff] }
 0x37b   : > { %v8458_v8 = vld [vmem:[#allocation1] sm:$0xff] }
 0x37c   : > { %11949 = vst [vmem:[#allocation116_spill] sm:$0xff] %v8458_v8  ;;  %v11960_v8 = vld [vmem:[#allocation40_spill] sm:$0xff] }
 0x37d   : > { %2269 = vst [vmem:[#allocation1] ss:$9 sm:$0xff] %v8054_v21 }
 0x37e   : > { %2270 = vst [vmem:[#allocation1 + $0x1] ss:$9 sm:$0xff] %v11904_v35 }
 0x37f   : > { %2271 = vst [vmem:[#allocation1 + $0x2] ss:$9 sm:$0xff] %v11905_v12 }
 0x380   : > { %2272 = vst [vmem:[#allocation1 + $0x3] ss:$9 sm:$0xff] %v11906_v32 }
 0x381   : > { %2273 = vst [vmem:[#allocation1 + $0x4] ss:$9 sm:$0xff] %v11907_v62 }
 0x382   : > { %2274 = vst [vmem:[#allocation1 + $0x5] ss:$9 sm:$0xff] %v11950_v22  ;;  %v11958_v22 = vld [vmem:[#allocation66_spill] sm:$0xff] }
 0x389   : > { %v8466_v59 = vld [vmem:[#allocation1] sm:$0xff] }
 0x38a   : > { %11951 = vst [vmem:[#allocation117_spill] sm:$0xff] %v8466_v59  ;;  %v11959_v59 = vld [vmem:[#allocation67_spill] sm:$0xff] }
 0x38b   : > { %2277 = vst [vmem:[#allocation1] ss:$9 sm:$0xff] %v11952_v23 }
 0x38c   : > { %2278 = vst [vmem:[#allocation1 + $0x1] ss:$9 sm:$0xff] %v11953_v10 }
 0x38d   : > { %2279 = vst [vmem:[#allocation1 + $0x2] ss:$9 sm:$0xff] %v11954_v6 }
 0x38e   : > { %2280 = vst [vmem:[#allocation1 + $0x3] ss:$9 sm:$0xff] %v11955_v11 }
 0x38f   : > { %2281 = vst [vmem:[#allocation1 + $0x4] ss:$9 sm:$0xff] %v11917_v3 }
 0x390   : > { %2282 = vst [vmem:[#allocation1 + $0x5] ss:$9 sm:$0xff] %v11956_v19  ;;  %v11962_v19 = vld [vmem:[#allocation74_spill] sm:$0xff] }
 0x397   : > { %v8474_v15 = vld [vmem:[#allocation1] sm:$0xff] }
 0x398   : > { %11957 = vst [vmem:[#allocation118_spill] sm:$0xff] %v8474_v15  ;;  %v11963_v15 = vld [vmem:[#allocation75_spill] sm:$0xff] }
 0x399   : > { %2285 = vst [vmem:[#allocation1] ss:$9 sm:$0xff] %v11919_v28 }
 0x39a   : > { %2286 = vst [vmem:[#allocation1 + $0x1] ss:$9 sm:$0xff] %v11920_v63 }
 0x39b   : > { %2287 = vst [vmem:[#allocation1 + $0x2] ss:$9 sm:$0xff] %v11958_v22 }
 0x39c   : > { %2288 = vst [vmem:[#allocation1 + $0x3] ss:$9 sm:$0xff] %v11959_v59 }
 0x39d   : > { %2289 = vst [vmem:[#allocation1 + $0x4] ss:$9 sm:$0xff] %v11925_v1 }
 0x39e   : > { %2290 = vst [vmem:[#allocation1 + $0x5] ss:$9 sm:$0xff] %v11960_v8  ;;  %v11967_v8 = vld [vmem:[#allocation86_spill] sm:$0xff] }
 0x3a5   : > { %v8482_v51 = vld [vmem:[#allocation1] sm:$0xff] }
 0x3a6   : > { %11961 = vst [vmem:[#allocation119_spill] sm:$0xff] %v8482_v51 }
 0x3a7   : > { %2293 = vst [vmem:[#allocation1] ss:$9 sm:$0xff] %v8175_v9 }
 0x3a8   : > { %2294 = vst [vmem:[#allocation1 + $0x1] ss:$9 sm:$0xff] %v8177_v30 }
 0x3a9   : > { %2295 = vst [vmem:[#allocation1 + $0x2] ss:$9 sm:$0xff] %v11962_v19 }
 0x3aa   : > { %2296 = vst [vmem:[#allocation1 + $0x3] ss:$9 sm:$0xff] %v11963_v15 }
 0x3ab   : > { %2297 = vst [vmem:[#allocation1 + $0x4] ss:$9 sm:$0xff] %v11964_v48 }
 0x3ac   : > { %2298 = vst [vmem:[#allocation1 + $0x5] ss:$9 sm:$0xff] %v8360_v25  ;;  %v11969_v25 = vld [vmem:[#allocation89_spill] sm:$0xff] }
 0x3b3   : > { %v8490_v50 = vld [vmem:[#allocation1] sm:$0xff] }
 0x3b4   : > { %11965 = vst [vmem:[#allocation120_spill] sm:$0xff] %v8490_v50  ;;  %v11970_v50 = vld [vmem:[#allocation77_spill] sm:$0xff] }
 0x3b5   : > { %2301 = vst [vmem:[#allocation1] ss:$9 sm:$0xff] %v8207_v24 }
 0x3b6   : > { %2302 = vst [vmem:[#allocation1 + $0x1] ss:$9 sm:$0xff] %v8212_v61 }
 0x3b7   : > { %2303 = vst [vmem:[#allocation1 + $0x2] ss:$9 sm:$0xff] %v11933_v57 }
 0x3b8   : > { %2304 = vst [vmem:[#allocation1 + $0x3] ss:$9 sm:$0xff] %v11934_v31 }
 0x3b9   : > { %2305 = vst [vmem:[#allocation1 + $0x4] ss:$9 sm:$0xff] %v11935_v44 }
 0x3ba   : > { %2306 = vst [vmem:[#allocation1 + $0x5] ss:$9 sm:$0xff] %v11936_v56  ;;  %v11973_v56 = vld [vmem:[#allocation27_spill] sm:$0xff] }
 0x3c1   : > { %v8498_v51 = vld [vmem:[#allocation1] sm:$0xff] }
 0x3c2   : > { %11966 = vst [vmem:[#allocation121_spill] sm:$0xff] %v8498_v51 }
 0x3c3   : > { %2309 = vst [vmem:[#allocation1] ss:$9 sm:$0xff] %v11967_v8 }
 0x3c4   : > { %2310 = vst [vmem:[#allocation1 + $0x1] ss:$9 sm:$0xff] %v11968_v54 }
 0x3c5   : > { %2311 = vst [vmem:[#allocation1 + $0x2] ss:$9 sm:$0xff] %v11969_v25 }
 0x3c6   : > { %2312 = vst [vmem:[#allocation1 + $0x3] ss:$9 sm:$0xff] %v8243_v5 }
 0x3c7   : > { %2313 = vst [vmem:[#allocation1 + $0x4] ss:$9 sm:$0xff] %v8246_v13 }
 0x3c8   : > { %2314 = vst [vmem:[#allocation1 + $0x5] ss:$9 sm:$0xff] %v11970_v50  ;;  %v11975_v50 = vld [vmem:[#allocation34_spill] sm:$0xff] }
 0x3cf   : > { %v8506_v39 = vld [vmem:[#allocation1] sm:$0xff] }
 0x3d0   : > { %11971 = vst [vmem:[#allocation122_spill] sm:$0xff] %v8506_v39 }
 0x3d1   : > { %2341 = vst [vmem:[#allocation1] ss:$9 sm:$0xff] %v11972_v20 }
 0x3d2   : > { %2343 = vst [vmem:[#allocation1 + $0x1] ss:$9 sm:$0xff] %v7879_v53 }
 0x3d3   : > { %2345 = vst [vmem:[#allocation1 + $0x2] ss:$9 sm:$0xff] %v7881_v2 }
 0x3d4   : > { %2347 = vst [vmem:[#allocation1 + $0x3] ss:$9 sm:$0xff] %v7884_v43 }
 0x3d5   : > { %2349 = vst [vmem:[#allocation1 + $0x4] ss:$9 sm:$0xff] %v7887_v52 }
 0x3d6   : > { %2351 = vst [vmem:[#allocation1 + $0x5] ss:$9 sm:$0xff] %v7894_v17 }
 0x3dd   : > { %v8514_v51 = vld [vmem:[#allocation1] sm:$0xff] }
 0x3de   : > { %2354 = vst [vmem:[#allocation1] ss:$9 sm:$0xff] %v11973_v56 }
 0x3df   : > { %2355 = vst [vmem:[#allocation1 + $0x1] ss:$9 sm:$0xff] %v7907_v36  ;;  %v8531_v36 = vpop.f32.mrf.mxu0 }
 0x3e0   : > { %2356 = vst [vmem:[#allocation1 + $0x2] ss:$9 sm:$0xff] %v7915_v38  ;;  %v11976_v38 = vld [vmem:[#allocation93_spill] sm:$0xff] }
 0x3e1   : > { %2357 = vst [vmem:[#allocation1 + $0x3] ss:$9 sm:$0xff] %v7917_v16  ;;  %v2122_v16 = vshll.u32 %v11976_v38, 16 }
 0x3e2   : > { %2358 = vst [vmem:[#allocation1 + $0x4] ss:$9 sm:$0xff] %v7920_v41 }
 0x3e3   : > { %2359 = vst [vmem:[#allocation1 + $0x5] ss:$9 sm:$0xff] %v7923_v34  ;;  %v2120_v34 = vshrl.u32 %v11976_v38, 16  ;;  %v2124_v41 = vrot.slane %v2122_v16, 1 }
 0x3e4   : > { %11977 = vst [vmem:[#allocation93_spill] sm:$0xff] %v8531_v36 }
 0x3e7   : > { %v1464_v38 = vpop.f32.mrf.mxu0 }
 0x3e8   : > { %v1465_v16 = vadd.f32 %v8391_v33, %v1464_v38 }
 0x3ea   : > { %v8522_v39 = vld [vmem:[#allocation1] sm:$0xff]  ;;  %v1492_v36 = vmax.f32 %v1465_v16, 0.0  ;;  %v11983_v16 = vld [vmem:[#allocation47_spill] sm:$0xff] }
 0x3eb   : > { %11974 = vst [vmem:[#allocation24_spill] sm:$0xff] %v8522_v39 }
 0x3ec   : > { %2362 = vst [vmem:[#allocation1] ss:$9 sm:$0xff] %v11975_v50  ;;  %v11979_v50 = vld [vmem:[#allocation37_spill] sm:$0xff] }
 0x3ed   : > { %2363 = vst [vmem:[#allocation1 + $0x1] ss:$9 sm:$0xff] %v7943_v18  ;;  %v2125_v18 = vor.u32 %v2124_v41, %v2120_v34  ;;  %v8546_v41 = vpack.c.bf16 %v1492_v36, %v1492_v36  ;;  %v11981_v34 = vld [vmem:[#allocation41_spill] sm:$0xff] }
 0x3ee   : > { %2364 = vst [vmem:[#allocation1 + $0x2] ss:$9 sm:$0xff] %v7950_v45 }
 0x3ef   : > { %2365 = vst [vmem:[#allocation1 + $0x3] ss:$9 sm:$0xff] %v7960_v58  ;;  %2192 = vrot.lane.b32.xlu0 %v2125_v18, %s7072_s8  ;;  %v11677_v18 = vrot.slane %v8546_v41, 3 }
 0x3f0   : > { %2366 = vst [vmem:[#allocation1 + $0x4] ss:$9 sm:$0xff] %v7962_v0 }
 0x3f1   : > { %2367 = vst [vmem:[#allocation1 + $0x5] ss:$9 sm:$0xff] %v7965_v42  ;;  %v8557_v38 = vsel %vm1572_vm11, %v8546_v41, %v11677_v18  ;;  %v11984_v18 = vld [vmem:[#allocation55_spill] sm:$0xff] }
 0x3f2   : > { %11980 = vst [vmem:[#allocation124_spill] sm:$0xff] %v8546_v41  ;;  %v11986_v41 = vld [vmem:[#allocation63_spill] sm:$0xff] }
 0x3f3   : > { %11982 = vst [vmem:[#allocation125_spill] sm:$0xff] %v8557_v38 }
 0x3f8   : > { %v8534_v39 = vld [vmem:[#allocation1] sm:$0xff] }
 0x3f9   : > { %11978 = vst [vmem:[#allocation123_spill] sm:$0xff] %v8534_v39 }
 0x3fa   : > { %2370 = vst [vmem:[#allocation1] ss:$9 sm:$0xff] %v11979_v50 }
 0x3fb   : > { %2371 = vst [vmem:[#allocation1 + $0x1] ss:$9 sm:$0xff] %v7979_v60 }
 0x3fc   : > { %2372 = vst [vmem:[#allocation1 + $0x2] ss:$9 sm:$0xff] %v7983_v46 }
 0x3fd   : > { %2373 = vst [vmem:[#allocation1 + $0x3] ss:$9 sm:$0xff] %v7991_v47  ;;  %v1466_v47 = vpop.f32.mrf.mxu0 }
 0x3fe   : > { %2374 = vst [vmem:[#allocation1 + $0x4] ss:$9 sm:$0xff] %v8001_v37 }
 0x3ff   : > { %2375 = vst [vmem:[#allocation1 + $0x5] ss:$9 sm:$0xff] %v8003_v29 }
 0x406   : > { %v8544_v39 = vld [vmem:[#allocation1] sm:$0xff] }
 0x407   : > { %2378 = vst [vmem:[#allocation1] ss:$9 sm:$0xff] %v11981_v34 }
 0x408   : > { %2379 = vst [vmem:[#allocation1 + $0x1] ss:$9 sm:$0xff] %v8026_v4 }
 0x409   : > { %2380 = vst [vmem:[#allocation1 + $0x2] ss:$9 sm:$0xff] %v8028_v14 }
 0x40a   : > { %2381 = vst [vmem:[#allocation1 + $0x3] ss:$9 sm:$0xff] %v8031_v55 }
 0x40b   : > { %2382 = vst [vmem:[#allocation1 + $0x4] ss:$9 sm:$0xff] %v11901_v26 }
 0x40c   : > { %2383 = vst [vmem:[#allocation1 + $0x5] ss:$9 sm:$0xff] %v11902_v40 }
 0x413   : > { %v8561_v36 = vld [vmem:[#allocation1] sm:$0xff] }
 0x414   : > { %2386 = vst [vmem:[#allocation1] ss:$9 sm:$0xff] %v11983_v16 }
 0x415   : > { %2387 = vst [vmem:[#allocation1 + $0x1] ss:$9 sm:$0xff] %v8054_v21 }
 0x416   : > { %2388 = vst [vmem:[#allocation1 + $0x2] ss:$9 sm:$0xff] %v11904_v35 }
 0x417   : > { %2389 = vst [vmem:[#allocation1 + $0x3] ss:$9 sm:$0xff] %v11905_v12 }
 0x418   : > { %2390 = vst [vmem:[#allocation1 + $0x4] ss:$9 sm:$0xff] %v11906_v32 }
 0x419   : > { %2391 = vst [vmem:[#allocation1 + $0x5] ss:$9 sm:$0xff] %v11907_v62 }
 0x420   : > { %v8569_v47 = vld [vmem:[#allocation1] sm:$0xff] }
 0x421   : > { %2394 = vst [vmem:[#allocation1] ss:$9 sm:$0xff] %v11984_v18 }
 0x422   : > { %2395 = vst [vmem:[#allocation1 + $0x1] ss:$9 sm:$0xff] %v11952_v23 }
 0x423   : > { %2396 = vst [vmem:[#allocation1 + $0x2] ss:$9 sm:$0xff] %v11953_v10 }
 0x424   : > { %2397 = vst [vmem:[#allocation1 + $0x3] ss:$9 sm:$0xff] %v11954_v6  ;;  %v11988_v6 = vld [vmem:[#allocation70_spill] sm:$0xff] }
 0x425   : > { %2398 = vst [vmem:[#allocation1 + $0x4] ss:$9 sm:$0xff] %v11955_v11 }
 0x426   : > { %2399 = vst [vmem:[#allocation1 + $0x5] ss:$9 sm:$0xff] %v11917_v3 }
 0x42d   : > { %v8577_v38 = vld [vmem:[#allocation1] sm:$0xff] }
 0x42e   : > { %11985 = vst [vmem:[#allocation126_spill] sm:$0xff] %v8577_v38 }
 0x42f   : > { %2402 = vst [vmem:[#allocation1] ss:$9 sm:$0xff] %v11986_v41 }
 0x430   : > { %2403 = vst [vmem:[#allocation1 + $0x1] ss:$9 sm:$0xff] %v11919_v28 }
 0x431   : > { %2404 = vst [vmem:[#allocation1 + $0x2] ss:$9 sm:$0xff] %v11920_v63 }
 0x432   : > { %2405 = vst [vmem:[#allocation1 + $0x3] ss:$9 sm:$0xff] %v11958_v22  ;;  %v11990_v22 = vld [vmem:[#allocation78_spill] sm:$0xff] }
 0x433   : > { %2406 = vst [vmem:[#allocation1 + $0x4] ss:$9 sm:$0xff] %v11959_v59 }
 0x434   : > { %2407 = vst [vmem:[#allocation1 + $0x5] ss:$9 sm:$0xff] %v11925_v1 }
 0x43b   : > { %v8585_v10 = vld [vmem:[#allocation1] sm:$0xff] }
 0x43c   : > { %11987 = vst [vmem:[#allocation127_spill] sm:$0xff] %v8585_v10  ;;  %v11991_v10 = vld [vmem:[#allocation108_spill] sm:$0xff] }
 0x43d   : > { %2410 = vst [vmem:[#allocation1] ss:$9 sm:$0xff] %v11988_v6 }
 0x43e   : > { %2411 = vst [vmem:[#allocation1 + $0x1] ss:$9 sm:$0xff] %v8175_v9 }
 0x43f   : > { %2412 = vst [vmem:[#allocation1 + $0x2] ss:$9 sm:$0xff] %v8177_v30 }
 0x440   : > { %2413 = vst [vmem:[#allocation1 + $0x3] ss:$9 sm:$0xff] %v11962_v19  ;;  %v1457_v19 = vadd.f32 %v8391_v33, %v11991_v10  ;;  %v11994_v10 = vld [vmem:[#allocation95_spill] sm:$0xff] }
 0x441   : > { %2414 = vst [vmem:[#allocation1 + $0x4] ss:$9 sm:$0xff] %v11963_v15 }
 0x442   : > { %2415 = vst [vmem:[#allocation1 + $0x5] ss:$9 sm:$0xff] %v11964_v48  ;;  %v1489_v15 = vmax.f32 %v1457_v19, 0.0  ;;  %v11993_v48 = vld [vmem:[#allocation85_spill] sm:$0xff] }
 0x449   : > { %v8593_v38 = vld [vmem:[#allocation1] sm:$0xff] }
 0x44a   : > { %11989 = vst [vmem:[#allocation128_spill] sm:$0xff] %v8593_v38  ;;  %v1514_v38 = vpack.c.bf16 %v1489_v15, %v1489_v15 }
 0x44b   : > { %2418 = vst [vmem:[#allocation1] ss:$9 sm:$0xff] %v11990_v22 }
 0x44c   : > { %2419 = vst [vmem:[#allocation1 + $0x1] ss:$9 sm:$0xff] %v8207_v24 }
 0x44d   : > { %2420 = vst [vmem:[#allocation1 + $0x2] ss:$9 sm:$0xff] %v8212_v61 }
 0x44e   : > { %2421 = vst [vmem:[#allocation1 + $0x3] ss:$9 sm:$0xff] %v11933_v57 }
 0x44f   : > { %2422 = vst [vmem:[#allocation1 + $0x4] ss:$9 sm:$0xff] %v11934_v31 }
 0x450   : > { %2423 = vst [vmem:[#allocation1 + $0x5] ss:$9 sm:$0xff] %v11935_v44  ;;  %v1564_v44 = vrot.slane %v1514_v38, 3 }
 0x452   : > { %v1827_v31 = vsel %vm1572_vm11, %v1514_v38, %v1564_v44  ;;  %v1830_v33 = vsel %vm1576_vm10, %v1514_v38, %v1564_v44  ;;  %v1833_v19 = vsel %vm11788_vm13, %v1514_v38, %v1564_v44  ;;  %v8618_v15 = vsel %vm1568_vm12, %v1514_v38, %v1564_v44 }
 0x453   : > { %11996 = vst [vmem:[#allocation129_spill] sm:$0xff] %v8618_v15  ;;  %v8629_v57 = vrot.slane %v1833_v19, 3 }
 0x455   : > { %11999 = vst [vmem:[#allocation132_spill] sm:$0xff] %v8629_v57 }
 0x457   : > { %v8603_v30 = vld [vmem:[#allocation1] sm:$0xff] }
 0x458   : > { %11992 = vst [vmem:[#allocation108_spill] sm:$0xff] %v8603_v30  ;;  %v2128_v30 = vshll.u32 %v11994_v10, 16 }
 0x459   : > { %2426 = vst [vmem:[#allocation1] ss:$9 sm:$0xff] %v11993_v48 }
 0x45a   : > { %2427 = vst [vmem:[#allocation1 + $0x1] ss:$9 sm:$0xff] %v11967_v8  ;;  %v2130_v8 = vrot.slane %v2128_v30, 1  ;;  %v12002_v30 = vld [vmem:[#allocation96_spill] sm:$0xff] }
 0x45b   : > { %2428 = vst [vmem:[#allocation1 + $0x2] ss:$9 sm:$0xff] %v11968_v54  ;;  %v8620_v54 = vrot.slane %v1827_v31, 1  ;;  %v8637_v31 = vsel %vm1568_vm12, %v8394_v27, %v8400_v7  ;;  %v2132_v19 = vshrl.u32 %v12002_v30, 16 }
 0x45c   : > { %2429 = vst [vmem:[#allocation1 + $0x3] ss:$9 sm:$0xff] %v11969_v25  ;;  %v8622_v25 = vrot.slane %v1830_v33, 2  ;;  %v2134_v33 = vshll.u32 %v12002_v30, 16 }
 0x45d   : > { %2430 = vst [vmem:[#allocation1 + $0x4] ss:$9 sm:$0xff] %v8243_v5  ;;  %v2126_v5 = vshrl.u32 %v11994_v10, 16 }
 0x45e   : > { %2431 = vst [vmem:[#allocation1 + $0x5] ss:$9 sm:$0xff] %v8246_v13  ;;  %v1839_v13 = vsel %vm1572_vm11, %v8394_v27, %v8400_v7  ;;  %v12004_v27 = vld [vmem:[#allocation98_spill] sm:$0xff] }
 0x45f   : > { %11997 = vst [vmem:[#allocation130_spill] sm:$0xff] %v8620_v54  ;;  %v2131_v44 = vor.u32 %v2130_v8, %v2126_v5  ;;  %v8639_v38 = vrot.slane %v1839_v13, 1  ;;  %v2136_v5 = vrot.slane %v2134_v33, 1  ;;  %v2140_v13 = vshll.u32 %v12004_v27, 16  ;;  %v12005_v33 = vld [vmem:[#allocation94_spill] sm:$0xff] }
 0x460   : > { %11998 = vst [vmem:[#allocation131_spill] sm:$0xff] %v8622_v25  ;;  %v2138_v7 = vshrl.u32 %v12004_v27, 16  ;;  %v12011_v27 = vld [vmem:[#allocation30_spill] sm:$0xff] }
 0x461   : > { %12000 = vst [vmem:[#allocation133_spill] sm:$0xff] %v8637_v31  ;;  %2194 = vrot.lane.b32.xlu2 %v2131_v44, %s7072_s8  ;;  %v2137_v8 = vor.u32 %v2136_v5, %v2132_v19  ;;  %v2142_v44 = vrot.slane %v2140_v13, 1  ;;  %v12008_v19 = vld [vmem:[#allocation28_spill] sm:$0xff]  ;;  %v12012_v13 = vld [vmem:[#allocation31_spill] sm:$0xff] }
 0x462   : > { %12001 = vst [vmem:[#allocation134_spill] sm:$0xff] %v8639_v38  ;;  %v12009_v5 = vld [vmem:[#allocation112_spill] sm:$0xff] }
 0x463   : > { %2196 = vrot.lane.b32.xlu0 %v2137_v8, %s7072_s8  ;;  %v2143_v30 = vor.u32 %v2142_v44, %v2138_v7  ;;  %v12010_v8 = vld [vmem:[#allocation114_spill] sm:$0xff]  ;;  %v12014_v7 = vld [vmem:[#allocation33_spill] sm:$0xff] }
 0x464   : > { %v12015_v44 = vld [vmem:[#allocation22_spill] sm:$0xff] }
 0x465   : > { %v8615_v48 = vld [vmem:[#allocation1] sm:$0xff]  ;;  %2198 = vrot.lane.b32.xlu1 %v2143_v30, %s7072_s8  ;;  %v12016_v30 = vld [vmem:[#allocation115_spill] sm:$0xff] }
 0x466   : > { %11995 = vst [vmem:[#allocation95_spill] sm:$0xff] %v8615_v48  ;;  %v12026_v48 = vld [vmem:[#allocation99_spill] sm:$0xff] }
 0x467   : > { %2434 = vst [vmem:[#allocation1] ss:$9 sm:$0xff] %v8618_v15 }
 0x468   : > { %2436 = vst [vmem:[#allocation1 + $0x1] ss:$9 sm:$0xff] %v8620_v54 }
 0x469   : > { %2438 = vst [vmem:[#allocation1 + $0x2] ss:$9 sm:$0xff] %v8622_v25  ;;  %2325 = vrot.lane.b32.xlu2 %v8450_v49, %s7073_s9 }
 0x46a   : > { %2440 = vst [vmem:[#allocation1 + $0x3] ss:$9 sm:$0xff] %v8629_v57 }
 0x46b   : > { %2441 = vst [vmem:[#allocation1 + $0x4] ss:$9 sm:$0xff] %v8637_v31 }
 0x46c   : > { %2443 = vst [vmem:[#allocation1 + $0x5] ss:$9 sm:$0xff] %v8639_v38 }
 0x46d   : > { %2317 = vrot.lane.b32.xlu1 %v12009_v5, %s7073_s9  ;;  %v12019_v5 = vld [vmem:[#allocation35_spill] sm:$0xff] }
 0x471   : > { %2446 = vrot.lane.b32.xlu2 %v8514_v51, %s7067_s12  ;;  %v12013_v51 = vld [vmem:[#allocation32_spill] sm:$0xff] }
 0x473   : > { %v8646_v10 = vld [vmem:[#allocation1] sm:$0xff] }
 0x474   : > { %12003 = vst [vmem:[#allocation96_spill] sm:$0xff] %v8646_v10  ;;  %v12024_v10 = vld [vmem:[#allocation39_spill] sm:$0xff] }
 0x475   : > { %2470 = vst [vmem:[#allocation1] ss:$9 sm:$0xff] %v11972_v20  ;;  %v12006_v20 = vld [vmem:[#allocation113_spill] sm:$0xff]  ;;  %2323 = vrot.lane.b32.xlu1 %v12016_v30, %s7073_s9 }
 0x476   : > { %2472 = vst [vmem:[#allocation1 + $0x1] ss:$9 sm:$0xff] %v7879_v53  ;;  %2319 = vrot.lane.b32.xlu0 %v12006_v20, %s7073_s9 }
 0x477   : > { %2474 = vst [vmem:[#allocation1 + $0x2] ss:$9 sm:$0xff] %v7881_v2 }
 0x478   : > { %2476 = vst [vmem:[#allocation1 + $0x3] ss:$9 sm:$0xff] %v7884_v43 }
 0x479   : > { %2478 = vst [vmem:[#allocation1 + $0x4] ss:$9 sm:$0xff] %v7887_v52  ;;  %2452 = vrot.lane.b32.xlu2 %v8544_v39, %s7067_s12  ;;  %v12018_v39 = vld [vmem:[#allocation34_spill] sm:$0xff] }
 0x47a   : > { %2480 = vst [vmem:[#allocation1 + $0x5] ss:$9 sm:$0xff] %v7894_v17 }
 0x47b   : > { %2482 = vst [vmem:[#allocation1 + $0x6] ss:$9 sm:$0xff] %v12005_v33 }
 0x47e   : > { %2321 = vrot.lane.b32.xlu0 %v12010_v8, %s7073_s9  ;;  %v12020_v8 = vld [vmem:[#allocation116_spill] sm:$0xff] }
 0x47f   : > { %2327 = vrot.lane.b32.xlu1 %v12020_v8, %s7073_s9  ;;  %v12025_v8 = vld [vmem:[#allocation123_spill] sm:$0xff] }
 0x481   : > { %2456 = vrot.lane.b32.xlu2 %v8569_v47, %s7067_s12  ;;  %v12022_v47 = vld [vmem:[#allocation24_spill] sm:$0xff] }
 0x482   : > { %v8665_v49 = vld [vmem:[#allocation1] sm:$0xff] }
 0x483   : > { %12007 = vst [vmem:[#allocation98_spill] sm:$0xff] %v8665_v49  ;;  %v12042_v49 = vld [vmem:[#allocation76_spill] sm:$0xff] }
 0x484   : > { %2484 = vst [vmem:[#allocation1] ss:$9 sm:$0xff] %v11973_v56  ;;  %v12032_v56 = vld [vmem:[#allocation58_spill] sm:$0xff] }
 0x485   : > { %2485 = vst [vmem:[#allocation1 + $0x1] ss:$9 sm:$0xff] %v12008_v19 }
 0x486   : > { %2486 = vst [vmem:[#allocation1 + $0x2] ss:$9 sm:$0xff] %v12011_v27  ;;  %2454 = vrot.lane.b32.xlu0 %v8561_v36, %s7067_s12  ;;  %v12021_v36 = vld [vmem:[#allocation97_spill] sm:$0xff] }
 0x487   : > { %2487 = vst [vmem:[#allocation1 + $0x3] ss:$9 sm:$0xff] %v12012_v13  ;;  %2448 = vrot.lane.b32.xlu1 %v12022_v47, %s7067_s12 }
 0x488   : > { %2488 = vst [vmem:[#allocation1 + $0x4] ss:$9 sm:$0xff] %v12013_v51 }
 0x489   : > { %2489 = vst [vmem:[#allocation1 + $0x5] ss:$9 sm:$0xff] %v12014_v7 }
 0x48a   : > { %2490 = vst [vmem:[#allocation1 + $0x6] ss:$9 sm:$0xff] %v12015_v44 }
 0x48f   : > { %2450 = vrot.lane.b32.xlu1 %v12025_v8, %s7067_s12  ;;  %v12030_v8 = vld [vmem:[#allocation23_spill] sm:$0xff] }
 0x491   : > { %v8686_v20 = vld [vmem:[#allocation1] sm:$0xff] }
 0x492   : > { %12017 = vst [vmem:[#allocation94_spill] sm:$0xff] %v8686_v20  ;;  %v12041_v20 = vld [vmem:[#allocation75_spill] sm:$0xff] }
 0x493   : > { %2492 = vst [vmem:[#allocation1] ss:$9 sm:$0xff] %v12018_v39 }
 0x494   : > { %2493 = vst [vmem:[#allocation1 + $0x1] ss:$9 sm:$0xff] %v12019_v5 }
 0x495   : > { %2494 = vst [vmem:[#allocation1 + $0x2] ss:$9 sm:$0xff] %v7950_v45 }
 0x496   : > { %2495 = vst [vmem:[#allocation1 + $0x3] ss:$9 sm:$0xff] %v7960_v58 }
 0x497   : > { %2496 = vst [vmem:[#allocation1 + $0x4] ss:$9 sm:$0xff] %v7962_v0 }
 0x498   : > { %2497 = vst [vmem:[#allocation1 + $0x5] ss:$9 sm:$0xff] %v7965_v42 }
 0x499   : > { %2498 = vst [vmem:[#allocation1 + $0x6] ss:$9 sm:$0xff] %v12021_v36 }
 0x4a0   : > { %v8699_v30 = vld [vmem:[#allocation1] sm:$0xff] }
 0x4a1   : > { %12023 = vst [vmem:[#allocation113_spill] sm:$0xff] %v8699_v30 }
 0x4a2   : > { %2500 = vst [vmem:[#allocation1] ss:$9 sm:$0xff] %v11979_v50  ;;  %v12028_v50 = vld [vmem:[#allocation101_spill] sm:$0xff] }
 0x4a3   : > { %2501 = vst [vmem:[#allocation1 + $0x1] ss:$9 sm:$0xff] %v7979_v60 }
 0x4a4   : > { %2502 = vst [vmem:[#allocation1 + $0x2] ss:$9 sm:$0xff] %v7983_v46 }
 0x4a5   : > { %2503 = vst [vmem:[#allocation1 + $0x3] ss:$9 sm:$0xff] %v12024_v10 }
 0x4a6   : > { %2504 = vst [vmem:[#allocation1 + $0x4] ss:$9 sm:$0xff] %v8001_v37 }
 0x4a7   : > { %2505 = vst [vmem:[#allocation1 + $0x5] ss:$9 sm:$0xff] %v8003_v29 }
 0x4a8   : > { %2506 = vst [vmem:[#allocation1 + $0x6] ss:$9 sm:$0xff] %v12026_v48 }
 0x4af   : > { %v8710_v47 = vld [vmem:[#allocation1] sm:$0xff] }
 0x4b0   : > { %12027 = vst [vmem:[#allocation28_spill] sm:$0xff] %v8710_v47 }
 0x4b1   : > { %2508 = vst [vmem:[#allocation1] ss:$9 sm:$0xff] %v11981_v34 }
 0x4b2   : > { %2509 = vst [vmem:[#allocation1 + $0x1] ss:$9 sm:$0xff] %v8026_v4 }
 0x4b3   : > { %2510 = vst [vmem:[#allocation1 + $0x2] ss:$9 sm:$0xff] %v8028_v14 }
 0x4b4   : > { %2511 = vst [vmem:[#allocation1 + $0x3] ss:$9 sm:$0xff] %v8031_v55 }
 0x4b5   : > { %2512 = vst [vmem:[#allocation1 + $0x4] ss:$9 sm:$0xff] %v11901_v26 }
 0x4b6   : > { %2513 = vst [vmem:[#allocation1 + $0x5] ss:$9 sm:$0xff] %v11902_v40 }
 0x4b7   : > { %2514 = vst [vmem:[#allocation1 + $0x6] ss:$9 sm:$0xff] %v12028_v50 }
 0x4be   : > { %v8719_v39 = vld [vmem:[#allocation1] sm:$0xff] }
 0x4bf   : > { %12029 = vst [vmem:[#allocation112_spill] sm:$0xff] %v8719_v39  ;;  %v12034_v39 = vld [vmem:[#allocation25_spill] sm:$0xff] }
 0x4c0   : > { %2516 = vst [vmem:[#allocation1] ss:$9 sm:$0xff] %v11983_v16  ;;  %v12033_v16 = vld [vmem:[#allocation59_spill] sm:$0xff] }
 0x4c1   : > { %2517 = vst [vmem:[#allocation1 + $0x1] ss:$9 sm:$0xff] %v8054_v21 }
 0x4c2   : > { %2518 = vst [vmem:[#allocation1 + $0x2] ss:$9 sm:$0xff] %v11904_v35 }
 0x4c3   : > { %2519 = vst [vmem:[#allocation1 + $0x3] ss:$9 sm:$0xff] %v11905_v12 }
 0x4c4   : > { %2520 = vst [vmem:[#allocation1 + $0x4] ss:$9 sm:$0xff] %v11906_v32 }
 0x4c5   : > { %2521 = vst [vmem:[#allocation1 + $0x5] ss:$9 sm:$0xff] %v11907_v62 }
 0x4c6   : > { %2522 = vst [vmem:[#allocation1 + $0x6] ss:$9 sm:$0xff] %v12030_v8 }
 0x4cd   : > { %v8728_v34 = vld [vmem:[#allocation1] sm:$0xff] }
 0x4ce   : > { %12031 = vst [vmem:[#allocation114_spill] sm:$0xff] %v8728_v34  ;;  %v12036_v34 = vld [vmem:[#allocation66_spill] sm:$0xff] }
 0x4cf   : > { %2524 = vst [vmem:[#allocation1] ss:$9 sm:$0xff] %v11984_v18  ;;  %v12037_v18 = vld [vmem:[#allocation40_spill] sm:$0xff] }
 0x4d0   : > { %2525 = vst [vmem:[#allocation1 + $0x1] ss:$9 sm:$0xff] %v11952_v23 }
 0x4d1   : > { %2526 = vst [vmem:[#allocation1 + $0x2] ss:$9 sm:$0xff] %v12032_v56 }
 0x4d2   : > { %2527 = vst [vmem:[#allocation1 + $0x3] ss:$9 sm:$0xff] %v12033_v16 }
 0x4d3   : > { %2528 = vst [vmem:[#allocation1 + $0x4] ss:$9 sm:$0xff] %v11955_v11 }
 0x4d4   : > { %2529 = vst [vmem:[#allocation1 + $0x5] ss:$9 sm:$0xff] %v11917_v3 }
 0x4d5   : > { %2530 = vst [vmem:[#allocation1 + $0x6] ss:$9 sm:$0xff] %v12034_v39 }
 0x4dc   : > { %v8737_v47 = vld [vmem:[#allocation1] sm:$0xff] }
 0x4dd   : > { %12035 = vst [vmem:[#allocation30_spill] sm:$0xff] %v8737_v47  ;;  %v12039_v47 = vld [vmem:[#allocation73_spill] sm:$0xff] }
 0x4de   : > { %2532 = vst [vmem:[#allocation1] ss:$9 sm:$0xff] %v11986_v41  ;;  %v12040_v41 = vld [vmem:[#allocation74_spill] sm:$0xff] }
 0x4df   : > { %2533 = vst [vmem:[#allocation1 + $0x1] ss:$9 sm:$0xff] %v11919_v28 }
 0x4e0   : > { %2534 = vst [vmem:[#allocation1 + $0x2] ss:$9 sm:$0xff] %v11920_v63 }
 0x4e1   : > { %2535 = vst [vmem:[#allocation1 + $0x3] ss:$9 sm:$0xff] %v12036_v34  ;;  %v12043_v34 = vld [vmem:[#allocation54_spill] sm:$0xff] }
 0x4e2   : > { %2536 = vst [vmem:[#allocation1 + $0x4] ss:$9 sm:$0xff] %v11959_v59 }
 0x4e3   : > { %2537 = vst [vmem:[#allocation1 + $0x5] ss:$9 sm:$0xff] %v11925_v1 }
 0x4e4   : > { %2538 = vst [vmem:[#allocation1 + $0x6] ss:$9 sm:$0xff] %v12037_v18 }
 0x4eb   : > { %v8746_v30 = vld [vmem:[#allocation1] sm:$0xff] }
 0x4ec   : > { %12038 = vst [vmem:[#allocation31_spill] sm:$0xff] %v8746_v30  ;;  %v12045_v30 = vld [vmem:[#allocation82_spill] sm:$0xff] }
 0x4ed   : > { %2540 = vst [vmem:[#allocation1] ss:$9 sm:$0xff] %v11988_v6  ;;  %v12046_v6 = vld [vmem:[#allocation83_spill] sm:$0xff] }
 0x4ee   : > { %2541 = vst [vmem:[#allocation1 + $0x1] ss:$9 sm:$0xff] %v8175_v9 }
 0x4ef   : > { %2542 = vst [vmem:[#allocation1 + $0x2] ss:$9 sm:$0xff] %v12039_v47  ;;  %v12047_v47 = vld [vmem:[#allocation84_spill] sm:$0xff] }
 0x4f0   : > { %2543 = vst [vmem:[#allocation1 + $0x3] ss:$9 sm:$0xff] %v12040_v41  ;;  %v12048_v41 = vld [vmem:[#allocation69_spill] sm:$0xff] }
 0x4f1   : > { %2544 = vst [vmem:[#allocation1 + $0x4] ss:$9 sm:$0xff] %v12041_v20 }
 0x4f2   : > { %2545 = vst [vmem:[#allocation1 + $0x5] ss:$9 sm:$0xff] %v12042_v49  ;;  %v12050_v49 = vld [vmem:[#allocation85_spill] sm:$0xff] }
 0x4f3   : > { %2546 = vst [vmem:[#allocation1 + $0x6] ss:$9 sm:$0xff] %v12043_v34  ;;  %v12051_v34 = vld [vmem:[#allocation86_spill] sm:$0xff] }
 0x4fa   : > { %v8755_v59 = vld [vmem:[#allocation1] sm:$0xff] }
 0x4fb   : > { %12044 = vst [vmem:[#allocation32_spill] sm:$0xff] %v8755_v59  ;;  %v12052_v59 = vld [vmem:[#allocation87_spill] sm:$0xff] }
 0x4fc   : > { %2548 = vst [vmem:[#allocation1] ss:$9 sm:$0xff] %v11990_v22  ;;  %v12053_v22 = vld [vmem:[#allocation89_spill] sm:$0xff] }
 0x4fd   : > { %2549 = vst [vmem:[#allocation1 + $0x1] ss:$9 sm:$0xff] %v8207_v24  ;;  %v12054_v24 = vld [vmem:[#allocation90_spill] sm:$0xff] }
 0x4fe   : > { %2550 = vst [vmem:[#allocation1 + $0x2] ss:$9 sm:$0xff] %v8212_v61  ;;  %v12055_v61 = vld [vmem:[#allocation91_spill] sm:$0xff] }
 0x4ff   : > { %2551 = vst [vmem:[#allocation1 + $0x3] ss:$9 sm:$0xff] %v12045_v30  ;;  %v12056_v30 = vld [vmem:[#allocation77_spill] sm:$0xff] }
 0x500   : > { %2552 = vst [vmem:[#allocation1 + $0x4] ss:$9 sm:$0xff] %v12046_v6 }
 0x501   : > { %2553 = vst [vmem:[#allocation1 + $0x5] ss:$9 sm:$0xff] %v12047_v47 }
 0x502   : > { %2554 = vst [vmem:[#allocation1 + $0x6] ss:$9 sm:$0xff] %v12048_v41 }
 0x509   : > { %v8764_v20 = vld [vmem:[#allocation1] sm:$0xff] }
 0x50a   : > { %12049 = vst [vmem:[#allocation33_spill] sm:$0xff] %v8764_v20  ;;  %v12058_v20 = vld [vmem:[#allocation110_spill] sm:$0xff] }
 0x50b   : > { %2556 = vst [vmem:[#allocation1] ss:$9 sm:$0xff] %v12050_v49  ;;  %v8780_v49 = vrot.slane %v12058_v20, 2 }
 0x50c   : > { %2557 = vst [vmem:[#allocation1 + $0x1] ss:$9 sm:$0xff] %v12051_v34 }
 0x50d   : > { %2558 = vst [vmem:[#allocation1 + $0x2] ss:$9 sm:$0xff] %v12052_v59 }
 0x50e   : > { %2559 = vst [vmem:[#allocation1 + $0x3] ss:$9 sm:$0xff] %v12053_v22 }
 0x50f   : > { %2560 = vst [vmem:[#allocation1 + $0x4] ss:$9 sm:$0xff] %v12054_v24 }
 0x510   : > { %2561 = vst [vmem:[#allocation1 + $0x5] ss:$9 sm:$0xff] %v12055_v61 }
 0x511   : > { %2562 = vst [vmem:[#allocation1 + $0x6] ss:$9 sm:$0xff] %v12056_v30 }
 0x512   : > { %12059 = vst [vmem:[#allocation35_spill] sm:$0xff] %v8780_v49 }
 0x518   : > { %v8773_v6 = vld [vmem:[#allocation1] sm:$0xff] }
 0x519   : > { %12057 = vst [vmem:[#allocation115_spill] sm:$0xff] %v8773_v6  ;;  %v12063_v6 = vld [vmem:[#allocation67_spill] sm:$0xff] }
 0x51a   : > { %2564 = vst [vmem:[#allocation1] ss:$9 sm:$0xff] %v8618_v15  ;;  %v12067_v15 = vld [vmem:[#allocation94_spill] sm:$0xff] }
 0x51b   : > { %2565 = vst [vmem:[#allocation1 + $0x1] ss:$9 sm:$0xff] %v8620_v54 }
 0x51c   : > { %2566 = vst [vmem:[#allocation1 + $0x2] ss:$9 sm:$0xff] %v8622_v25 }
 0x51d   : > { %2567 = vst [vmem:[#allocation1 + $0x3] ss:$9 sm:$0xff] %v8629_v57 }
 0x51e   : > { %2568 = vst [vmem:[#allocation1 + $0x4] ss:$9 sm:$0xff] %v8637_v31 }
 0x51f   : > { %2569 = vst [vmem:[#allocation1 + $0x5] ss:$9 sm:$0xff] %v8639_v38 }
 0x520   : > { %2571 = vst [vmem:[#allocation1 + $0x6] ss:$9 sm:$0xff] %v8780_v49 }
 0x527   : > { %v8785_v30 = vld [vmem:[#allocation1] sm:$0xff] }
 0x528   : > { %12060 = vst [vmem:[#allocation116_spill] sm:$0xff] %v8785_v30  ;;  %v12062_v30 = vld [vmem:[#allocation66_spill] sm:$0xff] }
 0x529   : > { %2669 = vst [vmem:[#allocation1] ss:$9 sm:$0xff] %v7879_v53 }
 0x52a   : > { %2671 = vst [vmem:[#allocation1 + $0x1] ss:$9 sm:$0xff] %v7881_v2 }
 0x52b   : > { %2673 = vst [vmem:[#allocation1 + $0x2] ss:$9 sm:$0xff] %v7884_v43 }
 0x52c   : > { %2675 = vst [vmem:[#allocation1 + $0x3] ss:$9 sm:$0xff] %v7887_v52 }
 0x52d   : > { %2677 = vst [vmem:[#allocation1 + $0x4] ss:$9 sm:$0xff] %v7894_v17 }
 0x52e   : > { %2679 = vst [vmem:[#allocation1 + $0x5] ss:$9 sm:$0xff] %v12005_v33 }
 0x535   : > { %v8793_v20 = vld [vmem:[#allocation1] sm:$0xff] }
 0x536   : > { %2682 = vst [vmem:[#allocation1] ss:$9 sm:$0xff] %v12008_v19 }
 0x537   : > { %2683 = vst [vmem:[#allocation1 + $0x1] ss:$9 sm:$0xff] %v12011_v27 }
 0x538   : > { %2684 = vst [vmem:[#allocation1 + $0x2] ss:$9 sm:$0xff] %v12012_v13 }
 0x539   : > { %2685 = vst [vmem:[#allocation1 + $0x3] ss:$9 sm:$0xff] %v12013_v51 }
 0x53a   : > { %2686 = vst [vmem:[#allocation1 + $0x4] ss:$9 sm:$0xff] %v12014_v7 }
 0x53b   : > { %2687 = vst [vmem:[#allocation1 + $0x5] ss:$9 sm:$0xff] %v12015_v44 }
 0x542   : > { %v8801_v53 = vld [vmem:[#allocation1] sm:$0xff] }
 0x543   : > { %2690 = vst [vmem:[#allocation1] ss:$9 sm:$0xff] %v12019_v5 }
 0x544   : > { %2691 = vst [vmem:[#allocation1 + $0x1] ss:$9 sm:$0xff] %v7950_v45 }
 0x545   : > { %2692 = vst [vmem:[#allocation1 + $0x2] ss:$9 sm:$0xff] %v7960_v58 }
 0x546   : > { %2693 = vst [vmem:[#allocation1 + $0x3] ss:$9 sm:$0xff] %v7962_v0 }
 0x547   : > { %2694 = vst [vmem:[#allocation1 + $0x4] ss:$9 sm:$0xff] %v7965_v42 }
 0x548   : > { %2695 = vst [vmem:[#allocation1 + $0x5] ss:$9 sm:$0xff] %v12021_v36 }
 0x54f   : > { %v8809_v52 = vld [vmem:[#allocation1] sm:$0xff] }
 0x550   : > { %2698 = vst [vmem:[#allocation1] ss:$9 sm:$0xff] %v7979_v60 }
 0x551   : > { %2699 = vst [vmem:[#allocation1 + $0x1] ss:$9 sm:$0xff] %v7983_v46 }
 0x552   : > { %2700 = vst [vmem:[#allocation1 + $0x2] ss:$9 sm:$0xff] %v12024_v10 }
 0x553   : > { %2701 = vst [vmem:[#allocation1 + $0x3] ss:$9 sm:$0xff] %v8001_v37 }
 0x554   : > { %2702 = vst [vmem:[#allocation1 + $0x4] ss:$9 sm:$0xff] %v8003_v29 }
 0x555   : > { %2703 = vst [vmem:[#allocation1 + $0x5] ss:$9 sm:$0xff] %v12026_v48 }
 0x55c   : > { %v8817_v2 = vld [vmem:[#allocation1] sm:$0xff] }
 0x55d   : > { %2706 = vst [vmem:[#allocation1] ss:$9 sm:$0xff] %v8026_v4 }
 0x55e   : > { %2707 = vst [vmem:[#allocation1 + $0x1] ss:$9 sm:$0xff] %v8028_v14 }
 0x55f   : > { %2708 = vst [vmem:[#allocation1 + $0x2] ss:$9 sm:$0xff] %v8031_v55 }
 0x560   : > { %2709 = vst [vmem:[#allocation1 + $0x3] ss:$9 sm:$0xff] %v11901_v26 }
 0x561   : > { %2710 = vst [vmem:[#allocation1 + $0x4] ss:$9 sm:$0xff] %v11902_v40 }
 0x562   : > { %2711 = vst [vmem:[#allocation1 + $0x5] ss:$9 sm:$0xff] %v12028_v50 }
 0x569   : > { %v8825_v43 = vld [vmem:[#allocation1] sm:$0xff] }
 0x56a   : > { %2714 = vst [vmem:[#allocation1] ss:$9 sm:$0xff] %v8054_v21 }
 0x56b   : > { %2715 = vst [vmem:[#allocation1 + $0x1] ss:$9 sm:$0xff] %v11904_v35 }
 0x56c   : > { %2716 = vst [vmem:[#allocation1 + $0x2] ss:$9 sm:$0xff] %v11905_v12 }
 0x56d   : > { %2717 = vst [vmem:[#allocation1 + $0x3] ss:$9 sm:$0xff] %v11906_v32 }
 0x56e   : > { %2718 = vst [vmem:[#allocation1 + $0x4] ss:$9 sm:$0xff] %v11907_v62 }
 0x56f   : > { %2719 = vst [vmem:[#allocation1 + $0x5] ss:$9 sm:$0xff] %v12030_v8  ;;  %v12064_v8 = vld [vmem:[#allocation98_spill] sm:$0xff] }
 0x570   : > { %v2575_v50 = vshll.u32 %v12064_v8, 16  ;;  %v2573_v48 = vshrl.u32 %v12064_v8, 16 }
 0x572   : > { %v2577_v36 = vrot.slane %v2575_v50, 1  ;;  %v12070_v50 = vld [vmem:[#allocation76_spill] sm:$0xff] }
 0x576   : > { %v8833_v17 = vld [vmem:[#allocation1] sm:$0xff] }
 0x577   : > { %2722 = vst [vmem:[#allocation1] ss:$9 sm:$0xff] %v11952_v23 }
 0x578   : > { %2723 = vst [vmem:[#allocation1 + $0x1] ss:$9 sm:$0xff] %v12032_v56 }
 0x579   : > { %2724 = vst [vmem:[#allocation1 + $0x2] ss:$9 sm:$0xff] %v12033_v16 }
 0x57a   : > { %2725 = vst [vmem:[#allocation1 + $0x3] ss:$9 sm:$0xff] %v11955_v11 }
 0x57b   : > { %2726 = vst [vmem:[#allocation1 + $0x4] ss:$9 sm:$0xff] %v11917_v3 }
 0x57c   : > { %2727 = vst [vmem:[#allocation1 + $0x5] ss:$9 sm:$0xff] %v12034_v39  ;;  %v2578_v39 = vor.u32 %v2577_v36, %v2573_v48  ;;  %v12071_v48 = vld [vmem:[#allocation54_spill] sm:$0xff] }
 0x57e   : > { %2645 = vrot.lane.b32.xlu0 %v2578_v39, %s7074_s10  ;;  %v12072_v39 = vld [vmem:[#allocation113_spill] sm:$0xff] }
 0x583   : > { %v8841_v33 = vld [vmem:[#allocation1] sm:$0xff] }
 0x584   : > { %12061 = vst [vmem:[#allocation24_spill] sm:$0xff] %v8841_v33  ;;  %v12066_v33 = vld [vmem:[#allocation73_spill] sm:$0xff] }
 0x585   : > { %2730 = vst [vmem:[#allocation1] ss:$9 sm:$0xff] %v11919_v28  ;;  %v12075_v28 = vld [vmem:[#allocation81_spill] sm:$0xff] }
 0x586   : > { %2731 = vst [vmem:[#allocation1 + $0x1] ss:$9 sm:$0xff] %v11920_v63 }
 0x587   : > { %2732 = vst [vmem:[#allocation1 + $0x2] ss:$9 sm:$0xff] %v12062_v30  ;;  %v2579_v30 = vshrl.u32 %v12067_v15, 16 }
 0x588   : > { %2733 = vst [vmem:[#allocation1 + $0x3] ss:$9 sm:$0xff] %v12063_v6  ;;  %v2581_v6 = vshll.u32 %v12067_v15, 16  ;;  %v12077_v15 = vld [vmem:[#allocation83_spill] sm:$0xff] }
 0x589   : > { %2734 = vst [vmem:[#allocation1 + $0x4] ss:$9 sm:$0xff] %v11925_v1  ;;  %v12068_v1 = vld [vmem:[#allocation74_spill] sm:$0xff] }
 0x58a   : > { %2735 = vst [vmem:[#allocation1 + $0x5] ss:$9 sm:$0xff] %v12037_v18  ;;  %v12069_v18 = vld [vmem:[#allocation75_spill] sm:$0xff]  ;;  %v2583_v8 = vrot.slane %v2581_v6, 1  ;;  %v12076_v6 = vld [vmem:[#allocation82_spill] sm:$0xff] }
 0x58c   : > { %v2584_v36 = vor.u32 %v2583_v8, %v2579_v30  ;;  %v12078_v30 = vld [vmem:[#allocation28_spill] sm:$0xff] }
 0x58d   : > { %v2593_v8 = vshll.u32 %v12078_v30, 16 }
 0x58e   : > { %2647 = vrot.lane.b32.xlu1 %v2584_v36, %s7074_s10 }
 0x58f   : > { %v2595_v36 = vrot.slane %v2593_v8, 1  ;;  %v12081_v8 = vld [vmem:[#allocation77_spill] sm:$0xff] }
 0x591   : > { %v8851_v44 = vld [vmem:[#allocation1] sm:$0xff] }
 0x592   : > { %12065 = vst [vmem:[#allocation39_spill] sm:$0xff] %v8851_v44  ;;  %v2587_v44 = vshll.u32 %v12072_v39, 16 }
 0x593   : > { %2738 = vst [vmem:[#allocation1] ss:$9 sm:$0xff] %v8175_v9 }
 0x594   : > { %2739 = vst [vmem:[#allocation1 + $0x1] ss:$9 sm:$0xff] %v12066_v33  ;;  %v2585_v33 = vshrl.u32 %v12072_v39, 16  ;;  %v2589_v9 = vrot.slane %v2587_v44, 1  ;;  %v2591_v44 = vshrl.u32 %v12078_v30, 16 }
 0x595   : > { %2740 = vst [vmem:[#allocation1 + $0x2] ss:$9 sm:$0xff] %v12068_v1  ;;  %v12074_v1 = vld [vmem:[#allocation79_spill] sm:$0xff] }
 0x596   : > { %2741 = vst [vmem:[#allocation1 + $0x3] ss:$9 sm:$0xff] %v12069_v18  ;;  %v2590_v18 = vor.u32 %v2589_v9, %v2585_v33  ;;  %v2596_v39 = vor.u32 %v2595_v36, %v2591_v44  ;;  %v12087_v36 = vld [vmem:[#allocation37_spill] sm:$0xff] }
 0x597   : > { %2742 = vst [vmem:[#allocation1 + $0x4] ss:$9 sm:$0xff] %v12070_v50 }
 0x598   : > { %2743 = vst [vmem:[#allocation1 + $0x5] ss:$9 sm:$0xff] %v12071_v48  ;;  %2649 = vrot.lane.b32.xlu2 %v2590_v18, %s7074_s10  ;;  %2651 = vrot.lane.b32.xlu0 %v2596_v39, %s7074_s10  ;;  %v12080_v18 = vld [vmem:[#allocation112_spill] sm:$0xff] }
 0x599   : > { %v2599_v33 = vshll.u32 %v12080_v18, 16 }
 0x59f   : > { %v8865_v63 = vld [vmem:[#allocation1] sm:$0xff] }
 0x5a0   : > { %12073 = vst [vmem:[#allocation123_spill] sm:$0xff] %v8865_v63  ;;  %2772 = vrot.lane.b32.xlu2 %v8801_v53, %s7075_s11  ;;  %v2597_v63 = vshrl.u32 %v12080_v18, 16  ;;  %2774 = vrot.lane.b32.xlu0 %v8809_v52, %s7075_s11  ;;  %v12085_v52 = vld [vmem:[#allocation34_spill] sm:$0xff] }
 0x5a1   : > { %2746 = vst [vmem:[#allocation1] ss:$9 sm:$0xff] %v12074_v1 }
 0x5a2   : > { %2747 = vst [vmem:[#allocation1 + $0x1] ss:$9 sm:$0xff] %v12075_v28 }
 0x5a3   : > { %2748 = vst [vmem:[#allocation1 + $0x2] ss:$9 sm:$0xff] %v12076_v6 }
 0x5a4   : > { %2749 = vst [vmem:[#allocation1 + $0x3] ss:$9 sm:$0xff] %v12077_v15 }
 0x5a5   : > { %2750 = vst [vmem:[#allocation1 + $0x4] ss:$9 sm:$0xff] %v12047_v47 }
 0x5a6   : > { %2751 = vst [vmem:[#allocation1 + $0x5] ss:$9 sm:$0xff] %v12048_v41  ;;  %v2601_v41 = vrot.slane %v2599_v33, 1 }
 0x5a8   : > { %v2602_v30 = vor.u32 %v2601_v41, %v2597_v63  ;;  %2778 = vrot.lane.b32.xlu2 %v8825_v43, %s7075_s11  ;;  %v12084_v41 = vld [vmem:[#allocation27_spill] sm:$0xff]  ;;  %v8923_v43 = vpop.permute.xlu1 %2198 }
 0x5a9   : > { %12086 = vst [vmem:[#allocation76_spill] sm:$0xff] %v8923_v43  ;;  %v8945_v43 = vpop.permute.xlu2 %2194 }
 0x5aa   : > { %2653 = vrot.lane.b32.xlu1 %v2602_v30, %s7074_s10  ;;  %12092 = vst [vmem:[#allocation28_spill] sm:$0xff] %v8945_v43 }
 0x5ad   : > { %v8879_v9 = vld [vmem:[#allocation1] sm:$0xff] }
 0x5ae   : > { %12079 = vst [vmem:[#allocation110_spill] sm:$0xff] %v8879_v9  ;;  %v12096_v9 = vld [vmem:[#allocation47_spill] sm:$0xff] }
 0x5af   : > { %2754 = vst [vmem:[#allocation1] ss:$9 sm:$0xff] %v12051_v34 }
 0x5b0   : > { %2755 = vst [vmem:[#allocation1 + $0x1] ss:$9 sm:$0xff] %v12052_v59  ;;  %v8930_v18 = vpop.permute.xlu1 %2317 }
 0x5b1   : > { %2756 = vst [vmem:[#allocation1 + $0x2] ss:$9 sm:$0xff] %v12053_v22 }
 0x5b2   : > { %2757 = vst [vmem:[#allocation1 + $0x3] ss:$9 sm:$0xff] %v12054_v24  ;;  %2770 = vrot.lane.b32.xlu1 %v8793_v20, %s7075_s11 }
 0x5b3   : > { %2758 = vst [vmem:[#allocation1 + $0x4] ss:$9 sm:$0xff] %v12055_v61 }
 0x5b4   : > { %2759 = vst [vmem:[#allocation1 + $0x5] ss:$9 sm:$0xff] %v12081_v8  ;;  %v12099_v8 = vld [vmem:[#allocation55_spill] sm:$0xff] }
 0x5b8   : > { %v8938_v30 = vpop.permute.xlu1 %2323 }
 0x5b9   : > { %12090 = vst [vmem:[#allocation81_spill] sm:$0xff] %v8938_v30 }
 0x5ba   : > { %2776 = vrot.lane.b32.xlu1 %v8817_v2, %s7075_s11  ;;  %v8921_v2 = vpop.permute.xlu0 %2192 }
 0x5bb   : > { %v8894_v53 = vld [vmem:[#allocation1] sm:$0xff] }
 0x5bc   : > { %12082 = vst [vmem:[#allocation98_spill] sm:$0xff] %v8894_v53 }
 0x5bd   : > { %2762 = vst [vmem:[#allocation1] ss:$9 sm:$0xff] %v8620_v54 }
 0x5be   : > { %2763 = vst [vmem:[#allocation1 + $0x1] ss:$9 sm:$0xff] %v8622_v25 }
 0x5bf   : > { %2764 = vst [vmem:[#allocation1 + $0x2] ss:$9 sm:$0xff] %v8629_v57 }
 0x5c0   : > { %2765 = vst [vmem:[#allocation1 + $0x3] ss:$9 sm:$0xff] %v8637_v31 }
 0x5c1   : > { %2766 = vst [vmem:[#allocation1 + $0x4] ss:$9 sm:$0xff] %v8639_v38 }
 0x5c2   : > { %2767 = vst [vmem:[#allocation1 + $0x5] ss:$9 sm:$0xff] %v8780_v49  ;;  %v8928_v39 = vpop.permute.xlu0 %2196 }
 0x5c3   : > { %12088 = vst [vmem:[#allocation113_spill] sm:$0xff] %v8928_v39  ;;  %v8948_v39 = vpop.permute.xlu1 %2327 }
 0x5c4   : > { %12093 = vst [vmem:[#allocation112_spill] sm:$0xff] %v8948_v39 }
 0x5c9   : > { %v8906_v63 = vld [vmem:[#allocation1] sm:$0xff] }
 0x5ca   : > { %12083 = vst [vmem:[#allocation94_spill] sm:$0xff] %v8906_v63  ;;  %v8936_v33 = vpop.permute.xlu0 %2319  ;;  %v8953_v63 = vpop.permute.xlu2 %2325 }
 0x5cb   : > { %2794 = vst [vmem:[#allocation1] ss:$9 sm:$0xff] %v12084_v41 }
 0x5cc   : > { %2796 = vst [vmem:[#allocation1 + $0x1] ss:$9 sm:$0xff] %v12008_v19 }
 0x5cd   : > { %2798 = vst [vmem:[#allocation1 + $0x2] ss:$9 sm:$0xff] %v12011_v27 }
 0x5ce   : > { %2800 = vst [vmem:[#allocation1 + $0x3] ss:$9 sm:$0xff] %v12012_v13 }
 0x5cf   : > { %2802 = vst [vmem:[#allocation1 + $0x4] ss:$9 sm:$0xff] %v12013_v51 }
 0x5d0   : > { %2804 = vst [vmem:[#allocation1 + $0x5] ss:$9 sm:$0xff] %v12014_v7 }
 0x5d1   : > { %12089 = vst [vmem:[#allocation79_spill] sm:$0xff] %v8936_v33 }
 0x5d2   : > { %v8951_v30 = vpop.permute.xlu0 %2321  ;;  %12095 = vst [vmem:[#allocation34_spill] sm:$0xff] %v8953_v63 }
 0x5d3   : > { %12094 = vst [vmem:[#allocation27_spill] sm:$0xff] %v8951_v30  ;;  %v2447_v30 = vpop.permute.xlu2 %2446 }
 0x5d4   : > { %v3274_v63 = vsel %vm895_vm4, %v8930_v18, %v2447_v30 }
 0x5d7   : > { %v2805_v20 = vld [vmem:[#allocation1] sm:$0xff] }
 0x5d8   : > { %2807 = vst [vmem:[#allocation1] ss:$9 sm:$0xff] %v12085_v52  ;;  %2899 = vrot.lane.b32.xlu2 %v2805_v20, %s7071_s16 }
 0x5d9   : > { %2808 = vst [vmem:[#allocation1 + $0x1] ss:$9 sm:$0xff] %v12019_v5 }
 0x5da   : > { %2809 = vst [vmem:[#allocation1 + $0x2] ss:$9 sm:$0xff] %v7950_v45  ;;  %v8958_v49 = vpop.permute.xlu0 %2454 }
 0x5db   : > { %2810 = vst [vmem:[#allocation1 + $0x3] ss:$9 sm:$0xff] %v7960_v58 }
 0x5dc   : > { %2811 = vst [vmem:[#allocation1 + $0x4] ss:$9 sm:$0xff] %v7962_v0 }
 0x5dd   : > { %2812 = vst [vmem:[#allocation1 + $0x5] ss:$9 sm:$0xff] %v7965_v42 }
 0x5de   : > { %12097 = vst [vmem:[#allocation37_spill] sm:$0xff] %v8958_v49 }
 0x5e4   : > { %v2813_v44 = vld [vmem:[#allocation1] sm:$0xff] }
 0x5e5   : > { %2815 = vst [vmem:[#allocation1] ss:$9 sm:$0xff] %v12087_v36  ;;  %2901 = vrot.lane.b32.xlu0 %v2813_v44, %s7071_s16  ;;  %v12091_v44 = vld [vmem:[#allocation41_spill] sm:$0xff] }
 0x5e6   : > { %2816 = vst [vmem:[#allocation1 + $0x1] ss:$9 sm:$0xff] %v7979_v60 }
 0x5e7   : > { %2817 = vst [vmem:[#allocation1 + $0x2] ss:$9 sm:$0xff] %v7983_v46 }
 0x5e8   : > { %2818 = vst [vmem:[#allocation1 + $0x3] ss:$9 sm:$0xff] %v12024_v10 }
 0x5e9   : > { %2819 = vst [vmem:[#allocation1 + $0x4] ss:$9 sm:$0xff] %v8001_v37 }
 0x5ea   : > { %2820 = vst [vmem:[#allocation1 + $0x5] ss:$9 sm:$0xff] %v8003_v29 }
 0x5f1   : > { %v2821_v20 = vld [vmem:[#allocation1] sm:$0xff] }
 0x5f2   : > { %2823 = vst [vmem:[#allocation1] ss:$9 sm:$0xff] %v12091_v44  ;;  %2903 = vrot.lane.b32.xlu1 %v2821_v20, %s7071_s16  ;;  %v2449_v20 = vpop.permute.xlu1 %2448 }
 0x5f3   : > { %2824 = vst [vmem:[#allocation1 + $0x1] ss:$9 sm:$0xff] %v8026_v4  ;;  %v3276_v30 = vsel %vm895_vm4, %v8936_v33, %v2449_v20  ;;  %v12105_v33 = vld [vmem:[#allocation30_spill] sm:$0xff] }
 0x5f4   : > { %2825 = vst [vmem:[#allocation1 + $0x2] ss:$9 sm:$0xff] %v8028_v14 }
 0x5f5   : > { %2826 = vst [vmem:[#allocation1 + $0x3] ss:$9 sm:$0xff] %v8031_v55 }
 0x5f6   : > { %2827 = vst [vmem:[#allocation1 + $0x4] ss:$9 sm:$0xff] %v11901_v26 }
 0x5f7   : > { %2828 = vst [vmem:[#allocation1 + $0x5] ss:$9 sm:$0xff] %v11902_v40 }
 0x5fa   : > { %v8966_v43 = vpop.permute.xlu1 %2450 }
 0x5fb   : > { %12098 = vst [vmem:[#allocation41_spill] sm:$0xff] %v8966_v43 }
 0x5fe   : > { %v2829_v53 = vld [vmem:[#allocation1] sm:$0xff] }
 0x5ff   : > { %2831 = vst [vmem:[#allocation1] ss:$9 sm:$0xff] %v12096_v9  ;;  %2905 = vrot.lane.b32.xlu2 %v2829_v53, %s7071_s16  ;;  %v2646_v53 = vpop.permute.xlu0 %2645 }
 0x600   : > { %2832 = vst [vmem:[#allocation1 + $0x1] ss:$9 sm:$0xff] %v8054_v21  ;;  %v8969_v39 = vsel %vm3297_vm14, %v3274_v63, %v2646_v53  ;;  %v12101_v53 = vld [vmem:[#allocation102_spill] sm:$0xff] }
 0x601   : > { %2833 = vst [vmem:[#allocation1 + $0x2] ss:$9 sm:$0xff] %v11904_v35  ;;  %v2152_v48 = vshll.u32 %v12101_v53, 16 }
 0x602   : > { %2834 = vst [vmem:[#allocation1 + $0x3] ss:$9 sm:$0xff] %v11905_v12  ;;  %v2648_v43 = vpop.permute.xlu1 %2647 }
 0x603   : > { %2835 = vst [vmem:[#allocation1 + $0x4] ss:$9 sm:$0xff] %v11906_v32  ;;  %v8981_v63 = vsel %vm3297_vm14, %v3276_v30, %v2648_v43  ;;  %v12107_v43 = vld [vmem:[#allocation66_spill] sm:$0xff]  ;;  %v12108_v30 = vld [vmem:[#allocation67_spill] sm:$0xff] }
 0x604   : > { %2836 = vst [vmem:[#allocation1 + $0x5] ss:$9 sm:$0xff] %v11907_v62 }
 0x605   : > { %12100 = vst [vmem:[#allocation47_spill] sm:$0xff] %v8981_v63 }
 0x60b   : > { %v2837_v49 = vld [vmem:[#allocation1] sm:$0xff] }
 0x60c   : > { %2839 = vst [vmem:[#allocation1] ss:$9 sm:$0xff] %v12099_v8  ;;  %2907 = vrot.lane.b32.xlu0 %v2837_v49, %s7071_s16  ;;  %v2154_v49 = vrot.slane %v2152_v48, 1  ;;  %v12106_v8 = vld [vmem:[#allocation65_spill] sm:$0xff] }
 0x60d   : > { %2840 = vst [vmem:[#allocation1 + $0x1] ss:$9 sm:$0xff] %v11952_v23  ;;  %v12104_v23 = vld [vmem:[#allocation64_spill] sm:$0xff] }
 0x60e   : > { %2841 = vst [vmem:[#allocation1 + $0x2] ss:$9 sm:$0xff] %v12032_v56 }
 0x60f   : > { %2842 = vst [vmem:[#allocation1 + $0x3] ss:$9 sm:$0xff] %v12033_v16  ;;  %v2150_v16 = vshrl.u32 %v12101_v53, 16  ;;  %v2609_v53 = vshrl.u32 %v12105_v33, 16 }
 0x610   : > { %2843 = vst [vmem:[#allocation1 + $0x4] ss:$9 sm:$0xff] %v11955_v11  ;;  %v12103_v11 = vld [vmem:[#allocation63_spill] sm:$0xff] }
 0x611   : > { %2844 = vst [vmem:[#allocation1 + $0x5] ss:$9 sm:$0xff] %v11917_v3  ;;  %v2155_v20 = vor.u32 %v2154_v49, %v2150_v16  ;;  %v2611_v3 = vshll.u32 %v12105_v33, 16  ;;  %v12110_v16 = vld [vmem:[#allocation70_spill] sm:$0xff]  ;;  %v12111_v49 = vld [vmem:[#allocation72_spill] sm:$0xff] }
 0x613   : > { %v2613_v48 = vrot.slane %v2611_v3, 1  ;;  %v12115_v3 = vld [vmem:[#allocation127_spill] sm:$0xff] }
 0x614   : > { %2780 = vrot.lane.b32.xlu0 %v8833_v17, %s7075_s11  ;;  %v12109_v17 = vld [vmem:[#allocation68_spill] sm:$0xff] }
 0x615   : > { %v2614_v63 = vor.u32 %v2613_v48, %v2609_v53  ;;  %v12118_v53 = vld [vmem:[#allocation85_spill] sm:$0xff] }
 0x618   : > { %v8986_v56 = vld [vmem:[#allocation1] sm:$0xff] }
 0x619   : > { %12102 = vst [vmem:[#allocation102_spill] sm:$0xff] %v8986_v56 }
 0x61a   : > { %2847 = vst [vmem:[#allocation1] ss:$9 sm:$0xff] %v12103_v11 }
 0x61b   : > { %2848 = vst [vmem:[#allocation1 + $0x1] ss:$9 sm:$0xff] %v12104_v23 }
 0x61c   : > { %2849 = vst [vmem:[#allocation1 + $0x2] ss:$9 sm:$0xff] %v12106_v8  ;;  %2202 = vrot.lane.b32.xlu0 %v2155_v20, %s7072_s8  ;;  %v12112_v8 = vld [vmem:[#allocation73_spill] sm:$0xff]  ;;  %v12114_v20 = vld [vmem:[#allocation75_spill] sm:$0xff] }
 0x61d   : > { %2850 = vst [vmem:[#allocation1 + $0x3] ss:$9 sm:$0xff] %v12107_v43  ;;  %v12113_v43 = vld [vmem:[#allocation74_spill] sm:$0xff] }
 0x61e   : > { %2851 = vst [vmem:[#allocation1 + $0x4] ss:$9 sm:$0xff] %v12108_v30 }
 0x61f   : > { %2852 = vst [vmem:[#allocation1 + $0x5] ss:$9 sm:$0xff] %v12109_v17 }
 0x624   : > { %2657 = vrot.lane.b32.xlu0 %v2614_v63, %s7074_s10  ;;  %v12116_v63 = vld [vmem:[#allocation78_spill] sm:$0xff] }
 0x626   : > { %v8999_v56 = vld [vmem:[#allocation1] sm:$0xff] }
 0x627   : > { %2855 = vst [vmem:[#allocation1] ss:$9 sm:$0xff] %v12110_v16 }
 0x628   : > { %2856 = vst [vmem:[#allocation1 + $0x1] ss:$9 sm:$0xff] %v12111_v49 }
 0x629   : > { %2857 = vst [vmem:[#allocation1 + $0x2] ss:$9 sm:$0xff] %v12112_v8 }
 0x62a   : > { %2858 = vst [vmem:[#allocation1 + $0x3] ss:$9 sm:$0xff] %v12113_v43 }
 0x62b   : > { %2859 = vst [vmem:[#allocation1 + $0x4] ss:$9 sm:$0xff] %v12114_v20 }
 0x62c   : > { %2860 = vst [vmem:[#allocation1 + $0x5] ss:$9 sm:$0xff] %v12070_v50  ;;  %2460 = vrot.lane.b32.xlu0 %v12115_v3, %s7067_s12  ;;  %v7039_v3 = vld [vmem:[%s11530_s2] ss:$0 sm:$0xff] }
 0x633   : > { %v9009_v33 = vld [vmem:[#allocation1] sm:$0xff] }
 0x634   : > { %2863 = vst [vmem:[#allocation1] ss:$9 sm:$0xff] %v12116_v63 }
 0x635   : > { %2864 = vst [vmem:[#allocation1 + $0x1] ss:$9 sm:$0xff] %v12074_v1 }
 0x636   : > { %2865 = vst [vmem:[#allocation1 + $0x2] ss:$9 sm:$0xff] %v12075_v28 }
 0x637   : > { %2866 = vst [vmem:[#allocation1 + $0x3] ss:$9 sm:$0xff] %v12076_v6 }
 0x638   : > { %2867 = vst [vmem:[#allocation1 + $0x4] ss:$9 sm:$0xff] %v12077_v15  ;;  %v12119_v15 = vld [vmem:[#allocation93_spill] sm:$0xff] }
 0x639   : > { %2868 = vst [vmem:[#allocation1 + $0x5] ss:$9 sm:$0xff] %v12047_v47  ;;  %v1462_v47 = vadd.f32 %v7039_v3, %v12119_v15  ;;  %v12122_v15 = vld [vmem:[#allocation111_spill] sm:$0xff] }
 0x63b   : > { %v1491_v6 = vmax.f32 %v1462_v47, 0.0  ;;  %v11767_v47 = vrot.slane %v12122_v15, 3 }
 0x640   : > { %v9017_v48 = vld [vmem:[#allocation1] sm:$0xff] }
 0x641   : > { %12117 = vst [vmem:[#allocation63_spill] sm:$0xff] %v9017_v48 }
 0x642   : > { %2871 = vst [vmem:[#allocation1] ss:$9 sm:$0xff] %v12118_v53  ;;  %v12121_v53 = vld [vmem:[#allocation129_spill] sm:$0xff] }
 0x643   : > { %2872 = vst [vmem:[#allocation1 + $0x1] ss:$9 sm:$0xff] %v12051_v34 }
 0x644   : > { %2873 = vst [vmem:[#allocation1 + $0x2] ss:$9 sm:$0xff] %v12052_v59 }
 0x645   : > { %2874 = vst [vmem:[#allocation1 + $0x3] ss:$9 sm:$0xff] %v12053_v22  ;;  %v1516_v22 = vpack.c.bf16 %v1491_v6, %v1491_v6 }
 0x646   : > { %2875 = vst [vmem:[#allocation1 + $0x4] ss:$9 sm:$0xff] %v12054_v24 }
 0x647   : > { %2876 = vst [vmem:[#allocation1 + $0x5] ss:$9 sm:$0xff] %v12055_v61  ;;  %v1566_v61 = vrot.slane %v1516_v22, 3 }
 0x649   : > { %v1851_v24 = vsel %vm1572_vm11, %v1516_v22, %v1566_v61  ;;  %v1854_v3 = vsel %vm1576_vm10, %v1516_v22, %v1566_v61  ;;  %v9046_v6 = vsel %vm1568_vm12, %v1516_v22, %v1566_v61 }
 0x64a   : > { %12124 = vst [vmem:[#allocation67_spill] sm:$0xff] %v9046_v6 }
 0x64e   : > { %v9029_v48 = vld [vmem:[#allocation1] sm:$0xff] }
 0x64f   : > { %12120 = vst [vmem:[#allocation64_spill] sm:$0xff] %v9029_v48 }
 0x650   : > { %2879 = vst [vmem:[#allocation1] ss:$9 sm:$0xff] %v12121_v53 }
 0x651   : > { %2880 = vst [vmem:[#allocation1 + $0x1] ss:$9 sm:$0xff] %v8620_v54  ;;  %v1857_v54 = vsel %vm11788_vm13, %v1516_v22, %v1566_v61  ;;  %v12132_v22 = vld [vmem:[#allocation26_spill] sm:$0xff]  ;;  %vm3468_vm13 = vcmask 1045506  }
 0x652   : > { %2881 = vst [vmem:[#allocation1 + $0x2] ss:$9 sm:$0xff] %v8622_v25  ;;  %v9055_v25 = vrot.slane %v1857_v54, 3 }
 0x653   : > { %2882 = vst [vmem:[#allocation1 + $0x3] ss:$9 sm:$0xff] %v8629_v57  ;;  %v9052_v57 = vrot.slane %v1854_v3, 2  ;;  %v3225_v3 = vsel %vm3223_vm2, %v12132_v22, %v8921_v2  ;;  %v12134_v2 = vld [vmem:[#allocation22_spill] sm:$0xff] }
 0x654   : > { %2883 = vst [vmem:[#allocation1 + $0x4] ss:$9 sm:$0xff] %v8637_v31  ;;  %v9048_v31 = vrot.slane %v1851_v24, 1 }
 0x655   : > { %2884 = vst [vmem:[#allocation1 + $0x5] ss:$9 sm:$0xff] %v8639_v38  ;;  %v9050_v38 = vpop.permute.xlu1 %2653 }
 0x656   : > { %12125 = vst [vmem:[#allocation68_spill] sm:$0xff] %v9048_v31 }
 0x657   : > { %12126 = vst [vmem:[#allocation70_spill] sm:$0xff] %v9050_v38 }
 0x658   : > { %12127 = vst [vmem:[#allocation72_spill] sm:$0xff] %v9052_v57 }
 0x659   : > { %12128 = vst [vmem:[#allocation73_spill] sm:$0xff] %v9055_v25 }
 0x65c   : > { %v9040_v48 = vld [vmem:[#allocation1] sm:$0xff] }
 0x65d   : > { %12123 = vst [vmem:[#allocation30_spill] sm:$0xff] %v9040_v48  ;;  %v9067_v61 = vpop.permute.xlu1 %2770 }
 0x65e   : > { %2888 = vst [vmem:[#allocation1] ss:$9 sm:$0xff] %v11767_v47  ;;  %v12129_v47 = vld [vmem:[#allocation124_spill] sm:$0xff]  ;;  %v3324_v54 = vsel %vm3322_vm1, %v8969_v39, %v9067_v61 }
 0x65f   : > { %2889 = vst [vmem:[#allocation1 + $0x1] ss:$9 sm:$0xff] %v9046_v6  ;;  %v12130_v48 = vrot.slane %v12129_v47, 3  ;;  %v3420_v38 = vrot.slane %v3324_v54, 6 }
 0x660   : > { %2891 = vst [vmem:[#allocation1 + $0x2] ss:$9 sm:$0xff] %v9048_v31 }
 0x661   : > { %2893 = vst [vmem:[#allocation1 + $0x3] ss:$9 sm:$0xff] %v9052_v57  ;;  %v9064_v24 = vsel %vm1568_vm12, %v12129_v47, %v12130_v48  ;;  %v3250_v48 = vsel %vm3248_vm15, %v3225_v3, %v8930_v18 }
 0x662   : > { %2895 = vst [vmem:[#allocation1 + $0x4] ss:$9 sm:$0xff] %v9055_v25  ;;  %v9083_v25 = vsel %vm3464_vm5, %v3250_v48, %v3420_v38  ;;  %v9086_v39 = vsel %vm3458_vm3, %v3250_v48, %v3420_v38 }
 0x663   : > { %12131 = vst [vmem:[#allocation74_spill] sm:$0xff] %v9064_v24 }
 0x664   : > { %2896 = vst [vmem:[#allocation1 + $0x5] ss:$9 sm:$0xff] %v9064_v24  ;;  %v9080_v24 = vsel %vm1391_vm0, %v3250_v48, %v3420_v38  ;;  %v12135_v38 = vld [vmem:[#allocation97_spill] sm:$0xff]  ;;  %v12139_v48 = vld [vmem:[#allocation55_spill] sm:$0xff] }
 0x66b   : > { %v9077_v47 = vld [vmem:[#allocation1] sm:$0xff] }
 0x66c   : > { %12133 = vst [vmem:[#allocation75_spill] sm:$0xff] %v9077_v47  ;;  %v12140_v47 = vld [vmem:[#allocation57_spill] sm:$0xff] }
 0x66d   : > { %2923 = vst [vmem:[#allocation1] ss:$9 sm:$0xff] %v12084_v41 }
 0x66e   : > { %2925 = vst [vmem:[#allocation1 + $0x1] ss:$9 sm:$0xff] %v12008_v19 }
 0x66f   : > { %2927 = vst [vmem:[#allocation1 + $0x2] ss:$9 sm:$0xff] %v12011_v27 }
 0x670   : > { %2929 = vst [vmem:[#allocation1 + $0x3] ss:$9 sm:$0xff] %v12012_v13 }
 0x671   : > { %2931 = vst [vmem:[#allocation1 + $0x4] ss:$9 sm:$0xff] %v12013_v51 }
 0x672   : > { %2933 = vst [vmem:[#allocation1 + $0x5] ss:$9 sm:$0xff] %v12014_v7 }
 0x673   : > { %2935 = vst [vmem:[#allocation1 + $0x6] ss:$9 sm:$0xff] %v12134_v2 }
 0x67a   : > { %v2936_v18 = vld [vmem:[#allocation1] sm:$0xff] }
 0x67b   : > { %2937 = vst [vmem:[#allocation1] ss:$9 sm:$0xff] %v12085_v52  ;;  %v12136_v52 = vld [vmem:[#allocation99_spill] sm:$0xff] }
 0x67c   : > { %2938 = vst [vmem:[#allocation1 + $0x1] ss:$9 sm:$0xff] %v12019_v5 }
 0x67d   : > { %2939 = vst [vmem:[#allocation1 + $0x2] ss:$9 sm:$0xff] %v7950_v45 }
 0x67e   : > { %2940 = vst [vmem:[#allocation1 + $0x3] ss:$9 sm:$0xff] %v7960_v58 }
 0x67f   : > { %2941 = vst [vmem:[#allocation1 + $0x4] ss:$9 sm:$0xff] %v7962_v0 }
 0x680   : > { %2942 = vst [vmem:[#allocation1 + $0x5] ss:$9 sm:$0xff] %v7965_v42 }
 0x681   : > { %2943 = vst [vmem:[#allocation1 + $0x6] ss:$9 sm:$0xff] %v12135_v38 }
 0x688   : > { %v2944_v41 = vld [vmem:[#allocation1] sm:$0xff] }
 0x689   : > { %2945 = vst [vmem:[#allocation1] ss:$9 sm:$0xff] %v12087_v36  ;;  %v12137_v36 = vld [vmem:[#allocation101_spill] sm:$0xff] }
 0x68a   : > { %2946 = vst [vmem:[#allocation1 + $0x1] ss:$9 sm:$0xff] %v7979_v60 }
 0x68b   : > { %2947 = vst [vmem:[#allocation1 + $0x2] ss:$9 sm:$0xff] %v7983_v46 }
 0x68c   : > { %2948 = vst [vmem:[#allocation1 + $0x3] ss:$9 sm:$0xff] %v12024_v10 }
 0x68d   : > { %2949 = vst [vmem:[#allocation1 + $0x4] ss:$9 sm:$0xff] %v8001_v37 }
 0x68e   : > { %2950 = vst [vmem:[#allocation1 + $0x5] ss:$9 sm:$0xff] %v8003_v29 }
 0x68f   : > { %2951 = vst [vmem:[#allocation1 + $0x6] ss:$9 sm:$0xff] %v12136_v52 }
 0x696   : > { %v9109_v54 = vld [vmem:[#allocation1] sm:$0xff] }
 0x697   : > { %2953 = vst [vmem:[#allocation1] ss:$9 sm:$0xff] %v12091_v44  ;;  %v12138_v44 = vld [vmem:[#allocation23_spill] sm:$0xff] }
 0x698   : > { %2954 = vst [vmem:[#allocation1 + $0x1] ss:$9 sm:$0xff] %v8026_v4 }
 0x699   : > { %2955 = vst [vmem:[#allocation1 + $0x2] ss:$9 sm:$0xff] %v8028_v14  ;;  %v3032_v14 = vshrl.u32 %v2944_v41, 16 }
 0x69a   : > { %2956 = vst [vmem:[#allocation1 + $0x3] ss:$9 sm:$0xff] %v8031_v55 }
 0x69b   : > { %2957 = vst [vmem:[#allocation1 + $0x4] ss:$9 sm:$0xff] %v11901_v26  ;;  %v12146_v26 = vld [vmem:[#allocation114_spill] sm:$0xff] }
 0x69c   : > { %2958 = vst [vmem:[#allocation1 + $0x5] ss:$9 sm:$0xff] %v11902_v40  ;;  %v2605_v55 = vshll.u32 %v12146_v26, 16 }
 0x69d   : > { %2959 = vst [vmem:[#allocation1 + $0x6] ss:$9 sm:$0xff] %v12137_v36  ;;  %v12141_v36 = vld [vmem:[#allocation58_spill] sm:$0xff] }
 0x6a4   : > { %v2960_v22 = vld [vmem:[#allocation1] sm:$0xff] }
 0x6a5   : > { %2961 = vst [vmem:[#allocation1] ss:$9 sm:$0xff] %v12096_v9  ;;  %v12142_v9 = vld [vmem:[#allocation59_spill] sm:$0xff] }
 0x6a6   : > { %2962 = vst [vmem:[#allocation1 + $0x1] ss:$9 sm:$0xff] %v8054_v21  ;;  %v3028_v21 = vshll.u32 %v2936_v18, 16 }
 0x6a7   : > { %2963 = vst [vmem:[#allocation1 + $0x2] ss:$9 sm:$0xff] %v11904_v35  ;;  %v12143_v35 = vld [vmem:[#allocation60_spill] sm:$0xff] }
 0x6a8   : > { %2964 = vst [vmem:[#allocation1 + $0x3] ss:$9 sm:$0xff] %v11905_v12  ;;  %v12144_v12 = vld [vmem:[#allocation61_spill] sm:$0xff]  ;;  %v3030_v40 = vrot.slane %v3028_v21, 1 }
 0x6a9   : > { %2965 = vst [vmem:[#allocation1 + $0x4] ss:$9 sm:$0xff] %v11906_v32  ;;  %v3026_v32 = vshrl.u32 %v2936_v18, 16 }
 0x6aa   : > { %2966 = vst [vmem:[#allocation1 + $0x5] ss:$9 sm:$0xff] %v11907_v62  ;;  %v12145_v62 = vld [vmem:[#allocation25_spill] sm:$0xff] }
 0x6ab   : > { %2967 = vst [vmem:[#allocation1 + $0x6] ss:$9 sm:$0xff] %v12138_v44  ;;  %v3031_v44 = vor.u32 %v3030_v40, %v3026_v32  ;;  %v12147_v40 = vld [vmem:[#allocation100_spill] sm:$0xff] }
 0x6ac   : > { %v2146_v32 = vshll.u32 %v12147_v40, 16 }
 0x6ad   : > { %3098 = vrot.lane.b32.xlu2 %v3031_v44, %s7076_s15 }
 0x6b2   : > { %v9125_v3 = vld [vmem:[#allocation1] sm:$0xff] }
 0x6b3   : > { %2969 = vst [vmem:[#allocation1] ss:$9 sm:$0xff] %v12139_v48  ;;  %v2607_v48 = vrot.slane %v2605_v55, 1  ;;  %v2148_v55 = vrot.slane %v2146_v32, 1 }
 0x6b4   : > { %2970 = vst [vmem:[#allocation1 + $0x1] ss:$9 sm:$0xff] %v12140_v47  ;;  %v3034_v47 = vshll.u32 %v2944_v41, 16 }
 0x6b5   : > { %2971 = vst [vmem:[#allocation1 + $0x2] ss:$9 sm:$0xff] %v12141_v36 }
 0x6b6   : > { %2972 = vst [vmem:[#allocation1 + $0x3] ss:$9 sm:$0xff] %v12142_v9  ;;  %v2603_v9 = vshrl.u32 %v12146_v26, 16  ;;  %v2144_v26 = vshrl.u32 %v12147_v40, 16 }
 0x6b7   : > { %2973 = vst [vmem:[#allocation1 + $0x4] ss:$9 sm:$0xff] %v12143_v35  ;;  %v3036_v35 = vrot.slane %v3034_v47, 1  ;;  %v12151_v47 = vld [vmem:[#allocation126_spill] sm:$0xff] }
 0x6b8   : > { %2974 = vst [vmem:[#allocation1 + $0x5] ss:$9 sm:$0xff] %v12144_v12  ;;  %v2608_v21 = vor.u32 %v2607_v48, %v2603_v9  ;;  %v12149_v12 = vld [vmem:[#allocation66_spill] sm:$0xff]  ;;  %v3046_v9 = vshll.u32 %v2960_v22, 16  ;;  %v3038_v48 = vshrl.u32 %v9109_v54, 16 }
 0x6b9   : > { %2975 = vst [vmem:[#allocation1 + $0x6] ss:$9 sm:$0xff] %v12145_v62  ;;  %v3037_v18 = vor.u32 %v3036_v35, %v3032_v14  ;;  %v12148_v62 = vld [vmem:[#allocation65_spill] sm:$0xff]  ;;  %v2149_v14 = vor.u32 %v2148_v55, %v2144_v26  ;;  %v3040_v35 = vshll.u32 %v9109_v54, 16  ;;  %v12152_v55 = vld [vmem:[#allocation102_spill] sm:$0xff]  ;;  %v3052_v54 = vshll.u32 %v9125_v3, 16 }
 0x6ba   : > { %2655 = vrot.lane.b32.xlu2 %v2608_v21, %s7074_s10  ;;  %v3044_v21 = vshrl.u32 %v2960_v22, 16  ;;  %v12154_v26 = vld [vmem:[#allocation117_spill] sm:$0xff] }
 0x6bb   : > { %3100 = vrot.lane.b32.xlu1 %v3037_v18, %s7076_s15  ;;  %v3042_v44 = vrot.slane %v3040_v35, 1  ;;  %v3048_v18 = vrot.slane %v3046_v9, 1  ;;  %v3054_v35 = vrot.slane %v3052_v54, 1  ;;  %v3050_v9 = vshrl.u32 %v9125_v3, 16 }
 0x6bd   : > { %v3043_v40 = vor.u32 %v3042_v44, %v3038_v48  ;;  %v3049_v32 = vor.u32 %v3048_v18, %v3044_v21  ;;  %v12157_v44 = vld [vmem:[#allocation83_spill] sm:$0xff]  ;;  %v12158_v48 = vld [vmem:[#allocation84_spill] sm:$0xff]  ;;  %v12160_v21 = vld [vmem:[#allocation69_spill] sm:$0xff] }
 0x6be   : > { %v12161_v18 = vld [vmem:[#allocation24_spill] sm:$0xff] }
 0x6bf   : > { %3104 = vrot.lane.b32.xlu0 %v3049_v32, %s7076_s15 }
 0x6c0   : > { %v9136_v36 = vld [vmem:[#allocation1] sm:$0xff] }
 0x6c1   : > { %2977 = vst [vmem:[#allocation1] ss:$9 sm:$0xff] %v12103_v11  ;;  %v12150_v11 = vld [vmem:[#allocation40_spill] sm:$0xff] }
 0x6c2   : > { %2978 = vst [vmem:[#allocation1 + $0x1] ss:$9 sm:$0xff] %v12104_v23  ;;  %2458 = vrot.lane.b32.xlu2 %v12151_v47, %s7067_s12  ;;  %v12156_v47 = vld [vmem:[#allocation82_spill] sm:$0xff] }
 0x6c3   : > { %2979 = vst [vmem:[#allocation1 + $0x2] ss:$9 sm:$0xff] %v12148_v62  ;;  %2200 = vrot.lane.b32.xlu1 %v2149_v14, %s7072_s8  ;;  %v9179_v14 = vpop.permute.xlu2 %2452 }
 0x6c4   : > { %2980 = vst [vmem:[#allocation1 + $0x3] ss:$9 sm:$0xff] %v12149_v12 }
 0x6c5   : > { %2981 = vst [vmem:[#allocation1 + $0x4] ss:$9 sm:$0xff] %v12108_v30 }
 0x6c6   : > { %2982 = vst [vmem:[#allocation1 + $0x5] ss:$9 sm:$0xff] %v12109_v17 }
 0x6c7   : > { %2983 = vst [vmem:[#allocation1 + $0x6] ss:$9 sm:$0xff] %v12150_v11  ;;  %2913 = vrot.lane.b32.xlu0 %v9009_v33, %s7071_s16  ;;  %v3055_v33 = vor.u32 %v3054_v35, %v3050_v9  ;;  %v3058_v35 = vshll.u32 %v9136_v36, 16  ;;  %v12164_v9 = vld [vmem:[#allocation85_spill] sm:$0xff] }
 0x6c8   : > { %12155 = vst [vmem:[#allocation127_spill] sm:$0xff] %v9179_v14  ;;  %v12163_v14 = vld [vmem:[#allocation31_spill] sm:$0xff] }
 0x6ca   : > { %3102 = vrot.lane.b32.xlu2 %v3043_v40, %s7076_s15  ;;  %v12162_v40 = vld [vmem:[#allocation118_spill] sm:$0xff] }
 0x6cb   : > { %2909 = vrot.lane.b32.xlu1 %v12152_v55, %s7071_s16  ;;  %v9193_v32 = vpop.permute.xlu2 %2456 }
 0x6ce   : > { %v9154_v41 = vld [vmem:[#allocation1] sm:$0xff] }
 0x6cf   : > { %2985 = vst [vmem:[#allocation1] ss:$9 sm:$0xff] %v12110_v16  ;;  %v12153_v16 = vld [vmem:[#allocation54_spill] sm:$0xff]  ;;  %3106 = vrot.lane.b32.xlu0 %v3055_v33, %s7076_s15  ;;  %v12165_v33 = vld [vmem:[#allocation39_spill] sm:$0xff] }
 0x6d0   : > { %2986 = vst [vmem:[#allocation1 + $0x1] ss:$9 sm:$0xff] %v12111_v49 }
 0x6d1   : > { %2987 = vst [vmem:[#allocation1 + $0x2] ss:$9 sm:$0xff] %v12112_v8 }
 0x6d2   : > { %2988 = vst [vmem:[#allocation1 + $0x3] ss:$9 sm:$0xff] %v12113_v43  ;;  %2911 = vrot.lane.b32.xlu2 %v8999_v56, %s7071_s16  ;;  %v12159_v56 = vld [vmem:[#allocation103_spill] sm:$0xff] }
 0x6d3   : > { %2989 = vst [vmem:[#allocation1 + $0x4] ss:$9 sm:$0xff] %v12114_v20  ;;  %2329 = vrot.lane.b32.xlu1 %v12154_v26, %s7073_s9  ;;  %v2156_v3 = vshrl.u32 %v12159_v56, 16 }
 0x6d4   : > { %2990 = vst [vmem:[#allocation1 + $0x5] ss:$9 sm:$0xff] %v12070_v50 }
 0x6d5   : > { %2991 = vst [vmem:[#allocation1 + $0x6] ss:$9 sm:$0xff] %v12153_v16 }
 0x6da   : > { %2331 = vrot.lane.b32.xlu2 %v12162_v40, %s7073_s9  ;;  %v9210_v40 = vpop.permute.xlu2 %2649 }
 0x6db   : > { %2782 = vrot.lane.b32.xlu1 %v12161_v18, %s7075_s11  ;;  %v3064_v18 = vshll.u32 %v9154_v41, 16  ;;  %12168 = vst [vmem:[#allocation78_spill] sm:$0xff] %v9210_v40  ;;  %v12173_v40 = vld [vmem:[#allocation104_spill] sm:$0xff] }
 0x6dc   : > { %v9169_v22 = vld [vmem:[#allocation1] sm:$0xff] }
 0x6dd   : > { %2993 = vst [vmem:[#allocation1] ss:$9 sm:$0xff] %v12116_v63  ;;  %v2158_v63 = vshll.u32 %v12159_v56, 16  ;;  %v12166_v56 = vld [vmem:[#allocation119_spill] sm:$0xff] }
 0x6de   : > { %2994 = vst [vmem:[#allocation1 + $0x1] ss:$9 sm:$0xff] %v12074_v1  ;;  %2333 = vrot.lane.b32.xlu0 %v12166_v56, %s7073_s9  ;;  %v3062_v56 = vshrl.u32 %v9154_v41, 16  ;;  %v2162_v41 = vshrl.u32 %v12173_v40, 16 }
 0x6df   : > { %2995 = vst [vmem:[#allocation1 + $0x2] ss:$9 sm:$0xff] %v12075_v28  ;;  %v2160_v55 = vrot.slane %v2158_v63, 1  ;;  %v12167_v63 = vld [vmem:[#allocation89_spill] sm:$0xff] }
 0x6e0   : > { %2996 = vst [vmem:[#allocation1 + $0x3] ss:$9 sm:$0xff] %v12156_v47 }
 0x6e1   : > { %2997 = vst [vmem:[#allocation1 + $0x4] ss:$9 sm:$0xff] %v12157_v44  ;;  %v2161_v26 = vor.u32 %v2160_v55, %v2156_v3  ;;  %v3060_v3 = vrot.slane %v3058_v35, 1  ;;  %v12172_v44 = vld [vmem:[#allocation77_spill] sm:$0xff] }
 0x6e2   : > { %2998 = vst [vmem:[#allocation1 + $0x5] ss:$9 sm:$0xff] %v12158_v48  ;;  %v2617_v48 = vshll.u32 %v12163_v14, 16  ;;  %2784 = vrot.lane.b32.xlu2 %v12165_v33, %s7075_s11  ;;  %v2615_v33 = vshrl.u32 %v12163_v14, 16 }
 0x6e3   : > { %2999 = vst [vmem:[#allocation1 + $0x6] ss:$9 sm:$0xff] %v12160_v21  ;;  %2204 = vrot.lane.b32.xlu1 %v2161_v26, %s7072_s8  ;;  %v9213_v21 = vpop.permute.xlu0 %2651  ;;  %v12171_v26 = vld [vmem:[#allocation91_spill] sm:$0xff] }
 0x6e4   : > { %v2619_v55 = vrot.slane %v2617_v48, 1  ;;  %12170 = vst [vmem:[#allocation93_spill] sm:$0xff] %v9213_v21  ;;  %v2164_v48 = vshll.u32 %v12173_v40, 16  ;;  %v12181_v40 = vld [vmem:[#allocation123_spill] sm:$0xff] }
 0x6e6   : > { %v2166_v14 = vrot.slane %v2164_v48, 1 }
 0x6ea   : > { %v9196_v54 = vld [vmem:[#allocation1] sm:$0xff] }
 0x6eb   : > { %3001 = vst [vmem:[#allocation1] ss:$9 sm:$0xff] %v12164_v9  ;;  %v12169_v9 = vld [vmem:[#allocation90_spill] sm:$0xff]  ;;  %v9226_v21 = vpop.permute.xlu0 %2774 }
 0x6ec   : > { %3002 = vst [vmem:[#allocation1 + $0x1] ss:$9 sm:$0xff] %v12051_v34  ;;  %v3066_v34 = vrot.slane %v3064_v18, 1  ;;  %v9224_v18 = vpop.permute.xlu2 %2772 }
 0x6ed   : > { %3003 = vst [vmem:[#allocation1 + $0x2] ss:$9 sm:$0xff] %v12052_v59  ;;  %v3056_v59 = vshrl.u32 %v9136_v36, 16 }
 0x6ee   : > { %3004 = vst [vmem:[#allocation1 + $0x3] ss:$9 sm:$0xff] %v12167_v63  ;;  %v2620_v63 = vor.u32 %v2619_v55, %v2615_v33  ;;  %v3067_v35 = vor.u32 %v3066_v34, %v3062_v56  ;;  %v2167_v34 = vor.u32 %v2166_v14, %v2162_v41  ;;  %v12176_v55 = vld [vmem:[#allocation32_spill] sm:$0xff]  ;;  %v12180_v56 = vld [vmem:[#allocation133_spill] sm:$0xff]  ;;  %v12183_v14 = vld [vmem:[#allocation35_spill] sm:$0xff] }
 0x6ef   : > { %3005 = vst [vmem:[#allocation1 + $0x4] ss:$9 sm:$0xff] %v12169_v9  ;;  %v3061_v47 = vor.u32 %v3060_v3, %v3056_v59  ;;  %v12175_v59 = vld [vmem:[#allocation130_spill] sm:$0xff]  ;;  %v12177_v3 = vld [vmem:[#allocation131_spill] sm:$0xff]  ;;  %v12179_v33 = vld [vmem:[#allocation128_spill] sm:$0xff] }
 0x6f0   : > { %3006 = vst [vmem:[#allocation1 + $0x5] ss:$9 sm:$0xff] %v12171_v26  ;;  %2659 = vrot.lane.b32.xlu1 %v2620_v63, %s7074_s10  ;;  %3110 = vrot.lane.b32.xlu0 %v3067_v35, %s7076_s15  ;;  %v2623_v63 = vshll.u32 %v12176_v55, 16  ;;  %v12194_v26 = vld [vmem:[#allocation106_spill] sm:$0xff] }
 0x6f1   : > { %3007 = vst [vmem:[#allocation1 + $0x6] ss:$9 sm:$0xff] %v12172_v44  ;;  %3108 = vrot.lane.b32.xlu2 %v3061_v47, %s7076_s15  ;;  %v12178_v47 = vld [vmem:[#allocation132_spill] sm:$0xff]  ;;  %v12190_v44 = vld [vmem:[#allocation73_spill] sm:$0xff]  ;;  %v2176_v9 = vshll.u32 %v12194_v26, 16 }
 0x6f2   : > { %12174 = vst [vmem:[#allocation129_spill] sm:$0xff] %v9226_v21  ;;  %v2625_v35 = vrot.slane %v2623_v63, 1  ;;  %v2621_v21 = vshrl.u32 %v12176_v55, 16 }
 0x6f3   : > { %v9246_v41 = vpop.permute.xlu0 %2901 }
 0x6f4   : > { %v9243_v48 = vpop.permute.xlu2 %2778 }
 0x6f8   : > { %v9228_v36 = vld [vmem:[#allocation1] sm:$0xff]  ;;  %2462 = vrot.lane.b32.xlu1 %v12179_v33, %s7067_s12  ;;  %2786 = vrot.lane.b32.xlu0 %v12181_v40, %s7075_s11  ;;  %v12186_v40 = vld [vmem:[#allocation108_spill] sm:$0xff] }
 0x6f9   : > { %3009 = vst [vmem:[#allocation1] ss:$9 sm:$0xff] %v12121_v53  ;;  %2206 = vrot.lane.b32.xlu2 %v2167_v34, %s7072_s8  ;;  %v12182_v53 = vld [vmem:[#allocation134_spill] sm:$0xff]  ;;  %v12184_v33 = vld [vmem:[#allocation33_spill] sm:$0xff]  ;;  %v12185_v34 = vld [vmem:[#allocation63_spill] sm:$0xff] }
 0x6fa   : > { %3010 = vst [vmem:[#allocation1 + $0x1] ss:$9 sm:$0xff] %v12175_v59 }
 0x6fb   : > { %3011 = vst [vmem:[#allocation1 + $0x2] ss:$9 sm:$0xff] %v12177_v3  ;;  %v2629_v3 = vshll.u32 %v12184_v33, 16 }
 0x6fc   : > { %3012 = vst [vmem:[#allocation1 + $0x3] ss:$9 sm:$0xff] %v12178_v47  ;;  %v2626_v47 = vor.u32 %v2625_v35, %v2621_v21  ;;  %v2900_v63 = vpop.permute.xlu2 %2899  ;;  %v2627_v21 = vshrl.u32 %v12184_v33, 16 }
 0x6fd   : > { %3013 = vst [vmem:[#allocation1 + $0x4] ss:$9 sm:$0xff] %v12180_v56  ;;  %v9259_v56 = vpop.permute.xlu0 %2907  ;;  %v2631_v55 = vrot.slane %v2629_v3, 1  ;;  %v12192_v3 = vld [vmem:[#allocation110_spill] sm:$0xff] }
 0x6fe   : > { %3014 = vst [vmem:[#allocation1 + $0x5] ss:$9 sm:$0xff] %v12182_v53 }
 0x6ff   : > { %3015 = vst [vmem:[#allocation1 + $0x6] ss:$9 sm:$0xff] %v12183_v14  ;;  %v12187_v14 = vrot.slane %v12122_v15, 3  ;;  %v2632_v15 = vor.u32 %v2631_v55, %v2627_v21  ;;  %v3068_v55 = vshrl.u32 %v9169_v22, 16 }
 0x700   : > { %2915 = vrot.lane.b32.xlu1 %v12185_v34, %s7071_s16  ;;  %2464 = vrot.lane.b32.xlu0 %v12186_v40, %s7067_s12  ;;  %v3070_v34 = vshll.u32 %v9169_v22, 16  ;;  %v12189_v40 = vld [vmem:[#allocation125_spill] sm:$0xff]  ;;  %v2178_v22 = vrot.slane %v2176_v9, 1 }
 0x701   : > { %2661 = vrot.lane.b32.xlu2 %v2626_v47, %s7074_s10  ;;  %v12188_v47 = vld [vmem:[#allocation105_spill] sm:$0xff]  ;;  %v1865_v59 = vrot.slane %v12189_v40, 1 }
 0x702   : > { %v2170_v35 = vshll.u32 %v12188_v47, 16 }
 0x704   : > { %v9277_v33 = vpop.permute.xlu2 %2905 }
 0x705   : > { %v9281_v21 = vpop.permute.xlu0 %2780 }
 0x706   : > { %v9255_v53 = vld [vmem:[#allocation1] sm:$0xff] }
 0x707   : > { %3017 = vst [vmem:[#allocation1] ss:$9 sm:$0xff] %v12187_v14  ;;  %v12191_v14 = vld [vmem:[#allocation74_spill] sm:$0xff] }
 0x708   : > { %3018 = vst [vmem:[#allocation1 + $0x1] ss:$9 sm:$0xff] %v9046_v6  ;;  %2788 = vrot.lane.b32.xlu1 %v12192_v3, %s7075_s11  ;;  %2663 = vrot.lane.b32.xlu0 %v2632_v15, %s7074_s10  ;;  %v3072_v6 = vrot.slane %v3070_v34, 1  ;;  %v3080_v34 = vshrl.u32 %v9228_v36, 16 }
 0x709   : > { %3019 = vst [vmem:[#allocation1 + $0x2] ss:$9 sm:$0xff] %v9048_v31  ;;  %v12193_v31 = vld [vmem:[#allocation120_spill] sm:$0xff] }
 0x70a   : > { %3020 = vst [vmem:[#allocation1 + $0x3] ss:$9 sm:$0xff] %v9052_v57  ;;  %2335 = vrot.lane.b32.xlu2 %v12193_v31, %s7073_s9  ;;  %v2172_v57 = vrot.slane %v2170_v35, 1  ;;  %v3073_v3 = vor.u32 %v3072_v6, %v3068_v55  ;;  %v3082_v31 = vshll.u32 %v9228_v36, 16 }
 0x70b   : > { %3021 = vst [vmem:[#allocation1 + $0x4] ss:$9 sm:$0xff] %v12190_v44  ;;  %v2168_v44 = vshrl.u32 %v12188_v47, 16  ;;  %v12195_v47 = vld [vmem:[#allocation95_spill] sm:$0xff] }
 0x70c   : > { %3022 = vst [vmem:[#allocation1 + $0x5] ss:$9 sm:$0xff] %v12191_v14  ;;  %v3099_v6 = vpop.permute.xlu2 %3098  ;;  %v3084_v35 = vrot.slane %v3082_v31, 1  ;;  %v3074_v31 = vshrl.u32 %v9196_v54, 16 }
 0x70d   : > { %3024 = vst [vmem:[#allocation1 + $0x6] ss:$9 sm:$0xff] %v1865_v59  ;;  %v2173_v14 = vor.u32 %v2172_v57, %v2168_v44  ;;  %v3348_v57 = vsel %vm1011_vm8, %v9067_v61, %v2900_v63  ;;  %v3076_v61 = vshll.u32 %v9196_v54, 16  ;;  %v2203_v63 = vpop.permute.xlu0 %2202 }
 0x70e   : > { %v3373_v44 = vsel %vm3371_vm6, %v3348_v57, %v3099_v6  ;;  %v3085_v9 = vor.u32 %v3084_v35, %v3080_v34 }
 0x70f   : > { %v3078_v15 = vrot.slane %v3076_v61, 1  ;;  %v3421_v55 = vrot.slane %v3373_v44, 4 }
 0x710   : > { %3112 = vrot.lane.b32.xlu1 %v3073_v3, %s7076_s15  ;;  %2466 = vrot.lane.b32.xlu0 %v12195_v47, %s7067_s12 }
 0x712   : > { %2208 = vrot.lane.b32.xlu2 %v2173_v14, %s7072_s8 }
 0x714   : > { %v9285_v40 = vld [vmem:[#allocation1] sm:$0xff] }
 0x715   : > { %3122 = vst [vmem:[#allocation1] ss:$9 sm:$0xff] %v12008_v19  ;;  %v2174_v19 = vshrl.u32 %v12194_v26, 16  ;;  %v12198_v26 = vld [vmem:[#allocation49_spill] sm:$0xff] }
 0x716   : > { %3124 = vst [vmem:[#allocation1 + $0x1] ss:$9 sm:$0xff] %v12011_v27  ;;  %v3235_v36 = vsel %vm3223_vm2, %v12198_v26, %v2203_v63  ;;  %v12200_v63 = vld [vmem:[#allocation121_spill] sm:$0xff] }
 0x717   : > { %3126 = vst [vmem:[#allocation1 + $0x2] ss:$9 sm:$0xff] %v12012_v13  ;;  %v2179_v27 = vor.u32 %v2178_v22, %v2174_v19  ;;  %v12196_v13 = vld [vmem:[#allocation64_spill] sm:$0xff]  ;;  %v3079_v19 = vor.u32 %v3078_v15, %v3074_v31 }
 0x718   : > { %3128 = vst [vmem:[#allocation1 + $0x3] ss:$9 sm:$0xff] %v12013_v51  ;;  %3116 = vrot.lane.b32.xlu0 %v3085_v9, %s7076_s15  ;;  %v12197_v51 = vld [vmem:[#allocation112_spill] sm:$0xff] }
 0x719   : > { %3130 = vst [vmem:[#allocation1 + $0x4] ss:$9 sm:$0xff] %v12014_v7  ;;  %2210 = vrot.lane.b32.xlu1 %v2179_v27, %s7072_s8  ;;  %v3284_v7 = vsel %vm895_vm4, %v12197_v51, %v9193_v32  ;;  %v3260_v57 = vsel %vm3248_vm15, %v3235_v36, %v12197_v51  ;;  %v12199_v32 = vld [vmem:[#allocation115_spill] sm:$0xff]  ;;  %v12203_v36 = vld [vmem:[#allocation98_spill] sm:$0xff]  ;;  %v12205_v31 = vld [vmem:[#allocation116_spill] sm:$0xff] }
 0x71a   : > { %3132 = vst [vmem:[#allocation1 + $0x5] ss:$9 sm:$0xff] %v12134_v2  ;;  %2917 = vrot.lane.b32.xlu2 %v12196_v13, %s7071_s16  ;;  %v2656_v2 = vpop.permute.xlu2 %2655  ;;  %v2635_v22 = vshll.u32 %v12199_v32, 16  ;;  %v12201_v13 = vld [vmem:[#allocation30_spill] sm:$0xff] }
 0x71b   : > { %v3309_v14 = vsel %vm3297_vm14, %v3284_v7, %v2656_v2  ;;  %v12202_v7 = vld [vmem:[#allocation107_spill] sm:$0xff] }
 0x71c   : > { %v3334_v3 = vsel %vm3322_vm1, %v3309_v14, %v9281_v21  ;;  %v2637_v51 = vrot.slane %v2635_v22, 1  ;;  %v2182_v26 = vshll.u32 %v12202_v7, 16  ;;  %v3086_v14 = vshrl.u32 %v9255_v53, 16 }
 0x71d   : > { %v3435_v6 = vrot.slane %v3334_v3, 6 }
 0x71f   : > { %v9322_v44 = vsel %vm1391_vm0, %v3260_v57, %v3435_v6  ;;  %v9325_v54 = vsel %vm3464_vm5, %v3260_v57, %v3435_v6  ;;  %v9328_v34 = vsel %vm3458_vm3, %v3260_v57, %v3435_v6  ;;  %v12206_v57 = vld [vmem:[#allocation109_spill] sm:$0xff] }
 0x720   : > { %2919 = vrot.lane.b32.xlu0 %v12201_v13, %s7071_s16  ;;  %v2188_v6 = vshll.u32 %v12206_v57, 16  ;;  %v3092_v13 = vshrl.u32 %v9285_v40, 16 }
 0x721   : > { %v3133_v47 = vld [vmem:[#allocation1] sm:$0xff]  ;;  %3114 = vrot.lane.b32.xlu1 %v3079_v19, %s7076_s15  ;;  %v12209_v19 = vld [vmem:[#allocation43_spill] sm:$0xff] }
 0x722   : > { %3135 = vst [vmem:[#allocation1] ss:$9 sm:$0xff] %v12019_v5  ;;  %v3422_v35 = vrot.slane %v3133_v47, 2  ;;  %2337 = vrot.lane.b32.xlu2 %v12200_v63, %s7073_s9  ;;  %v2641_v47 = vshll.u32 %v12205_v31, 16  ;;  %v12212_v63 = vld [vmem:[#allocation46_spill] sm:$0xff] }
 0x723   : > { %3136 = vst [vmem:[#allocation1 + $0x1] ss:$9 sm:$0xff] %v7950_v45 }
 0x724   : > { %3137 = vst [vmem:[#allocation1 + $0x2] ss:$9 sm:$0xff] %v7960_v58  ;;  %v3461_v27 = vsel %vm3458_vm3, %v3421_v55, %v3422_v35  ;;  %v3467_v5 = vsel %vm3466_vm7, %v3422_v35, %v3421_v55  ;;  %v3473_v61 = vsel %vm1391_vm0, %v3421_v55, %v3422_v35 }
 0x725   : > { %3138 = vst [vmem:[#allocation1 + $0x3] ss:$9 sm:$0xff] %v7962_v0  ;;  %v9340_v45 = vsel %vm3462_vm9, %v9080_v24, %v3461_v27  ;;  %v9344_v58 = vsel %vm3468_vm13, %v9083_v25, %v3467_v5  ;;  %v9348_v9 = vsel %vm3462_vm9, %v3473_v61, %v9086_v39  ;;  %v2633_v0 = vshrl.u32 %v12199_v32, 16  ;;  %v12204_v39 = vld [vmem:[#allocation122_spill] sm:$0xff]  ;;  %v12210_v27 = vld [vmem:[#allocation44_spill] sm:$0xff]  ;;  %v12211_v61 = vld [vmem:[#allocation45_spill] sm:$0xff] }
 0x726   : > { %3139 = vst [vmem:[#allocation1 + $0x4] ss:$9 sm:$0xff] %v7965_v42  ;;  %v3088_v25 = vshll.u32 %v9255_v53, 16  ;;  %v2184_v42 = vrot.slane %v2182_v26, 1  ;;  %v2186_v53 = vshrl.u32 %v12206_v57, 16  ;;  %v12216_v26 = vld [vmem:[#allocation48_spill] sm:$0xff] }
 0x727   : > { %3140 = vst [vmem:[#allocation1 + $0x5] ss:$9 sm:$0xff] %v12135_v38  ;;  %v2638_v24 = vor.u32 %v2637_v51, %v2633_v0  ;;  %v2180_v38 = vshrl.u32 %v12202_v7, 16  ;;  %v12213_v51 = vld [vmem:[#allocation101_spill] sm:$0xff]  ;;  %v12214_v0 = vld [vmem:[#allocation75_spill] sm:$0xff] }
 0x728   : > { %2339 = vrot.lane.b32.xlu0 %v12204_v39, %s7073_s9  ;;  %v3090_v15 = vrot.slane %v3088_v25, 1  ;;  %v12215_v7 = vld [vmem:[#allocation23_spill] sm:$0xff]  ;;  %v9401_v25 = vpop.permute.xlu1 %2776 }
 0x729   : > { %2665 = vrot.lane.b32.xlu1 %v2638_v24, %s7074_s10  ;;  %v2185_v55 = vor.u32 %v2184_v42, %v2180_v38  ;;  %v12218_v39 = vld [vmem:[#allocation51_spill] sm:$0xff]  ;;  %v12220_v42 = vld [vmem:[#allocation53_spill] sm:$0xff] }
 0x72a   : > { %2790 = vrot.lane.b32.xlu2 %v12203_v36, %s7075_s11  ;;  %v3091_v3 = vor.u32 %v3090_v15, %v3086_v14  ;;  %v12217_v36 = vld [vmem:[#allocation50_spill] sm:$0xff]  ;;  %v9407_v15 = vpop.permute.xlu2 %2458  ;;  %v12224_v57 = vld [vmem:[#allocation59_spill] sm:$0xff] }
 0x72e   : > { %v9362_v2 = vld [vmem:[#allocation1] sm:$0xff] }
 0x72f   : > { %3143 = vst [vmem:[#allocation1] ss:$9 sm:$0xff] %v7979_v60  ;;  %v2643_v60 = vrot.slane %v2641_v47, 1  ;;  %v12223_v47 = vld [vmem:[#allocation58_spill] sm:$0xff] }
 0x730   : > { %3144 = vst [vmem:[#allocation1 + $0x1] ss:$9 sm:$0xff] %v7983_v46  ;;  %v12207_v46 = vld [vmem:[#allocation94_spill] sm:$0xff]  ;;  %v9409_v38 = vpop.permute.xlu1 %2903 }
 0x731   : > { %3145 = vst [vmem:[#allocation1 + $0x2] ss:$9 sm:$0xff] %v12024_v10  ;;  %3118 = vrot.lane.b32.xlu1 %v3091_v3, %s7076_s15  ;;  %2792 = vrot.lane.b32.xlu0 %v12207_v46, %s7075_s11  ;;  %v2190_v10 = vrot.slane %v2188_v6, 1  ;;  %v12225_v46 = vld [vmem:[#allocation60_spill] sm:$0xff] }
 0x732   : > { %3146 = vst [vmem:[#allocation1 + $0x3] ss:$9 sm:$0xff] %v8001_v37  ;;  %2212 = vrot.lane.b32.xlu2 %v2185_v55, %s7072_s8  ;;  %v2639_v37 = vshrl.u32 %v12205_v31, 16  ;;  %v12221_v55 = vld [vmem:[#allocation47_spill] sm:$0xff]  ;;  %v12222_v31 = vld [vmem:[#allocation57_spill] sm:$0xff] }
 0x733   : > { %3147 = vst [vmem:[#allocation1 + $0x4] ss:$9 sm:$0xff] %v8003_v29  ;;  %v3094_v29 = vshll.u32 %v9285_v40, 16  ;;  %v2191_v35 = vor.u32 %v2190_v10, %v2186_v53  ;;  %v12219_v40 = vld [vmem:[#allocation52_spill] sm:$0xff]  ;;  %v3326_v3 = vsel %vm3322_vm1, %v12221_v55, %v9224_v18  ;;  %v9423_v10 = vpop.permute.xlu2 %3102  ;;  %v12233_v55 = vld [vmem:[#allocation70_spill] sm:$0xff] }
 0x734   : > { %3148 = vst [vmem:[#allocation1 + $0x5] ss:$9 sm:$0xff] %v12136_v52  ;;  %v2644_v32 = vor.u32 %v2643_v60, %v2639_v37  ;;  %v12208_v52 = vld [vmem:[#allocation96_spill] sm:$0xff]  ;;  %v3423_v6 = vrot.slane %v3326_v3, 6  ;;  %v3350_v60 = vsel %vm1011_vm8, %v9224_v18, %v9246_v41  ;;  %v12226_v37 = vld [vmem:[#allocation61_spill] sm:$0xff] }
 0x735   : > { %v3096_v5 = vrot.slane %v3094_v29, 1  ;;  %v12228_v29 = vld [vmem:[#allocation29_spill] sm:$0xff] }
 0x738   : > { %v3101_v53 = vpop.permute.xlu1 %3100 }
 0x739   : > { %2468 = vrot.lane.b32.xlu1 %v12208_v52, %s7067_s12  ;;  %2214 = vrot.lane.b32.xlu0 %v2191_v35, %s7072_s8  ;;  %v12229_v52 = vld [vmem:[#allocation25_spill] sm:$0xff]  ;;  %s6717_s8 = sshll.u32 %s12390_s24, 2 }
 0x73a   : > { %2667 = vrot.lane.b32.xlu2 %v2644_v32, %s7074_s10  ;;  %v12227_v32 = vld [vmem:[#allocation28_spill] sm:$0xff]  ;;  %s310_s14 = scalar_lea.vmem %s11535_s7, %s6717_s8 }
 0x73b   : > { %v9381_v22 = vld [vmem:[#allocation1] sm:$0xff]  ;;  %v3227_v35 = vsel %vm3223_vm2, %v12228_v29, %v12227_v32 }
 0x73c   : > { %3151 = vst [vmem:[#allocation1] ss:$9 sm:$0xff] %v8026_v4  ;;  %v3097_v4 = vor.u32 %v3096_v5, %v3092_v13  ;;  %v9436_v13 = vpop.permute.xlu0 %2657 }
 0x73d   : > { %3152 = vst [vmem:[#allocation1 + $0x1] ss:$9 sm:$0xff] %v12209_v19  ;;  %v3375_v19 = vsel %vm3371_vm6, %v3350_v60, %v3101_v53  ;;  %v12234_v60 = vld [vmem:[#allocation42_spill] sm:$0xff] }
 0x73e   : > { %3153 = vst [vmem:[#allocation1 + $0x2] ss:$9 sm:$0xff] %v12210_v27  ;;  %v12230_v27 = vld [vmem:[#allocation79_spill] sm:$0xff] }
 0x73f   : > { %3154 = vst [vmem:[#allocation1 + $0x3] ss:$9 sm:$0xff] %v12211_v61  ;;  %v3252_v5 = vsel %vm3248_vm15, %v3227_v35, %v12230_v27  ;;  %v3424_v61 = vrot.slane %v3375_v19, 4 }
 0x740   : > { %3155 = vst [vmem:[#allocation1 + $0x4] ss:$9 sm:$0xff] %v12212_v63  ;;  %v3425_v63 = vrot.slane %v9362_v2, 2  ;;  %v3478_v18 = vsel %vm1391_vm0, %v3252_v5, %v3423_v6  ;;  %v3483_v41 = vsel %vm3464_vm5, %v3252_v5, %v3423_v6 }
 0x741   : > { %3156 = vst [vmem:[#allocation1 + $0x5] ss:$9 sm:$0xff] %v12213_v51  ;;  %2921 = vrot.lane.b32.xlu1 %v12214_v0, %s7071_s16  ;;  %v3488_v51 = vsel %vm3458_vm3, %v3252_v5, %v3423_v6  ;;  %v2201_v6 = vpop.permute.xlu1 %2200  ;;  %v3356_v5 = vsel %vm1011_vm8, %v9243_v48, %v9259_v56  ;;  %v6972_v56 = vld [vmem:[%s11531_s3 + $0xb0] sm:$0xff] }
 0x742   : > { %3120 = vrot.lane.b32.xlu2 %v3097_v4, %s7076_s15  ;;  %v3481_v4 = vsel %vm3458_vm3, %v3424_v61, %v3425_v63  ;;  %v3484_v0 = vsel %vm3466_vm7, %v3425_v63, %v3424_v61 }
 0x744   : > { %v9470_v32 = vpop.permute.xlu0 %2460 }
 0x748   : > { %v9397_v24 = vld [vmem:[#allocation1] sm:$0xff] }
 0x749   : > { %3164 = vst [vmem:[#allocation1 + $0x5] ss:$9 sm:$0xff] %v12215_v7  ;;  %v3489_v7 = vsel %vm1391_vm0, %v3424_v61, %v3425_v63 }
 0x74a   : > { %3159 = vst [vmem:[#allocation1] ss:$9 sm:$0xff] %v12216_v26  ;;  %v9443_v26 = vsel %vm3462_vm9, %v3478_v18, %v3481_v4  ;;  %v9449_v2 = vsel %vm3462_vm9, %v3489_v7, %v3488_v51  ;;  %v6956_v4 = vld [vmem:[%s11531_s3 + $0x30] sm:$0xff] }
 0x74b   : > { %3160 = vst [vmem:[#allocation1 + $0x1] ss:$9 sm:$0xff] %v12217_v36  ;;  %v9446_v36 = vsel %vm3468_vm13, %v3483_v41, %v3484_v0  ;;  %v6964_v0 = vld [vmem:[%s11531_s3 + $0x70] sm:$0xff] }
 0x74c   : > { %3161 = vst [vmem:[#allocation1 + $0x2] ss:$9 sm:$0xff] %v12218_v39  ;;  %v12231_v39 = vld [vmem:[#allocation37_spill] sm:$0xff] }
 0x74d   : > { %3162 = vst [vmem:[#allocation1 + $0x3] ss:$9 sm:$0xff] %v12219_v40  ;;  %v12232_v40 = vld [vmem:[#allocation34_spill] sm:$0xff] }
 0x74e   : > { %3163 = vst [vmem:[#allocation1 + $0x4] ss:$9 sm:$0xff] %v12220_v42  ;;  %v3282_v42 = vsel %vm895_vm4, %v12232_v40, %v12231_v39 }
 0x74f   : > { %v3307_v3 = vsel %vm3297_vm14, %v3282_v42, %v12233_v55 }
 0x755   : > { %v9411_v14 = vld [vmem:[#allocation1] sm:$0xff] }
 0x756   : > { %3167 = vst [vmem:[#allocation1] ss:$9 sm:$0xff] %v12222_v31  ;;  %v3332_v31 = vsel %vm3322_vm1, %v3307_v3, %v9243_v48  ;;  %v3434_v51 = vrot.slane %v9411_v14, 2  ;;  %v12239_v3 = vld [vmem:[#allocation86_spill] sm:$0xff] }
 0x757   : > { %3168 = vst [vmem:[#allocation1 + $0x1] ss:$9 sm:$0xff] %v12223_v47 }
 0x758   : > { %3169 = vst [vmem:[#allocation1 + $0x2] ss:$9 sm:$0xff] %v12224_v57  ;;  %v9462_v57 = vpop.permute.xlu2 %2911 }
 0x759   : > { %3170 = vst [vmem:[#allocation1 + $0x3] ss:$9 sm:$0xff] %v12225_v46  ;;  %v3432_v46 = vrot.slane %v3332_v31, 6  ;;  %v6955_v31 = vld [vmem:[%s11531_s3 + $0x28] sm:$0xff] }
 0x75a   : > { %3171 = vst [vmem:[#allocation1 + $0x4] ss:$9 sm:$0xff] %v12226_v37  ;;  %v3233_v37 = vsel %vm3223_vm2, %v12234_v60, %v2201_v6  ;;  %v6963_v6 = vld [vmem:[%s11531_s3 + $0x68] sm:$0xff]  ;;  %v12240_v60 = vld [vmem:[#allocation87_spill] sm:$0xff] }
 0x75b   : > { %3172 = vst [vmem:[#allocation1 + $0x5] ss:$9 sm:$0xff] %v12229_v52  ;;  %v3258_v53 = vsel %vm3248_vm15, %v3233_v37, %v12232_v40  ;;  %v9483_v52 = vpop.permute.xlu0 %3104 }
 0x75c   : > { %v3536_v29 = vsel %vm3458_vm3, %v3258_v53, %v3432_v46 }
 0x762   : > { %v9458_v47 = vld [vmem:[#allocation1] sm:$0xff] }
 0x763   : > { %3175 = vst [vmem:[#allocation1] ss:$9 sm:$0xff] %v12104_v23  ;;  %v3526_v23 = vsel %vm1391_vm0, %v3258_v53, %v3432_v46  ;;  %v9495_v19 = vpop.permute.xlu0 %2913 }
 0x764   : > { %3176 = vst [vmem:[#allocation1 + $0x1] ss:$9 sm:$0xff] %v12148_v62  ;;  %v3531_v62 = vsel %vm3464_vm5, %v3258_v53, %v3432_v46  ;;  %v6971_v46 = vld [vmem:[%s11531_s3 + $0xa8] sm:$0xff] }
 0x765   : > { %3177 = vst [vmem:[#allocation1 + $0x2] ss:$9 sm:$0xff] %v12149_v12  ;;  %v9477_v12 = vpop.permute.xlu2 %2331 }
 0x766   : > { %3178 = vst [vmem:[#allocation1 + $0x3] ss:$9 sm:$0xff] %v12108_v30  ;;  %v9481_v30 = vpop.permute.xlu1 %2909 }
 0x767   : > { %3179 = vst [vmem:[#allocation1 + $0x4] ss:$9 sm:$0xff] %v12109_v17 }
 0x768   : > { %3180 = vst [vmem:[#allocation1 + $0x5] ss:$9 sm:$0xff] %v12150_v11 }
 0x76b   : > { %v3107_v63 = vpop.permute.xlu0 %3106 }
 0x76c   : > { %v3381_v18 = vsel %vm3371_vm6, %v3356_v5, %v3107_v63  ;;  %v6953_v5 = vld [vmem:[%s11531_s3 + $0x18] sm:$0xff] }
 0x76d   : > { %v9491_v17 = vpop.permute.xlu2 %2784  ;;  %v3433_v41 = vrot.slane %v3381_v18, 4  ;;  %v6961_v63 = vld [vmem:[%s11531_s3 + $0x58] sm:$0xff] }
 0x76e   : > { %v9493_v11 = vpop.permute.xlu1 %2329  ;;  %v6969_v18 = vld [vmem:[%s11531_s3 + $0x98] sm:$0xff] }
 0x76f   : > { %v9479_v35 = vld [vmem:[#allocation1] sm:$0xff]  ;;  %v3529_v48 = vsel %vm3458_vm3, %v3433_v41, %v3434_v51  ;;  %v3532_v7 = vsel %vm3466_vm7, %v3434_v51, %v3433_v41  ;;  %v3537_v39 = vsel %vm1391_vm0, %v3433_v41, %v3434_v51 }
 0x770   : > { %3183 = vst [vmem:[#allocation1] ss:$9 sm:$0xff] %v12111_v49  ;;  %v12237_v49 = vld [vmem:[#allocation84_spill] sm:$0xff]  ;;  %v9536_v14 = vsel %vm3462_vm9, %v3526_v23, %v3529_v48  ;;  %v9539_v40 = vsel %vm3468_vm13, %v3531_v62, %v3532_v7  ;;  %v9542_v42 = vsel %vm3462_vm9, %v3537_v39, %v3536_v29  ;;  %v12241_v23 = vld [vmem:[#allocation89_spill] sm:$0xff]  ;;  %v12242_v29 = vld [vmem:[#allocation90_spill] sm:$0xff] }
 0x771   : > { %3184 = vst [vmem:[#allocation1 + $0x1] ss:$9 sm:$0xff] %v12112_v8  ;;  %v12235_v8 = vld [vmem:[#allocation82_spill] sm:$0xff]  ;;  %v6952_v48 = vld [vmem:[%s11531_s3 + $0x10] sm:$0xff] }
 0x772   : > { %3185 = vst [vmem:[#allocation1 + $0x2] ss:$9 sm:$0xff] %v12113_v43  ;;  %v12236_v43 = vld [vmem:[#allocation83_spill] sm:$0xff] }
 0x773   : > { %3186 = vst [vmem:[#allocation1 + $0x3] ss:$9 sm:$0xff] %v12114_v20  ;;  %v9559_v53 = vpop.permute.xlu0 %2333  ;;  %v6960_v7 = vld [vmem:[%s11531_s3 + $0x50] sm:$0xff] }
 0x774   : > { %3187 = vst [vmem:[#allocation1 + $0x4] ss:$9 sm:$0xff] %v12070_v50  ;;  %v12238_v50 = vld [vmem:[#allocation69_spill] sm:$0xff]  ;;  %v6968_v39 = vld [vmem:[%s11531_s3 + $0x90] sm:$0xff] }
 0x775   : > { %3188 = vst [vmem:[#allocation1 + $0x5] ss:$9 sm:$0xff] %v12153_v16  ;;  %v9505_v20 = vpop.permute.xlu2 %3108  ;;  %v6957_v16 = vld [vmem:[%s11531_s3 + $0x38] sm:$0xff] }
 0x776   : > { %v9519_v61 = vpop.permute.xlu1 %2782  ;;  %4021 = vmatpush.bf16.msra.mxu1 %v6957_v16  ;;  %v12244_v16 = vld [vmem:[#allocation77_spill] sm:$0xff] }
 0x77a   : > { %4022 = vmatpush.bf16.msra.mxu1 %v6956_v4  ;;  %v12245_v4 = vld [vmem:[#allocation130_spill] sm:$0xff] }
 0x77c   : > { %v9497_v27 = vld [vmem:[#allocation1] sm:$0xff] }
 0x77d   : > { %3191 = vst [vmem:[#allocation1] ss:$9 sm:$0xff] %v12074_v1  ;;  %v6965_v1 = vld [vmem:[%s11531_s3 + $0x78] sm:$0xff]  ;;  %v9562_v62 = vpop.permute.xlu2 %2206 }
 0x77e   : > { %3192 = vst [vmem:[#allocation1 + $0x1] ss:$9 sm:$0xff] %v12075_v28  ;;  %v6973_v28 = vld [vmem:[%s11531_s3 + $0xb8] sm:$0xff]  ;;  %4075 = vmatpush.bf16.msra.mxu2 %v6965_v1  ;;  %v9557_v37 = vpop.permute.xlu1 %2204  ;;  %4023 = vmatpush.bf16.msra.mxu1 %v6955_v31  ;;  %v12249_v31 = vld [vmem:[#allocation129_spill] sm:$0xff] }
 0x77f   : > { %3193 = vst [vmem:[#allocation1 + $0x2] ss:$9 sm:$0xff] %v12235_v8  ;;  %4129 = vmatpush.bf16.msra.mxu3 %v6973_v28  ;;  %v12243_v8 = vld [vmem:[#allocation91_spill] sm:$0xff]  ;;  %v9578_v28 = vpop.permute.xlu0 %3110 }
 0x780   : > { %3194 = vst [vmem:[#allocation1 + $0x3] ss:$9 sm:$0xff] %v12236_v43  ;;  %v6954_v43 = vld [vmem:[%s11531_s3 + $0x20] sm:$0xff] }
 0x781   : > { %3195 = vst [vmem:[#allocation1 + $0x4] ss:$9 sm:$0xff] %v12237_v49  ;;  %v6962_v49 = vld [vmem:[%s11531_s3 + $0x60] sm:$0xff] }
 0x782   : > { %3196 = vst [vmem:[#allocation1 + $0x5] ss:$9 sm:$0xff] %v12238_v50  ;;  %4076 = vmatpush.bf16.msra.mxu2 %v6964_v0  ;;  %v6970_v50 = vld [vmem:[%s11531_s3 + $0xa0] sm:$0xff]  ;;  %4024 = vmatpush.bf16.msra.mxu1 %v6954_v43  ;;  %v12246_v0 = vld [vmem:[#allocation131_spill] sm:$0xff] }
 0x783   : > { %4130 = vmatpush.bf16.msra.mxu3 %v6972_v56  ;;  %v12247_v56 = vld [vmem:[#allocation132_spill] sm:$0xff] }
 0x785   : > { %v9591_v51 = vpop.permute.xlu2 %2661 }
 0x786   : > { %4077 = vmatpush.bf16.msra.mxu2 %v6963_v6  ;;  %v9576_v1 = vpop.permute.xlu1 %2659  ;;  %4025 = vmatpush.bf16.msra.mxu1 %v6953_v5  ;;  %v3352_v6 = vsel %vm1011_vm8, %v12249_v31, %v9409_v38  ;;  %v6951_v38 = vld [vmem:[%s11531_s3 + $0x8] sm:$0xff] }
 0x787   : > { %4131 = vmatpush.bf16.msra.mxu3 %v6971_v46  ;;  %v12250_v46 = vld [vmem:[#allocation134_spill] sm:$0xff]  ;;  %v3377_v43 = vsel %vm3371_vm6, %v3352_v6, %v9423_v10  ;;  %v12256_v6 = vld [vmem:[#allocation36_spill] sm:$0xff] }
 0x788   : > { %v6967_v5 = vld [vmem:[%s11531_s3 + $0x88] sm:$0xff] }
 0x789   : > { %v9544_v55 = vld [vmem:[#allocation1] sm:$0xff] }
 0x78a   : > { %3199 = vst [vmem:[#allocation1] ss:$9 sm:$0xff] %v12239_v3  ;;  %4078 = vmatpush.bf16.msra.mxu2 %v6962_v49  ;;  %v12248_v3 = vld [vmem:[#allocation133_spill] sm:$0xff]  ;;  %4026 = vmatpush.bf16.msra.mxu1 %v6952_v48  ;;  %v12254_v49 = vld [vmem:[#allocation78_spill] sm:$0xff]  ;;  %v3428_v48 = vrot.slane %v9381_v22, 2 }
 0x78b   : > { %3200 = vst [vmem:[#allocation1 + $0x1] ss:$9 sm:$0xff] %v12240_v60  ;;  %4132 = vmatpush.bf16.msra.mxu3 %v6970_v50  ;;  %v12251_v60 = vld [vmem:[#allocation41_spill] sm:$0xff] }
 0x78c   : > { %3201 = vst [vmem:[#allocation1 + $0x2] ss:$9 sm:$0xff] %v12241_v23  ;;  %v12252_v23 = vld [vmem:[#allocation27_spill] sm:$0xff] }
 0x78d   : > { %3202 = vst [vmem:[#allocation1 + $0x3] ss:$9 sm:$0xff] %v12242_v29  ;;  %v3278_v29 = vsel %vm895_vm4, %v12252_v23, %v12251_v60 }
 0x78e   : > { %3203 = vst [vmem:[#allocation1 + $0x4] ss:$9 sm:$0xff] %v12243_v8  ;;  %4079 = vmatpush.bf16.msra.mxu2 %v6961_v63  ;;  %v12253_v8 = vld [vmem:[#allocation35_spill] sm:$0xff]  ;;  %v3303_v50 = vsel %vm3297_vm14, %v3278_v29, %v12254_v49  ;;  %v9629_v10 = vpop.permute.xlu1 %2462  ;;  %4027 = vmatpush.bf16.msra.mxu1 %v6951_v38  ;;  %v12258_v49 = vld [vmem:[#allocation68_spill] sm:$0xff] }
 0x78f   : > { %3204 = vst [vmem:[#allocation1 + $0x5] ss:$9 sm:$0xff] %v12244_v16  ;;  %4133 = vmatpush.bf16.msra.mxu3 %v6969_v18  ;;  %v6959_v16 = vld [vmem:[%s11531_s3 + $0x48] sm:$0xff]  ;;  %v3328_v63 = vsel %vm3322_vm1, %v3303_v50, %v12249_v31  ;;  %v3427_v18 = vrot.slane %v3377_v43, 4  ;;  %v12255_v31 = vld [vmem:[#allocation113_spill] sm:$0xff]  ;;  %v12259_v38 = vld [vmem:[#allocation72_spill] sm:$0xff] }
 0x791   : > { %v3500_v22 = vsel %vm3466_vm7, %v3428_v48, %v3427_v18  ;;  %v3497_v50 = vsel %vm3458_vm3, %v3427_v18, %v3428_v48 }
 0x792   : > { %4080 = vmatpush.bf16.msra.mxu2 %v6960_v7  ;;  %v6950_v7 = vld [vmem:[%s11531_s3] sm:$0xff] }
 0x793   : > { %4134 = vmatpush.bf16.msra.mxu3 %v6968_v39  ;;  %v6958_v39 = vld [vmem:[%s11531_s3 + $0x40] sm:$0xff]  ;;  %4028 = vmatpush.bf16.msra.mxu1 %v6950_v7  ;;  %v12260_v7 = vld [vmem:[#allocation74_spill] sm:$0xff] }
 0x796   : > { %v9589_v41 = vld [vmem:[#allocation1] sm:$0xff]  ;;  %4081 = vmatpush.bf16.msra.mxu2 %v6959_v16 }
 0x797   : > { %3207 = vst [vmem:[#allocation1] ss:$9 sm:$0xff] %v12245_v4  ;;  %v9631_v4 = vpop.permute.xlu0 %2786  ;;  %4135 = vmatpush.bf16.msra.mxu3 %v6967_v5  ;;  %v9659_v5 = vpop.permute.xlu1 %2915 }
 0x798   : > { %3208 = vst [vmem:[#allocation1 + $0x1] ss:$9 sm:$0xff] %v12246_v0  ;;  %v9633_v0 = vpop.permute.xlu2 %2335 }
 0x799   : > { %3209 = vst [vmem:[#allocation1 + $0x2] ss:$9 sm:$0xff] %v12247_v56  ;;  %v3426_v56 = vrot.slane %v3328_v63, 6 }
 0x79a   : > { %3210 = vst [vmem:[#allocation1 + $0x3] ss:$9 sm:$0xff] %v12248_v3  ;;  %v6966_v3 = vld [vmem:[%s11531_s3 + $0x80] sm:$0xff]  ;;  %4082 = vmatpush.bf16.msra.mxu2 %v6958_v39 }
 0x79b   : > { %3211 = vst [vmem:[#allocation1 + $0x4] ss:$9 sm:$0xff] %v12250_v46  ;;  %v3229_v46 = vsel %vm3223_vm2, %v12256_v6, %v12255_v31  ;;  %4136 = vmatpush.bf16.msra.mxu3 %v6966_v3  ;;  %v12262_v3 = vld [vmem:[#allocation73_spill] sm:$0xff] }
 0x79c   : > { %3212 = vst [vmem:[#allocation1 + $0x5] ss:$9 sm:$0xff] %v12253_v8  ;;  %v3254_v29 = vsel %vm3248_vm15, %v3229_v46, %v12252_v23  ;;  %v12257_v8 = vld [vmem:[#allocation67_spill] sm:$0xff]  ;;  %v3487_v46 = vrot.slane %v9446_v36, 2 }
 0x79d   : > { %v3499_v43 = vsel %vm3464_vm5, %v3254_v29, %v3426_v56  ;;  %v3494_v63 = vsel %vm1391_vm0, %v3254_v29, %v3426_v56 }
 0x79e   : > { %v3501_v16 = vsel %vm3468_vm13, %v3499_v43, %v3500_v22  ;;  %v3498_v31 = vsel %vm3462_vm9, %v3494_v63, %v3497_v50  ;;  %v12264_v43 = vld [vmem:[#allocation81_spill] sm:$0xff]  ;;  %v3358_v50 = vsel %vm1011_vm8, %v9281_v21, %v9481_v30 }
 0x79f   : > { %v9663_v23 = vpop.permute.xlu0 %2464  ;;  %v3503_v6 = vrot.slane %v3501_v16, 2  ;;  %v12265_v16 = vld [vmem:[#allocation93_spill] sm:$0xff]  ;;  %v9690_v39 = vpop.permute.xlu1 %2788 }
 0x7a0   : > { %v9670_v22 = vpop.permute.xlu2 %2208 }
 0x7a3   : > { %v9648_v60 = vld [vmem:[#allocation1] sm:$0xff] }
 0x7a4   : > { %3215 = vst [vmem:[#allocation1] ss:$9 sm:$0xff] %v12257_v8  ;;  %v12263_v8 = vld [vmem:[#allocation127_spill] sm:$0xff] }
 0x7a5   : > { %3216 = vst [vmem:[#allocation1 + $0x1] ss:$9 sm:$0xff] %v12258_v49  ;;  %v3280_v49 = vsel %vm895_vm4, %v12264_v43, %v12263_v8  ;;  %v3288_v8 = vsel %vm895_vm4, %v9477_v12, %v9470_v32 }
 0x7a6   : > { %3217 = vst [vmem:[#allocation1 + $0x2] ss:$9 sm:$0xff] %v12259_v38  ;;  %v3354_v38 = vsel %vm1011_vm8, %v9401_v25, %v9277_v33  ;;  %v3305_v36 = vsel %vm3297_vm14, %v3280_v49, %v12265_v16  ;;  %v3431_v49 = vrot.slane %v9397_v24, 2  ;;  %v3313_v24 = vsel %vm3297_vm14, %v3288_v8, %v9576_v1  ;;  %v12268_v16 = vld [vmem:[#allocation56_spill] sm:$0xff] }
 0x7a7   : > { %3219 = vst [vmem:[#allocation1 + $0x4] ss:$9 sm:$0xff] %v12260_v7  ;;  %v3379_v63 = vsel %vm3371_vm6, %v3354_v38, %v9483_v52  ;;  %v3383_v7 = vsel %vm3371_vm6, %v3358_v50, %v9505_v20  ;;  %v3330_v33 = vsel %vm3322_vm1, %v3305_v36, %v9401_v25  ;;  %v3471_v52 = vrot.slane %v9344_v58, 2 }
 0x7a8   : > { %3220 = vst [vmem:[#allocation1 + $0x5] ss:$9 sm:$0xff] %v1865_v59  ;;  %v3492_v59 = vrot.slane %v9449_v2, 4  ;;  %v12266_v2 = vld [vmem:[#allocation76_spill] sm:$0xff]  ;;  %v3430_v30 = vrot.slane %v3379_v63, 4  ;;  %v3505_v20 = vsel %vm1391_vm0, %v3427_v18, %v3428_v48  ;;  %v3360_v25 = vsel %vm1011_vm8, %v9519_v61, %v9462_v57 }
 0x7a9   : > { %3727 = vst [vmem:[#allocation1 + $0x22] ss:$4 sm:$0xff] %v3498_v31  ;;  %v12267_v31 = vld [vmem:[#allocation38_spill] sm:$0xff]  ;;  %v3385_v58 = vsel %vm3371_vm6, %v3360_v25, %v9578_v28  ;;  %v3476_v48 = vrot.slane %v9348_v9, 4  ;;  %v3286_v57 = vsel %vm895_vm4, %v9493_v11, %v9407_v15  ;;  %v9730_v9 = vrot.slane %v9479_v35, 2 }
 0x7aa   : > { %3218 = vst [vmem:[#allocation1 + $0x3] ss:$9 sm:$0xff] %v12262_v3  ;;  %v3231_v21 = vsel %vm3223_vm2, %v12267_v31, %v12266_v2  ;;  %v9697_v3 = vpop.permute.xlu0 %2663  ;;  %v3516_v32 = vsel %vm3466_vm7, %v3431_v49, %v3430_v30  ;;  %v9736_v1 = vrot.slane %v3385_v58, 4  ;;  %v3311_v35 = vsel %vm3297_vm14, %v3286_v57, %v9436_v13 }
 0x7ab   : > { %3730 = vst [vmem:[#allocation1 + $0x23] ss:$4 sm:$0xff] %v3503_v6  ;;  %v9695_v6 = vrot.slane %v3383_v7, 4  ;;  %v3256_v18 = vsel %vm3248_vm15, %v3231_v21, %v12264_v43  ;;  %v3237_v36 = vsel %vm3223_vm2, %v12268_v16, %v9557_v37  ;;  %v3338_v63 = vsel %vm3322_vm1, %v3313_v24, %v9491_v17  ;;  %v6976_v7 = vld [vmem:[%s11531_s3 + $0xd0] sm:$0xff]  ;;  %v3113_v21 = vpop.permute.xlu1 %3112 }
 0x7ac   : > { %3722 = vst [vmem:[#allocation1 + $0x20] ss:$4 sm:$0xff] %v3487_v46  ;;  %v3429_v46 = vrot.slane %v3330_v33, 6  ;;  %v3336_v37 = vsel %vm3322_vm1, %v3311_v35, %v9519_v61  ;;  %4188 = vmatpush.bf16.msrb.mxu1 %v6976_v7  ;;  %v3540_v8 = vrot.slane %v9542_v42, 4  ;;  %v9778_v61 = vsel %vm3248_vm15, %v3237_v36, %v9493_v11 }
 0x7ad   : > { %3725 = vst [vmem:[#allocation1 + $0x21] ss:$4 sm:$0xff] %v3492_v59  ;;  %v9711_v59 = vrot.slane %v9458_v47, 2  ;;  %v3504_v47 = vsel %vm3458_vm3, %v3254_v29, %v3426_v56  ;;  %v9738_v56 = vpop.permute.xlu2 %2917  ;;  %v3521_v29 = vsel %vm1391_vm0, %v3430_v30, %v3431_v49  ;;  %v3569_v57 = vsel %vm1391_vm0, %v9736_v1, %v9730_v9 }
 0x7ae   : > { %v3515_v43 = vsel %vm3464_vm5, %v3256_v18, %v3429_v46  ;;  %v3506_v15 = vsel %vm3462_vm9, %v3505_v20, %v3504_v47  ;;  %v12269_v20 = vld [vmem:[#allocation62_spill] sm:$0xff]  ;;  %v3520_v42 = vsel %vm3458_vm3, %v3256_v18, %v3429_v46 }
 0x7af   : > { %v3545_v28 = vsel %vm3458_vm3, %v9695_v6, %v9711_v59  ;;  %v3517_v33 = vsel %vm3468_vm13, %v3515_v43, %v3516_v32  ;;  %v3239_v25 = vsel %vm3223_vm2, %v12269_v20, %v9562_v62  ;;  %v9781_v62 = vrot.slane %v3336_v37, 6 }
 0x7b0   : > { %v3546_v13 = vsel %vm3462_vm9, %v9322_v44, %v3545_v28  ;;  %v3519_v24 = vrot.slane %v3517_v33, 2  ;;  %v3522_v47 = vsel %vm3462_vm9, %v3521_v29, %v3520_v42  ;;  %v3292_v29 = vsel %vm895_vm4, %v9633_v0, %v9663_v23 }
 0x7b1   : > { %v9708_v38 = vld [vmem:[#allocation1] sm:$0xff]  ;;  %v3524_v36 = vrot.slane %v3522_v47, 4  ;;  %v3553_v7 = vsel %vm1391_vm0, %v9695_v6, %v9711_v59  ;;  %v3317_v23 = vsel %vm3297_vm14, %v3292_v29, %v9697_v3  ;;  %v3290_v42 = vsel %vm895_vm4, %v9559_v53, %v9629_v10 }
 0x7b2   : > { %3711 = vst [vmem:[#allocation1] ss:$4 sm:$0xff] %v9340_v45 }
 0x7b3   : > { %3714 = vst [vmem:[#allocation1 + $0x1] ss:$4 sm:$0xff] %v3471_v52  ;;  %v3535_v52 = vrot.slane %v9539_v40, 2  ;;  %v3441_v40 = vrot.slane %v3338_v63, 6  ;;  %v3548_v63 = vsel %vm3466_vm7, %v9711_v59, %v9695_v6 }
 0x7b4   : > { %3717 = vst [vmem:[#allocation1 + $0x2] ss:$4 sm:$0xff] %v3476_v48  ;;  %v9734_v45 = vld.sshfl [vmem:[#allocation1 + $0x20] sm:$0xff pattern:$0x73625140]  ;;  %v3513_v48 = vsel %vm3458_vm3, %v3430_v30, %v3431_v49  ;;  %v3264_v30 = vsel %vm3248_vm15, %v3239_v25, %v9477_v12  ;;  %v3568_v49 = vsel %vm3458_vm3, %v9778_v61, %v9781_v62  ;;  %v12270_v25 = vld [vmem:[#allocation80_spill] sm:$0xff] }
 0x7b5   : > { %3719 = vst [vmem:[#allocation1 + $0x3] ss:$4 sm:$0xff] %v9443_v26  ;;  %v9742_v50 = vld.sshfl [vmem:[#allocation1 + $0x28] sm:$0xff pattern:$0x73625140]  ;;  %v3362_v26 = vsel %vm1011_vm8, %v9491_v17, %v9495_v19  ;;  %v9770_v17 = vpop.permute.xlu0 %2466  ;;  %v3443_v19 = vrot.slane %v9497_v27, 2  ;;  %v3510_v27 = vsel %vm1391_vm0, %v3256_v18, %v3429_v46  ;;  %v3579_v46 = vsel %vm3464_vm5, %v3264_v30, %v3441_v40  ;;  %v9811_v33 = vpop.permute.xlu2 %2337 }
 0x7b6   : > { %v9760_v2 = vld.sshfl [vmem:[#allocation1 + $0x30] sm:$0xff pattern:$0x73625140]  ;;  %v9762_v31 = vld.sshfl [vmem:[#allocation1 + $0x38] sm:$0xff pattern:$0x73625140]  ;;  %v3387_v44 = vsel %vm3371_vm6, %v3362_v26, %v3113_v21  ;;  %v3514_v32 = vsel %vm3462_vm9, %v3510_v27, %v3513_v48  ;;  %v3570_v18 = vsel %vm3462_vm9, %v3569_v57, %v3568_v49  ;;  %v2211_v26 = vpop.permute.xlu1 %2210  ;;  %v3366_v21 = vsel %vm1011_vm8, %v9690_v39, %v9738_v56 }
 0x7b7   : > { %3751 = vst [vmem:[#allocation1 + $0x23] ss:$4 sm:$0xff] %v3546_v13  ;;  %v3442_v58 = vrot.slane %v3387_v44, 4  ;;  %v3584_v13 = vsel %vm3458_vm3, %v3264_v30, %v3441_v40  ;;  %v3572_v37 = vrot.slane %v3570_v18, 4  ;;  %v3243_v44 = vsel %vm3223_vm2, %v12270_v25, %v2211_v26 }
 0x7b8   : > { %3746 = vst [vmem:[#allocation1 + $0x20] ss:$4 sm:$0xff] %v9536_v14  ;;  %v3508_v14 = vrot.slane %v3506_v15, 4  ;;  %v3574_v48 = vsel %vm1391_vm0, %v3264_v30, %v3441_v40  ;;  %v3342_v56 = vsel %vm3322_vm1, %v3317_v23, %v9690_v39  ;;  %v3554_v40 = vsel %vm3462_vm9, %v3553_v7, %v9328_v34 }
 0x7b9   : > { %3748 = vst [vmem:[#allocation1 + $0x21] ss:$4 sm:$0xff] %v3535_v52  ;;  %v3580_v11 = vsel %vm3466_vm7, %v3443_v19, %v3442_v58  ;;  %v3585_v16 = vsel %vm1391_vm0, %v3442_v58, %v3443_v19  ;;  %v3577_v52 = vsel %vm3458_vm3, %v3442_v58, %v3443_v19  ;;  %v3549_v19 = vsel %vm3468_vm13, %v9325_v54, %v3548_v63  ;;  %v6975_v54 = vld [vmem:[%s11531_s3 + $0xc8] sm:$0xff] }
 0x7ba   : > { %3750 = vst [vmem:[#allocation1 + $0x22] ss:$4 sm:$0xff] %v3540_v8  ;;  %v3581_v12 = vsel %vm3468_vm13, %v3579_v46, %v3580_v11  ;;  %v3586_v59 = vsel %vm3462_vm9, %v3585_v16, %v3584_v13  ;;  %v3447_v47 = vrot.slane %v3342_v56, 6  ;;  %v3449_v30 = vrot.slane %v9589_v41, 2  ;;  %4189 = vmatpush.bf16.msrb.mxu1 %v6975_v54 }
 0x7bb   : > { %v3583_v6 = vrot.slane %v3581_v12, 2  ;;  %v3588_v39 = vrot.slane %v3586_v59, 4  ;;  %v3551_v10 = vrot.slane %v3549_v19, 2  ;;  %v3564_v49 = vsel %vm3466_vm7, %v9730_v9, %v9736_v1 }
 0x7bc   : > { %v3731_v28 = vld.sshfl [vmem:[#allocation1] sm:$0xff pattern:$0x73625140]  ;;  %v3732_v43 = vld.sshfl [vmem:[#allocation1 + $0x8] sm:$0xff pattern:$0x73625140]  ;;  %v3315_v34 = vsel %vm3297_vm14, %v3290_v42, %v9591_v51  ;;  %v3563_v46 = vsel %vm3464_vm5, %v9778_v61, %v9781_v62  ;;  %v3561_v16 = vsel %vm3458_vm3, %v9736_v1, %v9730_v9 }
 0x7bd   : > { %v3733_v15 = vld.sshfl [vmem:[#allocation1 + $0x10] sm:$0xff pattern:$0x73625140]  ;;  %v9798_v35 = vld.sshfl [vmem:[#allocation1 + $0x18] sm:$0xff pattern:$0x73625140]  ;;  %4029 = vmatmul.bf16.vlgmr.msra.gmra.mxu1 %v3731_v28  ;;  %4083 = vmatmul.bf16.vlgmr.msra.gmra.mxu2 %v3732_v43  ;;  %v3117_v20 = vpop.permute.xlu0 %3116  ;;  %v3340_v63 = vsel %vm3322_vm1, %v3315_v34, %v9631_v4  ;;  %v2791_v7 = vpop.permute.xlu2 %2790 }
 0x7be   : > { %3740 = vst [vmem:[#allocation1] ss:$4 sm:$0xff] %v3508_v14  ;;  %4137 = vmatmul.bf16.vlgmr.msra.gmra.mxu3 %v3733_v15  ;;  %v3391_v3 = vsel %vm3371_vm6, %v3366_v21, %v3117_v20  ;;  %v3578_v14 = vsel %vm3462_vm9, %v3574_v48, %v3577_v52  ;;  %v3115_v43 = vpop.permute.xlu1 %3114  ;;  %v3446_v1 = vrot.slane %v9544_v55, 2  ;;  %v12271_v20 = vld [vmem:[#allocation71_spill] sm:$0xff]  ;;  %v3444_v59 = vrot.slane %v3340_v63, 6 }
 0x7bf   : > { %3741 = vst [vmem:[#allocation1 + $0x1] ss:$4 sm:$0xff] %v3514_v32  ;;  %v9829_v57 = vrot.slane %v3391_v3, 4  ;;  %v3556_v32 = vrot.slane %v3554_v40, 4 }
 0x7c0   : > { %3743 = vst [vmem:[#allocation1 + $0x2] ss:$4 sm:$0xff] %v3519_v24  ;;  %v3268_v24 = vsel %vm3248_vm15, %v3243_v44, %v9633_v0  ;;  %v3364_v0 = vsel %vm1011_vm8, %v9631_v4, %v9659_v5 }
 0x7c1   : > { %3745 = vst [vmem:[#allocation1 + $0x3] ss:$4 sm:$0xff] %v3524_v36  ;;  %v9824_v8 = vld.sshfl [vmem:[#allocation1 + $0x20] sm:$0xff pattern:$0x73625140]  ;;  %v3611_v28 = vsel %vm3464_vm5, %v3268_v24, %v3447_v47  ;;  %v3612_v41 = vsel %vm3466_vm7, %v3449_v30, %v9829_v57  ;;  %v3616_v51 = vsel %vm3458_vm3, %v3268_v24, %v3447_v47  ;;  %v3617_v18 = vsel %vm1391_vm0, %v9829_v57, %v3449_v30 }
 0x7c2   : > { %v9833_v58 = vld.sshfl [vmem:[#allocation1 + $0x28] sm:$0xff pattern:$0x73625140]  ;;  %v9835_v27 = vld.sshfl [vmem:[#allocation1 + $0x30] sm:$0xff pattern:$0x73625140]  ;;  %v3389_v15 = vsel %vm3371_vm6, %v3364_v0, %v3115_v43  ;;  %v3565_v36 = vsel %vm3468_vm13, %v3563_v46, %v3564_v49  ;;  %v3613_v13 = vsel %vm3468_vm13, %v3611_v28, %v3612_v41  ;;  %v3618_v21 = vsel %vm3462_vm9, %v3617_v18, %v3616_v51 }
 0x7c3   : > { %v9843_v11 = vld.sshfl [vmem:[#allocation1 + $0x38] sm:$0xff pattern:$0x73625140]  ;;  %v3445_v9 = vrot.slane %v3389_v15, 4  ;;  %v3567_v52 = vrot.slane %v3565_v36, 2  ;;  %v3615_v25 = vrot.slane %v3613_v13, 2  ;;  %v3609_v40 = vsel %vm3458_vm3, %v9829_v57, %v3449_v30 }
 0x7c4   : > { %3768 = vst [vmem:[#allocation1 + $0x20] ss:$4 sm:$0xff] %v3572_v37  ;;  %v3558_v37 = vsel %vm1391_vm0, %v9778_v61, %v9781_v62  ;;  %v3620_v61 = vrot.slane %v3618_v21, 4  ;;  %v12272_v46 = vld [vmem:[#allocation88_spill] sm:$0xff]  ;;  %v3452_v13 = vrot.slane %v9648_v60, 2 }
 0x7c5   : > { %3769 = vst [vmem:[#allocation1 + $0x21] ss:$4 sm:$0xff] %v3578_v14  ;;  %v2920_v5 = vpop.permute.xlu0 %2919  ;;  %v3562_v4 = vsel %vm3462_vm9, %v3558_v37, %v3561_v16  ;;  %v3596_v62 = vsel %vm3466_vm7, %v3446_v1, %v3445_v9  ;;  %v3601_v55 = vsel %vm1391_vm0, %v3445_v9, %v3446_v1 }
 0x7c6   : > { %3771 = vst [vmem:[#allocation1 + $0x22] ss:$4 sm:$0xff] %v3583_v6  ;;  %v3241_v6 = vsel %vm3223_vm2, %v12271_v20, %v9670_v22  ;;  %v3294_v22 = vsel %vm895_vm4, %v9811_v33, %v9770_v17  ;;  %v3368_v18 = vsel %vm1011_vm8, %v2791_v7, %v2920_v5 }
 0x7c7   : > { %3773 = vst [vmem:[#allocation1 + $0x23] ss:$4 sm:$0xff] %v3588_v39  ;;  %v3266_v44 = vsel %vm3248_vm15, %v3241_v6, %v9559_v53  ;;  %v3606_v53 = vsel %vm1391_vm0, %v3268_v24, %v3447_v47  ;;  %v2213_v24 = vpop.permute.xlu2 %2212 }
 0x7c8   : > { %v9869_v29 = vld.sshfl [vmem:[#allocation1] sm:$0xff pattern:$0x73625140]  ;;  %v9871_v12 = vld.sshfl [vmem:[#allocation1 + $0x8] sm:$0xff pattern:$0x73625140]  ;;  %v3600_v56 = vsel %vm3458_vm3, %v3266_v44, %v3444_v59  ;;  %v3590_v49 = vsel %vm1391_vm0, %v3266_v44, %v3444_v59  ;;  %v3610_v47 = vsel %vm3462_vm9, %v3606_v53, %v3609_v40  ;;  %v3245_v51 = vsel %vm3223_vm2, %v12272_v46, %v2213_v24 }
 0x7c9   : > { %v9879_v23 = vld.sshfl [vmem:[#allocation1 + $0x10] sm:$0xff pattern:$0x73625140]  ;;  %v9881_v26 = vld.sshfl [vmem:[#allocation1 + $0x18] sm:$0xff pattern:$0x73625140]  ;;  %v3602_v39 = vsel %vm3462_vm9, %v3601_v55, %v3600_v56  ;;  %v3270_v36 = vsel %vm3248_vm15, %v3245_v51, %v9811_v33 }
 0x7ca   : > { %3761 = vst [vmem:[#allocation1] ss:$4 sm:$0xff] %v3551_v10  ;;  %v3593_v10 = vsel %vm3458_vm3, %v3445_v9, %v3446_v1 }
 0x7cb   : > { %3763 = vst [vmem:[#allocation1 + $0x1] ss:$4 sm:$0xff] %v3556_v32  ;;  %v3604_v32 = vrot.slane %v3602_v39, 4  ;;  %v3594_v30 = vsel %vm3462_vm9, %v3590_v49, %v3593_v10  ;;  %v3455_v10 = vrot.slane %v9708_v38, 2 }
 0x7cc   : > { %3764 = vst [vmem:[#allocation1 + $0x2] ss:$4 sm:$0xff] %v3562_v4 }
 0x7cd   : > { %3766 = vst [vmem:[#allocation1 + $0x3] ss:$4 sm:$0xff] %v3567_v52  ;;  %4034 = vmatmul.bf16.gmra.mxu1 %v9734_v45  ;;  %4088 = vmatmul.bf16.gmra.mxu2 %v9742_v50  ;;  %v2666_v45 = vpop.permute.xlu1 %2665  ;;  %v3595_v50 = vsel %vm3464_vm5, %v3266_v44, %v3444_v59  ;;  %v9915_v17 = vpop.permute.xlu0 %2339 }
 0x7ce   : > { %v9902_v3 = vld.sshfl [vmem:[#allocation1 + $0x20] sm:$0xff pattern:$0x73625140]  ;;  %v9904_v48 = vld.sshfl [vmem:[#allocation1 + $0x28] sm:$0xff pattern:$0x73625140]  ;;  %4142 = vmatmul.bf16.gmra.mxu3 %v9760_v2  ;;  %v3319_v14 = vsel %vm3297_vm14, %v3294_v22, %v2666_v45  ;;  %v3597_v2 = vsel %vm3468_vm13, %v3595_v50, %v3596_v62 }
 0x7cf   : > { %v9909_v19 = vld.sshfl [vmem:[#allocation1 + $0x30] sm:$0xff pattern:$0x73625140]  ;;  %v9911_v42 = vld.sshfl [vmem:[#allocation1 + $0x38] sm:$0xff pattern:$0x73625140]  ;;  %v3344_v54 = vsel %vm3322_vm1, %v3319_v14, %v2791_v7  ;;  %v2668_v6 = vpop.permute.xlu2 %2667 }
 0x7d0   : > { %3789 = vst [vmem:[#allocation1 + $0x20] ss:$4 sm:$0xff] %v3615_v25  ;;  %v3599_v34 = vrot.slane %v3597_v2, 2  ;;  %v3450_v0 = vrot.slane %v3344_v54, 6 }
 0x7d1   : > { %3791 = vst [vmem:[#allocation1 + $0x21] ss:$4 sm:$0xff] %v3620_v61 }
 0x7d2   : > { %v3622_v37 = vsel %vm1391_vm0, %v3270_v36, %v3450_v0  ;;  %v3627_v21 = vsel %vm3464_vm5, %v3270_v36, %v3450_v0  ;;  %v3632_v1 = vsel %vm3458_vm3, %v3270_v36, %v3450_v0 }
 0x7d4   : > { %v9925_v28 = vld.sshfl [vmem:[#allocation1] sm:$0xff pattern:$0x73625140]  ;;  %v9927_v57 = vld.sshfl [vmem:[#allocation1 + $0x8] sm:$0xff pattern:$0x73625140] }
 0x7d5   : > { %v9930_v41 = vld.sshfl [vmem:[#allocation1 + $0x10] sm:$0xff pattern:$0x73625140]  ;;  %v9932_v43 = vld.sshfl [vmem:[#allocation1 + $0x18] sm:$0xff pattern:$0x73625140]  ;;  %v3119_v15 = vpop.permute.xlu1 %3118  ;;  %v2793_v9 = vpop.permute.xlu0 %2792 }
 0x7d6   : > { %3787 = vst [vmem:[#allocation1 + $0x3] ss:$4 sm:$0xff] %v3610_v47  ;;  %v3393_v16 = vsel %vm3371_vm6, %v3368_v18, %v3119_v15  ;;  %v6974_v18 = vld [vmem:[%s11531_s3 + $0xc0] sm:$0xff] }
 0x7d7   : > { %3782 = vst [vmem:[#allocation1] ss:$4 sm:$0xff] %v3594_v30  ;;  %v3451_v63 = vrot.slane %v3393_v16, 4  ;;  %v3121_v14 = vpop.permute.xlu2 %3120  ;;  %4190 = vmatpush.bf16.msrb.mxu1 %v6974_v18 }
 0x7d8   : > { %3784 = vst [vmem:[#allocation1 + $0x1] ss:$4 sm:$0xff] %v3599_v34 }
 0x7d9   : > { %3786 = vst [vmem:[#allocation1 + $0x2] ss:$4 sm:$0xff] %v3604_v32  ;;  %v3625_v5 = vsel %vm3458_vm3, %v3451_v63, %v3452_v13  ;;  %v3628_v7 = vsel %vm3466_vm7, %v3452_v13, %v3451_v63  ;;  %v3633_v4 = vsel %vm1391_vm0, %v3451_v63, %v3452_v13 }
 0x7da   : > { %v3626_v33 = vsel %vm3462_vm9, %v3622_v37, %v3625_v5  ;;  %v3629_v52 = vsel %vm3468_vm13, %v3627_v21, %v3628_v7  ;;  %v3634_v60 = vsel %vm3462_vm9, %v3633_v4, %v3632_v1 }
 0x7db   : > { %v3631_v20 = vrot.slane %v3629_v52, 2  ;;  %3792 = vst [vmem:[#allocation1 + $0x22] ss:$4 sm:$0xff] %v3626_v33  ;;  %v3636_v59 = vrot.slane %v3634_v60, 4 }
 0x7dd   : > { %4039 = vmatmul.bf16.gmra.mxu1 %v9869_v29  ;;  %4093 = vmatmul.bf16.gmra.mxu2 %v9871_v12  ;;  %3794 = vst [vmem:[#allocation1 + $0x23] ss:$4 sm:$0xff] %v3631_v20  ;;  %v2469_v25 = vpop.permute.xlu1 %2468  ;;  %v2215_v50 = vpop.permute.xlu0 %2214  ;;  %v12273_v12 = vld [vmem:[#allocation92_spill] sm:$0xff] }
 0x7de   : > { %4147 = vmatmul.bf16.gmra.mxu3 %v9879_v23  ;;  %v3296_v61 = vsel %vm895_vm4, %v9915_v17, %v2469_v25  ;;  %v3247_v23 = vsel %vm3223_vm2, %v12273_v12, %v2215_v50  ;;  %vm5385_vm4 = vcmask 1042433  }
 0x7df   : > { %v3321_v44 = vsel %vm3297_vm14, %v3296_v61, %v2668_v6  ;;  %v3272_v39 = vsel %vm3248_vm15, %v3247_v23, %v9915_v17 }
 0x7e0   : > { %v3795_v62 = vld.sshfl [vmem:[#allocation1] sm:$0xff pattern:$0x73625140]  ;;  %v3796_v55 = vld.sshfl [vmem:[#allocation1 + $0x8] sm:$0xff pattern:$0x73625140]  ;;  %v3346_v29 = vsel %vm3322_vm1, %v3321_v44, %v2793_v9 }
 0x7e1   : > { %v3797_v22 = vld.sshfl [vmem:[#allocation1 + $0x10] sm:$0xff pattern:$0x73625140]  ;;  %v9956_v45 = vld.sshfl [vmem:[#allocation1 + $0x18] sm:$0xff pattern:$0x73625140] }
 0x7e2   : > { %3804 = vst [vmem:[#allocation1] ss:$4 sm:$0xff] %v3636_v59  ;;  %v3453_v56 = vrot.slane %v3346_v29, 6  ;;  %vm5398_vm1 = vcmask 1044484  }
 0x7e4   : > { %v3638_v49 = vsel %vm1391_vm0, %v3272_v39, %v3453_v56  ;;  %v3643_v24 = vsel %vm3464_vm5, %v3272_v39, %v3453_v56  ;;  %v3648_v47 = vsel %vm3458_vm3, %v3272_v39, %v3453_v56  ;;  %v3802_v60 = vld.sshfl [vmem:[#allocation1 + $0x38] sm:$0xff pattern:$0x73625140] }
 0x7e5   : > { %v2922_v53 = vpop.permute.xlu1 %2921 }
 0x7e6   : > { %v3370_v40 = vsel %vm1011_vm8, %v2793_v9, %v2922_v53 }
 0x7e7   : > { %v3395_v2 = vsel %vm3371_vm6, %v3370_v40, %v3121_v14 }
 0x7e8   : > { %v3454_v54 = vrot.slane %v3395_v2, 4 }
 0x7ea   : > { %v3641_v34 = vsel %vm3458_vm3, %v3454_v54, %v3455_v10  ;;  %v3644_v32 = vsel %vm3466_vm7, %v3455_v10, %v3454_v54  ;;  %v3649_v0 = vsel %vm1391_vm0, %v3454_v54, %v3455_v10 }
 0x7eb   : > { %v3642_v30 = vsel %vm3462_vm9, %v3638_v49, %v3641_v34  ;;  %v3645_v46 = vsel %vm3468_vm13, %v3643_v24, %v3644_v32  ;;  %v3650_v17 = vsel %vm3462_vm9, %v3649_v0, %v3648_v47  ;;  %vm5394_vm13 = vcmask 1044483  }
 0x7ec   : > { %v3647_v38 = vrot.slane %v3645_v46, 2  ;;  %v3652_v51 = vrot.slane %v3650_v17, 4  ;;  %3805 = vst [vmem:[#allocation1 + $0x1] ss:$4 sm:$0xff] %v3642_v30 }
 0x7ed   : > { %4044 = vmatmul.bf16.gmra.mxu1 %v9824_v8  ;;  %4098 = vmatmul.bf16.gmra.mxu2 %v9833_v58  ;;  %v3799_v8 = vld.sshfl [vmem:[#allocation1 + $0x20] sm:$0xff pattern:$0x73625140]  ;;  %v3800_v58 = vld.sshfl [vmem:[#allocation1 + $0x28] sm:$0xff pattern:$0x73625140] }
 0x7ee   : > { %4152 = vmatmul.bf16.gmra.mxu3 %v9835_v27  ;;  %3807 = vst [vmem:[#allocation1 + $0x2] ss:$4 sm:$0xff] %v3647_v38  ;;  %v3801_v27 = vld.sshfl [vmem:[#allocation1 + $0x30] sm:$0xff pattern:$0x73625140] }
 0x7ef   : > { %3809 = vst [vmem:[#allocation1 + $0x3] ss:$4 sm:$0xff] %v3652_v51 }
 0x7f6   : > { %v3812_v15 = vld.sshfl [vmem:[#allocation1 + $0x10] sm:$0xff pattern:$0x73625140]  ;;  %v3813_v29 = vld.sshfl [vmem:[#allocation1 + $0x18] sm:$0xff pattern:$0x73625140] }
 0x7fd   : > { %4049 = vmatmul.bf16.gmra.mxu1 %v9925_v28  ;;  %4103 = vmatmul.bf16.gmra.mxu2 %v9927_v57  ;;  %v3810_v57 = vld.sshfl [vmem:[#allocation1] sm:$0xff pattern:$0x73625140] }
 0x7fe   : > { %4157 = vmatmul.bf16.gmra.mxu3 %v9930_v41  ;;  %v3811_v41 = vld.sshfl [vmem:[#allocation1 + $0x8] sm:$0xff pattern:$0x73625140] }
 0x80d   : > { %4054 = vmatmul.bf16.gmra.mxu1 %v9902_v3  ;;  %4108 = vmatmul.bf16.gmra.mxu2 %v9904_v48 }
 0x80e   : > { %4162 = vmatmul.bf16.gmra.mxu3 %v9909_v19 }
 0x81d   : > { %4059 = vmatmul.bf16.gmra.mxu1 %v3795_v62  ;;  %4113 = vmatmul.bf16.gmra.mxu2 %v3796_v55 }
 0x81e   : > { %4167 = vmatmul.bf16.gmra.mxu3 %v3797_v22 }
 0x82d   : > { %4064 = vmatmul.bf16.gmra.mxu1 %v3799_v8  ;;  %4118 = vmatmul.bf16.gmra.mxu2 %v3800_v58 }
 0x82e   : > { %4172 = vmatmul.bf16.gmra.mxu3 %v3801_v27 }
 0x83a   : > { %v4030_v28 = vpop.f32.mrf.mxu1 }
 0x83d   : > { %4069 = vmatmul.bf16.gmra.mxu1 %v3810_v57  ;;  %4123 = vmatmul.bf16.gmra.mxu2 %v3811_v41 }
 0x83e   : > { %4177 = vmatmul.bf16.gmra.mxu3 %v3812_v15 }
 0x841   : > { %v4138_v5 = vpop.f32.mrf.mxu3 }
 0x842   : > { %v4032_v3 = vpop.f32.mrf.mxu1 }
 0x849   : > { %v4140_v4 = vpop.f32.mrf.mxu3 }
 0x84a   : > { %v4035_v48 = vpop.f32.mrf.mxu1 }
 0x84d   : > { %6847 = vmatmul.msk.bf16.vlgmr.msrb.gmra.mxu1 %vm3223_vm2, %v9798_v35 }
 0x851   : > { %v4143_v20 = vpop.f32.mrf.mxu3 }
 0x852   : > { %v9989_v19 = vpop.f32.mrf.mxu1 }
 0x859   : > { %v4145_v62 = vpop.f32.mrf.mxu3 }
 0x85a   : > { %v9991_v16 = vpop.f32.mrf.mxu1 }
 0x85d   : > { %6848 = vmatmul.msk.bf16.gmra.mxu1 %vm3223_vm2, %v9762_v31 }
 0x861   : > { %v4148_v53 = vpop.f32.mrf.mxu3 }
 0x862   : > { %v9995_v36 = vpop.f32.mrf.mxu1 }
 0x869   : > { %v4150_v17 = vpop.f32.mrf.mxu3 }
 0x86a   : > { %v9997_v63 = vpop.f32.mrf.mxu1 }
 0x86d   : > { %6849 = vmatmul.msk.bf16.gmra.mxu1 %vm3223_vm2, %v9881_v26  ;;  %v4084_v26 = vpop.f32.mrf.mxu2 }
 0x872   : > { %v10001_v13 = vpop.f32.mrf.mxu1 }
 0x87a   : > { %v10003_v37 = vpop.f32.mrf.mxu1 }
 0x87d   : > { %6850 = vmatmul.msk.bf16.gmra.mxu1 %vm3223_vm2, %v9843_v11  ;;  %v4086_v11 = vpop.f32.mrf.mxu2 }
 0x882   : > { %v10007_v35 = vpop.f32.mrf.mxu1 }
 0x88a   : > { %v10009_v21 = vpop.f32.mrf.mxu1 }
 0x88d   : > { %6851 = vmatmul.msk.bf16.gmra.mxu1 %vm3223_vm2, %v9932_v43  ;;  %v4089_v43 = vpop.f32.mrf.mxu2 }
 0x892   : > { %v10013_v31 = vpop.f32.mrf.mxu1 }
 0x895   : > { %v4091_v6 = vpop.f32.mrf.mxu2 }
 0x89a   : > { %v10015_v9 = vpop.f32.mrf.mxu1 }
 0x89d   : > { %6852 = vmatmul.msk.bf16.gmra.mxu1 %vm3223_vm2, %v9911_v42  ;;  %v10033_v42 = vld [vmem:[%s11532_s4] ss:$0 sm:$0xff]  ;;  %v4094_v44 = vpop.f32.mrf.mxu2 }
 0x89e   : > { %v4031_v25 = vadd.f32 %v10033_v42, %v4030_v28  ;;  %v4036_v39 = vadd.f32 %v10033_v42, %v4035_v48  ;;  %v4038_v51 = vadd.f32 %v10033_v42, %v9989_v19  ;;  %v4041_v19 = vadd.f32 %v10033_v42, %v9991_v16 }
 0x8a0   : > { %v4085_v61 = vadd.f32 %v4084_v26, %v4031_v25  ;;  %v4090_v34 = vadd.f32 %v4089_v43, %v4036_v39  ;;  %v4092_v28 = vadd.f32 %v4091_v6, %v4038_v51  ;;  %v4153_v43 = vpop.f32.mrf.mxu3 }
 0x8a2   : > { %v10019_v1 = vpop.f32.mrf.mxu1  ;;  %v4139_v55 = vadd.f32 %v4138_v5, %v4085_v61  ;;  %v4144_v30 = vadd.f32 %v4143_v20, %v4090_v34  ;;  %v4095_v20 = vadd.f32 %v4094_v44, %v4041_v19 }
 0x8a5   : > { %v4096_v24 = vpop.f32.mrf.mxu2 }
 0x8aa   : > { %v10021_v7 = vpop.f32.mrf.mxu1 }
 0x8ad   : > { %6853 = vmatmul.msk.bf16.gmra.mxu1 %vm3223_vm2, %v9956_v45  ;;  %v4033_v45 = vadd.f32 %v10033_v42, %v4032_v3  ;;  %v4099_v41 = vpop.f32.mrf.mxu2  ;;  %v4146_v3 = vadd.f32 %v4145_v62, %v4092_v28  ;;  %v4149_v62 = vadd.f32 %v4148_v53, %v4095_v20  ;;  %v4155_v53 = vpop.f32.mrf.mxu3  ;;  %v4051_v20 = vadd.f32 %v10033_v42, %v10003_v37 }
 0x8af   : > { %v4087_v12 = vadd.f32 %v4086_v11, %v4033_v45 }
 0x8b1   : > { %v4141_v14 = vadd.f32 %v4140_v4, %v4087_v12 }
 0x8b2   : > { %v10025_v33 = vpop.f32.mrf.mxu1 }
 0x8b5   : > { %v4101_v61 = vpop.f32.mrf.mxu2 }
 0x8ba   : > { %v10027_v52 = vpop.f32.mrf.mxu1 }
 0x8bd   : > { %6854 = vmatmul.msk.bf16.gmra.mxu1 %vm3223_vm2, %v3802_v60 }
 0x8c2   : > { %v10035_v59 = vpop.f32.mrf.mxu1 }
 0x8ca   : > { %v4192_v22 = vpop.f32.mrf.mxu1 }
 0x8cb   : > { %v4193_v50 = vadd.f32 %v4192_v22, %v4139_v55  ;;  %v4043_v22 = vadd.f32 %v10033_v42, %v9995_v36 }
 0x8cd   : > { %v4237_v23 = vmax.f32 %v4193_v50, 0.0  ;;  %6855 = vmatmul.msk.bf16.gmra.mxu1 %vm3223_vm2, %v3813_v29  ;;  %vm12303_vm2 = vcmask 1043459  }
 0x8ce   : > { %vm12305_vm6 = vmmov %vm12303_vm2 }
 0x8cf   : > { %v4255_v56 = vpack.c.bf16 %v4237_v23, %v4237_v23  ;;  %v4097_v23 = vadd.f32 %v4096_v24, %v4043_v22  ;;  %vm12306_vm7 = vmmov %vm12303_vm2 }
 0x8d0   : > { %vm12309_vm9 = vmmov %vm12303_vm2 }
 0x8d1   : > { %v4291_v40 = vrot.slane %v4255_v56, 2 }
 0x8d2   : > { %v4194_v2 = vpop.f32.mrf.mxu1 }
 0x8d3   : > { %v10042_v54 = vsel %vm1391_vm0, %v4255_v56, %v4291_v40  ;;  %v4312_v10 = vsel %vm3464_vm5, %v4255_v56, %v4291_v40  ;;  %v4195_v49 = vadd.f32 %v4194_v2, %v4141_v14  ;;  %v4151_v40 = vadd.f32 %v4150_v17, %v4097_v23  ;;  %v4104_v2 = vpop.f32.mrf.mxu2 }
 0x8d4   : > { %v10045_v47 = vrot.slane %v4312_v10, 2  ;;  %4417 = vst [vmem:[#allocation1] ss:$4 sm:$0xff] %v10042_v54  ;;  %v4046_v10 = vadd.f32 %v10033_v42, %v9997_v63 }
 0x8d5   : > { %v4238_v32 = vmax.f32 %v4195_v49, 0.0 }
 0x8d6   : > { %4420 = vst [vmem:[#allocation1 + $0x1] ss:$4 sm:$0xff] %v10045_v47  ;;  %v4100_v24 = vadd.f32 %v4099_v41, %v4046_v10 }
 0x8d7   : > { %v4256_v0 = vpack.c.bf16 %v4238_v32, %v4238_v32 }
 0x8d8   : > { %v4154_v51 = vadd.f32 %v4153_v43, %v4100_v24 }
 0x8d9   : > { %v4292_v46 = vrot.slane %v4256_v0, 2 }
 0x8da   : > { %v4197_v38 = vpop.f32.mrf.mxu1 }
 0x8db   : > { %v10052_v18 = vsel %vm1391_vm0, %v4256_v0, %v4292_v46  ;;  %v4318_v8 = vsel %vm3464_vm5, %v4256_v0, %v4292_v46  ;;  %v4198_v58 = vadd.f32 %v4197_v38, %v4144_v30  ;;  %v4158_v38 = vpop.f32.mrf.mxu3  ;;  %v4106_v41 = vpop.f32.mrf.mxu2 }
 0x8dc   : > { %v10055_v27 = vrot.slane %v4318_v8, 2  ;;  %4422 = vst [vmem:[#allocation1 + $0x2] ss:$4 sm:$0xff] %v10052_v18 }
 0x8dd   : > { %v4239_v57 = vmax.f32 %v4198_v58, 0.0  ;;  %v4048_v58 = vadd.f32 %v10033_v42, %v10001_v13 }
 0x8de   : > { %4426 = vst [vmem:[#allocation1 + $0x20] ss:$4 sm:$0xff] %v10055_v27 }
 0x8df   : > { %v4257_v15 = vpack.c.bf16 %v4239_v57, %v4239_v57 }
 0x8e1   : > { %v4293_v48 = vrot.slane %v4257_v15, 2 }
 0x8e2   : > { %v4199_v26 = vpop.f32.mrf.mxu1 }
 0x8e3   : > { %v10062_v5 = vsel %vm1391_vm0, %v4257_v15, %v4293_v48  ;;  %v4324_v11 = vsel %vm3464_vm5, %v4257_v15, %v4293_v48  ;;  %v4200_v4 = vadd.f32 %v4199_v26, %v4146_v3  ;;  %v10071_v45 = vld.sshfl [vmem:[#allocation1] sm:$0xff pattern:$0x73625140]  ;;  %v4102_v48 = vadd.f32 %v4101_v61, %v4048_v58  ;;  %v4160_v43 = vpop.f32.mrf.mxu3 }
 0x8e4   : > { %v10065_v60 = vrot.slane %v4324_v11, 2  ;;  %4428 = vst [vmem:[#allocation1 + $0x21] ss:$4 sm:$0xff] %v10062_v5 }
 0x8e5   : > { %v4240_v6 = vmax.f32 %v4200_v4, 0.0  ;;  %12274 = vst [vmem:[#allocation111_spill] sm:$0xff] %v10071_v45  ;;  %v4156_v11 = vadd.f32 %v4155_v53, %v4102_v48  ;;  %v4053_v53 = vadd.f32 %v10033_v42, %v10007_v35 }
 0x8e6   : > { %4431 = vst [vmem:[#allocation1 + $0x22] ss:$4 sm:$0xff] %v10065_v60 }
 0x8e7   : > { %v4258_v25 = vpack.c.bf16 %v4240_v6, %v4240_v6 }
 0x8e9   : > { %v4294_v55 = vrot.slane %v4258_v25, 2 }
 0x8ea   : > { %v4202_v16 = vpop.f32.mrf.mxu1 }
 0x8eb   : > { %v10074_v50 = vsel %vm1391_vm0, %v4258_v25, %v4294_v55  ;;  %v4330_v29 = vsel %vm3464_vm5, %v4258_v25, %v4294_v55  ;;  %v4203_v12 = vadd.f32 %v4202_v16, %v4149_v62  ;;  %v4105_v16 = vadd.f32 %v4104_v2, %v4051_v20 }
 0x8ec   : > { %v10077_v44 = vrot.slane %v4330_v29, 2  ;;  %4433 = vst [vmem:[#allocation1] ss:$4 sm:$0xff] %v10074_v50  ;;  %v4109_v29 = vpop.f32.mrf.mxu2  ;;  %v4107_v2 = vadd.f32 %v4106_v41, %v4053_v53  ;;  %v4061_v53 = vadd.f32 %v10033_v42, %v10015_v9 }
 0x8ed   : > { %v4241_v56 = vmax.f32 %v4203_v12, 0.0  ;;  %v10090_v30 = vld.sshfl [vmem:[#allocation1 + $0x20] sm:$0xff pattern:$0x73625140]  ;;  %v4159_v23 = vadd.f32 %v4158_v38, %v4105_v16 }
 0x8ee   : > { %4435 = vst [vmem:[#allocation1 + $0x1] ss:$4 sm:$0xff] %v10077_v44  ;;  %v4161_v35 = vadd.f32 %v4160_v43, %v4107_v2  ;;  %v4058_v43 = vadd.f32 %v10033_v42, %v10013_v31 }
 0x8ef   : > { %v4259_v14 = vpack.c.bf16 %v4241_v56, %v4241_v56  ;;  %12275 = vst [vmem:[#allocation124_spill] sm:$0xff] %v10090_v30 }
 0x8f1   : > { %v4295_v36 = vrot.slane %v4259_v14, 2 }
 0x8f2   : > { %v4204_v39 = vpop.f32.mrf.mxu1 }
 0x8f3   : > { %v10084_v49 = vsel %vm1391_vm0, %v4259_v14, %v4295_v36  ;;  %v4336_v34 = vsel %vm3464_vm5, %v4259_v14, %v4295_v36  ;;  %v4205_v32 = vadd.f32 %v4204_v39, %v4151_v40  ;;  %v4163_v39 = vpop.f32.mrf.mxu3 }
 0x8f4   : > { %v10087_v0 = vrot.slane %v4336_v34, 2  ;;  %4436 = vst [vmem:[#allocation1 + $0x2] ss:$4 sm:$0xff] %v10084_v49 }
 0x8f5   : > { %v4242_v46 = vmax.f32 %v4205_v32, 0.0 }
 0x8f6   : > { %4439 = vst [vmem:[#allocation1 + $0x20] ss:$4 sm:$0xff] %v10087_v0 }
 0x8f7   : > { %v4260_v17 = vpack.c.bf16 %v4242_v46, %v4242_v46  ;;  %v4111_v46 = vpop.f32.mrf.mxu2 }
 0x8f9   : > { %v4296_v63 = vrot.slane %v4260_v17, 2 }
 0x8fa   : > { %v4207_v8 = vpop.f32.mrf.mxu1 }
 0x8fb   : > { %v10096_v28 = vsel %vm1391_vm0, %v4260_v17, %v4296_v63  ;;  %v4342_v57 = vsel %vm3464_vm5, %v4260_v17, %v4296_v63  ;;  %v4208_v15 = vadd.f32 %v4207_v8, %v4154_v51  ;;  %v10105_v6 = vld.sshfl [vmem:[#allocation1] sm:$0xff pattern:$0x73625140]  ;;  %v4056_v51 = vadd.f32 %v10033_v42, %v10009_v21  ;;  %v4165_v48 = vpop.f32.mrf.mxu3 }
 0x8fc   : > { %v10099_v3 = vrot.slane %v4342_v57, 2  ;;  %4440 = vst [vmem:[#allocation1 + $0x21] ss:$4 sm:$0xff] %v10096_v28 }
 0x8fd   : > { %v4243_v26 = vmax.f32 %v4208_v15, 0.0  ;;  %12276 = vst [vmem:[#allocation26_spill] sm:$0xff] %v10105_v6  ;;  %v4110_v15 = vadd.f32 %v4109_v29, %v4056_v51 }
 0x8fe   : > { %4442 = vst [vmem:[#allocation1 + $0x22] ss:$4 sm:$0xff] %v10099_v3 }
 0x8ff   : > { %v4261_v19 = vpack.c.bf16 %v4243_v26, %v4243_v26 }
 0x901   : > { %v4297_v4 = vrot.slane %v4261_v19, 2 }
 0x902   : > { %v4209_v13 = vpop.f32.mrf.mxu1 }
 0x903   : > { %v10108_v25 = vsel %vm1391_vm0, %v4261_v19, %v4297_v4  ;;  %v4348_v62 = vsel %vm3464_vm5, %v4261_v19, %v4297_v4  ;;  %v4210_v55 = vadd.f32 %v4209_v13, %v4156_v11  ;;  %v4164_v19 = vadd.f32 %v4163_v39, %v4110_v15  ;;  %v4114_v4 = vpop.f32.mrf.mxu2 }
 0x904   : > { %v10111_v61 = vrot.slane %v4348_v62, 2  ;;  %4444 = vst [vmem:[#allocation1] ss:$4 sm:$0xff] %v10108_v25 }
 0x905   : > { %v4244_v22 = vmax.f32 %v4210_v55, 0.0  ;;  %v10124_v34 = vld.sshfl [vmem:[#allocation1 + $0x20] sm:$0xff pattern:$0x73625140] }
 0x906   : > { %4446 = vst [vmem:[#allocation1 + $0x1] ss:$4 sm:$0xff] %v10111_v61 }
 0x907   : > { %v4262_v12 = vpack.c.bf16 %v4244_v22, %v4244_v22  ;;  %v4112_v22 = vadd.f32 %v4111_v46, %v4058_v43 }
 0x909   : > { %v4298_v37 = vrot.slane %v4262_v12, 2 }
 0x90a   : > { %v4212_v56 = vpop.f32.mrf.mxu1 }
 0x90b   : > { %v10118_v14 = vsel %vm1391_vm0, %v4262_v12, %v4298_v37  ;;  %v4354_v40 = vsel %vm3464_vm5, %v4262_v12, %v4298_v37  ;;  %v4213_v36 = vadd.f32 %v4212_v56, %v4159_v23  ;;  %v4168_v23 = vpop.f32.mrf.mxu3  ;;  %v4166_v37 = vadd.f32 %v4165_v48, %v4112_v22  ;;  %v4116_v2 = vpop.f32.mrf.mxu2 }
 0x90c   : > { %v10121_v10 = vrot.slane %v4354_v40, 2  ;;  %4447 = vst [vmem:[#allocation1 + $0x2] ss:$4 sm:$0xff] %v10118_v14 }
 0x90d   : > { %v4245_v32 = vmax.f32 %v4213_v36, 0.0 }
 0x90e   : > { %4450 = vst [vmem:[#allocation1 + $0x20] ss:$4 sm:$0xff] %v10121_v10 }
 0x90f   : > { %v4263_v24 = vpack.c.bf16 %v4245_v32, %v4245_v32 }
 0x911   : > { %v4299_v17 = vrot.slane %v4263_v24, 2 }
 0x912   : > { %v4214_v38 = vpop.f32.mrf.mxu1 }
 0x913   : > { %v10130_v63 = vsel %vm1391_vm0, %v4263_v24, %v4299_v17  ;;  %v4360_v8 = vsel %vm3464_vm5, %v4263_v24, %v4299_v17  ;;  %v4215_v58 = vadd.f32 %v4214_v38, %v4161_v35  ;;  %v10139_v13 = vld.sshfl [vmem:[#allocation1] sm:$0xff pattern:$0x73625140]  ;;  %v4115_v24 = vadd.f32 %v4114_v4, %v4061_v53  ;;  %v4170_v51 = vpop.f32.mrf.mxu3  ;;  %v4119_v4 = vpop.f32.mrf.mxu2 }
 0x914   : > { %v10133_v57 = vrot.slane %v4360_v8, 2  ;;  %4451 = vst [vmem:[#allocation1 + $0x21] ss:$4 sm:$0xff] %v10130_v63 }
 0x915   : > { %v4246_v41 = vmax.f32 %v4215_v58, 0.0  ;;  %12277 = vst [vmem:[#allocation22_spill] sm:$0xff] %v10139_v13  ;;  %v4169_v38 = vadd.f32 %v4168_v23, %v4115_v24  ;;  %v4063_v58 = vadd.f32 %v10033_v42, %v10019_v1  ;;  %v4066_v1 = vadd.f32 %v10033_v42, %v10021_v7 }
 0x916   : > { %4453 = vst [vmem:[#allocation1 + $0x22] ss:$4 sm:$0xff] %v10133_v57 }
 0x917   : > { %v4264_v26 = vpack.c.bf16 %v4246_v41, %v4246_v41 }
 0x919   : > { %v4300_v11 = vrot.slane %v4264_v26, 2 }
 0x91a   : > { %v4217_v21 = vpop.f32.mrf.mxu1 }
 0x91b   : > { %v10142_v20 = vsel %vm1391_vm0, %v4264_v26, %v4300_v11  ;;  %v4366_v62 = vsel %vm3464_vm5, %v4264_v26, %v4300_v11  ;;  %v4218_v55 = vadd.f32 %v4217_v21, %v4164_v19  ;;  %v4117_v19 = vadd.f32 %v4116_v2, %v4063_v58 }
 0x91c   : > { %v10145_v16 = vrot.slane %v4366_v62, 2  ;;  %4455 = vst [vmem:[#allocation1] ss:$4 sm:$0xff] %v10142_v20 }
 0x91d   : > { %v4247_v29 = vmax.f32 %v4218_v55, 0.0  ;;  %v10158_v46 = vld.sshfl [vmem:[#allocation1 + $0x20] sm:$0xff pattern:$0x73625140]  ;;  %v4171_v43 = vadd.f32 %v4170_v51, %v4117_v19 }
 0x91e   : > { %4457 = vst [vmem:[#allocation1 + $0x1] ss:$4 sm:$0xff] %v10145_v16 }
 0x91f   : > { %v4265_v12 = vpack.c.bf16 %v4247_v29, %v4247_v29  ;;  %12278 = vst [vmem:[#allocation97_spill] sm:$0xff] %v10158_v46 }
 0x921   : > { %v4301_v31 = vrot.slane %v4265_v12, 2 }
 0x922   : > { %v4219_v56 = vpop.f32.mrf.mxu1 }
 0x923   : > { %v10152_v40 = vsel %vm1391_vm0, %v4265_v12, %v4301_v31  ;;  %v4372_v36 = vsel %vm3464_vm5, %v4265_v12, %v4301_v31  ;;  %v4220_v39 = vadd.f32 %v4219_v56, %v4166_v37  ;;  %v4173_v37 = vpop.f32.mrf.mxu3  ;;  %v4120_v56 = vadd.f32 %v4119_v4, %v4066_v1 }
 0x924   : > { %v10155_v32 = vrot.slane %v4372_v36, 2  ;;  %4458 = vst [vmem:[#allocation1 + $0x2] ss:$4 sm:$0xff] %v10152_v40  ;;  %v4071_v4 = vadd.f32 %v10033_v42, %v10027_v52 }
 0x925   : > { %v4248_v35 = vmax.f32 %v4220_v39, 0.0  ;;  %v10183_v39 = vpop.f32.mrf.mxu2  ;;  %v4174_v7 = vadd.f32 %v4173_v37, %v4120_v56 }
 0x926   : > { %4461 = vst [vmem:[#allocation1 + $0x20] ss:$4 sm:$0xff] %v10155_v32 }
 0x927   : > { %v4266_v17 = vpack.c.bf16 %v4248_v35, %v4248_v35 }
 0x929   : > { %v4302_v9 = vrot.slane %v4266_v17, 2 }
 0x92a   : > { %v4222_v8 = vpop.f32.mrf.mxu1 }
 0x92b   : > { %v10164_v15 = vsel %vm1391_vm0, %v4266_v17, %v4302_v9  ;;  %v4378_v41 = vsel %vm3464_vm5, %v4266_v17, %v4302_v9  ;;  %v4223_v48 = vadd.f32 %v4222_v8, %v4169_v38  ;;  %v10173_v22 = vld.sshfl [vmem:[#allocation1] sm:$0xff pattern:$0x73625140]  ;;  %v10194_v58 = vpop.f32.mrf.mxu3 }
 0x92c   : > { %v10167_v26 = vrot.slane %v4378_v41, 2  ;;  %4462 = vst [vmem:[#allocation1 + $0x21] ss:$4 sm:$0xff] %v10164_v15 }
 0x92d   : > { %v4249_v11 = vmax.f32 %v4223_v48, 0.0  ;;  %12279 = vst [vmem:[#allocation99_spill] sm:$0xff] %v10173_v22  ;;  %v4124_v19 = vpop.f32.mrf.mxu2 }
 0x92e   : > { %4464 = vst [vmem:[#allocation1 + $0x22] ss:$4 sm:$0xff] %v10167_v26  ;;  %v4125_v1 = vadd.f32 %v4124_v19, %v4071_v4 }
 0x92f   : > { %v4267_v21 = vpack.c.bf16 %v4249_v11, %v4249_v11 }
 0x931   : > { %v4303_v62 = vrot.slane %v4267_v21, 2 }
 0x932   : > { %v4224_v55 = vpop.f32.mrf.mxu1 }
 0x933   : > { %v10176_v29 = vsel %vm1391_vm0, %v4267_v21, %v4303_v62  ;;  %v4384_v12 = vsel %vm3464_vm5, %v4267_v21, %v4303_v62  ;;  %v4225_v23 = vadd.f32 %v4224_v55, %v4171_v43 }
 0x934   : > { %v10179_v31 = vrot.slane %v4384_v12, 2  ;;  %4466 = vst [vmem:[#allocation1] ss:$4 sm:$0xff] %v10176_v29  ;;  %v4178_v12 = vpop.f32.mrf.mxu3 }
 0x935   : > { %v4250_v53 = vmax.f32 %v4225_v23, 0.0  ;;  %v10192_v51 = vld.sshfl [vmem:[#allocation1 + $0x20] sm:$0xff pattern:$0x73625140]  ;;  %v4179_v52 = vadd.f32 %v4178_v12, %v4125_v1 }
 0x936   : > { %4468 = vst [vmem:[#allocation1 + $0x1] ss:$4 sm:$0xff] %v10179_v31 }
 0x937   : > { %v4268_v36 = vpack.c.bf16 %v4250_v53, %v4250_v53  ;;  %12280 = vst [vmem:[#allocation55_spill] sm:$0xff] %v10192_v51 }
 0x939   : > { %v4304_v2 = vrot.slane %v4268_v36, 2 }
 0x93a   : > { %v4227_v24 = vpop.f32.mrf.mxu1 }
 0x93b   : > { %v10186_v35 = vsel %vm1391_vm0, %v4268_v36, %v4304_v2  ;;  %v4390_v17 = vsel %vm3464_vm5, %v4268_v36, %v4304_v2  ;;  %v4228_v38 = vadd.f32 %v4227_v24, %v4174_v7 }
 0x93c   : > { %v10189_v9 = vrot.slane %v4390_v17, 2  ;;  %4469 = vst [vmem:[#allocation1 + $0x2] ss:$4 sm:$0xff] %v10186_v35 }
 0x93d   : > { %v4251_v8 = vmax.f32 %v4228_v38, 0.0 }
 0x93e   : > { %4472 = vst [vmem:[#allocation1 + $0x20] ss:$4 sm:$0xff] %v10189_v9 }
 0x93f   : > { %v4269_v41 = vpack.c.bf16 %v4251_v8, %v4251_v8 }
 0x941   : > { %v4305_v48 = vrot.slane %v4269_v41, 2 }
 0x942   : > { %v10197_v11 = vpop.f32.mrf.mxu1 }
 0x943   : > { %v10201_v21 = vld.sshfl [vmem:[#allocation1] sm:$0xff pattern:$0x73625140]  ;;  %v4396_v43 = vsel %vm3464_vm5, %v4269_v41, %v4305_v48  ;;  %v10206_v62 = vsel %vm1391_vm0, %v4269_v41, %v4305_v48 }
 0x944   : > { %12281 = vst [vmem:[#allocation114_spill] sm:$0xff] %v10201_v21  ;;  %v10208_v55 = vrot.slane %v4396_v43, 2 }
 0x945   : > { %4477 = vst [vmem:[#allocation1] ss:$4 sm:$0xff] %v10042_v54 }
 0x946   : > { %4479 = vst [vmem:[#allocation1 + $0x1] ss:$4 sm:$0xff] %v10045_v47 }
 0x947   : > { %4481 = vst [vmem:[#allocation1 + $0x2] ss:$4 sm:$0xff] %v10052_v18 }
 0x948   : > { %4473 = vst [vmem:[#allocation1 + $0x21] ss:$4 sm:$0xff] %v10206_v62 }
 0x949   : > { %4475 = vst [vmem:[#allocation1 + $0x22] ss:$4 sm:$0xff] %v10208_v55 }
 0x94a   : > { %v4232_v23 = vpop.f32.mrf.mxu1 }
 0x94b   : > { %v4233_v37 = vadd.f32 %v4232_v23, %v4179_v52 }
 0x94d   : > { %v4253_v53 = vmax.f32 %v4233_v37, 0.0 }
 0x94e   : > { %v4482_v56 = vld.sshfl [vmem:[#allocation1] sm:$0xff pattern:$0x73625140] }
 0x94f   : > { %4490 = vst [vmem:[#allocation1] ss:$4 sm:$0xff] %v10074_v50  ;;  %v10218_v7 = vpack.c.bf16 %v4253_v53, %v4253_v53  ;;  %v4524_v1 = vshll.u32 %v4482_v56, 16  ;;  %v4522_v12 = vshrl.u32 %v4482_v56, 16 }
 0x950   : > { %4491 = vst [vmem:[#allocation1 + $0x1] ss:$4 sm:$0xff] %v10077_v44  ;;  %v10216_v36 = vld.sshfl [vmem:[#allocation1 + $0x20] sm:$0xff pattern:$0x73625140] }
 0x951   : > { %12282 = vst [vmem:[#allocation100_spill] sm:$0xff] %v10216_v36  ;;  %v11789_v2 = vrot.slane %v10218_v7, 2  ;;  %v4526_v52 = vrot.slane %v4524_v1, 1 }
 0x952   : > { %4492 = vst [vmem:[#allocation1 + $0x2] ss:$4 sm:$0xff] %v10084_v49  ;;  %v4234_v45 = vpop.f32.mrf.mxu1 }
 0x953   : > { %4484 = vst [vmem:[#allocation1 + $0x20] ss:$4 sm:$0xff] %v10055_v27  ;;  %v10229_v24 = vsel %vm3464_vm5, %v10218_v7, %v11789_v2 }
 0x954   : > { %4486 = vst [vmem:[#allocation1 + $0x21] ss:$4 sm:$0xff] %v10062_v5 }
 0x955   : > { %4488 = vst [vmem:[#allocation1 + $0x22] ss:$4 sm:$0xff] %v10065_v60 }
 0x959   : > { %v4493_v17 = vld.sshfl [vmem:[#allocation1] sm:$0xff pattern:$0x73625140] }
 0x95a   : > { %4498 = vst [vmem:[#allocation1] ss:$4 sm:$0xff] %v10108_v25 }
 0x95b   : > { %4499 = vst [vmem:[#allocation1 + $0x1] ss:$4 sm:$0xff] %v10111_v61 }
 0x95c   : > { %4500 = vst [vmem:[#allocation1 + $0x2] ss:$4 sm:$0xff] %v10118_v14  ;;  %v4489_v38 = vld.sshfl [vmem:[#allocation1 + $0x20] sm:$0xff pattern:$0x73625140] }
 0x95d   : > { %4494 = vst [vmem:[#allocation1 + $0x20] ss:$4 sm:$0xff] %v10087_v0  ;;  %v4530_v2 = vshll.u32 %v4489_v38, 16  ;;  %v4528_v1 = vshrl.u32 %v4489_v38, 16 }
 0x95e   : > { %4495 = vst [vmem:[#allocation1 + $0x21] ss:$4 sm:$0xff] %v10096_v28 }
 0x95f   : > { %4496 = vst [vmem:[#allocation1 + $0x22] ss:$4 sm:$0xff] %v10099_v3  ;;  %v4532_v56 = vrot.slane %v4530_v2, 1 }
 0x963   : > { %v4501_v8 = vld.sshfl [vmem:[#allocation1] sm:$0xff pattern:$0x73625140] }
 0x964   : > { %4506 = vst [vmem:[#allocation1] ss:$4 sm:$0xff] %v10142_v20  ;;  %v4548_v51 = vshll.u32 %v4501_v8, 16  ;;  %v4546_v2 = vshrl.u32 %v4501_v8, 16 }
 0x965   : > { %4507 = vst [vmem:[#allocation1 + $0x1] ss:$4 sm:$0xff] %v10145_v16 }
 0x966   : > { %4508 = vst [vmem:[#allocation1 + $0x2] ss:$4 sm:$0xff] %v10152_v40  ;;  %v4497_v41 = vld.sshfl [vmem:[#allocation1 + $0x20] sm:$0xff pattern:$0x73625140] }
 0x967   : > { %4502 = vst [vmem:[#allocation1 + $0x20] ss:$4 sm:$0xff] %v10121_v10  ;;  %v4540_v21 = vshrl.u32 %v4497_v41, 16 }
 0x968   : > { %4503 = vst [vmem:[#allocation1 + $0x21] ss:$4 sm:$0xff] %v10130_v63 }
 0x969   : > { %4504 = vst [vmem:[#allocation1 + $0x22] ss:$4 sm:$0xff] %v10133_v57 }
 0x96d   : > { %v10243_v48 = vld.sshfl [vmem:[#allocation1] sm:$0xff pattern:$0x73625140] }
 0x96e   : > { %4514 = vst [vmem:[#allocation1] ss:$4 sm:$0xff] %v10176_v29 }
 0x96f   : > { %4515 = vst [vmem:[#allocation1 + $0x1] ss:$4 sm:$0xff] %v10179_v31 }
 0x970   : > { %4516 = vst [vmem:[#allocation1 + $0x2] ss:$4 sm:$0xff] %v10186_v35  ;;  %v10248_v19 = vld.sshfl [vmem:[#allocation1 + $0x20] sm:$0xff pattern:$0x73625140] }
 0x971   : > { %4510 = vst [vmem:[#allocation1 + $0x20] ss:$4 sm:$0xff] %v10155_v32 }
 0x972   : > { %4511 = vst [vmem:[#allocation1 + $0x21] ss:$4 sm:$0xff] %v10164_v15 }
 0x973   : > { %4512 = vst [vmem:[#allocation1 + $0x22] ss:$4 sm:$0xff] %v10167_v26 }
 0x977   : > { %v10253_v4 = vld.sshfl [vmem:[#allocation1] sm:$0xff pattern:$0x73625140] }
 0x978   : > { %4602 = vst [vmem:[#allocation1] ss:$4 sm:$0xff] %v10042_v54  ;;  %v4527_v54 = vor.u32 %v4526_v52, %v4522_v12  ;;  %v4542_v12 = vshll.u32 %v4497_v41, 16  ;;  %v4533_v52 = vor.u32 %v4532_v56, %v4528_v1 }
 0x979   : > { %4604 = vst [vmem:[#allocation1 + $0x1] ss:$4 sm:$0xff] %v10045_v47  ;;  %v4536_v47 = vshll.u32 %v4493_v17, 16 }
 0x97a   : > { %4606 = vst [vmem:[#allocation1 + $0x2] ss:$4 sm:$0xff] %v10052_v18  ;;  %v10258_v43 = vld.sshfl [vmem:[#allocation1 + $0x20] sm:$0xff pattern:$0x73625140]  ;;  %4582 = vrot.lane.b32.xlu2 %v4527_v54, %s7071_s16  ;;  %v4534_v18 = vshrl.u32 %v4493_v17, 16 }
 0x97b   : > { %4518 = vst [vmem:[#allocation1 + $0x20] ss:$4 sm:$0xff] %v10189_v9  ;;  %v4538_v37 = vrot.slane %v4536_v47, 1  ;;  %v4544_v54 = vrot.slane %v4542_v12, 1 }
 0x97c   : > { %4519 = vst [vmem:[#allocation1 + $0x21] ss:$4 sm:$0xff] %v10206_v62 }
 0x97d   : > { %4520 = vst [vmem:[#allocation1 + $0x22] ss:$4 sm:$0xff] %v10208_v55  ;;  %v4539_v53 = vor.u32 %v4538_v37, %v4534_v18  ;;  %v4545_v17 = vor.u32 %v4544_v54, %v4540_v21  ;;  %v4550_v18 = vrot.slane %v4548_v51, 1  ;;  %v4068_v54 = vadd.f32 %v10033_v42, %v10025_v33 }
 0x97f   : > { %4586 = vrot.lane.b32.xlu0 %v4539_v53, %s7071_s16  ;;  %v4551_v38 = vor.u32 %v4550_v18, %v4546_v2 }
 0x981   : > { %v4607_v21 = vld.sshfl [vmem:[#allocation1] sm:$0xff pattern:$0x73625140] }
 0x982   : > { %4588 = vrot.lane.b32.xlu2 %v4545_v17, %s7071_s16  ;;  %v4657_v37 = vrot.slane %v4607_v21, 1  ;;  %4617 = vst [vmem:[#allocation1] ss:$4 sm:$0xff] %v10074_v50  ;;  %v4122_v17 = vadd.f32 %v10183_v39, %v4068_v54  ;;  %v12283_v54 = vrot.slane %v10218_v7, 2 }
 0x983   : > { %4618 = vst [vmem:[#allocation1 + $0x1] ss:$4 sm:$0xff] %v10077_v44 }
 0x984   : > { %v10263_v23 = vld.sshfl [vmem:[#allocation1 + $0x20] sm:$0xff pattern:$0x73625140]  ;;  %4619 = vst [vmem:[#allocation1 + $0x2] ss:$4 sm:$0xff] %v10084_v49  ;;  %v4176_v18 = vadd.f32 %v10194_v58, %v4122_v17  ;;  %v10353_v17 = vsel %vm1391_vm0, %v10218_v7, %v12283_v54 }
 0x985   : > { %4610 = vst [vmem:[#allocation1 + $0x20] ss:$4 sm:$0xff] %v10055_v27 }
 0x986   : > { %4612 = vst [vmem:[#allocation1 + $0x21] ss:$4 sm:$0xff] %v10062_v5 }
 0x987   : > { %4614 = vst [vmem:[#allocation1 + $0x22] ss:$4 sm:$0xff] %v10065_v60  ;;  %4584 = vrot.lane.b32.xlu0 %v4533_v52, %s7071_s16 }
 0x98b   : > { %v4620_v8 = vld.sshfl [vmem:[#allocation1] sm:$0xff pattern:$0x73625140] }
 0x98c   : > { %v4659_v53 = vrot.slane %v4620_v8, 1  ;;  %4627 = vst [vmem:[#allocation1] ss:$4 sm:$0xff] %v10108_v25 }
 0x98d   : > { %4628 = vst [vmem:[#allocation1 + $0x1] ss:$4 sm:$0xff] %v10111_v61 }
 0x98e   : > { %v4615_v36 = vld.sshfl [vmem:[#allocation1 + $0x20] sm:$0xff pattern:$0x73625140]  ;;  %4629 = vst [vmem:[#allocation1 + $0x2] ss:$4 sm:$0xff] %v10118_v14 }
 0x98f   : > { %4622 = vst [vmem:[#allocation1 + $0x20] ss:$4 sm:$0xff] %v10087_v0  ;;  %4590 = vrot.lane.b32.xlu0 %v4551_v38, %s7071_s16  ;;  %v4658_v56 = vrot.slane %v4615_v36, 1  ;;  %v4230_v38 = vadd.f32 %v10197_v11, %v4176_v18 }
 0x990   : > { %4623 = vst [vmem:[#allocation1 + $0x21] ss:$4 sm:$0xff] %v10096_v28 }
 0x991   : > { %4624 = vst [vmem:[#allocation1 + $0x22] ss:$4 sm:$0xff] %v10099_v3  ;;  %4669 = vrot.lane.b32.xlu1 %v4658_v56, %s7074_s10  ;;  %v4252_v33 = vmax.f32 %v4230_v38, 0.0 }
 0x993   : > { %v4270_v21 = vpack.c.bf16 %v4252_v33, %v4252_v33 }
 0x995   : > { %v10303_v52 = vld.sshfl [vmem:[#allocation1] sm:$0xff pattern:$0x73625140]  ;;  %v4306_v11 = vrot.slane %v4270_v21, 2 }
 0x996   : > { %4637 = vst [vmem:[#allocation1] ss:$4 sm:$0xff] %v10142_v20 }
 0x997   : > { %4667 = vrot.lane.b32.xlu0 %v4657_v37, %s7074_s10  ;;  %4638 = vst [vmem:[#allocation1 + $0x1] ss:$4 sm:$0xff] %v10145_v16  ;;  %v4402_v8 = vsel %vm3464_vm5, %v4270_v21, %v4306_v11 }
 0x998   : > { %v4625_v47 = vld.sshfl [vmem:[#allocation1 + $0x20] sm:$0xff pattern:$0x73625140]  ;;  %4639 = vst [vmem:[#allocation1 + $0x2] ss:$4 sm:$0xff] %v10152_v40  ;;  %v10343_v56 = vrot.slane %v4402_v8, 2 }
 0x999   : > { %4632 = vst [vmem:[#allocation1 + $0x20] ss:$4 sm:$0xff] %v10121_v10  ;;  %v4660_v12 = vrot.slane %v4625_v47, 1 }
 0x99a   : > { %4633 = vst [vmem:[#allocation1 + $0x21] ss:$4 sm:$0xff] %v10130_v63 }
 0x99b   : > { %4634 = vst [vmem:[#allocation1 + $0x22] ss:$4 sm:$0xff] %v10133_v57  ;;  %4673 = vrot.lane.b32.xlu2 %v4660_v12, %s7074_s10 }
 0x99f   : > { %4671 = vrot.lane.b32.xlu0 %v4659_v53, %s7074_s10  ;;  %v10315_v47 = vld.sshfl [vmem:[#allocation1] sm:$0xff pattern:$0x73625140]  ;;  %v10341_v53 = vsel %vm1391_vm0, %v4270_v21, %v4306_v11 }
 0x9a0   : > { %4647 = vst [vmem:[#allocation1] ss:$4 sm:$0xff] %v10176_v29 }
 0x9a1   : > { %4648 = vst [vmem:[#allocation1 + $0x1] ss:$4 sm:$0xff] %v10179_v31 }
 0x9a2   : > { %v10279_v41 = vld.sshfl [vmem:[#allocation1 + $0x20] sm:$0xff pattern:$0x73625140]  ;;  %4649 = vst [vmem:[#allocation1 + $0x2] ss:$4 sm:$0xff] %v10186_v35 }
 0x9a3   : > { %4642 = vst [vmem:[#allocation1 + $0x20] ss:$4 sm:$0xff] %v10155_v32 }
 0x9a4   : > { %4643 = vst [vmem:[#allocation1 + $0x21] ss:$4 sm:$0xff] %v10164_v15 }
 0x9a5   : > { %4644 = vst [vmem:[#allocation1 + $0x22] ss:$4 sm:$0xff] %v10167_v26 }
 0x9a9   : > { %v10325_v39 = vld.sshfl [vmem:[#allocation1] sm:$0xff pattern:$0x73625140] }
 0x9aa   : > { %4687 = vst [vmem:[#allocation1] ss:$4 sm:$0xff] %v10055_v27 }
 0x9ab   : > { %4689 = vst [vmem:[#allocation1 + $0x1] ss:$4 sm:$0xff] %v10062_v5 }
 0x9ac   : > { %v10288_v51 = vld.sshfl [vmem:[#allocation1 + $0x20] sm:$0xff pattern:$0x73625140]  ;;  %4691 = vst [vmem:[#allocation1 + $0x2] ss:$4 sm:$0xff] %v10065_v60 }
 0x9ad   : > { %4652 = vst [vmem:[#allocation1 + $0x20] ss:$4 sm:$0xff] %v10189_v9 }
 0x9ae   : > { %4653 = vst [vmem:[#allocation1 + $0x21] ss:$4 sm:$0xff] %v10206_v62 }
 0x9af   : > { %4654 = vst [vmem:[#allocation1 + $0x22] ss:$4 sm:$0xff] %v10208_v55 }
 0x9b3   : > { %v4692_v37 = vld.sshfl [vmem:[#allocation1] sm:$0xff pattern:$0x73625140] }
 0x9b4   : > { %4743 = vrot.lane.b32.xlu2 %v4692_v37, %s7073_s9  ;;  %4702 = vst [vmem:[#allocation1] ss:$4 sm:$0xff] %v10087_v0 }
 0x9b5   : > { %4703 = vst [vmem:[#allocation1 + $0x1] ss:$4 sm:$0xff] %v10096_v28 }
 0x9b6   : > { %v10298_v1 = vld.sshfl [vmem:[#allocation1 + $0x20] sm:$0xff pattern:$0x73625140]  ;;  %4704 = vst [vmem:[#allocation1 + $0x2] ss:$4 sm:$0xff] %v10099_v3 }
 0x9b7   : > { %4695 = vst [vmem:[#allocation1 + $0x20] ss:$4 sm:$0xff] %v10074_v50 }
 0x9b8   : > { %4697 = vst [vmem:[#allocation1 + $0x21] ss:$4 sm:$0xff] %v10077_v44 }
 0x9b9   : > { %4699 = vst [vmem:[#allocation1 + $0x22] ss:$4 sm:$0xff] %v10084_v49 }
 0x9bd   : > { %v4705_v18 = vld.sshfl [vmem:[#allocation1] sm:$0xff pattern:$0x73625140] }
 0x9be   : > { %4747 = vrot.lane.b32.xlu0 %v4705_v18, %s7073_s9  ;;  %4712 = vst [vmem:[#allocation1] ss:$4 sm:$0xff] %v10121_v10 }
 0x9bf   : > { %4713 = vst [vmem:[#allocation1 + $0x1] ss:$4 sm:$0xff] %v10130_v63 }
 0x9c0   : > { %v4700_v36 = vld.sshfl [vmem:[#allocation1 + $0x20] sm:$0xff pattern:$0x73625140]  ;;  %4714 = vst [vmem:[#allocation1 + $0x2] ss:$4 sm:$0xff] %v10133_v57 }
 0x9c1   : > { %4707 = vst [vmem:[#allocation1 + $0x20] ss:$4 sm:$0xff] %v10108_v25 }
 0x9c2   : > { %4708 = vst [vmem:[#allocation1 + $0x21] ss:$4 sm:$0xff] %v10111_v61 }
 0x9c3   : > { %4709 = vst [vmem:[#allocation1 + $0x22] ss:$4 sm:$0xff] %v10118_v14 }
 0x9c6   : > { %4745 = vrot.lane.b32.xlu0 %v4700_v36, %s7073_s9 }
 0x9c7   : > { %v10366_v7 = vld.sshfl [vmem:[#allocation1] sm:$0xff pattern:$0x73625140] }
 0x9c8   : > { %4722 = vst [vmem:[#allocation1] ss:$4 sm:$0xff] %v10155_v32 }
 0x9c9   : > { %4723 = vst [vmem:[#allocation1 + $0x1] ss:$4 sm:$0xff] %v10164_v15 }
 0x9ca   : > { %v4710_v2 = vld.sshfl [vmem:[#allocation1 + $0x20] sm:$0xff pattern:$0x73625140]  ;;  %4724 = vst [vmem:[#allocation1 + $0x2] ss:$4 sm:$0xff] %v10167_v26 }
 0x9cb   : > { %4718 = vst [vmem:[#allocation1 + $0x21] ss:$4 sm:$0xff] %v10145_v16 }
 0x9cc   : > { %4717 = vst [vmem:[#allocation1 + $0x20] ss:$4 sm:$0xff] %v10142_v20 }
 0x9cd   : > { %4719 = vst [vmem:[#allocation1 + $0x22] ss:$4 sm:$0xff] %v10152_v40 }
 0x9ce   : > { %4749 = vrot.lane.b32.xlu0 %v4710_v2, %s7073_s9 }
 0x9d1   : > { %v10377_v21 = vld.sshfl [vmem:[#allocation1] sm:$0xff pattern:$0x73625140] }
 0x9d2   : > { %4732 = vst [vmem:[#allocation1] ss:$4 sm:$0xff] %v10189_v9 }
 0x9d3   : > { %4733 = vst [vmem:[#allocation1 + $0x1] ss:$4 sm:$0xff] %v10206_v62 }
 0x9d4   : > { %v10330_v58 = vld.sshfl [vmem:[#allocation1 + $0x20] sm:$0xff pattern:$0x73625140]  ;;  %4734 = vst [vmem:[#allocation1 + $0x2] ss:$4 sm:$0xff] %v10208_v55  ;;  %v10395_v37 = vpop.permute.xlu2 %4582 }
 0x9d5   : > { %4727 = vst [vmem:[#allocation1 + $0x20] ss:$4 sm:$0xff] %v10176_v29 }
 0x9d6   : > { %4728 = vst [vmem:[#allocation1 + $0x21] ss:$4 sm:$0xff] %v10179_v31 }
 0x9d7   : > { %4729 = vst [vmem:[#allocation1 + $0x22] ss:$4 sm:$0xff] %v10186_v35 }
 0x9d8   : > { %12288 = vst [vmem:[#allocation102_spill] sm:$0xff] %v10395_v37 }
 0x9db   : > { %v10387_v11 = vld.sshfl [vmem:[#allocation1] sm:$0xff pattern:$0x73625140] }
 0x9dc   : > { %12286 = vst [vmem:[#allocation40_spill] sm:$0xff] %v10387_v11  ;;  %v4589_v54 = vpop.permute.xlu2 %4588 }
 0x9dd   : > { %4763 = vst [vmem:[#allocation1] ss:$4 sm:$0xff] %v10055_v27  ;;  %v5227_v22 = vsel %vm1011_vm8, %v10124_v34, %v4589_v54 }
 0x9de   : > { %v10345_v12 = vld.sshfl [vmem:[#allocation1 + $0x20] sm:$0xff pattern:$0x73625140]  ;;  %4765 = vst [vmem:[#allocation1 + $0x1] ss:$4 sm:$0xff] %v10062_v5 }
 0x9df   : > { %4737 = vst [vmem:[#allocation1 + $0x20] ss:$4 sm:$0xff] %v10341_v53 }
 0x9e0   : > { %4739 = vst [vmem:[#allocation1 + $0x21] ss:$4 sm:$0xff] %v10343_v56 }
 0x9e1   : > { %4740 = vst [vmem:[#allocation1 + $0x22] ss:$4 sm:$0xff] %v10353_v17 }
 0x9e2   : > { %4767 = vst [vmem:[#allocation1 + $0x2] ss:$4 sm:$0xff] %v10065_v60 }
 0x9e8   : > { %v10360_v38 = vld.sshfl [vmem:[#allocation1 + $0x20] sm:$0xff pattern:$0x73625140] }
 0x9e9   : > { %4770 = vst [vmem:[#allocation1 + $0x20] ss:$4 sm:$0xff] %v10074_v50  ;;  %v10399_v8 = vld.sshfl [vmem:[#allocation1] sm:$0xff pattern:$0x73625140] }
 0x9ea   : > { %4772 = vst [vmem:[#allocation1 + $0x21] ss:$4 sm:$0xff] %v10077_v44 }
 0x9eb   : > { %4774 = vst [vmem:[#allocation1 + $0x22] ss:$4 sm:$0xff] %v10084_v49 }
 0x9ec   : > { %12289 = vst [vmem:[#allocation54_spill] sm:$0xff] %v10399_v8 }
 0x9ed   : > { %4776 = vst [vmem:[#allocation1] ss:$4 sm:$0xff] %v10087_v0 }
 0x9ee   : > { %4777 = vst [vmem:[#allocation1 + $0x1] ss:$4 sm:$0xff] %v10096_v28 }
 0x9ef   : > { %4778 = vst [vmem:[#allocation1 + $0x2] ss:$4 sm:$0xff] %v10099_v3 }
 0x9f2   : > { %v10371_v33 = vld.sshfl [vmem:[#allocation1 + $0x20] sm:$0xff pattern:$0x73625140] }
 0x9f3   : > { %12284 = vst [vmem:[#allocation65_spill] sm:$0xff] %v10371_v33 }
 0x9f4   : > { %4780 = vst [vmem:[#allocation1 + $0x20] ss:$4 sm:$0xff] %v10108_v25 }
 0x9f5   : > { %4781 = vst [vmem:[#allocation1 + $0x21] ss:$4 sm:$0xff] %v10111_v61 }
 0x9f6   : > { %4782 = vst [vmem:[#allocation1 + $0x22] ss:$4 sm:$0xff] %v10118_v14  ;;  %v10409_v46 = vld.sshfl [vmem:[#allocation1] sm:$0xff pattern:$0x73625140] }
 0x9f7   : > { %12291 = vst [vmem:[#allocation103_spill] sm:$0xff] %v10409_v46 }
 0x9f8   : > { %4784 = vst [vmem:[#allocation1] ss:$4 sm:$0xff] %v10121_v10 }
 0x9f9   : > { %4785 = vst [vmem:[#allocation1 + $0x1] ss:$4 sm:$0xff] %v10130_v63 }
 0x9fa   : > { %4786 = vst [vmem:[#allocation1 + $0x2] ss:$4 sm:$0xff] %v10133_v57 }
 0x9fd   : > { %v10382_v36 = vld.sshfl [vmem:[#allocation1 + $0x20] sm:$0xff pattern:$0x73625140] }
 0x9fe   : > { %12285 = vst [vmem:[#allocation66_spill] sm:$0xff] %v10382_v36 }
 0x9ff   : > { %4788 = vst [vmem:[#allocation1 + $0x20] ss:$4 sm:$0xff] %v10142_v20 }
 0xa00   : > { %4789 = vst [vmem:[#allocation1 + $0x21] ss:$4 sm:$0xff] %v10145_v16 }
 0xa01   : > { %4790 = vst [vmem:[#allocation1 + $0x22] ss:$4 sm:$0xff] %v10152_v40  ;;  %v10424_v36 = vld.sshfl [vmem:[#allocation1] sm:$0xff pattern:$0x73625140] }
 0xa02   : > { %4792 = vst [vmem:[#allocation1] ss:$4 sm:$0xff] %v10155_v32 }
 0xa03   : > { %4793 = vst [vmem:[#allocation1 + $0x1] ss:$4 sm:$0xff] %v10164_v15 }
 0xa04   : > { %4794 = vst [vmem:[#allocation1 + $0x2] ss:$4 sm:$0xff] %v10167_v26 }
 0xa08   : > { %v10392_v2 = vld.sshfl [vmem:[#allocation1 + $0x20] sm:$0xff pattern:$0x73625140] }
 0xa09   : > { %12287 = vst [vmem:[#allocation126_spill] sm:$0xff] %v10392_v2  ;;  %v4674_v2 = vpop.permute.xlu2 %4673 }
 0xa0a   : > { %4796 = vst [vmem:[#allocation1 + $0x20] ss:$4 sm:$0xff] %v10176_v29  ;;  %v10415_v13 = vsel %vm3297_vm14, %v5227_v22, %v4674_v2 }
 0xa0b   : > { %4797 = vst [vmem:[#allocation1 + $0x21] ss:$4 sm:$0xff] %v10179_v31  ;;  %v10432_v22 = vld.sshfl [vmem:[#allocation1] sm:$0xff pattern:$0x73625140] }
 0xa0c   : > { %4798 = vst [vmem:[#allocation1 + $0x22] ss:$4 sm:$0xff] %v10186_v35 }
 0xa0d   : > { %12292 = vst [vmem:[#allocation24_spill] sm:$0xff] %v10415_v13  ;;  %v4073_v13 = vadd.f32 %v10033_v42, %v10035_v59 }
 0xa0e   : > { %12294 = vst [vmem:[#allocation31_spill] sm:$0xff] %v10432_v22 }
 0xa0f   : > { %4800 = vst [vmem:[#allocation1] ss:$4 sm:$0xff] %v10189_v9 }
 0xa10   : > { %4801 = vst [vmem:[#allocation1 + $0x1] ss:$4 sm:$0xff] %v10206_v62 }
 0xa11   : > { %4802 = vst [vmem:[#allocation1 + $0x2] ss:$4 sm:$0xff] %v10208_v55 }
 0xa13   : > { %v10404_v18 = vld.sshfl [vmem:[#allocation1 + $0x20] sm:$0xff pattern:$0x73625140] }
 0xa14   : > { %12290 = vst [vmem:[#allocation117_spill] sm:$0xff] %v10404_v18 }
 0xa15   : > { %4804 = vst [vmem:[#allocation1 + $0x20] ss:$4 sm:$0xff] %v10341_v53 }
 0xa16   : > { %4805 = vst [vmem:[#allocation1 + $0x21] ss:$4 sm:$0xff] %v10343_v56 }
 0xa17   : > { %4806 = vst [vmem:[#allocation1 + $0x22] ss:$4 sm:$0xff] %v10353_v17 }
 0xa1e   : > { %v10419_v18 = vld.sshfl [vmem:[#allocation1 + $0x20] sm:$0xff pattern:$0x73625140] }
 0xa1f   : > { %12293 = vst [vmem:[#allocation118_spill] sm:$0xff] %v10419_v18  ;;  %v10441_v18 = vld.sshfl [vmem:[#allocation1] sm:$0xff pattern:$0x73625140] }
 0xa20   : > { %4876 = vst [vmem:[#allocation1 + $0x20] ss:$4 sm:$0xff] %v10074_v50 }
 0xa21   : > { %4878 = vst [vmem:[#allocation1 + $0x21] ss:$4 sm:$0xff] %v10077_v44 }
 0xa22   : > { %4880 = vst [vmem:[#allocation1 + $0x22] ss:$4 sm:$0xff] %v10084_v49 }
 0xa23   : > { %12295 = vst [vmem:[#allocation85_spill] sm:$0xff] %v10441_v18 }
 0xa24   : > { %4868 = vst [vmem:[#allocation1] ss:$4 sm:$0xff] %v10055_v27 }
 0xa25   : > { %4870 = vst [vmem:[#allocation1 + $0x1] ss:$4 sm:$0xff] %v10062_v5 }
 0xa26   : > { %4872 = vst [vmem:[#allocation1 + $0x2] ss:$4 sm:$0xff] %v10065_v60 }
 0xa29   : > { %v4881_v34 = vld.sshfl [vmem:[#allocation1 + $0x20] sm:$0xff pattern:$0x73625140] }
 0xa2a   : > { %4888 = vst [vmem:[#allocation1 + $0x20] ss:$4 sm:$0xff] %v10108_v25  ;;  %v4924_v2 = vrot.slane %v4881_v34, 1 }
 0xa2b   : > { %4889 = vst [vmem:[#allocation1 + $0x21] ss:$4 sm:$0xff] %v10111_v61 }
 0xa2c   : > { %4890 = vst [vmem:[#allocation1 + $0x22] ss:$4 sm:$0xff] %v10118_v14  ;;  %4935 = vrot.lane.b32.xlu2 %v4924_v2, %s7071_s16 }
 0xa2d   : > { %v4873_v34 = vld.sshfl [vmem:[#allocation1] sm:$0xff pattern:$0x73625140] }
 0xa2e   : > { %v4923_v2 = vrot.slane %v4873_v34, 1  ;;  %4883 = vst [vmem:[#allocation1] ss:$4 sm:$0xff] %v10087_v0 }
 0xa2f   : > { %4884 = vst [vmem:[#allocation1 + $0x1] ss:$4 sm:$0xff] %v10096_v28 }
 0xa30   : > { %4933 = vrot.lane.b32.xlu1 %v4923_v2, %s7071_s16  ;;  %4885 = vst [vmem:[#allocation1 + $0x2] ss:$4 sm:$0xff] %v10099_v3 }
 0xa33   : > { %v4891_v54 = vld.sshfl [vmem:[#allocation1 + $0x20] sm:$0xff pattern:$0x73625140] }
 0xa34   : > { %4898 = vst [vmem:[#allocation1 + $0x20] ss:$4 sm:$0xff] %v10142_v20 }
 0xa35   : > { %4899 = vst [vmem:[#allocation1 + $0x21] ss:$4 sm:$0xff] %v10145_v16 }
 0xa36   : > { %4900 = vst [vmem:[#allocation1 + $0x22] ss:$4 sm:$0xff] %v10152_v40 }
 0xa37   : > { %v4886_v5 = vld.sshfl [vmem:[#allocation1] sm:$0xff pattern:$0x73625140] }
 0xa38   : > { %v4925_v60 = vrot.slane %v4886_v5, 1  ;;  %4893 = vst [vmem:[#allocation1] ss:$4 sm:$0xff] %v10121_v10 }
 0xa39   : > { %4894 = vst [vmem:[#allocation1 + $0x1] ss:$4 sm:$0xff] %v10130_v63 }
 0xa3a   : > { %4937 = vrot.lane.b32.xlu1 %v4925_v60, %s7071_s16  ;;  %4895 = vst [vmem:[#allocation1 + $0x2] ss:$4 sm:$0xff] %v10133_v57  ;;  %v4126_v60 = vpop.f32.mrf.mxu2 }
 0xa3b   : > { %v4127_v6 = vadd.f32 %v4126_v60, %v4073_v13  ;;  %v10502_v60 = vrot.slane %v10229_v24, 2 }
 0xa3d   : > { %v10446_v22 = vld.sshfl [vmem:[#allocation1 + $0x20] sm:$0xff pattern:$0x73625140] }
 0xa3e   : > { %4908 = vst [vmem:[#allocation1 + $0x20] ss:$4 sm:$0xff] %v10176_v29 }
 0xa3f   : > { %4909 = vst [vmem:[#allocation1 + $0x21] ss:$4 sm:$0xff] %v10179_v31 }
 0xa40   : > { %4910 = vst [vmem:[#allocation1 + $0x22] ss:$4 sm:$0xff] %v10186_v35 }
 0xa41   : > { %v4896_v2 = vld.sshfl [vmem:[#allocation1] sm:$0xff pattern:$0x73625140] }
 0xa42   : > { %v4927_v18 = vrot.slane %v4896_v2, 1  ;;  %4903 = vst [vmem:[#allocation1] ss:$4 sm:$0xff] %v10155_v32  ;;  %v4926_v2 = vrot.slane %v4891_v54, 1 }
 0xa43   : > { %4904 = vst [vmem:[#allocation1 + $0x1] ss:$4 sm:$0xff] %v10164_v15 }
 0xa44   : > { %4941 = vrot.lane.b32.xlu1 %v4927_v18, %s7071_s16  ;;  %4905 = vst [vmem:[#allocation1 + $0x2] ss:$4 sm:$0xff] %v10167_v26  ;;  %v4180_v18 = vpop.f32.mrf.mxu3 }
 0xa45   : > { %v4181_v37 = vadd.f32 %v4180_v18, %v4127_v6 }
 0xa47   : > { %v10455_v27 = vld.sshfl [vmem:[#allocation1 + $0x20] sm:$0xff pattern:$0x73625140]  ;;  %v4235_v42 = vadd.f32 %v4234_v45, %v4181_v37 }
 0xa48   : > { %4918 = vst [vmem:[#allocation1 + $0x20] ss:$4 sm:$0xff] %v10341_v53 }
 0xa49   : > { %4919 = vst [vmem:[#allocation1 + $0x21] ss:$4 sm:$0xff] %v10343_v56  ;;  %v4254_v59 = vmax.f32 %v4235_v42, 0.0 }
 0xa4a   : > { %4920 = vst [vmem:[#allocation1 + $0x22] ss:$4 sm:$0xff] %v10353_v17 }
 0xa4b   : > { %v10478_v30 = vld.sshfl [vmem:[#allocation1] sm:$0xff pattern:$0x73625140]  ;;  %v4272_v54 = vpack.c.bf16 %v4254_v59, %v4254_v59  ;;  %v4560_v59 = vshll.u32 %v10243_v48, 16 }
 0xa4c   : > { %4939 = vrot.lane.b32.xlu1 %v4926_v2, %s7071_s16  ;;  %4913 = vst [vmem:[#allocation1] ss:$4 sm:$0xff] %v10189_v9 }
 0xa4d   : > { %4914 = vst [vmem:[#allocation1 + $0x1] ss:$4 sm:$0xff] %v10206_v62  ;;  %v4308_v45 = vrot.slane %v4272_v54, 2 }
 0xa4e   : > { %4915 = vst [vmem:[#allocation1 + $0x2] ss:$4 sm:$0xff] %v10208_v55 }
 0xa51   : > { %v10464_v34 = vld.sshfl [vmem:[#allocation1 + $0x20] sm:$0xff pattern:$0x73625140] }
 0xa52   : > { %4961 = vst [vmem:[#allocation1 + $0x20] ss:$4 sm:$0xff] %v10087_v0 }
 0xa53   : > { %4963 = vst [vmem:[#allocation1 + $0x21] ss:$4 sm:$0xff] %v10096_v28 }
 0xa54   : > { %4965 = vst [vmem:[#allocation1 + $0x22] ss:$4 sm:$0xff] %v10099_v3 }
 0xa55   : > { %v10488_v13 = vld.sshfl [vmem:[#allocation1] sm:$0xff pattern:$0x73625140] }
 0xa56   : > { %4953 = vst [vmem:[#allocation1] ss:$4 sm:$0xff] %v10074_v50 }
 0xa57   : > { %4955 = vst [vmem:[#allocation1 + $0x1] ss:$4 sm:$0xff] %v10077_v44 }
 0xa58   : > { %4957 = vst [vmem:[#allocation1 + $0x2] ss:$4 sm:$0xff] %v10084_v49 }
 0xa5b   : > { %v4966_v5 = vld.sshfl [vmem:[#allocation1 + $0x20] sm:$0xff pattern:$0x73625140] }
 0xa5c   : > { %4973 = vst [vmem:[#allocation1 + $0x20] ss:$4 sm:$0xff] %v10121_v10  ;;  %5012 = vrot.lane.b32.xlu1 %v4966_v5, %s7074_s10  ;;  %v4414_v5 = vsel %vm3464_vm5, %v4272_v54, %v4308_v45 }
 0xa5d   : > { %4974 = vst [vmem:[#allocation1 + $0x21] ss:$4 sm:$0xff] %v10130_v63  ;;  %v10511_v18 = vrot.slane %v4414_v5, 2 }
 0xa5e   : > { %4975 = vst [vmem:[#allocation1 + $0x22] ss:$4 sm:$0xff] %v10133_v57 }
 0xa5f   : > { %v4958_v37 = vld.sshfl [vmem:[#allocation1] sm:$0xff pattern:$0x73625140] }
 0xa60   : > { %5010 = vrot.lane.b32.xlu0 %v4958_v37, %s7074_s10  ;;  %4968 = vst [vmem:[#allocation1] ss:$4 sm:$0xff] %v10108_v25 }
 0xa61   : > { %4969 = vst [vmem:[#allocation1 + $0x1] ss:$4 sm:$0xff] %v10111_v61 }
 0xa62   : > { %4970 = vst [vmem:[#allocation1 + $0x2] ss:$4 sm:$0xff] %v10118_v14 }
 0xa65   : > { %v4976_v11 = vld.sshfl [vmem:[#allocation1 + $0x20] sm:$0xff pattern:$0x73625140] }
 0xa66   : > { %4983 = vst [vmem:[#allocation1 + $0x20] ss:$4 sm:$0xff] %v10155_v32  ;;  %5016 = vrot.lane.b32.xlu1 %v4976_v11, %s7074_s10  ;;  %v10509_v11 = vsel %vm1391_vm0, %v4272_v54, %v4308_v45  ;;  %v4558_v45 = vshrl.u32 %v10243_v48, 16 }
 0xa67   : > { %4984 = vst [vmem:[#allocation1 + $0x21] ss:$4 sm:$0xff] %v10164_v15 }
 0xa68   : > { %4985 = vst [vmem:[#allocation1 + $0x22] ss:$4 sm:$0xff] %v10167_v26  ;;  %4751 = vrot.lane.b32.xlu0 %v10366_v7, %s7073_s9  ;;  %v4562_v7 = vrot.slane %v4560_v59, 1  ;;  %v4566_v59 = vshll.u32 %v10258_v43, 16 }
 0xa69   : > { %v4971_v24 = vld.sshfl [vmem:[#allocation1] sm:$0xff pattern:$0x73625140] }
 0xa6a   : > { %5014 = vrot.lane.b32.xlu2 %v4971_v24, %s7074_s10  ;;  %4978 = vst [vmem:[#allocation1] ss:$4 sm:$0xff] %v10142_v20  ;;  %v4563_v37 = vor.u32 %v4562_v7, %v4558_v45  ;;  %v4662_v24 = vrot.slane %v10279_v41, 1  ;;  %v4568_v41 = vrot.slane %v4566_v59, 1  ;;  %v4564_v45 = vshrl.u32 %v10258_v43, 16 }
 0xa6b   : > { %4979 = vst [vmem:[#allocation1 + $0x1] ss:$4 sm:$0xff] %v10145_v16 }
 0xa6c   : > { %4980 = vst [vmem:[#allocation1 + $0x2] ss:$4 sm:$0xff] %v10152_v40 }
 0xa6f   : > { %v4986_v6 = vld.sshfl [vmem:[#allocation1 + $0x20] sm:$0xff pattern:$0x73625140] }
 0xa70   : > { %4993 = vst [vmem:[#allocation1 + $0x20] ss:$4 sm:$0xff] %v10189_v9  ;;  %5020 = vrot.lane.b32.xlu0 %v4986_v6, %s7074_s10 }
 0xa71   : > { %4994 = vst [vmem:[#allocation1 + $0x21] ss:$4 sm:$0xff] %v10206_v62 }
 0xa72   : > { %4995 = vst [vmem:[#allocation1 + $0x22] ss:$4 sm:$0xff] %v10208_v55 }
 0xa73   : > { %v4981_v54 = vld.sshfl [vmem:[#allocation1] sm:$0xff pattern:$0x73625140] }
 0xa74   : > { %5018 = vrot.lane.b32.xlu2 %v4981_v54, %s7074_s10  ;;  %4988 = vst [vmem:[#allocation1] ss:$4 sm:$0xff] %v10176_v29 }
 0xa75   : > { %4989 = vst [vmem:[#allocation1 + $0x1] ss:$4 sm:$0xff] %v10179_v31 }
 0xa76   : > { %4990 = vst [vmem:[#allocation1 + $0x2] ss:$4 sm:$0xff] %v10186_v35 }
 0xa78   : > { %4594 = vrot.lane.b32.xlu0 %v4563_v37, %s7071_s16  ;;  %v4569_v37 = vor.u32 %v4568_v41, %v4564_v45 }
 0xa79   : > { %v10505_v2 = vld.sshfl [vmem:[#allocation1 + $0x20] sm:$0xff pattern:$0x73625140] }
 0xa7a   : > { %5004 = vst [vmem:[#allocation1 + $0x20] ss:$4 sm:$0xff] %v10502_v60 }
 0xa7b   : > { %5005 = vst [vmem:[#allocation1 + $0x21] ss:$4 sm:$0xff] %v10509_v11 }
 0xa7c   : > { %5007 = vst [vmem:[#allocation1 + $0x22] ss:$4 sm:$0xff] %v10511_v18 }
 0xa7d   : > { %v10539_v6 = vld.sshfl [vmem:[#allocation1] sm:$0xff pattern:$0x73625140] }
 0xa7e   : > { %4998 = vst [vmem:[#allocation1] ss:$4 sm:$0xff] %v10341_v53 }
 0xa7f   : > { %4999 = vst [vmem:[#allocation1 + $0x1] ss:$4 sm:$0xff] %v10343_v56 }
 0xa80   : > { %4677 = vrot.lane.b32.xlu0 %v4662_v24, %s7074_s10  ;;  %5000 = vst [vmem:[#allocation1 + $0x2] ss:$4 sm:$0xff] %v10353_v17 }
 0xa83   : > { %v10521_v42 = vld.sshfl [vmem:[#allocation1 + $0x20] sm:$0xff pattern:$0x73625140] }
 0xa84   : > { %5037 = vst [vmem:[#allocation1 + $0x20] ss:$4 sm:$0xff] %v10087_v0 }
 0xa85   : > { %5039 = vst [vmem:[#allocation1 + $0x21] ss:$4 sm:$0xff] %v10096_v28 }
 0xa86   : > { %5041 = vst [vmem:[#allocation1 + $0x22] ss:$4 sm:$0xff] %v10099_v3 }
 0xa87   : > { %v5001_v7 = vld.sshfl [vmem:[#allocation1] sm:$0xff pattern:$0x73625140] }
 0xa88   : > { %5030 = vst [vmem:[#allocation1] ss:$4 sm:$0xff] %v10074_v50  ;;  %4755 = vrot.lane.b32.xlu0 %v10377_v21, %s7073_s9 }
 0xa89   : > { %5032 = vst [vmem:[#allocation1 + $0x1] ss:$4 sm:$0xff] %v10077_v44 }
 0xa8a   : > { %5034 = vst [vmem:[#allocation1 + $0x2] ss:$4 sm:$0xff] %v10084_v49 }
 0xa8d   : > { %v10533_v5 = vld.sshfl [vmem:[#allocation1 + $0x20] sm:$0xff pattern:$0x73625140] }
 0xa8e   : > { %5047 = vst [vmem:[#allocation1 + $0x20] ss:$4 sm:$0xff] %v10121_v10 }
 0xa8f   : > { %5048 = vst [vmem:[#allocation1 + $0x21] ss:$4 sm:$0xff] %v10130_v63 }
 0xa90   : > { %5049 = vst [vmem:[#allocation1 + $0x22] ss:$4 sm:$0xff] %v10133_v57  ;;  %4596 = vrot.lane.b32.xlu0 %v4569_v37, %s7071_s16 }
 0xa91   : > { %v5035_v24 = vld.sshfl [vmem:[#allocation1] sm:$0xff pattern:$0x73625140] }
 0xa92   : > { %v5077_v21 = vshll.u32 %v5035_v24, 16  ;;  %5043 = vst [vmem:[#allocation1] ss:$4 sm:$0xff] %v10108_v25  ;;  %v5075_v59 = vshrl.u32 %v5035_v24, 16 }
 0xa93   : > { %5044 = vst [vmem:[#allocation1 + $0x1] ss:$4 sm:$0xff] %v10111_v61 }
 0xa94   : > { %v5079_v46 = vrot.slane %v5077_v21, 1  ;;  %5045 = vst [vmem:[#allocation1 + $0x2] ss:$4 sm:$0xff] %v10118_v14  ;;  %v4578_v21 = vshll.u32 %v10263_v23, 16 }
 0xa96   : > { %v5080_v43 = vor.u32 %v5079_v46, %v5075_v59  ;;  %v4928_v46 = vrot.slane %v10446_v22, 1  ;;  %v4580_v22 = vrot.slane %v4578_v21, 1  ;;  %v10605_v21 = vpop.permute.xlu1 %4669 }
 0xa97   : > { %v10546_v48 = vld.sshfl [vmem:[#allocation1 + $0x20] sm:$0xff pattern:$0x73625140] }
 0xa98   : > { %5055 = vst [vmem:[#allocation1 + $0x20] ss:$4 sm:$0xff] %v10155_v32  ;;  %5135 = vrot.lane.b32.xlu1 %v5080_v43, %s7073_s9  ;;  %4757 = vrot.lane.b32.xlu0 %v10345_v12, %s7073_s9  ;;  %v5083_v12 = vshll.u32 %v10533_v5, 16 }
 0xa99   : > { %5056 = vst [vmem:[#allocation1 + $0x21] ss:$4 sm:$0xff] %v10164_v15 }
 0xa9a   : > { %5057 = vst [vmem:[#allocation1 + $0x22] ss:$4 sm:$0xff] %v10167_v26 }
 0xa9b   : > { %v5046_v41 = vld.sshfl [vmem:[#allocation1] sm:$0xff pattern:$0x73625140] }
 0xa9c   : > { %v5089_v45 = vshll.u32 %v5046_v41, 16  ;;  %5051 = vst [vmem:[#allocation1] ss:$4 sm:$0xff] %v10142_v20  ;;  %v5087_v37 = vshrl.u32 %v5046_v41, 16  ;;  %v5085_v41 = vrot.slane %v5083_v12, 1  ;;  %v6983_v12 = vld [vmem:[%s11533_s5 + $0x30] sm:$0xff] }
 0xa9d   : > { %5052 = vst [vmem:[#allocation1 + $0x1] ss:$4 sm:$0xff] %v10145_v16 }
 0xa9e   : > { %v5091_v24 = vrot.slane %v5089_v45, 1  ;;  %5053 = vst [vmem:[#allocation1 + $0x2] ss:$4 sm:$0xff] %v10152_v40  ;;  %v4576_v45 = vshrl.u32 %v10263_v23, 16 }
 0xaa0   : > { %v5092_v43 = vor.u32 %v5091_v24, %v5087_v37  ;;  %4943 = vrot.lane.b32.xlu1 %v4928_v46, %s7071_s16  ;;  %5026 = vrot.lane.b32.xlu0 %v5001_v7, %s7074_s10  ;;  %v4581_v24 = vor.u32 %v4580_v22, %v4576_v45  ;;  %v4665_v46 = vrot.slane %v10325_v39, 1  ;;  %v6992_v39 = vld [vmem:[%s11533_s5 + $0x78] sm:$0xff]  ;;  %v10634_v22 = vpop.permute.xlu2 %4743  ;;  %v6991_v45 = vld [vmem:[%s11533_s5 + $0x70] sm:$0xff] }
 0xaa1   : > { %v10557_v54 = vld.sshfl [vmem:[#allocation1 + $0x20] sm:$0xff pattern:$0x73625140]  ;;  %5920 = vmatpush.bf16.msrb.mxu3 %v6992_v39 }
 0xaa2   : > { %5063 = vst [vmem:[#allocation1 + $0x20] ss:$4 sm:$0xff] %v10189_v9  ;;  %5139 = vrot.lane.b32.xlu2 %v5092_v43, %s7073_s9 }
 0xaa3   : > { %5064 = vst [vmem:[#allocation1 + $0x21] ss:$4 sm:$0xff] %v10206_v62 }
 0xaa4   : > { %5065 = vst [vmem:[#allocation1 + $0x22] ss:$4 sm:$0xff] %v10208_v55 }
 0xaa5   : > { %v5054_v33 = vld.sshfl [vmem:[#allocation1] sm:$0xff pattern:$0x73625140]  ;;  %5921 = vmatpush.bf16.msrb.mxu3 %v6991_v45 }
 0xaa6   : > { %v5101_v37 = vshll.u32 %v5054_v33, 16  ;;  %5059 = vst [vmem:[#allocation1] ss:$4 sm:$0xff] %v10176_v29 }
 0xaa7   : > { %5060 = vst [vmem:[#allocation1 + $0x1] ss:$4 sm:$0xff] %v10179_v31 }
 0xaa8   : > { %5022 = vrot.lane.b32.xlu1 %v10539_v6, %s7074_s10  ;;  %5061 = vst [vmem:[#allocation1 + $0x2] ss:$4 sm:$0xff] %v10186_v35  ;;  %4600 = vrot.lane.b32.xlu0 %v4581_v24, %s7071_s16  ;;  %v5103_v23 = vrot.slane %v5101_v37, 1  ;;  %v5095_v6 = vshll.u32 %v10546_v48, 16  ;;  %v10644_v24 = vpop.permute.xlu1 %4933 }
 0xaab   : > { %v10567_v8 = vld.sshfl [vmem:[#allocation1 + $0x20] sm:$0xff pattern:$0x73625140] }
 0xaac   : > { %5071 = vst [vmem:[#allocation1 + $0x20] ss:$4 sm:$0xff] %v10502_v60 }
 0xaad   : > { %5072 = vst [vmem:[#allocation1 + $0x21] ss:$4 sm:$0xff] %v10509_v11 }
 0xaae   : > { %5073 = vst [vmem:[#allocation1 + $0x22] ss:$4 sm:$0xff] %v10511_v18 }
 0xaaf   : > { %v10607_v43 = vld.sshfl [vmem:[#allocation1] sm:$0xff pattern:$0x73625140] }
 0xab0   : > { %4683 = vrot.lane.b32.xlu0 %v4665_v46, %s7074_s10  ;;  %5067 = vst [vmem:[#allocation1] ss:$4 sm:$0xff] %v10341_v53  ;;  %v10678_v46 = vpop.permute.xlu1 %4937  ;;  %v5113_v45 = vshll.u32 %v10607_v43, 16 }
 0xab1   : > { %5068 = vst [vmem:[#allocation1 + $0x1] ss:$4 sm:$0xff] %v10343_v56 }
 0xab2   : > { %5069 = vst [vmem:[#allocation1 + $0x2] ss:$4 sm:$0xff] %v10353_v17 }
 0xab5   : > { %v10580_v59 = vld.sshfl [vmem:[#allocation1 + $0x20] sm:$0xff pattern:$0x73625140] }
 0xab6   : > { %5163 = vst [vmem:[#allocation1 + $0x20] ss:$4 sm:$0xff] %v10087_v0  ;;  %v5081_v0 = vshrl.u32 %v10533_v5, 16  ;;  %v5099_v5 = vshrl.u32 %v5054_v33, 16 }
 0xab7   : > { %5165 = vst [vmem:[#allocation1 + $0x21] ss:$4 sm:$0xff] %v10096_v28 }
 0xab8   : > { %5167 = vst [vmem:[#allocation1 + $0x22] ss:$4 sm:$0xff] %v10099_v3  ;;  %v5086_v28 = vor.u32 %v5085_v41, %v5081_v0  ;;  %v5104_v7 = vor.u32 %v5103_v23, %v5099_v5  ;;  %v5093_v41 = vshrl.u32 %v10546_v48, 16  ;;  %v10641_v0 = vpop.permute.xlu0 %4586  ;;  %v4929_v48 = vrot.slane %v10478_v30, 1  ;;  %4761 = vrot.lane.b32.xlu0 %v10360_v38, %s7073_s9  ;;  %v6981_v30 = vld [vmem:[%s11533_s5 + $0x20] sm:$0xff]  ;;  %v10665_v23 = vpop.permute.xlu2 %4935 }
 0xaba   : > { %5137 = vrot.lane.b32.xlu2 %v5086_v28, %s7073_s9  ;;  %5143 = vrot.lane.b32.xlu1 %v5104_v7, %s7073_s9  ;;  %v4554_v28 = vshll.u32 %v10248_v19, 16  ;;  %v4552_v7 = vshrl.u32 %v10248_v19, 16 }
 0xabc   : > { %v4556_v38 = vrot.slane %v4554_v28, 1 }
 0xabf   : > { %v10597_v3 = vld.sshfl [vmem:[#allocation1 + $0x20] sm:$0xff pattern:$0x73625140] }
 0xac0   : > { %5175 = vst [vmem:[#allocation1 + $0x20] ss:$4 sm:$0xff] %v10121_v10  ;;  %v4661_v10 = vrot.slane %v10303_v52, 1  ;;  %v5097_v52 = vrot.slane %v5095_v6, 1  ;;  %v10674_v6 = vpop.permute.xlu0 %4584 }
 0xac1   : > { %5176 = vst [vmem:[#allocation1 + $0x21] ss:$4 sm:$0xff] %v10130_v63  ;;  %v10616_v63 = vld [vmem:[%s11533_s5 + $0x88] sm:$0xff] }
 0xac2   : > { %5177 = vst [vmem:[#allocation1 + $0x22] ss:$4 sm:$0xff] %v10133_v57  ;;  %v6984_v57 = vld [vmem:[%s11533_s5 + $0x38] sm:$0xff]  ;;  %4675 = vrot.lane.b32.xlu2 %v4661_v10, %s7074_s10  ;;  %5969 = vmatpush.bf16.msrb.mxu0 %v10616_v63  ;;  %v5098_v37 = vor.u32 %v5097_v52, %v5093_v41  ;;  %v5105_v52 = vshrl.u32 %v10557_v54, 16 }
 0xac3   : > { %5877 = vmatpush.bf16.msrb.mxu2 %v6984_v57 }
 0xac4   : > { %5141 = vrot.lane.b32.xlu1 %v5098_v37, %s7073_s9  ;;  %v10689_v19 = vpop.permute.xlu2 %5014  ;;  %v5115_v37 = vrot.slane %v5113_v45, 1 }
 0xac7   : > { %5878 = vmatpush.bf16.msrb.mxu2 %v6983_v12 }
 0xac8   : > { %v10702_v39 = vpop.permute.xlu0 %4590 }
 0xac9   : > { %v10627_v33 = vld.sshfl [vmem:[#allocation1 + $0x20] sm:$0xff pattern:$0x73625140] }
 0xaca   : > { %5185 = vst [vmem:[#allocation1 + $0x20] ss:$4 sm:$0xff] %v10155_v32  ;;  %v6982_v32 = vld [vmem:[%s11533_s5 + $0x28] sm:$0xff]  ;;  %4945 = vrot.lane.b32.xlu2 %v4929_v48, %s7071_s16  ;;  %v5119_v48 = vshll.u32 %v10567_v8, 16 }
 0xacb   : > { %5186 = vst [vmem:[#allocation1 + $0x21] ss:$4 sm:$0xff] %v10164_v15  ;;  %v10654_v15 = vld.sshfl [vmem:[#allocation1] sm:$0xff pattern:$0x73625140]  ;;  %5879 = vmatpush.bf16.msrb.mxu2 %v6982_v32  ;;  %v5111_v32 = vshrl.u32 %v10607_v43, 16 }
 0xacc   : > { %5187 = vst [vmem:[#allocation1 + $0x22] ss:$4 sm:$0xff] %v10167_v26  ;;  %v6990_v26 = vld [vmem:[%s11533_s5 + $0x68] sm:$0xff] }
 0xacd   : > { %5155 = vst [vmem:[#allocation1] ss:$4 sm:$0xff] %v10074_v50  ;;  %5922 = vmatpush.bf16.msrb.mxu3 %v6990_v26  ;;  %v4663_v50 = vrot.slane %v10315_v47, 1  ;;  %v5107_v47 = vshll.u32 %v10557_v54, 16  ;;  %v4664_v26 = vrot.slane %v10288_v51, 1  ;;  %v5125_v51 = vshll.u32 %v10654_v15, 16 }
 0xace   : > { %5157 = vst [vmem:[#allocation1 + $0x1] ss:$4 sm:$0xff] %v10077_v44  ;;  %v4557_v44 = vor.u32 %v4556_v38, %v4552_v7  ;;  %v5019_v12 = vpop.permute.xlu2 %5018  ;;  %v5123_v38 = vshrl.u32 %v10654_v15, 16  ;;  %v6978_v15 = vld [vmem:[%s11533_s5 + $0x8] sm:$0xff] }
 0xacf   : > { %5159 = vst [vmem:[#allocation1 + $0x2] ss:$4 sm:$0xff] %v10084_v49  ;;  %5880 = vmatpush.bf16.msrb.mxu2 %v6981_v30  ;;  %4679 = vrot.lane.b32.xlu1 %v4663_v50, %s7074_s10  ;;  %v10684_v49 = vld [vmem:[%s11533_s5 + $0x80] sm:$0xff] }
 0xad0   : > { %5970 = vmatpush.bf16.msrb.mxu0 %v10684_v49  ;;  %v10726_v54 = vpop.permute.xlu0 %4667 }
 0xad2   : > { %4592 = vrot.lane.b32.xlu2 %v4557_v44, %s7071_s16 }
 0xad3   : > { %v10668_v5 = vld.sshfl [vmem:[#allocation1 + $0x20] sm:$0xff pattern:$0x73625140] }
 0xad4   : > { %5195 = vst [vmem:[#allocation1 + $0x20] ss:$4 sm:$0xff] %v10189_v9 }
 0xad5   : > { %5196 = vst [vmem:[#allocation1 + $0x21] ss:$4 sm:$0xff] %v10206_v62  ;;  %v4834_v62 = vshll.u32 %v10424_v36, 16 }
 0xad6   : > { %5197 = vst [vmem:[#allocation1 + $0x22] ss:$4 sm:$0xff] %v10208_v55  ;;  %v10686_v9 = vld.sshfl [vmem:[#allocation1] sm:$0xff pattern:$0x73625140]  ;;  %v4930_v55 = vrot.slane %v10455_v27, 1 }
 0xad7   : > { %5170 = vst [vmem:[#allocation1] ss:$4 sm:$0xff] %v10108_v25  ;;  %v4836_v57 = vrot.slane %v4834_v62, 1  ;;  %v4832_v25 = vshrl.u32 %v10424_v36, 16  ;;  %v6980_v27 = vld [vmem:[%s11533_s5 + $0x18] sm:$0xff] }
 0xad8   : > { %5171 = vst [vmem:[#allocation1 + $0x1] ss:$4 sm:$0xff] %v10111_v61  ;;  %4947 = vrot.lane.b32.xlu1 %v4930_v55, %s7071_s16  ;;  %v5109_v61 = vrot.slane %v5107_v47, 1  ;;  %5881 = vmatpush.bf16.msrb.mxu2 %v6980_v27 }
 0xad9   : > { %5172 = vst [vmem:[#allocation1 + $0x2] ss:$4 sm:$0xff] %v10118_v14  ;;  %v6989_v14 = vld [vmem:[%s11533_s5 + $0x60] sm:$0xff] }
 0xada   : > { %4753 = vrot.lane.b32.xlu2 %v10330_v58, %s7073_s9  ;;  %5923 = vmatpush.bf16.msrb.mxu3 %v6989_v14  ;;  %v5110_v58 = vor.u32 %v5109_v61, %v5105_v52  ;;  %v6977_v14 = vld [vmem:[%s11533_s5] sm:$0xff] }
 0xadb   : > { %v12296_v52 = vld [vmem:[#allocation65_spill] sm:$0xff] }
 0xadc   : > { %v4814_v45 = vshrl.u32 %v12296_v52, 16 }
 0xadd   : > { %v10697_v10 = vld.sshfl [vmem:[#allocation1 + $0x20] sm:$0xff pattern:$0x73625140] }
 0xade   : > { %5205 = vst [vmem:[#allocation1 + $0x20] ss:$4 sm:$0xff] %v10502_v60  ;;  %v4942_v60 = vpop.permute.xlu1 %4941 }
 0xadf   : > { %5206 = vst [vmem:[#allocation1 + $0x21] ss:$4 sm:$0xff] %v10509_v11  ;;  %v4837_v11 = vor.u32 %v4836_v57, %v4832_v25  ;;  %v4666_v57 = vrot.slane %v10298_v1, 1  ;;  %v5129_v25 = vshrl.u32 %v10580_v59, 16  ;;  %v4816_v1 = vshll.u32 %v12296_v52, 16 }
 0xae0   : > { %5207 = vst [vmem:[#allocation1 + $0x22] ss:$4 sm:$0xff] %v10511_v18  ;;  %v10715_v18 = vld.sshfl [vmem:[#allocation1] sm:$0xff pattern:$0x73625140]  ;;  %5145 = vrot.lane.b32.xlu1 %v5110_v58, %s7073_s9  ;;  %v12297_v58 = vld [vmem:[#allocation54_spill] sm:$0xff] }
 0xae1   : > { %v5294_v36 = vsel %vm1011_vm8, %v4837_v11, %v4942_v60  ;;  %5180 = vst [vmem:[#allocation1] ss:$4 sm:$0xff] %v10142_v20  ;;  %v4931_v20 = vrot.slane %v10488_v13, 1  ;;  %v5117_v13 = vshrl.u32 %v10567_v8, 16  ;;  %v5127_v8 = vrot.slane %v5125_v51, 1  ;;  %v6985_v11 = vld [vmem:[%s11533_s5 + $0x40] sm:$0xff] }
 0xae2   : > { %v10720_v41 = vsel %vm3297_vm14, %v5294_v36, %v5019_v12  ;;  %5181 = vst [vmem:[#allocation1 + $0x1] ss:$4 sm:$0xff] %v10145_v16  ;;  %5024 = vrot.lane.b32.xlu2 %v10505_v2, %s7074_s10  ;;  %v5116_v16 = vor.u32 %v5115_v37, %v5111_v32  ;;  %v10740_v2 = vpop.permute.xlu0 %4671  ;;  %v4818_v36 = vrot.slane %v4816_v1, 1  ;;  %v4810_v12 = vshll.u32 %v12297_v58, 16  ;;  %v12301_v51 = vld [vmem:[#allocation111_spill] sm:$0xff] }
 0xae3   : > { %5182 = vst [vmem:[#allocation1 + $0x2] ss:$4 sm:$0xff] %v10152_v40  ;;  %v5121_v40 = vrot.slane %v5119_v48, 1  ;;  %v5128_v44 = vor.u32 %v5127_v8, %v5123_v38  ;;  %v12298_v48 = vld [vmem:[#allocation103_spill] sm:$0xff] }
 0xae4   : > { %v4819_v32 = vor.u32 %v4818_v36, %v4814_v45 }
 0xae5   : > { %v5122_v43 = vor.u32 %v5121_v40, %v5117_v13  ;;  %v12299_v13 = vld [vmem:[#allocation40_spill] sm:$0xff] }
 0xae6   : > { %v10767_v62 = vpop.permute.xlu1 %4939 }
 0xae8   : > { %4949 = vrot.lane.b32.xlu1 %v4931_v20, %s7071_s16  ;;  %v4812_v20 = vrot.slane %v4810_v12, 1 }
 0xaea   : > { %v10733_v28 = vld.sshfl [vmem:[#allocation1] sm:$0xff pattern:$0x73625140]  ;;  %5147 = vrot.lane.b32.xlu2 %v5116_v16, %s7073_s9  ;;  %v4822_v16 = vshll.u32 %v12298_v48, 16 }
 0xaeb   : > { %5190 = vst [vmem:[#allocation1] ss:$4 sm:$0xff] %v10176_v29  ;;  %v10749_v29 = vpop.permute.xlu0 %4747 }
 0xaec   : > { %5191 = vst [vmem:[#allocation1 + $0x1] ss:$4 sm:$0xff] %v10179_v31  ;;  %v6988_v31 = vld [vmem:[%s11533_s5 + $0x58] sm:$0xff] }
 0xaed   : > { %5192 = vst [vmem:[#allocation1 + $0x2] ss:$4 sm:$0xff] %v10186_v35  ;;  %v6979_v35 = vld [vmem:[%s11533_s5 + $0x10] sm:$0xff]  ;;  %5924 = vmatpush.bf16.msrb.mxu3 %v6988_v31 }
 0xaee   : > { %5882 = vmatpush.bf16.msrb.mxu2 %v6979_v35  ;;  %v5013_v27 = vpop.permute.xlu1 %5012 }
 0xaf0   : > { %5149 = vrot.lane.b32.xlu1 %v5122_v43, %s7073_s9  ;;  %v5211_v43 = vrot.slane %v10597_v3, 1  ;;  %v4824_v3 = vrot.slane %v4822_v16, 1 }
 0xaf2   : > { %4681 = vrot.lane.b32.xlu2 %v4664_v26, %s7074_s10  ;;  %5883 = vmatpush.bf16.msrb.mxu2 %v6978_v15  ;;  %v4808_v26 = vshrl.u32 %v12297_v58, 16  ;;  %v10832_v15 = vld.sshfl [vmem:[#allocation1 + $0x20] sm:$0xff pattern:$0x73625140] }
 0xaf3   : > { %v4746_v50 = vpop.permute.xlu0 %4745 }
 0xaf4   : > { %v10745_v30 = vld.sshfl [vmem:[#allocation1] sm:$0xff pattern:$0x73625140] }
 0xaf5   : > { %5200 = vst [vmem:[#allocation1] ss:$4 sm:$0xff] %v10341_v53  ;;  %v4932_v53 = vrot.slane %v10464_v34, 1  ;;  %v6987_v34 = vld [vmem:[%s11533_s5 + $0x50] sm:$0xff] }
 0xaf6   : > { %5201 = vst [vmem:[#allocation1 + $0x1] ss:$4 sm:$0xff] %v10343_v56  ;;  %v4572_v56 = vshll.u32 %v10253_v4, 16  ;;  %5925 = vmatpush.bf16.msrb.mxu3 %v6987_v34  ;;  %5884 = vmatpush.bf16.msrb.mxu2 %v6977_v14  ;;  %v10801_v40 = vpop.permute.xlu1 %5016  ;;  %v5210_v34 = vrot.slane %v10686_v9, 1 }
 0xaf7   : > { %5202 = vst [vmem:[#allocation1 + $0x2] ss:$4 sm:$0xff] %v10353_v17  ;;  %v4570_v17 = vshrl.u32 %v10253_v4, 16  ;;  %v6986_v4 = vld [vmem:[%s11533_s5 + $0x48] sm:$0xff] }
 0xaf8   : > { %5028 = vrot.lane.b32.xlu1 %v10521_v42, %s7074_s10  ;;  %v4574_v7 = vrot.slane %v4572_v56, 1  ;;  %v5131_v42 = vshll.u32 %v10580_v59, 16  ;;  %v12302_v56 = vld [vmem:[#allocation124_spill] sm:$0xff] }
 0xaf9   : > { %v5223_v8 = vsel %vm1011_vm8, %v12302_v56, %v10674_v6 }
 0xafa   : > { %4951 = vrot.lane.b32.xlu2 %v4932_v53, %s7071_s16  ;;  %v4575_v55 = vor.u32 %v4574_v7, %v4570_v17  ;;  %v5133_v47 = vrot.slane %v5131_v42, 1  ;;  %5926 = vmatpush.bf16.msrb.mxu3 %v6986_v4  ;;  %v4813_v7 = vor.u32 %v4812_v20, %v4808_v26  ;;  %v10823_v42 = vrot.slane %v5211_v43, 6 }
 0xafb   : > { %v10783_v61 = vpop.permute.xlu0 %4749  ;;  %6995 = vmatpush.bf16.msra.mxu2 %v10616_v63  ;;  %v5285_v63 = vsel %vm1011_vm8, %v4819_v32, %v10665_v23  ;;  %v5243_v23 = vsel %vm3297_vm14, %v5223_v8, %v10605_v21  ;;  %v5361_v20 = vrot.slane %v5210_v34, 6 }
 0xafc   : > { %v5134_v60 = vor.u32 %v5133_v47, %v5129_v25  ;;  %v10794_v59 = vpop.permute.xlu2 %5139  ;;  %v5313_v31 = vsel %vm3297_vm14, %v5285_v63, %v5013_v27  ;;  %v5263_v17 = vsel %vm3248_vm15, %v5243_v23, %v4746_v50  ;;  %v5282_v50 = vsel %vm1011_vm8, %v4813_v7, %v10644_v24  ;;  %v12304_v7 = vld [vmem:[#allocation26_spill] sm:$0xff] }
 0xafe   : > { %5927 = vmatpush.bf16.msrb.mxu3 %v6985_v11  ;;  %v10844_v14 = vld.sshfl [vmem:[#allocation1] sm:$0xff pattern:$0x73625140] }
 0xaff   : > { %6996 = vmatpush.bf16.msra.mxu2 %v10684_v49  ;;  %v12300_v49 = vld [vmem:[#allocation102_spill] sm:$0xff] }
 0xb00   : > { %5151 = vrot.lane.b32.xlu1 %v5128_v44, %s7073_s9  ;;  %v5221_v53 = vsel %vm1011_vm8, %v12301_v51, %v12300_v49 }
 0xb01   : > { %v5241_v24 = vsel %vm3297_vm14, %v5221_v53, %v10726_v54 }
 0xb02   : > { %4598 = vrot.lane.b32.xlu2 %v4575_v55, %s7071_s16  ;;  %v4820_v55 = vshrl.u32 %v12298_v48, 16  ;;  %v5261_v58 = vsel %vm3248_vm15, %v5241_v24, %v10634_v22 }
 0xb03   : > { %v5011_v37 = vpop.permute.xlu0 %5010 }
 0xb04   : > { %v4825_v27 = vor.u32 %v4824_v3, %v4820_v55  ;;  %v5225_v3 = vsel %vm1011_vm8, %v12304_v7, %v10641_v0  ;;  %v5212_v55 = vrot.slane %v10715_v18, 1 }
 0xb05   : > { %v5245_v34 = vsel %vm3297_vm14, %v5225_v3, %v10740_v2 }
 0xb06   : > { %v5288_v12 = vsel %vm1011_vm8, %v4825_v27, %v10678_v46 }
 0xb08   : > { %4685 = vrot.lane.b32.xlu1 %v4666_v57, %s7074_s10 }
 0xb0a   : > { %5153 = vrot.lane.b32.xlu2 %v5134_v60, %s7073_s9  ;;  %v5311_v60 = vsel %vm3297_vm14, %v5282_v50, %v5011_v37  ;;  %v5136_v1 = vpop.permute.xlu1 %5135  ;;  %v5315_v37 = vsel %vm3297_vm14, %v5288_v12, %v10689_v19  ;;  %v5365_v50 = vrot.slane %v5212_v55, 6  ;;  %v5213_v55 = vrot.slane %v10627_v33, 1 }
 0xb0b   : > { %v10836_v4 = vpop.permute.xlu0 %4751  ;;  %v5331_v36 = vsel %vm3248_vm15, %v5311_v60, %v5136_v1  ;;  %v5335_v51 = vsel %vm3248_vm15, %v5315_v37, %v10794_v59  ;;  %v12307_v37 = vld [vmem:[#allocation66_spill] sm:$0xff] }
 0xb0c   : > { %v5360_v45 = vrot.slane %v5331_v36, 7 }
 0xb0e   : > { %v5381_v54 = vsel %vm1568_vm12, %v5261_v58, %v5360_v45  ;;  %v5384_v48 = vsel %vm1572_vm11, %v5261_v58, %v5360_v45  ;;  %v5389_v22 = vsel %vm1576_vm10, %v5261_v58, %v5360_v45  ;;  %v5393_v16 = vsel %vm12303_vm2, %v5261_v58, %v5360_v45 }
 0xb0f   : > { %v5383_v46 = vsel %vm1391_vm0, %v5381_v54, %v5361_v20  ;;  %v5390_v63 = vsel %vm3464_vm5, %v5389_v22, %v5361_v20  ;;  %v5395_v19 = vsel %vm5394_vm13, %v5393_v16, %v5361_v20  ;;  %v12308_v22 = vld [vmem:[#allocation22_spill] sm:$0xff] }
 0xb10   : > { %v5392_v26 = vrot.slane %v5390_v63, 2  ;;  %5623 = vst [vmem:[#allocation1] ss:$9 sm:$0xff] %v5383_v46  ;;  %v5229_v16 = vsel %vm1011_vm8, %v12308_v22, %v10702_v39 }
 0xb12   : > { %4759 = vrot.lane.b32.xlu2 %v12299_v13, %s7073_s9  ;;  %v5386_v13 = vsel %vm5385_vm4, %v5384_v48, %v5361_v20  ;;  %v10872_v8 = vpop.permute.xlu1 %4943  ;;  %5629 = vst [vmem:[#allocation1 + $0x2] ss:$9 sm:$0xff] %v5392_v26 }
 0xb13   : > { %v5388_v43 = vrot.slane %v5386_v13, 1  ;;  %v10867_v49 = vpop.permute.xlu0 %5020 }
 0xb14   : > { %v5138_v35 = vpop.permute.xlu2 %5137 }
 0xb15   : > { %v5333_v38 = vsel %vm3248_vm15, %v5313_v31, %v5138_v35  ;;  %v5397_v31 = vrot.slane %v5395_v19, 3  ;;  %v5399_v35 = vsel %vm5398_vm1, %v5261_v58, %v5360_v45  ;;  %5626 = vst [vmem:[#allocation1 + $0x1] ss:$9 sm:$0xff] %v5388_v43 }
 0xb16   : > { %v10819_v44 = vrot.slane %v5333_v38, 7  ;;  %v5400_v53 = vsel %vm3458_vm3, %v5399_v35, %v5361_v20  ;;  %v5364_v38 = vrot.slane %v5335_v51, 7  ;;  %v4828_v20 = vshll.u32 %v12307_v37, 16 }
 0xb17   : > { %v5402_v56 = vrot.slane %v5400_v53, 4  ;;  %5632 = vst [vmem:[#allocation1 + $0x3] ss:$9 sm:$0xff] %v5397_v31  ;;  %v4826_v35 = vshrl.u32 %v12307_v37, 16 }
 0xb18   : > { %v5404_v6 = vsel %vm1568_vm12, %v5263_v17, %v10819_v44  ;;  %v5407_v47 = vsel %vm1572_vm11, %v5263_v17, %v10819_v44  ;;  %v5411_v21 = vsel %vm1576_vm10, %v5263_v17, %v10819_v44  ;;  %v5415_v59 = vsel %vm12305_vm6, %v5263_v17, %v10819_v44  ;;  %vm12316_vm6 = vmmov %vm12303_vm2 }
 0xb19   : > { %v5406_v9 = vsel %vm1391_vm0, %v5404_v6, %v10823_v42  ;;  %v5408_v57 = vsel %vm5385_vm4, %v5407_v47, %v10823_v42  ;;  %v5412_v25 = vsel %vm3464_vm5, %v5411_v21, %v10823_v42  ;;  %5635 = vst [vmem:[#allocation1 + $0x4] ss:$9 sm:$0xff] %v5402_v56  ;;  %v5419_v6 = vsel %vm5398_vm1, %v5263_v17, %v10819_v44 }
 0xb1a   : > { %v5410_v11 = vrot.slane %v5408_v57, 1  ;;  %v5414_v52 = vrot.slane %v5412_v25, 2  ;;  %5637 = vst [vmem:[#allocation1 + $0x5] ss:$9 sm:$0xff] %v5406_v9  ;;  %v5265_v47 = vsel %vm3248_vm15, %v5245_v34, %v10749_v29  ;;  %v5416_v0 = vsel %vm5394_vm13, %v5415_v59, %v10823_v42  ;;  %v10895_v2 = vpop.permute.xlu1 %5022 }
 0xb1b   : > { %v5427_v21 = vsel %vm1572_vm11, %v5265_v47, %v5364_v38  ;;  %v5431_v18 = vsel %vm1576_vm10, %v5265_v47, %v5364_v38  ;;  %v5420_v9 = vsel %vm3458_vm3, %v5419_v6, %v10823_v42  ;;  %v5435_v57 = vsel %vm12306_vm7, %v5265_v47, %v5364_v38  ;;  %v10900_v25 = vpop.permute.xlu0 %4594  ;;  %vm12317_vm7 = vmmov %vm12303_vm2 }
 0xb1c   : > { %v10854_v32 = vpop.permute.xlu2 %4675  ;;  %5640 = vst [vmem:[#allocation1 + $0x6] ss:$9 sm:$0xff] %v5410_v11  ;;  %v5424_v44 = vsel %vm1568_vm12, %v5265_v47, %v5364_v38  ;;  %v5428_v17 = vsel %vm5385_vm4, %v5427_v21, %v5365_v50  ;;  %v5439_v29 = vsel %vm5398_vm1, %v5265_v47, %v5364_v38  ;;  %v5418_v27 = vrot.slane %v5416_v0, 3  ;;  %v12310_v21 = vld [vmem:[#allocation24_spill] sm:$0xff] }
 0xb1d   : > { %5643 = vst [vmem:[#allocation1 + $0x7] ss:$9 sm:$0xff] %v5414_v52  ;;  %v5432_v60 = vsel %vm3464_vm5, %v5431_v18, %v5365_v50  ;;  %v5422_v11 = vrot.slane %v5420_v9, 4  ;;  %v5436_v36 = vsel %vm5394_vm13, %v5435_v57, %v5365_v50  ;;  %v5426_v58 = vsel %vm1391_vm0, %v5424_v44, %v5365_v50 }
 0xb1e   : > { %v5430_v12 = vrot.slane %v5428_v17, 1  ;;  %v5440_v45 = vsel %vm3458_vm3, %v5439_v29, %v5365_v50  ;;  %v5434_v54 = vrot.slane %v5432_v60, 2  ;;  %v5438_v48 = vrot.slane %v5436_v36, 3 }
 0xb1f   : > { %v5442_v46 = vrot.slane %v5440_v45, 4  ;;  %v5249_v13 = vsel %vm3297_vm14, %v5229_v16, %v10854_v32  ;;  %v4830_v19 = vrot.slane %v4828_v20, 1  ;;  %v5267_v0 = vsel %vm3248_vm15, %v12310_v21, %v10783_v61 }
 0xb20   : > { %v5269_v39 = vsel %vm3248_vm15, %v5249_v13, %v10836_v4  ;;  %v5367_v50 = vrot.slane %v5213_v55, 6  ;;  %v5214_v29 = vrot.slane %v10733_v28, 1 }
 0xb21   : > { %v4831_v7 = vor.u32 %v4830_v19, %v4826_v35 }
 0xb23   : > { %v10920_v51 = vpop.permute.xlu0 %4677  ;;  %v5291_v3 = vsel %vm1011_vm8, %v4831_v7, %v10767_v62 }
 0xb24   : > { %v10874_v23 = vpop.permute.xlu2 %4945  ;;  %v5644_v1 = vld [vmem:[#allocation1] sm:$0xff]  ;;  %v5645_v42 = vld [vmem:[#allocation1 + $0x9] sm:$0xff]  ;;  %v5646_v24 = vld [vmem:[#allocation1 + $0x12] sm:$0xff]  ;;  %v5317_v4 = vsel %vm3297_vm14, %v5291_v3, %v10801_v40 }
 0xb25   : > { %5885 = vmatmul.bf16.vlgmr.msrb.gmra.mxu2 %v5644_v1  ;;  %5648 = vst [vmem:[#allocation1] ss:$9 sm:$0xff] %v5418_v27  ;;  %5928 = vmatmul.bf16.vlgmr.msrb.gmra.mxu3 %v5645_v42  ;;  %v12311_v40 = vld [vmem:[#allocation31_spill] sm:$0xff]  ;;  %v12312_v1 = vld [vmem:[#allocation126_spill] sm:$0xff] }
 0xb26   : > { %5650 = vst [vmem:[#allocation1 + $0x1] ss:$9 sm:$0xff] %v5422_v11  ;;  %6928 = vmatmul.msk.bf16.vlgmr.msrb.gmra.mxu0 %vm1011_vm8, %v5646_v24  ;;  %v4846_v57 = vshll.u32 %v12311_v40, 16  ;;  %v4840_v42 = vshll.u32 %v12312_v1, 16 }
 0xb27   : > { %5651 = vst [vmem:[#allocation1 + $0x2] ss:$9 sm:$0xff] %v5426_v58 }
 0xb28   : > { %5653 = vst [vmem:[#allocation1 + $0x3] ss:$9 sm:$0xff] %v5430_v12  ;;  %v4848_v36 = vrot.slane %v4846_v57, 1  ;;  %v5369_v12 = vrot.slane %v5214_v29, 6  ;;  %v4842_v16 = vrot.slane %v4840_v42, 1 }
 0xb29   : > { %5655 = vst [vmem:[#allocation1 + $0x4] ss:$9 sm:$0xff] %v5434_v54 }
 0xb2a   : > { %5657 = vst [vmem:[#allocation1 + $0x5] ss:$9 sm:$0xff] %v5438_v48  ;;  %v4844_v48 = vshrl.u32 %v12311_v40, 16 }
 0xb2b   : > { %5659 = vst [vmem:[#allocation1 + $0x6] ss:$9 sm:$0xff] %v5442_v46  ;;  %v10943_v9 = vpop.permute.xlu0 %4755 }
 0xb2c   : > { %v10903_v52 = vpop.permute.xlu2 %4592  ;;  %v5144_v63 = vpop.permute.xlu1 %5143  ;;  %v4849_v19 = vor.u32 %v4848_v36, %v4844_v48 }
 0xb2d   : > { %v5339_v43 = vsel %vm3248_vm15, %v10720_v41, %v5144_v63 }
 0xb2e   : > { %v5368_v26 = vrot.slane %v5339_v43, 7 }
 0xb30   : > { %v5464_v53 = vsel %vm1568_vm12, %v5269_v39, %v5368_v26  ;;  %v5467_v32 = vsel %vm1572_vm11, %v5269_v39, %v5368_v26  ;;  %v5471_v56 = vsel %vm1576_vm10, %v5269_v39, %v5368_v26  ;;  %v5475_v38 = vsel %vm12309_vm9, %v5269_v39, %v5368_v26  ;;  %vm12321_vm9 = vmmov %vm12303_vm2 }
 0xb31   : > { %v10929_v41 = vsel %vm5398_vm1, %v5269_v39, %v5368_v26  ;;  %v5468_v13 = vsel %vm5385_vm4, %v5467_v32, %v5369_v12  ;;  %v5472_v43 = vsel %vm3464_vm5, %v5471_v56, %v5369_v12  ;;  %v4838_v39 = vshrl.u32 %v12312_v1, 16 }
 0xb32   : > { %v5476_v7 = vsel %vm5394_vm13, %v5475_v38, %v5369_v12  ;;  %v5300_v32 = vsel %vm1011_vm8, %v4849_v19, %v10874_v23  ;;  %v5466_v3 = vsel %vm1391_vm0, %v5464_v53, %v5369_v12  ;;  %v5470_v55 = vrot.slane %v5468_v13, 1 }
 0xb33   : > { %v10958_v46 = vpop.permute.xlu0 %4596  ;;  %v5478_v21 = vrot.slane %v5476_v7, 3 }
 0xb34   : > { %v10917_v31 = vpop.permute.xlu2 %4753 }
 0xb36   : > { %v5142_v59 = vpop.permute.xlu1 %5141 }
 0xb37   : > { %v5337_v34 = vsel %vm3248_vm15, %v5317_v4, %v5142_v59  ;;  %v4843_v4 = vor.u32 %v4842_v16, %v4838_v39  ;;  %v5323_v59 = vsel %vm3297_vm14, %v5300_v32, %v10895_v2  ;;  %v12314_v2 = vld [vmem:[#allocation97_spill] sm:$0xff] }
 0xb38   : > { %v5366_v47 = vrot.slane %v5337_v34, 7  ;;  %v5474_v34 = vrot.slane %v5472_v43, 2 }
 0xb39   : > { %v5297_v23 = vsel %vm1011_vm8, %v4843_v4, %v10872_v8 }
 0xb3a   : > { %v5444_v18 = vsel %vm1568_vm12, %v5267_v0, %v5366_v47  ;;  %v5447_v62 = vsel %vm1572_vm11, %v5267_v0, %v5366_v47  ;;  %v5451_v44 = vsel %vm1576_vm10, %v5267_v0, %v5366_v47  ;;  %v5455_v27 = vsel %vm12303_vm2, %v5267_v0, %v5366_v47 }
 0xb3b   : > { %v5446_v33 = vsel %vm1391_vm0, %v5444_v18, %v5367_v50  ;;  %v5448_v61 = vsel %vm5385_vm4, %v5447_v62, %v5367_v50  ;;  %v5459_v60 = vsel %vm5398_vm1, %v5267_v0, %v5366_v47  ;;  %v5452_v24 = vsel %vm3464_vm5, %v5451_v44, %v5367_v50  ;;  %v12313_v47 = vld [vmem:[#allocation99_spill] sm:$0xff]  ;;  %v10992_v44 = vpop.permute.xlu0 %4757 }
 0xb3c   : > { %v10937_v6 = vpop.permute.xlu2 %5024  ;;  %5660 = vst [vmem:[#allocation1 + $0x7] ss:$9 sm:$0xff] %v5446_v33  ;;  %v5456_v58 = vsel %vm5394_vm13, %v5455_v27, %v5367_v50  ;;  %v5450_v45 = vrot.slane %v5448_v61, 1  ;;  %v5460_v37 = vsel %vm3458_vm3, %v5459_v60, %v5367_v50  ;;  %v5454_v22 = vrot.slane %v5452_v24, 2 }
 0xb3d   : > { %v5458_v63 = vrot.slane %v5456_v58, 3  ;;  %v5462_v26 = vrot.slane %v5460_v37, 4  ;;  %v5233_v38 = vsel %vm1011_vm8, %v12313_v47, %v10900_v25  ;;  %v5215_v50 = vrot.slane %v10668_v5, 1 }
 0xb3e   : > { %v5231_v18 = vsel %vm1011_vm8, %v12314_v2, %v10903_v52  ;;  %v5216_v25 = vrot.slane %v10745_v30, 1  ;;  %v5480_v62 = vsel %vm3458_vm3, %v10929_v41, %v5369_v12  ;;  %v5321_v8 = vsel %vm3297_vm14, %v5297_v23, %v10867_v49 }
 0xb3f   : > { %v5251_v52 = vsel %vm3297_vm14, %v5231_v18, %v10920_v51  ;;  %v5371_v27 = vrot.slane %v5215_v50, 6  ;;  %v5482_v41 = vrot.slane %v5480_v62, 4  ;;  %v12320_v62 = vld [vmem:[#allocation85_spill] sm:$0xff] }
 0xb40   : > { %v5373_v60 = vrot.slane %v5216_v25, 6 }
 0xb41   : > { %v4680_v17 = vpop.permute.xlu1 %4679 }
 0xb42   : > { %v5253_v53 = vsel %vm3297_vm14, %v5233_v38, %v4680_v17  ;;  %v12315_v17 = vld [vmem:[#allocation117_spill] sm:$0xff]  ;;  %v5217_v38 = vrot.slane %v10697_v10, 1  ;;  %v12319_v10 = vld [vmem:[#allocation118_spill] sm:$0xff] }
 0xb43   : > { %v5661_v20 = vld [vmem:[#allocation1] sm:$0xff]  ;;  %v5662_v28 = vld [vmem:[#allocation1 + $0x9] sm:$0xff]  ;;  %v5663_v54 = vld [vmem:[#allocation1 + $0x12] sm:$0xff]  ;;  %v5273_v40 = vsel %vm3248_vm15, %v5253_v53, %v10943_v9  ;;  %v4852_v29 = vshll.u32 %v12315_v17, 16  ;;  %v5271_v9 = vsel %vm3248_vm15, %v5251_v52, %v10917_v31  ;;  %v11019_v39 = vpop.permute.xlu0 %5026  ;;  %v4864_v25 = vshll.u32 %v12319_v10, 16 }
 0xb44   : > { %v5148_v11 = vpop.permute.xlu2 %5147  ;;  %5890 = vmatmul.bf16.gmra.mxu2 %v5661_v20  ;;  %5665 = vst [vmem:[#allocation1] ss:$9 sm:$0xff] %v5450_v45  ;;  %5933 = vmatmul.bf16.gmra.mxu3 %v5662_v28 }
 0xb45   : > { %5667 = vst [vmem:[#allocation1 + $0x1] ss:$9 sm:$0xff] %v5454_v22  ;;  %6929 = vmatmul.msk.bf16.gmra.mxu0 %vm1011_vm8, %v5663_v54  ;;  %v5343_v0 = vsel %vm3248_vm15, %v5323_v59, %v5148_v11  ;;  %v4854_v22 = vrot.slane %v4852_v29, 1 }
 0xb46   : > { %5669 = vst [vmem:[#allocation1 + $0x2] ss:$9 sm:$0xff] %v5458_v63  ;;  %v5372_v33 = vrot.slane %v5343_v0, 7 }
 0xb47   : > { %5671 = vst [vmem:[#allocation1 + $0x3] ss:$9 sm:$0xff] %v5462_v26  ;;  %v4850_v26 = vshrl.u32 %v12315_v17, 16 }
 0xb48   : > { %5672 = vst [vmem:[#allocation1 + $0x4] ss:$9 sm:$0xff] %v5466_v3  ;;  %v5507_v49 = vsel %vm1572_vm11, %v5273_v40, %v5372_v33  ;;  %v5504_v13 = vsel %vm1568_vm12, %v5273_v40, %v5372_v33  ;;  %v5515_v59 = vsel %vm12317_vm7, %v5273_v40, %v5372_v33 }
 0xb49   : > { %5674 = vst [vmem:[#allocation1 + $0x5] ss:$9 sm:$0xff] %v5470_v55  ;;  %v5508_v63 = vsel %vm5385_vm4, %v5507_v49, %v5373_v60  ;;  %v5506_v7 = vsel %vm1391_vm0, %v5504_v13, %v5373_v60  ;;  %v4855_v3 = vor.u32 %v4854_v22, %v4850_v26  ;;  %v5511_v55 = vsel %vm1576_vm10, %v5273_v40, %v5372_v33 }
 0xb4a   : > { %v10963_v35 = vpop.permute.xlu1 %4947  ;;  %5676 = vst [vmem:[#allocation1 + $0x6] ss:$9 sm:$0xff] %v5474_v34  ;;  %v5510_v32 = vrot.slane %v5508_v63, 1  ;;  %v5519_v34 = vsel %vm5398_vm1, %v5273_v40, %v5372_v33  ;;  %v5512_v23 = vsel %vm3464_vm5, %v5511_v55, %v5373_v60  ;;  %v5516_v53 = vsel %vm5394_vm13, %v5515_v59, %v5373_v60 }
 0xb4b   : > { %5678 = vst [vmem:[#allocation1 + $0x7] ss:$9 sm:$0xff] %v5478_v21  ;;  %v5303_v47 = vsel %vm1011_vm8, %v4855_v3, %v10963_v35  ;;  %v12318_v21 = vld [vmem:[#allocation55_spill] sm:$0xff]  ;;  %v5520_v50 = vsel %vm3458_vm3, %v5519_v34, %v5373_v60  ;;  %v4858_v40 = vshll.u32 %v12320_v62, 16  ;;  %v11049_v60 = vpop.permute.xlu0 %4600 }
 0xb4c   : > { %v10970_v56 = vpop.permute.xlu2 %4681  ;;  %v5235_v0 = vsel %vm1011_vm8, %v12318_v21, %v10958_v46  ;;  %v5325_v18 = vsel %vm3297_vm14, %v5303_v47, %v10937_v6  ;;  %v5522_v52 = vrot.slane %v5520_v50, 4 }
 0xb4d   : > { %v5255_v2 = vsel %vm3297_vm14, %v5235_v0, %v10970_v56 }
 0xb4e   : > { %v5275_v17 = vsel %vm3248_vm15, %v5255_v2, %v10992_v44 }
 0xb52   : > { %v5146_v57 = vpop.permute.xlu1 %5145  ;;  %v5679_v31 = vld [vmem:[#allocation1] sm:$0xff]  ;;  %v5680_v45 = vld [vmem:[#allocation1 + $0x9] sm:$0xff]  ;;  %v5681_v37 = vld [vmem:[#allocation1 + $0x12] sm:$0xff] }
 0xb53   : > { %v5341_v5 = vsel %vm3248_vm15, %v5321_v8, %v5146_v57  ;;  %5683 = vst [vmem:[#allocation1] ss:$9 sm:$0xff] %v5482_v41  ;;  %v5375_v8 = vrot.slane %v5217_v38, 6  ;;  %v5514_v57 = vrot.slane %v5512_v23, 2  ;;  %v4684_v13 = vpop.permute.xlu0 %4683 }
 0xb54   : > { %v5370_v30 = vrot.slane %v5341_v5, 7  ;;  %v10998_v61 = vpop.permute.xlu2 %4951  ;;  %5895 = vmatmul.bf16.gmra.mxu2 %v5679_v31  ;;  %5938 = vmatmul.bf16.gmra.mxu3 %v5680_v45  ;;  %5693 = vst [vmem:[#allocation1 + $0x6] ss:$9 sm:$0xff] %v5506_v7  ;;  %v5518_v5 = vrot.slane %v5516_v53, 3  ;;  %v5218_v7 = vrot.slane %v10844_v14, 1 }
 0xb55   : > { %6930 = vmatmul.msk.bf16.gmra.mxu0 %vm1011_vm8, %v5681_v37  ;;  %5695 = vst [vmem:[#allocation1 + $0x7] ss:$9 sm:$0xff] %v5510_v32 }
 0xb56   : > { %v5484_v11 = vsel %vm1568_vm12, %v5271_v9, %v5370_v30  ;;  %v5487_v1 = vsel %vm1572_vm11, %v5271_v9, %v5370_v30  ;;  %v5491_v42 = vsel %vm1576_vm10, %v5271_v9, %v5370_v30  ;;  %v5495_v51 = vsel %vm12316_vm6, %v5271_v9, %v5370_v30 }
 0xb57   : > { %v5486_v24 = vsel %vm1391_vm0, %v5484_v11, %v5371_v27  ;;  %v5488_v36 = vsel %vm5385_vm4, %v5487_v1, %v5371_v27  ;;  %v5492_v58 = vsel %vm3464_vm5, %v5491_v42, %v5371_v27  ;;  %v5496_v12 = vsel %vm5394_vm13, %v5495_v51, %v5371_v27 }
 0xb58   : > { %v5490_v20 = vrot.slane %v5488_v36, 1  ;;  %v5494_v28 = vrot.slane %v5492_v58, 2  ;;  %v5498_v54 = vrot.slane %v5496_v12, 3  ;;  %v5499_v48 = vsel %vm5398_vm1, %v5271_v9, %v5370_v30  ;;  %5684 = vst [vmem:[#allocation1 + $0x1] ss:$9 sm:$0xff] %v5486_v24 }
 0xb59   : > { %v5500_v16 = vsel %vm3458_vm3, %v5499_v48, %v5371_v27  ;;  %v4860_v58 = vrot.slane %v4858_v40, 1  ;;  %v5377_v21 = vrot.slane %v5218_v7, 6 }
 0xb5a   : > { %v5502_v19 = vrot.slane %v5500_v16, 4  ;;  %5686 = vst [vmem:[#allocation1 + $0x2] ss:$9 sm:$0xff] %v5490_v20  ;;  %v11016_v43 = vpop.permute.xlu1 %4949  ;;  %v4866_v20 = vrot.slane %v4864_v25, 1 }
 0xb5b   : > { %5688 = vst [vmem:[#allocation1 + $0x3] ss:$9 sm:$0xff] %v5494_v28  ;;  %v4856_v28 = vshrl.u32 %v12320_v62, 16 }
 0xb5c   : > { %5690 = vst [vmem:[#allocation1 + $0x4] ss:$9 sm:$0xff] %v5498_v54  ;;  %v11023_v4 = vpop.permute.xlu2 %4598  ;;  %v4862_v54 = vshrl.u32 %v12319_v10, 16 }
 0xb5d   : > { %5692 = vst [vmem:[#allocation1 + $0x5] ss:$9 sm:$0xff] %v5502_v19  ;;  %v4861_v48 = vor.u32 %v4860_v58, %v4856_v28  ;;  %v12322_v19 = vld [vmem:[#allocation114_spill] sm:$0xff] }
 0xb5e   : > { %v4867_v22 = vor.u32 %v4866_v20, %v4862_v54  ;;  %v5237_v26 = vsel %vm1011_vm8, %v12322_v19, %v11023_v4  ;;  %v5219_v4 = vrot.slane %v10832_v15, 1  ;;  %v12325_v20 = vld [vmem:[#allocation3_spill] sm:$0xff]  ;;  %v12326_v54 = vld [vmem:[#allocation2_spill] sm:$0xff] }
 0xb5f   : > { %v5306_v16 = vsel %vm1011_vm8, %v4861_v48, %v11016_v43  ;;  %v5257_v43 = vsel %vm3297_vm14, %v5237_v26, %v4684_v13  ;;  %v12327_v13 = vld [vmem:[#allocation5_spill] sm:$0xff] }
 0xb60   : > { %v5309_v63 = vsel %vm1011_vm8, %v4867_v22, %v10998_v61  ;;  %v5327_v55 = vsel %vm3297_vm14, %v5306_v16, %v11019_v39 }
 0xb62   : > { %v5150_v35 = vpop.permute.xlu1 %5149 }
 0xb63   : > { %v5345_v33 = vsel %vm3248_vm15, %v5325_v18, %v5150_v35 }
 0xb64   : > { %v5374_v46 = vrot.slane %v5345_v33, 7  ;;  %v5696_v27 = vld [vmem:[#allocation1] sm:$0xff]  ;;  %v5697_v41 = vld [vmem:[#allocation1 + $0x9] sm:$0xff]  ;;  %v5698_v9 = vld [vmem:[#allocation1 + $0x12] sm:$0xff]  ;;  %v5154_v36 = vpop.permute.xlu2 %5153 }
 0xb65   : > { %5700 = vst [vmem:[#allocation1] ss:$9 sm:$0xff] %v5514_v57  ;;  %5900 = vmatmul.bf16.gmra.mxu2 %v5696_v27  ;;  %5943 = vmatmul.bf16.gmra.mxu3 %v5697_v41 }
 0xb66   : > { %v5524_v56 = vsel %vm1568_vm12, %v5275_v17, %v5374_v46  ;;  %v5527_v29 = vsel %vm1572_vm11, %v5275_v17, %v5374_v46  ;;  %v5531_v6 = vsel %vm1576_vm10, %v5275_v17, %v5374_v46  ;;  %v5535_v30 = vsel %vm12321_vm9, %v5275_v17, %v5374_v46  ;;  %5702 = vst [vmem:[#allocation1 + $0x1] ss:$9 sm:$0xff] %v5518_v5 }
 0xb67   : > { %v5526_v49 = vsel %vm1391_vm0, %v5524_v56, %v5375_v8  ;;  %v5528_v11 = vsel %vm5385_vm4, %v5527_v29, %v5375_v8  ;;  %v5532_v1 = vsel %vm3464_vm5, %v5531_v6, %v5375_v8  ;;  %v5536_v44 = vsel %vm5394_vm13, %v5535_v30, %v5375_v8  ;;  %5704 = vst [vmem:[#allocation1 + $0x2] ss:$9 sm:$0xff] %v5522_v52 }
 0xb68   : > { %v5530_v42 = vrot.slane %v5528_v11, 1  ;;  %v5534_v51 = vrot.slane %v5532_v1, 2  ;;  %v5539_v24 = vsel %vm5398_vm1, %v5275_v17, %v5374_v46  ;;  %v5538_v12 = vrot.slane %v5536_v44, 3  ;;  %5705 = vst [vmem:[#allocation1 + $0x3] ss:$9 sm:$0xff] %v5526_v49  ;;  %6931 = vmatmul.msk.bf16.gmra.mxu0 %vm1011_vm8, %v5698_v9  ;;  %v4762_v17 = vpop.permute.xlu0 %4761 }
 0xb69   : > { %v5540_v31 = vsel %vm3458_vm3, %v5539_v24, %v5375_v8  ;;  %v12323_v8 = vld [vmem:[#allocation100_spill] sm:$0xff]  ;;  %v5379_v30 = vrot.slane %v5219_v4, 6 }
 0xb6a   : > { %v5542_v45 = vrot.slane %v5540_v31, 4  ;;  %v5029_v37 = vpop.permute.xlu1 %5028  ;;  %5707 = vst [vmem:[#allocation1 + $0x4] ss:$9 sm:$0xff] %v5530_v42  ;;  %v5239_v57 = vsel %vm1011_vm8, %v12323_v8, %v11049_v60 }
 0xb6b   : > { %5709 = vst [vmem:[#allocation1 + $0x5] ss:$9 sm:$0xff] %v5534_v51  ;;  %v5329_v32 = vsel %vm3297_vm14, %v5309_v63, %v5029_v37 }
 0xb6c   : > { %5711 = vst [vmem:[#allocation1 + $0x6] ss:$9 sm:$0xff] %v5538_v12  ;;  %v4760_v3 = vpop.permute.xlu2 %4759  ;;  %v5349_v61 = vsel %vm3248_vm15, %v5329_v32, %v5154_v36  ;;  %v12328_v32 = vld [vmem:[#allocation4_spill] sm:$0xff] }
 0xb6d   : > { %5713 = vst [vmem:[#allocation1 + $0x7] ss:$9 sm:$0xff] %v5542_v45  ;;  %v5277_v38 = vsel %vm3248_vm15, %v5257_v43, %v4760_v3  ;;  %v5378_v56 = vrot.slane %v5349_v61, 7 }
 0xb72   : > { %v5152_v59 = vpop.permute.xlu1 %5151 }
 0xb73   : > { %v5347_v34 = vsel %vm3248_vm15, %v5327_v55, %v5152_v59 }
 0xb74   : > { %v5376_v47 = vrot.slane %v5347_v34, 7  ;;  %v5714_v35 = vld [vmem:[#allocation1] sm:$0xff]  ;;  %v5715_v33 = vld [vmem:[#allocation1 + $0x9] sm:$0xff]  ;;  %v5716_v10 = vld [vmem:[#allocation1 + $0x12] sm:$0xff] }
 0xb75   : > { %5905 = vmatmul.bf16.gmra.mxu2 %v5714_v35  ;;  %5948 = vmatmul.bf16.gmra.mxu3 %v5715_v33  ;;  %v12329_v34 = vld [vmem:[#allocation7_spill] sm:$0xff] }
 0xb76   : > { %v5544_v14 = vsel %vm1568_vm12, %v5277_v38, %v5376_v47  ;;  %v5547_v0 = vsel %vm1572_vm11, %v5277_v38, %v5376_v47  ;;  %v5551_v23 = vsel %vm1576_vm10, %v5277_v38, %v5376_v47  ;;  %v5555_v39 = vsel %vm12303_vm2, %v5277_v38, %v5376_v47 }
 0xb77   : > { %v5546_v53 = vsel %vm1391_vm0, %v5544_v14, %v5377_v21  ;;  %v5548_v50 = vsel %vm5385_vm4, %v5547_v0, %v5377_v21  ;;  %v5552_v2 = vsel %vm3464_vm5, %v5551_v23, %v5377_v21  ;;  %v5556_v18 = vsel %vm5394_vm13, %v5555_v39, %v5377_v21  ;;  %v12331_v0 = vld [vmem:[#allocation9_spill] sm:$0xff] }
 0xb78   : > { %v5550_v15 = vrot.slane %v5548_v50, 1  ;;  %v5554_v25 = vrot.slane %v5552_v2, 2  ;;  %v5558_v62 = vrot.slane %v5556_v18, 3  ;;  %v5559_v40 = vsel %vm5398_vm1, %v5277_v38, %v5376_v47  ;;  %5717 = vst [vmem:[#allocation1] ss:$9 sm:$0xff] %v5546_v53  ;;  %6932 = vmatmul.msk.bf16.gmra.mxu0 %vm1011_vm8, %v5716_v10  ;;  %v12330_v38 = vld [vmem:[#allocation6_spill] sm:$0xff] }
 0xb79   : > { %v5560_v46 = vsel %vm3458_vm3, %v5559_v40, %v5377_v21  ;;  %v12332_v2 = vld [vmem:[#allocation8_spill] sm:$0xff]  ;;  %v12333_v10 = vld [vmem:[#allocation11_spill] sm:$0xff]  ;;  %v12334_v40 = vld [vmem:[#allocation10_spill] sm:$0xff] }
 0xb7a   : > { %v5562_v5 = vrot.slane %v5560_v46, 4  ;;  %5719 = vst [vmem:[#allocation1 + $0x1] ss:$9 sm:$0xff] %v5550_v15  ;;  %v4686_v52 = vpop.permute.xlu1 %4685 }
 0xb7b   : > { %5721 = vst [vmem:[#allocation1 + $0x2] ss:$9 sm:$0xff] %v5554_v25  ;;  %v5259_v29 = vsel %vm3297_vm14, %v5239_v57, %v4686_v52  ;;  %vm12324_vm14 = vmmov %vm12303_vm2  ;;  %v12336_v52 = vld [vmem:[#allocation13_spill] sm:$0xff] }
 0xb7c   : > { %5723 = vst [vmem:[#allocation1 + $0x3] ss:$9 sm:$0xff] %v5558_v62  ;;  %v5279_v6 = vsel %vm3248_vm15, %v5259_v29, %v4762_v17 }
 0xb7d   : > { %5725 = vst [vmem:[#allocation1 + $0x4] ss:$9 sm:$0xff] %v5562_v5  ;;  %v5564_v27 = vsel %vm1568_vm12, %v5279_v6, %v5378_v56  ;;  %v5567_v41 = vsel %vm1572_vm11, %v5279_v6, %v5378_v56  ;;  %v5571_v9 = vsel %vm1576_vm10, %v5279_v6, %v5378_v56  ;;  %v5575_v42 = vsel %vm12324_vm14, %v5279_v6, %v5378_v56 }
 0xb7e   : > { %v5566_v60 = vsel %vm1391_vm0, %v5564_v27, %v5379_v30  ;;  %v5568_v49 = vsel %vm5385_vm4, %v5567_v41, %v5379_v30  ;;  %v5572_v11 = vsel %vm3464_vm5, %v5571_v9, %v5379_v30  ;;  %v5579_v51 = vsel %vm5398_vm1, %v5279_v6, %v5378_v56  ;;  %v12337_v27 = vld [vmem:[#allocation12_spill] sm:$0xff]  ;;  %vm6199_vm0 = vmor %vm1568_vm12, %vm1576_vm10 }
 0xb7f   : > { %v5570_v1 = vrot.slane %v5568_v49, 1  ;;  %v5574_v44 = vrot.slane %v5572_v11, 2  ;;  %5726 = vst [vmem:[#allocation1 + $0x5] ss:$9 sm:$0xff] %v5566_v60  ;;  %v5576_v24 = vsel %vm5394_vm13, %v5575_v42, %v5379_v30  ;;  %v5580_v36 = vsel %vm3458_vm3, %v5579_v51, %v5379_v30  ;;  %v12338_v49 = vld [vmem:[#allocation15_spill] sm:$0xff] }
 0xb80   : > { %v5578_v58 = vrot.slane %v5576_v24, 3  ;;  %v5582_v12 = vrot.slane %v5580_v36, 4  ;;  %v11194_v24 = vld [vmem:[%s11534_s6] ss:$0 sm:$0xff]  ;;  %v12339_v36 = vld [vmem:[#allocation14_spill] sm:$0xff]  ;;  %vm6201_vm11 = vcmask 1046534  }
 0xb81   : > { %5728 = vst [vmem:[#allocation1 + $0x6] ss:$9 sm:$0xff] %v5570_v1  ;;  %vm6628_vm12 = vcmask 813056  }
 0xb82   : > { %5730 = vst [vmem:[#allocation1 + $0x7] ss:$9 sm:$0xff] %v5574_v44 }
 0xb89   : > { %v5731_v31 = vld [vmem:[#allocation1] sm:$0xff]  ;;  %v5732_v45 = vld [vmem:[#allocation1 + $0x9] sm:$0xff]  ;;  %v5733_v37 = vld [vmem:[#allocation1 + $0x12] sm:$0xff] }
 0xb8a   : > { %5910 = vmatmul.bf16.gmra.mxu2 %v5731_v31  ;;  %5735 = vst [vmem:[#allocation1] ss:$9 sm:$0xff] %v5578_v58  ;;  %5953 = vmatmul.bf16.gmra.mxu3 %v5732_v45 }
 0xb8b   : > { %5737 = vst [vmem:[#allocation1 + $0x1] ss:$9 sm:$0xff] %v5582_v12  ;;  %6933 = vmatmul.msk.bf16.gmra.mxu0 %vm1011_vm8, %v5733_v37 }
 0xb8c   : > { %6114 = vst.sshfl [vmem:[#allocation1 + $0x20] sm:$0xff pattern:$0x73625140] %v12325_v20  ;;  %v12343_v20 = vld [vmem:[#allocation17_spill] sm:$0xff] }
 0xb92   : > { %v5738_v28 = vld [vmem:[#allocation1] sm:$0xff]  ;;  %v5739_v63 = vld [vmem:[#allocation1 + $0x9] sm:$0xff]  ;;  %v5740_v23 = vld [vmem:[#allocation1 + $0x12] sm:$0xff] }
 0xb93   : > { %6113 = vst.sshfl [vmem:[#allocation1] sm:$0xff pattern:$0x73625140] %v12326_v54  ;;  %v11105_v48 = vld [vmem:[#allocation1 + $0x20] ss:$4 sm:$0xff] }
 0xb94   : > { %v11107_v22 = vld [vmem:[#allocation1 + $0x21] ss:$4 sm:$0xff]  ;;  %v11109_v16 = vld [vmem:[#allocation1 + $0x22] ss:$4 sm:$0xff] }
 0xb95   : > { %6128 = vst.sshfl [vmem:[#allocation1 + $0x20] sm:$0xff pattern:$0x73625140] %v12327_v13 }
 0xb9a   : > { %5915 = vmatmul.bf16.gmra.mxu2 %v5738_v28  ;;  %5958 = vmatmul.bf16.gmra.mxu3 %v5739_v63  ;;  %v11112_v19 = vld [vmem:[#allocation1 + $0x1] ss:$4 sm:$0xff]  ;;  %v11114_v26 = vld [vmem:[#allocation1 + $0x2] ss:$4 sm:$0xff]  ;;  %v11116_v7 = vld [vmem:[#allocation1 + $0x3] ss:$4 sm:$0xff] }
 0xb9b   : > { %6127 = vst.sshfl [vmem:[#allocation1] sm:$0xff pattern:$0x73625140] %v12328_v32 }
 0xb9c   : > { %v11119_v3 = vld [vmem:[#allocation1 + $0x20] ss:$4 sm:$0xff]  ;;  %v11121_v55 = vld [vmem:[#allocation1 + $0x21] ss:$4 sm:$0xff]  ;;  %v11123_v59 = vld [vmem:[#allocation1 + $0x22] ss:$4 sm:$0xff] }
 0xb9d   : > { %6136 = vst.sshfl [vmem:[#allocation1 + $0x20] sm:$0xff pattern:$0x73625140] %v12329_v34 }
 0xba2   : > { %v11126_v43 = vld [vmem:[#allocation1 + $0x1] ss:$4 sm:$0xff]  ;;  %v11128_v47 = vld [vmem:[#allocation1 + $0x2] ss:$4 sm:$0xff]  ;;  %v11130_v61 = vld [vmem:[#allocation1 + $0x3] ss:$4 sm:$0xff] }
 0xba3   : > { %6135 = vst.sshfl [vmem:[#allocation1] sm:$0xff pattern:$0x73625140] %v12330_v38  ;;  %v11168_v5 = vpop.f32.mrf.mxu0  ;;  %v11799_v34 = vrot.slane %v11130_v61, 7 }
 0xba4   : > { %v11133_v21 = vld [vmem:[#allocation1 + $0x20] ss:$4 sm:$0xff]  ;;  %v11135_v4 = vld [vmem:[#allocation1 + $0x21] ss:$4 sm:$0xff]  ;;  %v11137_v14 = vld [vmem:[#allocation1 + $0x22] ss:$4 sm:$0xff] }
 0xba5   : > { %6144 = vst.sshfl [vmem:[#allocation1 + $0x20] sm:$0xff pattern:$0x73625140] %v12331_v0  ;;  %v12344_v0 = vld [vmem:[#allocation16_spill] sm:$0xff] }
 0xba8   : > { %v5886_v17 = vpop.f32.mrf.mxu2  ;;  %v5929_v30 = vpop.f32.mrf.mxu3 }
 0xbaa   : > { %6934 = vmatmul.msk.bf16.vlgmr.msra.gmra.mxu2 %vm1011_vm8, %v5740_v23  ;;  %v11141_v39 = vld [vmem:[#allocation1 + $0x1] ss:$4 sm:$0xff]  ;;  %v11143_v53 = vld [vmem:[#allocation1 + $0x2] ss:$4 sm:$0xff]  ;;  %v11145_v50 = vld [vmem:[#allocation1 + $0x3] ss:$4 sm:$0xff] }
 0xbab   : > { %6143 = vst.sshfl [vmem:[#allocation1] sm:$0xff pattern:$0x73625140] %v12332_v2  ;;  %v5974_v11 = vpop.f32.mrf.mxu0  ;;  %vm6200_vm8 = vmor %vm6199_vm0, %vm5398_vm1 }
 0xbac   : > { %v11148_v18 = vld [vmem:[#allocation1 + $0x20] ss:$4 sm:$0xff]  ;;  %v11150_v35 = vld [vmem:[#allocation1 + $0x21] ss:$4 sm:$0xff]  ;;  %v11152_v33 = vld [vmem:[#allocation1 + $0x22] ss:$4 sm:$0xff] }
 0xbad   : > { %6152 = vst.sshfl [vmem:[#allocation1 + $0x20] sm:$0xff pattern:$0x73625140] %v12333_v10  ;;  %vm11240_vm10 = vmor %vm6200_vm8, %vm6201_vm11 }
 0xbb0   : > { %v5888_v1 = vpop.f32.mrf.mxu2  ;;  %v5931_v37 = vpop.f32.mrf.mxu3 }
 0xbb1   : > { %v5889_v45 = vadd.f32 %v11194_v24, %v5888_v1 }
 0xbb2   : > { %v11155_v15 = vld [vmem:[#allocation1 + $0x1] ss:$4 sm:$0xff]  ;;  %v11157_v25 = vld [vmem:[#allocation1 + $0x2] ss:$4 sm:$0xff]  ;;  %v11159_v62 = vld [vmem:[#allocation1 + $0x3] ss:$4 sm:$0xff] }
 0xbb3   : > { %6151 = vst.sshfl [vmem:[#allocation1] sm:$0xff pattern:$0x73625140] %v12334_v40  ;;  %v5932_v54 = vadd.f32 %v5931_v37, %v5889_v45  ;;  %v11800_v37 = vrot.slane %v11119_v3, 7 }
 0xbb4   : > { %v11162_v46 = vld [vmem:[#allocation1 + $0x20] ss:$4 sm:$0xff]  ;;  %v11164_v8 = vld [vmem:[#allocation1 + $0x21] ss:$4 sm:$0xff]  ;;  %v11166_v57 = vld [vmem:[#allocation1 + $0x22] ss:$4 sm:$0xff] }
 0xbb5   : > { %12335 = vst [vmem:[#allocation39_spill] sm:$0xff] %v11166_v57  ;;  %v11225_v40 = vadd.f32 %v5974_v11, %v5932_v54 }
 0xbb6   : > { %6160 = vst.sshfl [vmem:[#allocation1 + $0x20] sm:$0xff pattern:$0x73625140] %v12336_v52 }
 0xbb7   : > { %v6024_v45 = vrot.slane %v11225_v40, 6 }
 0xbba   : > { %v11171_v56 = vld [vmem:[#allocation1 + $0x1] ss:$4 sm:$0xff]  ;;  %v11173_v29 = vld [vmem:[#allocation1 + $0x2] ss:$4 sm:$0xff]  ;;  %v11175_v6 = vld [vmem:[#allocation1 + $0x3] ss:$4 sm:$0xff] }
 0xbbb   : > { %6159 = vst.sshfl [vmem:[#allocation1] sm:$0xff pattern:$0x73625140] %v12337_v27  ;;  %v12348_v27 = vld [vmem:[#allocation19_spill] sm:$0xff] }
 0xbbd   : > { %v11178_v41 = vld [vmem:[#allocation1 + $0x20] ss:$4 sm:$0xff]  ;;  %v11180_v9 = vld [vmem:[#allocation1 + $0x21] ss:$4 sm:$0xff]  ;;  %v11182_v60 = vld [vmem:[#allocation1 + $0x22] ss:$4 sm:$0xff] }
 0xbbe   : > { %6168 = vst.sshfl [vmem:[#allocation1 + $0x20] sm:$0xff pattern:$0x73625140] %v12338_v49  ;;  %v5887_v49 = vadd.f32 %v11194_v24, %v5886_v17 }
 0xbc0   : > { %v5930_v54 = vadd.f32 %v5929_v30, %v5887_v49  ;;  %v6205_v30 = vrot.slane %v11114_v26, 7  ;;  %v6221_v49 = vrot.slane %v11128_v47, 7  ;;  %v6936_v47 = vrot.slane %v11126_v43, 9 }
 0xbc2   : > { %v11185_v44 = vld [vmem:[#allocation1 + $0x1] ss:$4 sm:$0xff]  ;;  %v11187_v42 = vld [vmem:[#allocation1 + $0x2] ss:$4 sm:$0xff]  ;;  %v11189_v51 = vld [vmem:[#allocation1 + $0x3] ss:$4 sm:$0xff]  ;;  %v11205_v28 = vpop.f32.mrf.mxu0 }
 0xbc3   : > { %6167 = vst.sshfl [vmem:[#allocation1] sm:$0xff pattern:$0x73625140] %v12339_v36  ;;  %v6226_v36 = vrot.slane %v11799_v34, 2  ;;  %v6935_v34 = vrot.slane %v11112_v19, 9  ;;  %v6208_v19 = vrot.slane %v11116_v7, 7 }
 0xbc5   : > { %v11197_v58 = vld [vmem:[#allocation1 + $0x20] ss:$4 sm:$0xff]  ;;  %v11199_v12 = vld [vmem:[#allocation1 + $0x21] ss:$4 sm:$0xff]  ;;  %v11201_v31 = vld [vmem:[#allocation1 + $0x22] ss:$4 sm:$0xff]  ;;  %v6206_v7 = vsel %vm11240_vm10, %v6935_v34, %v6205_v30 }
 0xbc6   : > { %12340 = vst [vmem:[#allocation119_spill] sm:$0xff] %v11197_v58  ;;  %v12358_v58 = vld [vmem:[#allocation21_spill] sm:$0xff] }
 0xbc7   : > { %12341 = vst [vmem:[#allocation104_spill] sm:$0xff] %v11199_v12  ;;  %v11214_v38 = vpop.f32.mrf.mxu2  ;;  %v11227_v52 = vpop.f32.mrf.mxu3 }
 0xbc8   : > { %12342 = vst [vmem:[#allocation32_spill] sm:$0xff] %v11201_v31 }
 0xbc9   : > { %6176 = vst.sshfl [vmem:[#allocation1 + $0x20] sm:$0xff pattern:$0x73625140] %v12343_v20 }
 0xbca   : > { %v11207_v13 = vld [vmem:[#allocation1 + $0x1] ss:$4 sm:$0xff]  ;;  %v11209_v63 = vld [vmem:[#allocation1 + $0x2] ss:$4 sm:$0xff]  ;;  %v11211_v32 = vld [vmem:[#allocation1 + $0x3] ss:$4 sm:$0xff]  ;;  %v11231_v1 = vpop.f32.mrf.mxu0 }
 0xbcb   : > { %6175 = vst.sshfl [vmem:[#allocation1] sm:$0xff pattern:$0x73625140] %v12344_v0 }
 0xbcf   : > { %v5893_v0 = vpop.f32.mrf.mxu2 }
 0xbd0   : > { %v11217_v23 = vld [vmem:[#allocation1 + $0x20] ss:$4 sm:$0xff]  ;;  %v11219_v2 = vld [vmem:[#allocation1 + $0x21] ss:$4 sm:$0xff]  ;;  %v11221_v10 = vld [vmem:[#allocation1 + $0x22] ss:$4 sm:$0xff] }
 0xbd1   : > { %12345 = vst [vmem:[#allocation128_spill] sm:$0xff] %v11217_v23  ;;  %v5936_v23 = vpop.f32.mrf.mxu3 }
 0xbd2   : > { %12346 = vst [vmem:[#allocation123_spill] sm:$0xff] %v11219_v2  ;;  %v11238_v11 = vld [vmem:[#allocation1 + $0x1] ss:$4 sm:$0xff]  ;;  %v6228_v2 = vsel %vm11240_vm10, %v6226_v36, %v11800_v37  ;;  %v11267_v36 = vadd.f32 %v11168_v5, %v5930_v54  ;;  %v6217_v37 = vrot.slane %v11109_v16, 7  ;;  %v6223_v5 = vrot.slane %v6221_v49, 2 }
 0xbd3   : > { %12347 = vst [vmem:[#allocation33_spill] sm:$0xff] %v11221_v10  ;;  %v11247_v10 = vld [vmem:[#allocation1 + $0x3] ss:$4 sm:$0xff]  ;;  %v6420_v17 = vadd.f32 %v6228_v2, %v6024_v45  ;;  %v11272_v2 = vpop.f32.mrf.mxu0  ;;  %v6211_v45 = vrot.slane %v11105_v48, 7  ;;  %v6210_v54 = vrot.slane %v6208_v19, 2  ;;  %v6222_v16 = vsel %vm11240_vm10, %v6936_v47, %v6221_v49 }
 0xbd4   : > { %6184 = vst.sshfl [vmem:[#allocation1 + $0x20] sm:$0xff pattern:$0x73625140] %v12348_v27  ;;  %v11245_v27 = vld [vmem:[#allocation1 + $0x2] ss:$4 sm:$0xff]  ;;  %v12362_v49 = vrot.slane %v11130_v61, 7 }
 0xbd5   : > { %12349 = vst [vmem:[#allocation63_spill] sm:$0xff] %v11238_v11  ;;  %v12354_v11 = vld [vmem:[#allocation18_spill] sm:$0xff] }
 0xbd6   : > { %12352 = vst [vmem:[#allocation108_spill] sm:$0xff] %v11245_v27  ;;  %v5894_v27 = vadd.f32 %v11194_v24, %v5893_v0  ;;  %v6207_v0 = vrot.slane %v6205_v30, 2 }
 0xbd7   : > { %12353 = vst [vmem:[#allocation105_spill] sm:$0xff] %v11247_v10 }
 0xbd8   : > { %6183 = vst.sshfl [vmem:[#allocation1] sm:$0xff pattern:$0x73625140] %v12354_v11  ;;  %v12359_v11 = vrot.slane %v11107_v22, 7  ;;  %v5937_v43 = vadd.f32 %v5936_v23, %v5894_v27  ;;  %v6243_v23 = vrot.slane %v11133_v21, 7  ;;  %v6246_v27 = vrot.slane %v11135_v4, 7 }
 0xbd9   : > { %v6019_v21 = vrot.slane %v11267_v36, 2  ;;  %v6213_v4 = vrot.slane %v6211_v45, 2 }
 0xbda   : > { %v6216_v26 = vrot.slane %v12359_v11, 2  ;;  %v6230_v11 = vrot.slane %v11121_v55, 7  ;;  %v5980_v61 = vadd.f32 %v11231_v1, %v5937_v43  ;;  %v6245_v43 = vrot.slane %v6243_v23, 2 }
 0xbdb   : > { %v11255_v31 = vld [vmem:[#allocation1 + $0x20] ss:$4 sm:$0xff]  ;;  %v11259_v12 = vld [vmem:[#allocation1 + $0x21] ss:$4 sm:$0xff]  ;;  %v11261_v10 = vld [vmem:[#allocation1 + $0x22] ss:$4 sm:$0xff] }
 0xbdc   : > { %12355 = vst [vmem:[#allocation110_spill] sm:$0xff] %v11255_v31  ;;  %v6218_v48 = vsel %vm11240_vm10, %v6216_v26, %v6217_v37  ;;  %v12361_v37 = vld [vmem:[#allocation20_spill] sm:$0xff]  ;;  %v6225_v26 = vsel %vm11240_vm10, %v6223_v5, %v12362_v49  ;;  %v5984_v49 = vpop.f32.mrf.mxu0  ;;  %v6232_v1 = vrot.slane %v6230_v11, 2 }
 0xbdd   : > { %12356 = vst [vmem:[#allocation120_spill] sm:$0xff] %v11259_v12  ;;  %v6413_v12 = vadd.f32 %v6206_v7, %v11267_v36  ;;  %v6417_v57 = vadd.f32 %v6218_v48, %v11225_v40  ;;  %v5892_v7 = vadd.f32 %v11194_v24, %v11214_v38  ;;  %v6209_v38 = vsel %vm11240_vm10, %v6207_v0, %v6208_v19 }
 0xbde   : > { %12357 = vst [vmem:[#allocation106_spill] sm:$0xff] %v11261_v10  ;;  %v6023_v10 = vrot.slane %v11225_v40, 4  ;;  %v12366_v19 = vrot.slane %v11145_v50, 7  ;;  %v6248_v0 = vrot.slane %v6246_v27, 2 }
 0xbdf   : > { %6192 = vst.sshfl [vmem:[#allocation1 + $0x20] sm:$0xff pattern:$0x73625140] %v12358_v58  ;;  %v6022_v58 = vrot.slane %v11225_v40, 2  ;;  %v11288_v34 = vld [vmem:[#allocation1 + $0x1] ss:$4 sm:$0xff] }
 0xbe0   : > { %6527 = vst [vmem:[#allocation1 + $0x23] ss:$4 sm:$0xff] %v6420_v17  ;;  %v11286_v17 = vpop.f32.mrf.mxu2  ;;  %v11290_v30 = vld [vmem:[#allocation1 + $0x2] ss:$4 sm:$0xff]  ;;  %v11292_v31 = vld [vmem:[#allocation1 + $0x3] ss:$4 sm:$0xff] }
 0xbe1   : > { %12360 = vst [vmem:[#allocation95_spill] sm:$0xff] %v11288_v34  ;;  %v6418_v47 = vadd.f32 %v6222_v16, %v6022_v58  ;;  %v11305_v34 = vpop.f32.mrf.mxu3  ;;  %v6020_v58 = vrot.slane %v11267_v36, 4  ;;  %v6233_v16 = vrot.slane %v11123_v59, 7  ;;  %v6028_v59 = vrot.slane %v5980_v61, 2 }
 0xbe2   : > { %6191 = vst.sshfl [vmem:[#allocation1] sm:$0xff pattern:$0x73625140] %v12361_v37  ;;  %v6419_v37 = vadd.f32 %v6225_v26, %v6023_v10  ;;  %v6212_v10 = vsel %vm11240_vm10, %v6210_v54, %v6211_v45  ;;  %v6237_v26 = vrot.slane %v11143_v53, 7 }
 0xbe3   : > { %6513 = vst [vmem:[#allocation1] ss:$4 sm:$0xff] %v6413_v12  ;;  %v12365_v12 = vrot.slane %v11119_v3, 7  ;;  %v6242_v3 = vrot.slane %v12366_v19, 2  ;;  %v6415_v54 = vadd.f32 %v6212_v10, %v6020_v58  ;;  %v6249_v19 = vrot.slane %v11137_v14, 7 }
 0xbe4   : > { %v6247_v58 = vsel %vm11240_vm10, %v6245_v43, %v6246_v27  ;;  %v6937_v10 = vrot.slane %v11141_v39, 9 }
 0xbe5   : > { %v6229_v5 = vrot.slane %v12365_v12, 2  ;;  %v6414_v12 = vadd.f32 %v6209_v38, %v6019_v21  ;;  %v11357_v27 = vpop.f32.mrf.mxu0 }
 0xbe6   : > { %v11307_v40 = vld [vmem:[#allocation1 + $0x20] ss:$4 sm:$0xff]  ;;  %v11309_v48 = vld [vmem:[#allocation1 + $0x21] ss:$4 sm:$0xff]  ;;  %v11313_v55 = vld [vmem:[#allocation1 + $0x22] ss:$4 sm:$0xff] }
 0xbe7   : > { %12363 = vst [vmem:[#allocation64_spill] sm:$0xff] %v11309_v48  ;;  %v6021_v48 = vrot.slane %v11267_v36, 6  ;;  %v6253_v36 = vrot.slane %v11157_v25, 7 }
 0xbe8   : > { %12364 = vst [vmem:[#allocation112_spill] sm:$0xff] %v11313_v55  ;;  %v12367_v55 = vrot.slane %v11107_v22, 7  ;;  %v5898_v53 = vpop.f32.mrf.mxu2 }
 0xbe9   : > { %6521 = vst [vmem:[#allocation1 + $0x20] ss:$4 sm:$0xff] %v6417_v57  ;;  %v5935_v57 = vadd.f32 %v11227_v52, %v5892_v7  ;;  %v6231_v52 = vsel %vm11240_vm10, %v6229_v5, %v6230_v11  ;;  %v11336_v7 = vld [vmem:[#allocation1 + $0x1] ss:$4 sm:$0xff]  ;;  %v11340_v21 = vld [vmem:[#allocation1 + $0x3] ss:$4 sm:$0xff]  ;;  %v5899_v22 = vadd.f32 %v11194_v24, %v5898_v53  ;;  %v6244_v11 = vsel %vm11240_vm10, %v6242_v3, %v6243_v23  ;;  %v5941_v5 = vpop.f32.mrf.mxu3 }
 0xbea   : > { %6523 = vst [vmem:[#allocation1 + $0x21] ss:$4 sm:$0xff] %v6418_v47  ;;  %v6938_v47 = vrot.slane %v11155_v15, 9  ;;  %v6215_v45 = vsel %vm11240_vm10, %v6213_v4, %v12367_v55  ;;  %v6029_v15 = vrot.slane %v5980_v61, 4  ;;  %v6030_v4 = vrot.slane %v5980_v61, 6 }
 0xbeb   : > { %6525 = vst [vmem:[#allocation1 + $0x22] ss:$4 sm:$0xff] %v6419_v37  ;;  %v11338_v37 = vld [vmem:[#allocation1 + $0x2] ss:$4 sm:$0xff]  ;;  %v6416_v38 = vadd.f32 %v6215_v45, %v6021_v48  ;;  %v5978_v55 = vadd.f32 %v11205_v28, %v5935_v57  ;;  %v6250_v48 = vsel %vm11240_vm10, %v6248_v0, %v6249_v19  ;;  %v6425_v14 = vadd.f32 %v6244_v11, %v5980_v61 }
 0xbec   : > { %6515 = vst [vmem:[#allocation1 + $0x1] ss:$4 sm:$0xff] %v6414_v12  ;;  %v5942_v45 = vadd.f32 %v5941_v5, %v5899_v22  ;;  %v6239_v12 = vrot.slane %v6237_v26, 2  ;;  %v6254_v28 = vsel %vm11240_vm10, %v6938_v47, %v6253_v36  ;;  %v6426_v23 = vadd.f32 %v6247_v58, %v6028_v59 }
 0xbed   : > { %6517 = vst [vmem:[#allocation1 + $0x2] ss:$4 sm:$0xff] %v6415_v54  ;;  %v6269_v57 = vrot.slane %v11173_v29, 7  ;;  %v6427_v39 = vadd.f32 %v6250_v48, %v6029_v15  ;;  %v5897_v3 = vadd.f32 %v11194_v24, %v11286_v17  ;;  %v6272_v0 = vrot.slane %v11175_v6, 7 }
 0xbee   : > { %6519 = vst [vmem:[#allocation1 + $0x3] ss:$4 sm:$0xff] %v6416_v38  ;;  %v5985_v61 = vadd.f32 %v5984_v49, %v5942_v45  ;;  %v6025_v54 = vrot.slane %v5978_v55, 2  ;;  %v6428_v53 = vadd.f32 %v6254_v28, %v6030_v4  ;;  %v6259_v38 = vrot.slane %v11148_v18, 7 }
 0xbef   : > { %v6275_v59 = vrot.slane %v11162_v46, 7  ;;  %v6026_v29 = vrot.slane %v5978_v55, 4  ;;  %v6234_v47 = vsel %vm11240_vm10, %v6232_v1, %v6233_v16  ;;  %v6238_v15 = vsel %vm11240_vm10, %v6937_v10, %v6237_v26 }
 0xbf0   : > { %v6939_v17 = vrot.slane %v11171_v56, 9  ;;  %v6027_v49 = vrot.slane %v5978_v55, 6  ;;  %v12368_v6 = vrot.slane %v11145_v50, 7  ;;  %v6262_v22 = vrot.slane %v11150_v35, 7  ;;  %v5901_v4 = vpop.f32.mrf.mxu2 }
 0xbf1   : > { %v6271_v46 = vrot.slane %v6269_v57, 2  ;;  %v6421_v11 = vadd.f32 %v6231_v52, %v5978_v55  ;;  %v5940_v16 = vadd.f32 %v11305_v34, %v5897_v3  ;;  %v6034_v1 = vrot.slane %v5985_v61, 2  ;;  %v5944_v48 = vpop.f32.mrf.mxu3 }
 0xbf2   : > { %v11359_v43 = vld.sshfl [vmem:[#allocation1 + $0x20] sm:$0xff pattern:$0x73625140]  ;;  %v6241_v19 = vsel %vm11240_vm10, %v6239_v12, %v12368_v6  ;;  %v6274_v58 = vrot.slane %v6272_v0, 2  ;;  %v6422_v26 = vadd.f32 %v6234_v47, %v6025_v54  ;;  %v6261_v56 = vrot.slane %v6259_v38, 2 }
 0xbf3   : > { %6534 = vst [vmem:[#allocation1 + $0x20] ss:$4 sm:$0xff] %v6425_v14  ;;  %v6035_v5 = vrot.slane %v5985_v61, 4  ;;  %v6277_v10 = vrot.slane %v6275_v59, 2  ;;  %v6423_v14 = vadd.f32 %v6238_v15, %v6026_v29  ;;  %v6256_v45 = vrot.slane %v11159_v62, 7 }
 0xbf4   : > { %6535 = vst [vmem:[#allocation1 + $0x21] ss:$4 sm:$0xff] %v6426_v23  ;;  %v6036_v35 = vrot.slane %v5985_v61, 6  ;;  %v6270_v12 = vsel %vm11240_vm10, %v6939_v17, %v6269_v57  ;;  %v6424_v34 = vadd.f32 %v6241_v19, %v6027_v49  ;;  %v6273_v52 = vsel %vm11240_vm10, %v6271_v46, %v6272_v0 }
 0xbf5   : > { %6536 = vst [vmem:[#allocation1 + $0x22] ss:$4 sm:$0xff] %v6427_v39  ;;  %v6528_v50 = vld.sshfl [vmem:[#allocation1] sm:$0xff pattern:$0x73625140]  ;;  %v6278_v55 = vrot.slane %v11164_v8, 7  ;;  %v6433_v28 = vadd.f32 %v6270_v12, %v5985_v61  ;;  %v5983_v23 = vadd.f32 %v11272_v2, %v5940_v16  ;;  %v6276_v39 = vsel %vm11240_vm10, %v6274_v58, %v6275_v59 }
 0xbf6   : > { %6537 = vst [vmem:[#allocation1 + $0x23] ss:$4 sm:$0xff] %v6428_v53  ;;  %6596 = vxpose.xlu1.b32.start [1/13] (short) (narrow) %v6528_v50, 8  ;;  %v6434_v62 = vadd.f32 %v6273_v52, %v6034_v1  ;;  %v6291_v3 = vrot.slane %v11178_v41, 7  ;;  %v6264_v57 = vrot.slane %v6262_v22, 2  ;;  %v6435_v0 = vadd.f32 %v6276_v39, %v6035_v5  ;;  %v5989_v53 = vpop.f32.mrf.mxu0 }
 0xbf7   : > { %6530 = vst [vmem:[#allocation1] ss:$4 sm:$0xff] %v6421_v11  ;;  %v6279_v54 = vsel %vm11240_vm10, %v6277_v10, %v6278_v55  ;;  %v6294_v61 = vrot.slane %v11180_v9, 7  ;;  %v6255_v2 = vrot.slane %v6253_v36, 2  ;;  %v6258_v29 = vrot.slane %v6256_v45, 2 }
 0xbf8   : > { %6531 = vst [vmem:[#allocation1 + $0x1] ss:$4 sm:$0xff] %v6422_v26  ;;  %v6436_v59 = vadd.f32 %v6279_v54, %v6036_v35  ;;  %v6263_v15 = vsel %vm11240_vm10, %v6261_v56, %v6262_v22  ;;  %v6265_v17 = vrot.slane %v11152_v33, 7  ;;  %v5902_v49 = vadd.f32 %v11194_v24, %v5901_v4  ;;  %v5903_v6 = vpop.f32.mrf.mxu2 }
 0xbf9   : > { %6532 = vst [vmem:[#allocation1 + $0x2] ss:$4 sm:$0xff] %v6423_v14  ;;  %v6031_v19 = vrot.slane %v5983_v23, 2  ;;  %v5904_v46 = vadd.f32 %v11194_v24, %v5903_v6  ;;  %v6293_v25 = vrot.slane %v6291_v3, 2  ;;  %v6301_v9 = vrot.slane %v11209_v63, 7  ;;  %v5946_v16 = vpop.f32.mrf.mxu3 }
 0xbfa   : > { %6533 = vst [vmem:[#allocation1 + $0x3] ss:$4 sm:$0xff] %v6424_v34  ;;  %v6032_v36 = vrot.slane %v5983_v23, 4  ;;  %v6033_v11 = vrot.slane %v5983_v23, 6  ;;  %v6266_v22 = vsel %vm11240_vm10, %v6264_v57, %v6265_v17  ;;  %v6296_v33 = vrot.slane %v6294_v61, 2 }
 0xbfb   : > { %v6257_v4 = vsel %vm11240_vm10, %v6255_v2, %v6256_v45  ;;  %v6260_v1 = vsel %vm11240_vm10, %v6258_v29, %v6259_v38  ;;  %v5947_v63 = vadd.f32 %v5946_v16, %v5904_v46  ;;  %v5945_v26 = vadd.f32 %v5944_v48, %v5902_v49  ;;  %v12370_v46 = vld [vmem:[#allocation119_spill] sm:$0xff] }
 0xbfc   : > { %v6429_v58 = vadd.f32 %v6257_v4, %v5983_v23  ;;  %v6297_v56 = vrot.slane %v11182_v60, 7  ;;  %v6941_v5 = vrot.slane %v11207_v13, 9  ;;  %v6430_v10 = vadd.f32 %v6260_v1, %v6031_v19 }
 0xbfd   : > { %v11396_v47 = vld.sshfl [vmem:[#allocation1 + $0x20] sm:$0xff pattern:$0x73625140]  ;;  %v5990_v50 = vadd.f32 %v5989_v53, %v5947_v63  ;;  %v6295_v14 = vsel %vm11240_vm10, %v6293_v25, %v6294_v61  ;;  %v6303_v45 = vrot.slane %v6301_v9, 2  ;;  %v6431_v35 = vadd.f32 %v6263_v15, %v6032_v36 }
 0xbfe   : > { %6544 = vst [vmem:[#allocation1 + $0x20] ss:$4 sm:$0xff] %v6433_v28  ;;  %6597 = vxpose.xlu1.b32.cont [2/13] (short) (narrow) %v11359_v43, 8  ;;  %v6432_v12 = vadd.f32 %v6266_v22, %v6033_v11  ;;  %v6298_v43 = vsel %vm11240_vm10, %v6296_v33, %v6297_v56  ;;  %v6304_v38 = vrot.slane %v11211_v32, 7  ;;  %v5988_v13 = vadd.f32 %v11357_v27, %v5945_v26  ;;  %v12372_v22 = vld [vmem:[#allocation104_spill] sm:$0xff] }
 0xbff   : > { %6545 = vst [vmem:[#allocation1 + $0x21] ss:$4 sm:$0xff] %v6434_v62  ;;  %v6040_v48 = vrot.slane %v5990_v50, 2  ;;  %v6041_v34 = vrot.slane %v5990_v50, 4  ;;  %v6042_v60 = vrot.slane %v5990_v50, 6  ;;  %v6441_v52 = vadd.f32 %v6295_v14, %v5990_v50  ;;  %v5992_v62 = vpop.f32.mrf.mxu0 }
 0xc00   : > { %6546 = vst [vmem:[#allocation1 + $0x22] ss:$4 sm:$0xff] %v6435_v0  ;;  %v6285_v28 = vrot.slane %v11187_v42, 7  ;;  %v6288_v23 = vrot.slane %v11189_v51, 7  ;;  %v6302_v39 = vsel %vm11240_vm10, %v6941_v5, %v6301_v9  ;;  %v5906_v57 = vpop.f32.mrf.mxu2  ;;  %v6305_v32 = vsel %vm11240_vm10, %v6303_v45, %v6304_v38  ;;  %v12371_v9 = vld [vmem:[#allocation108_spill] sm:$0xff] }
 0xc01   : > { %6547 = vst [vmem:[#allocation1 + $0x23] ss:$4 sm:$0xff] %v6436_v59  ;;  %v6538_v18 = vld.sshfl [vmem:[#allocation1] sm:$0xff pattern:$0x73625140]  ;;  %v6442_v54 = vadd.f32 %v6298_v43, %v6040_v48  ;;  %v6443_v0 = vadd.f32 %v6302_v39, %v6041_v34  ;;  %v5907_v53 = vadd.f32 %v11194_v24, %v5906_v57  ;;  %v6280_v27 = vrot.slane %v6278_v55, 2  ;;  %v5949_v61 = vpop.f32.mrf.mxu3 }
 0xc02   : > { %6540 = vst [vmem:[#allocation1] ss:$4 sm:$0xff] %v6429_v58  ;;  %v6444_v42 = vadd.f32 %v6305_v32, %v6042_v60  ;;  %v6940_v2 = vrot.slane %v11185_v44, 9  ;;  %v6037_v29 = vrot.slane %v5988_v13, 2  ;;  %v12369_v59 = vld [vmem:[#allocation39_spill] sm:$0xff]  ;;  %v6287_v17 = vrot.slane %v6285_v28, 2 }
 0xc03   : > { %6541 = vst [vmem:[#allocation1 + $0x1] ss:$4 sm:$0xff] %v6430_v10  ;;  %v6281_v15 = vrot.slane %v12369_v59, 7  ;;  %v6290_v49 = vrot.slane %v6288_v23, 2  ;;  %v6038_v6 = vrot.slane %v5988_v13, 4  ;;  %v5950_v19 = vadd.f32 %v5949_v61, %v5907_v53  ;;  %v12373_v58 = vld [vmem:[#allocation105_spill] sm:$0xff] }
 0xc04   : > { %6542 = vst [vmem:[#allocation1 + $0x2] ss:$4 sm:$0xff] %v6431_v35  ;;  %v6307_v25 = vrot.slane %v12370_v46, 7  ;;  %v6039_v8 = vrot.slane %v5988_v13, 6  ;;  %v6317_v36 = vrot.slane %v12371_v9, 7  ;;  %v6286_v44 = vsel %vm11240_vm10, %v6940_v2, %v6285_v28  ;;  %v12375_v34 = vld [vmem:[#allocation32_spill] sm:$0xff] }
 0xc05   : > { %6543 = vst [vmem:[#allocation1 + $0x3] ss:$4 sm:$0xff] %v6432_v12  ;;  %v6282_v55 = vsel %vm11240_vm10, %v6280_v27, %v6281_v15  ;;  %v6310_v16 = vrot.slane %v12372_v22, 7  ;;  %v6289_v33 = vsel %vm11240_vm10, %v6287_v17, %v6288_v23  ;;  %v6292_v4 = vsel %vm11240_vm10, %v6290_v49, %v6291_v3  ;;  %v12374_v3 = vld [vmem:[#allocation128_spill] sm:$0xff]  ;;  %v12377_v32 = vld [vmem:[#allocation63_spill] sm:$0xff] }
 0xc06   : > { %6598 = vxpose.xlu1.b32.cont [3/13] (short) (narrow) %v6538_v18, 8  ;;  %v6437_v11 = vadd.f32 %v6282_v55, %v5988_v13  ;;  %v6438_v1 = vadd.f32 %v6286_v44, %v6037_v29  ;;  %v6320_v26 = vrot.slane %v12373_v58, 7  ;;  %v6439_v5 = vadd.f32 %v6289_v33, %v6038_v6  ;;  %v12376_v13 = vld [vmem:[#allocation123_spill] sm:$0xff]  ;;  %v12378_v55 = vld [vmem:[#allocation33_spill] sm:$0xff] }
 0xc07   : > { %v5993_v10 = vadd.f32 %v5992_v62, %v5950_v19  ;;  %v6309_v50 = vrot.slane %v6307_v25, 2  ;;  %v6440_v45 = vadd.f32 %v6292_v4, %v6039_v8  ;;  %v6306_v18 = vrot.slane %v6304_v38, 2  ;;  %v5994_v35 = vpop.f32.mrf.mxu0 }
 0xc08   : > { %v11432_v51 = vld.sshfl [vmem:[#allocation1 + $0x20] sm:$0xff pattern:$0x73625140]  ;;  %v5908_v63 = vpop.f32.mrf.mxu2  ;;  %v6319_v43 = vrot.slane %v6317_v36, 2  ;;  %v6323_v48 = vrot.slane %v12374_v3, 7  ;;  %v6313_v60 = vrot.slane %v12375_v34, 7 }
 0xc09   : > { %6554 = vst [vmem:[#allocation1 + $0x20] ss:$4 sm:$0xff] %v6441_v52  ;;  %v5909_v14 = vadd.f32 %v11194_v24, %v5908_v63  ;;  %v5951_v12 = vpop.f32.mrf.mxu3  ;;  %v6322_v52 = vrot.slane %v6320_v26, 2  ;;  %v6326_v28 = vrot.slane %v12376_v13, 7  ;;  %v6043_v23 = vrot.slane %v5993_v10, 2 }
 0xc0a   : > { %6555 = vst [vmem:[#allocation1 + $0x21] ss:$4 sm:$0xff] %v6442_v54  ;;  %v6311_v38 = vsel %vm11240_vm10, %v6309_v50, %v6310_v16  ;;  %v6312_v39 = vrot.slane %v6310_v16, 2  ;;  %v6044_v57 = vrot.slane %v5993_v10, 4  ;;  %v6942_v54 = vrot.slane %v12377_v32, 9 }
 0xc0b   : > { %6556 = vst [vmem:[#allocation1 + $0x22] ss:$4 sm:$0xff] %v6443_v0  ;;  %v5952_v41 = vadd.f32 %v5951_v12, %v5909_v14  ;;  %v6321_v0 = vsel %vm11240_vm10, %v6319_v43, %v6320_v26  ;;  %v6045_v53 = vrot.slane %v5993_v10, 6  ;;  %v6324_v59 = vsel %vm11240_vm10, %v6322_v52, %v6323_v48  ;;  %v12380_v14 = vld [vmem:[#allocation95_spill] sm:$0xff]  ;;  %v12381_v12 = vld [vmem:[#allocation120_spill] sm:$0xff] }
 0xc0c   : > { %6557 = vst [vmem:[#allocation1 + $0x23] ss:$4 sm:$0xff] %v6444_v42  ;;  %v6548_v56 = vld.sshfl [vmem:[#allocation1] sm:$0xff pattern:$0x73625140]  ;;  %v6325_v42 = vrot.slane %v6323_v48, 2  ;;  %v6314_v49 = vsel %vm11240_vm10, %v6312_v39, %v6313_v60  ;;  %v6446_v6 = vadd.f32 %v6311_v38, %v6043_v23 }
 0xc0d   : > { %6550 = vst [vmem:[#allocation1] ss:$4 sm:$0xff] %v6437_v11  ;;  %v5995_v62 = vadd.f32 %v5994_v35, %v5952_v41  ;;  %v6328_v15 = vrot.slane %v6326_v28, 2  ;;  %v6447_v8 = vadd.f32 %v6314_v49, %v6044_v57  ;;  %v6329_v9 = vrot.slane %v12378_v55, 7 }
 0xc0e   : > { %6551 = vst [vmem:[#allocation1 + $0x1] ss:$4 sm:$0xff] %v6438_v1  ;;  %6599 = vxpose.xlu1.b32.cont [4/13] (short) (narrow) %v11396_v47, 8  ;;  %v6308_v47 = vsel %vm11240_vm10, %v6306_v18, %v6307_v25  ;;  %v6318_v25 = vsel %vm11240_vm10, %v6942_v54, %v6317_v36  ;;  %v6333_v22 = vrot.slane %v11290_v30, 7  ;;  %v6327_v33 = vsel %vm11240_vm10, %v6325_v42, %v6326_v28 }
 0xc0f   : > { %6552 = vst [vmem:[#allocation1 + $0x2] ss:$4 sm:$0xff] %v6439_v5  ;;  %v6046_v27 = vrot.slane %v5995_v62, 2  ;;  %v6449_v61 = vadd.f32 %v6321_v0, %v5995_v62  ;;  %v6445_v2 = vadd.f32 %v6308_v47, %v5993_v10  ;;  %v6047_v29 = vrot.slane %v5995_v62, 4  ;;  %v5997_v58 = vpop.f32.mrf.mxu0  ;;  %v12379_v10 = vld [vmem:[#allocation110_spill] sm:$0xff] }
 0xc10   : > { %6553 = vst [vmem:[#allocation1 + $0x3] ss:$4 sm:$0xff] %v6440_v45  ;;  %v6048_v19 = vrot.slane %v5995_v62, 6  ;;  %v5911_v44 = vpop.f32.mrf.mxu2  ;;  %v6448_v16 = vadd.f32 %v6318_v25, %v6045_v53  ;;  %v6330_v36 = vsel %vm11240_vm10, %v6328_v15, %v6329_v9  ;;  %v6336_v26 = vrot.slane %v11292_v31, 7  ;;  %v12382_v0 = vld [vmem:[#allocation106_spill] sm:$0xff] }
 0xc11   : > { %v6450_v46 = vadd.f32 %v6324_v59, %v6046_v27  ;;  %v5954_v11 = vpop.f32.mrf.mxu3  ;;  %v5912_v4 = vadd.f32 %v11194_v24, %v5911_v44  ;;  %v6451_v63 = vadd.f32 %v6327_v33, %v6047_v29  ;;  %v6339_v50 = vrot.slane %v12379_v10, 7 }
 0xc12   : > { %v6452_v5 = vadd.f32 %v6330_v36, %v6048_v19  ;;  %v6335_v18 = vrot.slane %v6333_v22, 2  ;;  %v6338_v35 = vrot.slane %v6336_v26, 2  ;;  %v6342_v43 = vrot.slane %v12381_v12, 7  ;;  %v12383_v36 = vld [vmem:[#allocation64_spill] sm:$0xff] }
 0xc13   : > { %v11464_v17 = vld.sshfl [vmem:[#allocation1 + $0x20] sm:$0xff pattern:$0x73625140]  ;;  %v5955_v30 = vadd.f32 %v5954_v11, %v5912_v4  ;;  %v6341_v48 = vrot.slane %v6339_v50, 2  ;;  %v6349_v13 = vrot.slane %v11338_v37, 7  ;;  %v6352_v28 = vrot.slane %v11340_v21, 7 }
 0xc14   : > { %6564 = vst [vmem:[#allocation1 + $0x20] ss:$4 sm:$0xff] %v6449_v61  ;;  %v6337_v23 = vsel %vm11240_vm10, %v6335_v18, %v6336_v26  ;;  %v6340_v62 = vsel %vm11240_vm10, %v6338_v35, %v6339_v50  ;;  %v6344_v47 = vrot.slane %v6342_v43, 2  ;;  %v6345_v21 = vrot.slane %v12382_v0, 7  ;;  %v12384_v50 = vld [vmem:[#allocation112_spill] sm:$0xff] }
 0xc15   : > { %6565 = vst [vmem:[#allocation1 + $0x21] ss:$4 sm:$0xff] %v6450_v46  ;;  %v5998_v45 = vadd.f32 %v5997_v58, %v5955_v30  ;;  %v6343_v32 = vsel %vm11240_vm10, %v6341_v48, %v6342_v43  ;;  %v6944_v42 = vrot.slane %v11336_v7, 9  ;;  %v6351_v61 = vrot.slane %v6349_v13, 2 }
 0xc16   : > { %6600 = vxpose.xlu1.b32.cont [5/13] (short) (narrow) %v6548_v56, 8  ;;  %v6943_v56 = vrot.slane %v12380_v14, 9  ;;  %6566 = vst [vmem:[#allocation1 + $0x22] ss:$4 sm:$0xff] %v6451_v63  ;;  %v6346_v59 = vsel %vm11240_vm10, %v6344_v47, %v6345_v21  ;;  %v6355_v15 = vrot.slane %v11307_v40, 7  ;;  %v6358_v63 = vrot.slane %v12383_v36, 7 }
 0xc17   : > { %v11475_v1 = vld.sshfl [vmem:[#allocation1] sm:$0xff pattern:$0x73625140]  ;;  %v6049_v41 = vrot.slane %v5998_v45, 2  ;;  %v6050_v3 = vrot.slane %v5998_v45, 4  ;;  %v6051_v31 = vrot.slane %v5998_v45, 6  ;;  %v5999_v27 = vpop.f32.mrf.mxu0  ;;  %v6350_v25 = vsel %vm11240_vm10, %v6944_v42, %v6349_v13 }
 0xc18   : > { %6560 = vst [vmem:[#allocation1] ss:$4 sm:$0xff] %v6445_v2  ;;  %v6334_v34 = vsel %vm11240_vm10, %v6943_v56, %v6333_v22  ;;  %v5913_v60 = vpop.f32.mrf.mxu2  ;;  %v6354_v2 = vrot.slane %v6352_v28, 2  ;;  %v6353_v7 = vsel %vm11240_vm10, %v6351_v61, %v6352_v28  ;;  %v6357_v58 = vrot.slane %v6355_v15, 2 }
 0xc19   : > { %6561 = vst [vmem:[#allocation1 + $0x1] ss:$4 sm:$0xff] %v6446_v6  ;;  %v5956_v52 = vpop.f32.mrf.mxu3  ;;  %v6453_v38 = vadd.f32 %v6334_v34, %v5998_v45  ;;  %v5914_v39 = vadd.f32 %v11194_v24, %v5913_v60  ;;  %v6454_v57 = vadd.f32 %v6337_v23, %v6049_v41  ;;  %v6455_v54 = vadd.f32 %v6340_v62, %v6050_v3 }
 0xc1a   : > { %6562 = vst [vmem:[#allocation1 + $0x2] ss:$4 sm:$0xff] %v6447_v8  ;;  %v6456_v53 = vadd.f32 %v6343_v32, %v6051_v31  ;;  %v6356_v9 = vsel %vm11240_vm10, %v6354_v2, %v6355_v15  ;;  %v6360_v30 = vrot.slane %v6358_v63, 2  ;;  %v6359_v10 = vsel %vm11240_vm10, %v6357_v58, %v6358_v63 }
 0xc1b   : > { %6563 = vst [vmem:[#allocation1 + $0x3] ss:$4 sm:$0xff] %v6448_v16  ;;  %v5957_v37 = vadd.f32 %v5956_v52, %v5914_v39  ;;  %v6361_v14 = vrot.slane %v12384_v50, 7 }
 0xc1c   : > { %6567 = vst [vmem:[#allocation1 + $0x23] ss:$4 sm:$0xff] %v6452_v5 }
 0xc1d   : > { %v6000_v29 = vadd.f32 %v5999_v27, %v5957_v37 }
 0xc1e   : > { %6601 = vxpose.xlu1.b32.cont [6/13] (short) (narrow) %v11432_v51, 8 }
 0xc1f   : > { %v6052_v49 = vrot.slane %v6000_v29, 2  ;;  %v6053_v6 = vrot.slane %v6000_v29, 4  ;;  %v6054_v19 = vrot.slane %v6000_v29, 6  ;;  %v6457_v46 = vadd.f32 %v6346_v59, %v6000_v29 }
 0xc20   : > { %v5916_v8 = vpop.f32.mrf.mxu2 }
 0xc21   : > { %v5959_v55 = vpop.f32.mrf.mxu3  ;;  %v6458_v44 = vadd.f32 %v6350_v25, %v6052_v49  ;;  %v6459_v11 = vadd.f32 %v6353_v7, %v6053_v6  ;;  %v6460_v40 = vadd.f32 %v6356_v9, %v6054_v19  ;;  %v5917_v4 = vadd.f32 %v11194_v24, %v5916_v8 }
 0xc22   : > { %v6568_v51 = vld.sshfl [vmem:[#allocation1] sm:$0xff pattern:$0x73625140] }
 0xc23   : > { %6570 = vst [vmem:[#allocation1] ss:$4 sm:$0xff] %v6453_v38  ;;  %v6569_v22 = vld.sshfl [vmem:[#allocation1 + $0x20] sm:$0xff pattern:$0x73625140]  ;;  %v5960_v26 = vadd.f32 %v5959_v55, %v5917_v4 }
 0xc24   : > { %6571 = vst [vmem:[#allocation1 + $0x1] ss:$4 sm:$0xff] %v6454_v57 }
 0xc25   : > { %6572 = vst [vmem:[#allocation1 + $0x2] ss:$4 sm:$0xff] %v6455_v54 }
 0xc26   : > { %6573 = vst [vmem:[#allocation1 + $0x3] ss:$4 sm:$0xff] %v6456_v53  ;;  %6602 = vxpose.xlu1.b32.cont [7/13] (short) (narrow) %v11475_v1, 8 }
 0xc27   : > { %6574 = vst [vmem:[#allocation1 + $0x20] ss:$4 sm:$0xff] %v6457_v46 }
 0xc28   : > { %6575 = vst [vmem:[#allocation1 + $0x21] ss:$4 sm:$0xff] %v6458_v44  ;;  %v5918_v16 = vpop.f32.mrf.mxu2 }
 0xc29   : > { %6576 = vst [vmem:[#allocation1 + $0x22] ss:$4 sm:$0xff] %v6459_v11  ;;  %v5961_v33 = vpop.f32.mrf.mxu3 }
 0xc2a   : > { %6577 = vst [vmem:[#allocation1 + $0x23] ss:$4 sm:$0xff] %v6460_v40 }
 0xc2d   : > { %v6578_v24 = vld.sshfl [vmem:[#allocation1] sm:$0xff pattern:$0x73625140] }
 0xc2e   : > { %6603 = vxpose.xlu1.b32.cont [8/13] (short) (narrow) %v11464_v17, 8  ;;  %v6362_v17 = vsel %vm11240_vm10, %v6360_v30, %v6361_v14 }
 0xc30   : > { %v6002_v5 = vpop.f32.mrf.mxu2 }
 0xc31   : > { %v6003_v1 = vadd.f32 %v6002_v5, %v5960_v26  ;;  %v6579_v12 = vld.sshfl [vmem:[#allocation1 + $0x20] sm:$0xff pattern:$0x73625140] }
 0xc33   : > { %v6055_v56 = vrot.slane %v6003_v1, 2  ;;  %v6461_v45 = vadd.f32 %v6359_v10, %v6003_v1 }
 0xc35   : > { %v6462_v18 = vadd.f32 %v6362_v17, %v6055_v56  ;;  %6580 = vst [vmem:[#allocation1] ss:$4 sm:$0xff] %v6461_v45 }
 0xc36   : > { %6604 = vxpose.xlu1.b32.cont [9/13] (short) (narrow) %v6568_v51, 8 }
 0xc37   : > { %6581 = vst [vmem:[#allocation1 + $0x1] ss:$4 sm:$0xff] %v6462_v18 }
 0xc38   : > { %v6004_v35 = vpop.f32.mrf.mxu2 }
 0xc3e   : > { %6605 = vxpose.xlu1.b32.cont [10/13] (short) (narrow) %v6569_v22, 8  ;;  %v6582_v43 = vld.sshfl [vmem:[#allocation1] sm:$0xff pattern:$0x73625140] }
 0xc46   : > { %6606 = vxpose.xlu1.b32.cont [11/13] (short) (narrow) %v6578_v24, 8 }
 0xc4e   : > { %6607 = vxpose.xlu1.b32.cont [12/13] (short) (narrow) %v6579_v12, 8 }
 0xc56   : > { %6608 = vxpose.xlu1.b32.end [13/13] (short) (narrow) %v6582_v43, 8 }
 0xc9a   : > { %v6612_v41 = vpop.trf.xlu1 }
 0xc9b   : > { %6629 = vst.msk [vmem:[%s310_s14] sm:$0x7] %vm6628_vm12, %v6612_v41 }
 0xc9c PF: > { %s17_s26 = sadd.s32 1, %s7062_s26   ;;  %s12385_s24 = smov %s7058_s25 }
 0xc9d   : > { %p14_p5 = scmp.ge.s32.totalorder %s17_s26, 4   ;;  %s12386_s25 = smov %s12388_s27 }
 0xc9f   :  { %16 = sbr.rel (!%p14_p5) target bundleno = 2 (0x2), region = 205 }

</bundles_post_ra>
